<compile_context>
chip_gen: v7x
topology: tpu7x:2x2x1
jax: 0.10.0
libtpu: 0.0.40
codegen_flags: <defaults>
</compile_context>

<pallas_src>
import functools

import numpy as np

import jax
import jax.numpy as jnp
from jax.experimental import pallas as pl
from jax.experimental.pallas import tpu as pltpu


def _round_up(x, m):
    return (x + m - 1) // m * m


def _conv_in_relu_kernel(x_ref, w_ref, mask_ref, o_ref, *,
                         offsets, ldense, inv_n, eps):
    """Fused Conv2d (valid, on reflect-padded input) + InstanceNorm2d + ReLU.

    x_ref:    (Cin, Lin)          row-major flattened padded image (+ zero tail)
    w_ref:    (k*k, Cout_t, Cin)  per-tap weight matrices, tap t = i*k + j
    mask_ref: (1, Ldense)         1.0 where the dense flat position is a real
                                  output pixel, 0.0 on wrap-around garbage
    o_ref:    (Cout_t, Ldense)    dense (uncropped) result, lane-dense layout
    """
    mask = mask_ref[...]

    # Conv as k*k shifted matmuls on the MXU (HW on lanes, Cin contracted).
    y = None
    for t, d in enumerate(offsets):
        part = jnp.dot(w_ref[t], x_ref[:, d:d + ldense],
                       preferred_element_type=jnp.float32)
        y = part if y is None else y + part

    # InstanceNorm2d (no affine, biased variance) over valid positions only.
    mean = jnp.sum(y * mask, axis=1, keepdims=True) * inv_n
    d0 = y - mean                                   # reused for var + normalize
    var = jnp.sum(d0 * d0 * mask, axis=1, keepdims=True) * inv_n
    y = d0 * jax.lax.rsqrt(var + eps)

    # ReLU (garbage lanes are cropped by the wrapper; leaving them is fine).
    o_ref[...] = jnp.maximum(y, 0.0).astype(o_ref.dtype)


def conv_in_relu(x, weight, bias=None, *, kernel_size, stride=1, eps=1e-5,
                 cout_tile=None):
    """x: (N, Cin, H, W); weight: (Cout, Cin, k, k); bias: (Cout,) (unused).

    Conv bias is an exact mathematical no-op through InstanceNorm2d(affine=False)
    (the mean subtraction removes it), so it is not DMA'd into the kernel.
    """
    del bias
    N, Cin, H, W = x.shape
    Cout = weight.shape[0]
    k = kernel_size
    pad = k // 2
    assert weight.shape == (Cout, Cin, k, k)

    # ReflectionPad2d (cheap XLA glue, single pass over the un-inflated input).
    xp = jnp.pad(x, ((0, 0), (0, 0), (pad, pad), (pad, pad)), mode="reflect")
    Hp, Wp = H + 2 * pad, W + 2 * pad

    # Geometry of the dense flattened conv.
    Hdense = Hp - k + 1                    # rows where the window fits vertically
    Ho = (Hp - k) // stride + 1            # real output rows
    Wo = (Wp - k) // stride + 1            # real output cols
    Ldense = Hdense * Wp                   # dense flat length (incl. garbage cols)
    Lin = _round_up(Hp * Wp + k - 1, 128)  # input length so every tap slice fits

    # Row-major flatten + zero tail (tail only ever feeds garbage positions).
    x_flat = xp.reshape(N, Cin, Hp * Wp).astype(jnp.float32)
    x_flat = jnp.pad(x_flat, ((0, 0), (0, 0), (0, Lin - Hp * Wp)))

    # Per-tap weight matrices and their flat offsets (tap t = i*k + j).
    w_taps = jnp.transpose(weight, (2, 3, 0, 1)).reshape(k * k, Cout, Cin)
    w_taps = w_taps.astype(jnp.float32)
    offsets = tuple(int(i * Wp + j) for i in range(k) for j in range(k))

    # Validity mask over the dense flat positions (tiny, host-computed).
    rows = np.arange(Hdense)
    cols = np.arange(Wp)
    vr = (rows % stride == 0) & (rows <= stride * (Ho - 1))
    vc = (cols % stride == 0) & (cols <= stride * (Wo - 1))
    mask_np = (vr[:, None] & vc[None, :]).astype(np.float32).reshape(1, Ldense)
    assert int(mask_np.sum()) == Ho * Wo
    mask = jnp.asarray(mask_np)

    if cout_tile is None:
        cout_tile = Cout
    assert Cout % cout_tile == 0
    assert cout_tile == Cout or cout_tile % 8 == 0

    kernel = functools.partial(
        _conv_in_relu_kernel, offsets=offsets, ldense=Ldense,
        inv_n=1.0 / float(Ho * Wo), eps=float(eps))

    flops = 2 * N * Cout * Cin * k * k * Ldense
    bytes_accessed = 4 * (int(x_flat.size) + int(w_taps.size) + int(mask.size)
                          + N * Cout * Ldense)

    y_dense = pl.pallas_call(
        kernel,
        out_shape=jax.ShapeDtypeStruct((N, Cout, Ldense), jnp.float32),
        grid_spec=pltpu.PrefetchScalarGridSpec(
            num_scalar_prefetch=0,
            grid=(N, Cout // cout_tile),
            in_specs=[
                # Per-batch flattened activation (leading dim squeezed).
                pl.BlockSpec((None, Cin, Lin), lambda n, c: (n, 0, 0)),
                # Per-tap weights: constant block index -> stays resident.
                pl.BlockSpec((k * k, cout_tile, Cin), lambda n, c: (0, c, 0)),
                # Validity mask: constant block index -> stays resident.
                pl.BlockSpec((1, Ldense), lambda n, c: (0, 0)),
            ],
            out_specs=pl.BlockSpec((None, cout_tile, Ldense),
                                   lambda n, c: (n, c, 0)),
        ),
        compiler_params=pltpu.CompilerParams(
            dimension_semantics=("parallel", "parallel"),
            vmem_limit_bytes=64 * 1024 * 1024),
        cost_estimate=pl.CostEstimate(
            flops=flops, transcendentals=N * Cout,
            bytes_accessed=bytes_accessed),
    )(x_flat, w_taps, mask)

    # Lane-dense kernel output -> NCHW: reshape + strided crop, no transpose.
    out = y_dense.reshape(N, Cout, Hdense, Wp)[:, :, ::stride, ::stride]
    out = out[:, :, :Ho, :Wo]
    return out


def _reference(x, weight, bias, *, kernel_size, stride=1, eps=1e-5):
    """Pure-JAX reference (includes the conv bias -> proves it cancels)."""
    pad = kernel_size // 2
    xp = jnp.pad(x, ((0, 0), (0, 0), (pad, pad), (pad, pad)), mode="reflect")
    y = jax.lax.conv_general_dilated(
        xp, weight, window_strides=(stride, stride), padding="VALID",
        dimension_numbers=("NCHW", "OIHW", "NCHW"))
    y = y + bias.reshape(1, -1, 1, 1)
    mean = jnp.mean(y, axis=(2, 3), keepdims=True)
    var = jnp.mean((y - mean) ** 2, axis=(2, 3), keepdims=True)
    y = (y - mean) * jax.lax.rsqrt(var + eps)
    return jnp.maximum(y, 0.0)


if __name__ == "__main__":
    key = jax.random.PRNGKey(0)

    # Scaled-down versions of Ghiasi's ConvInRelu layers:
    #   (name, N, Cin, Cout, k, stride, H, W)
    configs = [
        ("ConvInRelu(3,32,9,s=1)", 2, 3, 32, 9, 1, 16, 16),
        ("ConvInRelu(8,16,3,s=2)", 2, 8, 16, 3, 2, 16, 16),
    ]

    for name, N, Cin, Cout, k, stride, H, W in configs:
        key, kx, kw, kb = jax.random.split(key, 4)
        x = jax.random.normal(kx, (N, Cin, H, W), dtype=jnp.float32)
        weight = jax.random.normal(kw, (Cout, Cin, k, k), dtype=jnp.float32) * 0.1
        bias = jax.random.normal(kb, (Cout,), dtype=jnp.float32) * 0.1

        out = jax.block_until_ready(
            conv_in_relu(x, weight, bias, kernel_size=k, stride=stride))
        ref = jax.block_until_ready(
            _reference(x, weight, bias, kernel_size=k, stride=stride))

        assert out.shape == ref.shape, (name, out.shape, ref.shape)
        err = float(jnp.max(jnp.abs(out - ref)))
        assert err < 2e-3, (name, err)

    print("KERNEL_OK")
</pallas_src>

<mosaic_0001>
module attributes {stable_mosaic.version = 11 : i64} {
  func.func @_conv_in_relu_kernel(%arg0: i32, %arg1: i32, %arg2: memref<1x3x640xf32, #tpu.memory_space<vmem>>, %arg3: memref<81x32x3xf32, #tpu.memory_space<vmem>>, %arg4: memref<1x384xf32, #tpu.memory_space<vmem>>, %arg5: memref<1x32x384xf32, #tpu.memory_space<vmem>>) attributes {dimension_semantics = [#tpu.dimension_semantics<parallel>, #tpu.dimension_semantics<parallel>], iteration_bounds = array<i64: 2, 1>, scalar_prefetch = 0 : i64, scratch_operands = 0 : i64, tpu.core_type = #tpu.core_type<tc>, window_params = [{transform_indices = @transform_0, window_bounds = array<i64: 1, 3, 640>}, {transform_indices = @transform_1, window_bounds = array<i64: 81, 32, 3>}, {pipeline_mode = #tpu.pipeline_mode<synchronous>, transform_indices = @transform_2, window_bounds = array<i64: 1, 384>}, {transform_indices = @transform_3, window_bounds = array<i64: 1, 32, 384>}]} {
    %c0 = arith.constant 0 : index
    %c0_0 = arith.constant 0 : index
    %0 = vector.load %arg4[%c0, %c0_0] : memref<1x384xf32, #tpu.memory_space<vmem>>, vector<1x384xf32>
    %c0_1 = arith.constant 0 : index
    %c0_2 = arith.constant 0 : index
    %c0_3 = arith.constant 0 : index
    %1 = vector.load %arg3[%c0_1, %c0_2, %c0_3] : memref<81x32x3xf32, #tpu.memory_space<vmem>>, vector<1x32x3xf32>
    %2 = vector.shape_cast %1 : vector<1x32x3xf32> to vector<32x3xf32>
    %c0_4 = arith.constant 0 : index
    %c0_5 = arith.constant 0 : index
    %c0_6 = arith.constant 0 : index
    %3 = vector.load %arg2[%c0_4, %c0_5, %c0_6] : memref<1x3x640xf32, #tpu.memory_space<vmem>>, vector<1x3x384xf32>
    %4 = vector.shape_cast %3 : vector<1x3x384xf32> to vector<3x384xf32>
    %cst = arith.constant dense<0.000000e+00> : vector<32x384xf32>
    %5 = tpu.matmul %2, %4, %cst {dimension_numbers = #tpu.dot_dimension_numbers<[1], [0], [0], [1], [0, 0, 1, 1], [], []>} : vector<32x3xf32>, vector<3x384xf32>, vector<32x384xf32> -> vector<32x384xf32>
    %c1 = arith.constant 1 : index
    %c0_7 = arith.constant 0 : index
    %c0_8 = arith.constant 0 : index
    %6 = vector.load %arg3[%c1, %c0_7, %c0_8] : memref<81x32x3xf32, #tpu.memory_space<vmem>>, vector<1x32x3xf32>
    %7 = vector.shape_cast %6 : vector<1x32x3xf32> to vector<32x3xf32>
    %c0_9 = arith.constant 0 : index
    %c0_10 = arith.constant 0 : index
    %c1_11 = arith.constant 1 : index
    %8 = vector.load %arg2[%c0_9, %c0_10, %c1_11] : memref<1x3x640xf32, #tpu.memory_space<vmem>>, vector<1x3x384xf32>
    %9 = vector.shape_cast %8 : vector<1x3x384xf32> to vector<3x384xf32>
    %cst_12 = arith.constant dense<0.000000e+00> : vector<32x384xf32>
    %10 = tpu.matmul %7, %9, %cst_12 {dimension_numbers = #tpu.dot_dimension_numbers<[1], [0], [0], [1], [0, 0, 1, 1], [], []>} : vector<32x3xf32>, vector<3x384xf32>, vector<32x384xf32> -> vector<32x384xf32>
    %11 = arith.addf %5, %10 : vector<32x384xf32>
    %c2 = arith.constant 2 : index
    %c0_13 = arith.constant 0 : index
    %c0_14 = arith.constant 0 : index
    %12 = vector.load %arg3[%c2, %c0_13, %c0_14] : memref<81x32x3xf32, #tpu.memory_space<vmem>>, vector<1x32x3xf32>
    %13 = vector.shape_cast %12 : vector<1x32x3xf32> to vector<32x3xf32>
    %c0_15 = arith.constant 0 : index
    %c0_16 = arith.constant 0 : index
    %c2_17 = arith.constant 2 : index
    %14 = vector.load %arg2[%c0_15, %c0_16, %c2_17] : memref<1x3x640xf32, #tpu.memory_space<vmem>>, vector<1x3x384xf32>
    %15 = vector.shape_cast %14 : vector<1x3x384xf32> to vector<3x384xf32>
    %cst_18 = arith.constant dense<0.000000e+00> : vector<32x384xf32>
    %16 = tpu.matmul %13, %15, %cst_18 {dimension_numbers = #tpu.dot_dimension_numbers<[1], [0], [0], [1], [0, 0, 1, 1], [], []>} : vector<32x3xf32>, vector<3x384xf32>, vector<32x384xf32> -> vector<32x384xf32>
    %17 = arith.addf %11, %16 : vector<32x384xf32>
    %c3 = arith.constant 3 : index
    %c0_19 = arith.constant 0 : index
    %c0_20 = arith.constant 0 : index
    %18 = vector.load %arg3[%c3, %c0_19, %c0_20] : memref<81x32x3xf32, #tpu.memory_space<vmem>>, vector<1x32x3xf32>
    %19 = vector.shape_cast %18 : vector<1x32x3xf32> to vector<32x3xf32>
    %c0_21 = arith.constant 0 : index
    %c0_22 = arith.constant 0 : index
    %c3_23 = arith.constant 3 : index
    %20 = vector.load %arg2[%c0_21, %c0_22, %c3_23] : memref<1x3x640xf32, #tpu.memory_space<vmem>>, vector<1x3x384xf32>
    %21 = vector.shape_cast %20 : vector<1x3x384xf32> to vector<3x384xf32>
    %cst_24 = arith.constant dense<0.000000e+00> : vector<32x384xf32>
    %22 = tpu.matmul %19, %21, %cst_24 {dimension_numbers = #tpu.dot_dimension_numbers<[1], [0], [0], [1], [0, 0, 1, 1], [], []>} : vector<32x3xf32>, vector<3x384xf32>, vector<32x384xf32> -> vector<32x384xf32>
    %23 = arith.addf %17, %22 : vector<32x384xf32>
    %c4 = arith.constant 4 : index
    %c0_25 = arith.constant 0 : index
    %c0_26 = arith.constant 0 : index
    %24 = vector.load %arg3[%c4, %c0_25, %c0_26] : memref<81x32x3xf32, #tpu.memory_space<vmem>>, vector<1x32x3xf32>
    %25 = vector.shape_cast %24 : vector<1x32x3xf32> to vector<32x3xf32>
    %c0_27 = arith.constant 0 : index
    %c0_28 = arith.constant 0 : index
    %c4_29 = arith.constant 4 : index
    %26 = vector.load %arg2[%c0_27, %c0_28, %c4_29] : memref<1x3x640xf32, #tpu.memory_space<vmem>>, vector<1x3x384xf32>
    %27 = vector.shape_cast %26 : vector<1x3x384xf32> to vector<3x384xf32>
    %cst_30 = arith.constant dense<0.000000e+00> : vector<32x384xf32>
    %28 = tpu.matmul %25, %27, %cst_30 {dimension_numbers = #tpu.dot_dimension_numbers<[1], [0], [0], [1], [0, 0, 1, 1], [], []>} : vector<32x3xf32>, vector<3x384xf32>, vector<32x384xf32> -> vector<32x384xf32>
    %29 = arith.addf %23, %28 : vector<32x384xf32>
    %c5 = arith.constant 5 : index
    %c0_31 = arith.constant 0 : index
    %c0_32 = arith.constant 0 : index
    %30 = vector.load %arg3[%c5, %c0_31, %c0_32] : memref<81x32x3xf32, #tpu.memory_space<vmem>>, vector<1x32x3xf32>
    %31 = vector.shape_cast %30 : vector<1x32x3xf32> to vector<32x3xf32>
    %c0_33 = arith.constant 0 : index
    %c0_34 = arith.constant 0 : index
    %c5_35 = arith.constant 5 : index
    %32 = vector.load %arg2[%c0_33, %c0_34, %c5_35] : memref<1x3x640xf32, #tpu.memory_space<vmem>>, vector<1x3x384xf32>
    %33 = vector.shape_cast %32 : vector<1x3x384xf32> to vector<3x384xf32>
    %cst_36 = arith.constant dense<0.000000e+00> : vector<32x384xf32>
    %34 = tpu.matmul %31, %33, %cst_36 {dimension_numbers = #tpu.dot_dimension_numbers<[1], [0], [0], [1], [0, 0, 1, 1], [], []>} : vector<32x3xf32>, vector<3x384xf32>, vector<32x384xf32> -> vector<32x384xf32>
    %35 = arith.addf %29, %34 : vector<32x384xf32>
    %c6 = arith.constant 6 : index
    %c0_37 = arith.constant 0 : index
    %c0_38 = arith.constant 0 : index
    %36 = vector.load %arg3[%c6, %c0_37, %c0_38] : memref<81x32x3xf32, #tpu.memory_space<vmem>>, vector<1x32x3xf32>
    %37 = vector.shape_cast %36 : vector<1x32x3xf32> to vector<32x3xf32>
    %c0_39 = arith.constant 0 : index
    %c0_40 = arith.constant 0 : index
    %c6_41 = arith.constant 6 : index
    %38 = vector.load %arg2[%c0_39, %c0_40, %c6_41] : memref<1x3x640xf32, #tpu.memory_space<vmem>>, vector<1x3x384xf32>
    %39 = vector.shape_cast %38 : vector<1x3x384xf32> to vector<3x384xf32>
    %cst_42 = arith.constant dense<0.000000e+00> : vector<32x384xf32>
    %40 = tpu.matmul %37, %39, %cst_42 {dimension_numbers = #tpu.dot_dimension_numbers<[1], [0], [0], [1], [0, 0, 1, 1], [], []>} : vector<32x3xf32>, vector<3x384xf32>, vector<32x384xf32> -> vector<32x384xf32>
    %41 = arith.addf %35, %40 : vector<32x384xf32>
    %c7 = arith.constant 7 : index
    %c0_43 = arith.constant 0 : index
    %c0_44 = arith.constant 0 : index
    %42 = vector.load %arg3[%c7, %c0_43, %c0_44] : memref<81x32x3xf32, #tpu.memory_space<vmem>>, vector<1x32x3xf32>
    %43 = vector.shape_cast %42 : vector<1x32x3xf32> to vector<32x3xf32>
    %c0_45 = arith.constant 0 : index
    %c0_46 = arith.constant 0 : index
    %c7_47 = arith.constant 7 : index
    %44 = vector.load %arg2[%c0_45, %c0_46, %c7_47] : memref<1x3x640xf32, #tpu.memory_space<vmem>>, vector<1x3x384xf32>
    %45 = vector.shape_cast %44 : vector<1x3x384xf32> to vector<3x384xf32>
    %cst_48 = arith.constant dense<0.000000e+00> : vector<32x384xf32>
    %46 = tpu.matmul %43, %45, %cst_48 {dimension_numbers = #tpu.dot_dimension_numbers<[1], [0], [0], [1], [0, 0, 1, 1], [], []>} : vector<32x3xf32>, vector<3x384xf32>, vector<32x384xf32> -> vector<32x384xf32>
    %47 = arith.addf %41, %46 : vector<32x384xf32>
    %c8 = arith.constant 8 : index
    %c0_49 = arith.constant 0 : index
    %c0_50 = arith.constant 0 : index
    %48 = vector.load %arg3[%c8, %c0_49, %c0_50] : memref<81x32x3xf32, #tpu.memory_space<vmem>>, vector<1x32x3xf32>
    %49 = vector.shape_cast %48 : vector<1x32x3xf32> to vector<32x3xf32>
    %c0_51 = arith.constant 0 : index
    %c0_52 = arith.constant 0 : index
    %c8_53 = arith.constant 8 : index
    %50 = vector.load %arg2[%c0_51, %c0_52, %c8_53] : memref<1x3x640xf32, #tpu.memory_space<vmem>>, vector<1x3x384xf32>
    %51 = vector.shape_cast %50 : vector<1x3x384xf32> to vector<3x384xf32>
    %cst_54 = arith.constant dense<0.000000e+00> : vector<32x384xf32>
    %52 = tpu.matmul %49, %51, %cst_54 {dimension_numbers = #tpu.dot_dimension_numbers<[1], [0], [0], [1], [0, 0, 1, 1], [], []>} : vector<32x3xf32>, vector<3x384xf32>, vector<32x384xf32> -> vector<32x384xf32>
    %53 = arith.addf %47, %52 : vector<32x384xf32>
    %c9 = arith.constant 9 : index
    %c0_55 = arith.constant 0 : index
    %c0_56 = arith.constant 0 : index
    %54 = vector.load %arg3[%c9, %c0_55, %c0_56] : memref<81x32x3xf32, #tpu.memory_space<vmem>>, vector<1x32x3xf32>
    %55 = vector.shape_cast %54 : vector<1x32x3xf32> to vector<32x3xf32>
    %c0_57 = arith.constant 0 : index
    %c0_58 = arith.constant 0 : index
    %c24 = arith.constant 24 : index
    %56 = vector.load %arg2[%c0_57, %c0_58, %c24] : memref<1x3x640xf32, #tpu.memory_space<vmem>>, vector<1x3x384xf32>
    %57 = vector.shape_cast %56 : vector<1x3x384xf32> to vector<3x384xf32>
    %cst_59 = arith.constant dense<0.000000e+00> : vector<32x384xf32>
    %58 = tpu.matmul %55, %57, %cst_59 {dimension_numbers = #tpu.dot_dimension_numbers<[1], [0], [0], [1], [0, 0, 1, 1], [], []>} : vector<32x3xf32>, vector<3x384xf32>, vector<32x384xf32> -> vector<32x384xf32>
    %59 = arith.addf %53, %58 : vector<32x384xf32>
    %c10 = arith.constant 10 : index
    %c0_60 = arith.constant 0 : index
    %c0_61 = arith.constant 0 : index
    %60 = vector.load %arg3[%c10, %c0_60, %c0_61] : memref<81x32x3xf32, #tpu.memory_space<vmem>>, vector<1x32x3xf32>
    %61 = vector.shape_cast %60 : vector<1x32x3xf32> to vector<32x3xf32>
    %c0_62 = arith.constant 0 : index
    %c0_63 = arith.constant 0 : index
    %c25 = arith.constant 25 : index
    %62 = vector.load %arg2[%c0_62, %c0_63, %c25] : memref<1x3x640xf32, #tpu.memory_space<vmem>>, vector<1x3x384xf32>
    %63 = vector.shape_cast %62 : vector<1x3x384xf32> to vector<3x384xf32>
    %cst_64 = arith.constant dense<0.000000e+00> : vector<32x384xf32>
    %64 = tpu.matmul %61, %63, %cst_64 {dimension_numbers = #tpu.dot_dimension_numbers<[1], [0], [0], [1], [0, 0, 1, 1], [], []>} : vector<32x3xf32>, vector<3x384xf32>, vector<32x384xf32> -> vector<32x384xf32>
    %65 = arith.addf %59, %64 : vector<32x384xf32>
    %c11 = arith.constant 11 : index
    %c0_65 = arith.constant 0 : index
    %c0_66 = arith.constant 0 : index
    %66 = vector.load %arg3[%c11, %c0_65, %c0_66] : memref<81x32x3xf32, #tpu.memory_space<vmem>>, vector<1x32x3xf32>
    %67 = vector.shape_cast %66 : vector<1x32x3xf32> to vector<32x3xf32>
    %c0_67 = arith.constant 0 : index
    %c0_68 = arith.constant 0 : index
    %c26 = arith.constant 26 : index
    %68 = vector.load %arg2[%c0_67, %c0_68, %c26] : memref<1x3x640xf32, #tpu.memory_space<vmem>>, vector<1x3x384xf32>
    %69 = vector.shape_cast %68 : vector<1x3x384xf32> to vector<3x384xf32>
    %cst_69 = arith.constant dense<0.000000e+00> : vector<32x384xf32>
    %70 = tpu.matmul %67, %69, %cst_69 {dimension_numbers = #tpu.dot_dimension_numbers<[1], [0], [0], [1], [0, 0, 1, 1], [], []>} : vector<32x3xf32>, vector<3x384xf32>, vector<32x384xf32> -> vector<32x384xf32>
    %71 = arith.addf %65, %70 : vector<32x384xf32>
    %c12 = arith.constant 12 : index
    %c0_70 = arith.constant 0 : index
    %c0_71 = arith.constant 0 : index
    %72 = vector.load %arg3[%c12, %c0_70, %c0_71] : memref<81x32x3xf32, #tpu.memory_space<vmem>>, vector<1x32x3xf32>
    %73 = vector.shape_cast %72 : vector<1x32x3xf32> to vector<32x3xf32>
    %c0_72 = arith.constant 0 : index
    %c0_73 = arith.constant 0 : index
    %c27 = arith.constant 27 : index
    %74 = vector.load %arg2[%c0_72, %c0_73, %c27] : memref<1x3x640xf32, #tpu.memory_space<vmem>>, vector<1x3x384xf32>
    %75 = vector.shape_cast %74 : vector<1x3x384xf32> to vector<3x384xf32>
    %cst_74 = arith.constant dense<0.000000e+00> : vector<32x384xf32>
    %76 = tpu.matmul %73, %75, %cst_74 {dimension_numbers = #tpu.dot_dimension_numbers<[1], [0], [0], [1], [0, 0, 1, 1], [], []>} : vector<32x3xf32>, vector<3x384xf32>, vector<32x384xf32> -> vector<32x384xf32>
    %77 = arith.addf %71, %76 : vector<32x384xf32>
    %c13 = arith.constant 13 : index
    %c0_75 = arith.constant 0 : index
    %c0_76 = arith.constant 0 : index
    %78 = vector.load %arg3[%c13, %c0_75, %c0_76] : memref<81x32x3xf32, #tpu.memory_space<vmem>>, vector<1x32x3xf32>
    %79 = vector.shape_cast %78 : vector<1x32x3xf32> to vector<32x3xf32>
    %c0_77 = arith.constant 0 : index
    %c0_78 = arith.constant 0 : index
    %c28 = arith.constant 28 : index
    %80 = vector.load %arg2[%c0_77, %c0_78, %c28] : memref<1x3x640xf32, #tpu.memory_space<vmem>>, vector<1x3x384xf32>
    %81 = vector.shape_cast %80 : vector<1x3x384xf32> to vector<3x384xf32>
    %cst_79 = arith.constant dense<0.000000e+00> : vector<32x384xf32>
    %82 = tpu.matmul %79, %81, %cst_79 {dimension_numbers = #tpu.dot_dimension_numbers<[1], [0], [0], [1], [0, 0, 1, 1], [], []>} : vector<32x3xf32>, vector<3x384xf32>, vector<32x384xf32> -> vector<32x384xf32>
    %83 = arith.addf %77, %82 : vector<32x384xf32>
    %c14 = arith.constant 14 : index
    %c0_80 = arith.constant 0 : index
    %c0_81 = arith.constant 0 : index
    %84 = vector.load %arg3[%c14, %c0_80, %c0_81] : memref<81x32x3xf32, #tpu.memory_space<vmem>>, vector<1x32x3xf32>
    %85 = vector.shape_cast %84 : vector<1x32x3xf32> to vector<32x3xf32>
    %c0_82 = arith.constant 0 : index
    %c0_83 = arith.constant 0 : index
    %c29 = arith.constant 29 : index
    %86 = vector.load %arg2[%c0_82, %c0_83, %c29] : memref<1x3x640xf32, #tpu.memory_space<vmem>>, vector<1x3x384xf32>
    %87 = vector.shape_cast %86 : vector<1x3x384xf32> to vector<3x384xf32>
    %cst_84 = arith.constant dense<0.000000e+00> : vector<32x384xf32>
    %88 = tpu.matmul %85, %87, %cst_84 {dimension_numbers = #tpu.dot_dimension_numbers<[1], [0], [0], [1], [0, 0, 1, 1], [], []>} : vector<32x3xf32>, vector<3x384xf32>, vector<32x384xf32> -> vector<32x384xf32>
    %89 = arith.addf %83, %88 : vector<32x384xf32>
    %c15 = arith.constant 15 : index
    %c0_85 = arith.constant 0 : index
    %c0_86 = arith.constant 0 : index
    %90 = vector.load %arg3[%c15, %c0_85, %c0_86] : memref<81x32x3xf32, #tpu.memory_space<vmem>>, vector<1x32x3xf32>
    %91 = vector.shape_cast %90 : vector<1x32x3xf32> to vector<32x3xf32>
    %c0_87 = arith.constant 0 : index
    %c0_88 = arith.constant 0 : index
    %c30 = arith.constant 30 : index
    %92 = vector.load %arg2[%c0_87, %c0_88, %c30] : memref<1x3x640xf32, #tpu.memory_space<vmem>>, vector<1x3x384xf32>
    %93 = vector.shape_cast %92 : vector<1x3x384xf32> to vector<3x384xf32>
    %cst_89 = arith.constant dense<0.000000e+00> : vector<32x384xf32>
    %94 = tpu.matmul %91, %93, %cst_89 {dimension_numbers = #tpu.dot_dimension_numbers<[1], [0], [0], [1], [0, 0, 1, 1], [], []>} : vector<32x3xf32>, vector<3x384xf32>, vector<32x384xf32> -> vector<32x384xf32>
    %95 = arith.addf %89, %94 : vector<32x384xf32>
    %c16 = arith.constant 16 : index
    %c0_90 = arith.constant 0 : index
    %c0_91 = arith.constant 0 : index
    %96 = vector.load %arg3[%c16, %c0_90, %c0_91] : memref<81x32x3xf32, #tpu.memory_space<vmem>>, vector<1x32x3xf32>
    %97 = vector.shape_cast %96 : vector<1x32x3xf32> to vector<32x3xf32>
    %c0_92 = arith.constant 0 : index
    %c0_93 = arith.constant 0 : index
    %c31 = arith.constant 31 : index
    %98 = vector.load %arg2[%c0_92, %c0_93, %c31] : memref<1x3x640xf32, #tpu.memory_space<vmem>>, vector<1x3x384xf32>
    %99 = vector.shape_cast %98 : vector<1x3x384xf32> to vector<3x384xf32>
    %cst_94 = arith.constant dense<0.000000e+00> : vector<32x384xf32>
    %100 = tpu.matmul %97, %99, %cst_94 {dimension_numbers = #tpu.dot_dimension_numbers<[1], [0], [0], [1], [0, 0, 1, 1], [], []>} : vector<32x3xf32>, vector<3x384xf32>, vector<32x384xf32> -> vector<32x384xf32>
    %101 = arith.addf %95, %100 : vector<32x384xf32>
    %c17 = arith.constant 17 : index
    %c0_95 = arith.constant 0 : index
    %c0_96 = arith.constant 0 : index
    %102 = vector.load %arg3[%c17, %c0_95, %c0_96] : memref<81x32x3xf32, #tpu.memory_space<vmem>>, vector<1x32x3xf32>
    %103 = vector.shape_cast %102 : vector<1x32x3xf32> to vector<32x3xf32>
    %c0_97 = arith.constant 0 : index
    %c0_98 = arith.constant 0 : index
    %c32 = arith.constant 32 : index
    %104 = vector.load %arg2[%c0_97, %c0_98, %c32] : memref<1x3x640xf32, #tpu.memory_space<vmem>>, vector<1x3x384xf32>
    %105 = vector.shape_cast %104 : vector<1x3x384xf32> to vector<3x384xf32>
    %cst_99 = arith.constant dense<0.000000e+00> : vector<32x384xf32>
    %106 = tpu.matmul %103, %105, %cst_99 {dimension_numbers = #tpu.dot_dimension_numbers<[1], [0], [0], [1], [0, 0, 1, 1], [], []>} : vector<32x3xf32>, vector<3x384xf32>, vector<32x384xf32> -> vector<32x384xf32>
    %107 = arith.addf %101, %106 : vector<32x384xf32>
    %c18 = arith.constant 18 : index
    %c0_100 = arith.constant 0 : index
    %c0_101 = arith.constant 0 : index
    %108 = vector.load %arg3[%c18, %c0_100, %c0_101] : memref<81x32x3xf32, #tpu.memory_space<vmem>>, vector<1x32x3xf32>
    %109 = vector.shape_cast %108 : vector<1x32x3xf32> to vector<32x3xf32>
    %c0_102 = arith.constant 0 : index
    %c0_103 = arith.constant 0 : index
    %c48 = arith.constant 48 : index
    %110 = vector.load %arg2[%c0_102, %c0_103, %c48] : memref<1x3x640xf32, #tpu.memory_space<vmem>>, vector<1x3x384xf32>
    %111 = vector.shape_cast %110 : vector<1x3x384xf32> to vector<3x384xf32>
    %cst_104 = arith.constant dense<0.000000e+00> : vector<32x384xf32>
    %112 = tpu.matmul %109, %111, %cst_104 {dimension_numbers = #tpu.dot_dimension_numbers<[1], [0], [0], [1], [0, 0, 1, 1], [], []>} : vector<32x3xf32>, vector<3x384xf32>, vector<32x384xf32> -> vector<32x384xf32>
    %113 = arith.addf %107, %112 : vector<32x384xf32>
    %c19 = arith.constant 19 : index
    %c0_105 = arith.constant 0 : index
    %c0_106 = arith.constant 0 : index
    %114 = vector.load %arg3[%c19, %c0_105, %c0_106] : memref<81x32x3xf32, #tpu.memory_space<vmem>>, vector<1x32x3xf32>
    %115 = vector.shape_cast %114 : vector<1x32x3xf32> to vector<32x3xf32>
    %c0_107 = arith.constant 0 : index
    %c0_108 = arith.constant 0 : index
    %c49 = arith.constant 49 : index
    %116 = vector.load %arg2[%c0_107, %c0_108, %c49] : memref<1x3x640xf32, #tpu.memory_space<vmem>>, vector<1x3x384xf32>
    %117 = vector.shape_cast %116 : vector<1x3x384xf32> to vector<3x384xf32>
    %cst_109 = arith.constant dense<0.000000e+00> : vector<32x384xf32>
    %118 = tpu.matmul %115, %117, %cst_109 {dimension_numbers = #tpu.dot_dimension_numbers<[1], [0], [0], [1], [0, 0, 1, 1], [], []>} : vector<32x3xf32>, vector<3x384xf32>, vector<32x384xf32> -> vector<32x384xf32>
    %119 = arith.addf %113, %118 : vector<32x384xf32>
    %c20 = arith.constant 20 : index
    %c0_110 = arith.constant 0 : index
    %c0_111 = arith.constant 0 : index
    %120 = vector.load %arg3[%c20, %c0_110, %c0_111] : memref<81x32x3xf32, #tpu.memory_space<vmem>>, vector<1x32x3xf32>
    %121 = vector.shape_cast %120 : vector<1x32x3xf32> to vector<32x3xf32>
    %c0_112 = arith.constant 0 : index
    %c0_113 = arith.constant 0 : index
    %c50 = arith.constant 50 : index
    %122 = vector.load %arg2[%c0_112, %c0_113, %c50] : memref<1x3x640xf32, #tpu.memory_space<vmem>>, vector<1x3x384xf32>
    %123 = vector.shape_cast %122 : vector<1x3x384xf32> to vector<3x384xf32>
    %cst_114 = arith.constant dense<0.000000e+00> : vector<32x384xf32>
    %124 = tpu.matmul %121, %123, %cst_114 {dimension_numbers = #tpu.dot_dimension_numbers<[1], [0], [0], [1], [0, 0, 1, 1], [], []>} : vector<32x3xf32>, vector<3x384xf32>, vector<32x384xf32> -> vector<32x384xf32>
    %125 = arith.addf %119, %124 : vector<32x384xf32>
    %c21 = arith.constant 21 : index
    %c0_115 = arith.constant 0 : index
    %c0_116 = arith.constant 0 : index
    %126 = vector.load %arg3[%c21, %c0_115, %c0_116] : memref<81x32x3xf32, #tpu.memory_space<vmem>>, vector<1x32x3xf32>
    %127 = vector.shape_cast %126 : vector<1x32x3xf32> to vector<32x3xf32>
    %c0_117 = arith.constant 0 : index
    %c0_118 = arith.constant 0 : index
    %c51 = arith.constant 51 : index
    %128 = vector.load %arg2[%c0_117, %c0_118, %c51] : memref<1x3x640xf32, #tpu.memory_space<vmem>>, vector<1x3x384xf32>
    %129 = vector.shape_cast %128 : vector<1x3x384xf32> to vector<3x384xf32>
    %cst_119 = arith.constant dense<0.000000e+00> : vector<32x384xf32>
    %130 = tpu.matmul %127, %129, %cst_119 {dimension_numbers = #tpu.dot_dimension_numbers<[1], [0], [0], [1], [0, 0, 1, 1], [], []>} : vector<32x3xf32>, vector<3x384xf32>, vector<32x384xf32> -> vector<32x384xf32>
    %131 = arith.addf %125, %130 : vector<32x384xf32>
    %c22 = arith.constant 22 : index
    %c0_120 = arith.constant 0 : index
    %c0_121 = arith.constant 0 : index
    %132 = vector.load %arg3[%c22, %c0_120, %c0_121] : memref<81x32x3xf32, #tpu.memory_space<vmem>>, vector<1x32x3xf32>
    %133 = vector.shape_cast %132 : vector<1x32x3xf32> to vector<32x3xf32>
    %c0_122 = arith.constant 0 : index
    %c0_123 = arith.constant 0 : index
    %c52 = arith.constant 52 : index
    %134 = vector.load %arg2[%c0_122, %c0_123, %c52] : memref<1x3x640xf32, #tpu.memory_space<vmem>>, vector<1x3x384xf32>
    %135 = vector.shape_cast %134 : vector<1x3x384xf32> to vector<3x384xf32>
    %cst_124 = arith.constant dense<0.000000e+00> : vector<32x384xf32>
    %136 = tpu.matmul %133, %135, %cst_124 {dimension_numbers = #tpu.dot_dimension_numbers<[1], [0], [0], [1], [0, 0, 1, 1], [], []>} : vector<32x3xf32>, vector<3x384xf32>, vector<32x384xf32> -> vector<32x384xf32>
    %137 = arith.addf %131, %136 : vector<32x384xf32>
    %c23 = arith.constant 23 : index
    %c0_125 = arith.constant 0 : index
    %c0_126 = arith.constant 0 : index
    %138 = vector.load %arg3[%c23, %c0_125, %c0_126] : memref<81x32x3xf32, #tpu.memory_space<vmem>>, vector<1x32x3xf32>
    %139 = vector.shape_cast %138 : vector<1x32x3xf32> to vector<32x3xf32>
    %c0_127 = arith.constant 0 : index
    %c0_128 = arith.constant 0 : index
    %c53 = arith.constant 53 : index
    %140 = vector.load %arg2[%c0_127, %c0_128, %c53] : memref<1x3x640xf32, #tpu.memory_space<vmem>>, vector<1x3x384xf32>
    %141 = vector.shape_cast %140 : vector<1x3x384xf32> to vector<3x384xf32>
    %cst_129 = arith.constant dense<0.000000e+00> : vector<32x384xf32>
    %142 = tpu.matmul %139, %141, %cst_129 {dimension_numbers = #tpu.dot_dimension_numbers<[1], [0], [0], [1], [0, 0, 1, 1], [], []>} : vector<32x3xf32>, vector<3x384xf32>, vector<32x384xf32> -> vector<32x384xf32>
    %143 = arith.addf %137, %142 : vector<32x384xf32>
    %c24_130 = arith.constant 24 : index
    %c0_131 = arith.constant 0 : index
    %c0_132 = arith.constant 0 : index
    %144 = vector.load %arg3[%c24_130, %c0_131, %c0_132] : memref<81x32x3xf32, #tpu.memory_space<vmem>>, vector<1x32x3xf32>
    %145 = vector.shape_cast %144 : vector<1x32x3xf32> to vector<32x3xf32>
    %c0_133 = arith.constant 0 : index
    %c0_134 = arith.constant 0 : index
    %c54 = arith.constant 54 : index
    %146 = vector.load %arg2[%c0_133, %c0_134, %c54] : memref<1x3x640xf32, #tpu.memory_space<vmem>>, vector<1x3x384xf32>
    %147 = vector.shape_cast %146 : vector<1x3x384xf32> to vector<3x384xf32>
    %cst_135 = arith.constant dense<0.000000e+00> : vector<32x384xf32>
    %148 = tpu.matmul %145, %147, %cst_135 {dimension_numbers = #tpu.dot_dimension_numbers<[1], [0], [0], [1], [0, 0, 1, 1], [], []>} : vector<32x3xf32>, vector<3x384xf32>, vector<32x384xf32> -> vector<32x384xf32>
    %149 = arith.addf %143, %148 : vector<32x384xf32>
    %c25_136 = arith.constant 25 : index
    %c0_137 = arith.constant 0 : index
    %c0_138 = arith.constant 0 : index
    %150 = vector.load %arg3[%c25_136, %c0_137, %c0_138] : memref<81x32x3xf32, #tpu.memory_space<vmem>>, vector<1x32x3xf32>
    %151 = vector.shape_cast %150 : vector<1x32x3xf32> to vector<32x3xf32>
    %c0_139 = arith.constant 0 : index
    %c0_140 = arith.constant 0 : index
    %c55 = arith.constant 55 : index
    %152 = vector.load %arg2[%c0_139, %c0_140, %c55] : memref<1x3x640xf32, #tpu.memory_space<vmem>>, vector<1x3x384xf32>
    %153 = vector.shape_cast %152 : vector<1x3x384xf32> to vector<3x384xf32>
    %cst_141 = arith.constant dense<0.000000e+00> : vector<32x384xf32>
    %154 = tpu.matmul %151, %153, %cst_141 {dimension_numbers = #tpu.dot_dimension_numbers<[1], [0], [0], [1], [0, 0, 1, 1], [], []>} : vector<32x3xf32>, vector<3x384xf32>, vector<32x384xf32> -> vector<32x384xf32>
    %155 = arith.addf %149, %154 : vector<32x384xf32>
    %c26_142 = arith.constant 26 : index
    %c0_143 = arith.constant 0 : index
    %c0_144 = arith.constant 0 : index
    %156 = vector.load %arg3[%c26_142, %c0_143, %c0_144] : memref<81x32x3xf32, #tpu.memory_space<vmem>>, vector<1x32x3xf32>
    %157 = vector.shape_cast %156 : vector<1x32x3xf32> to vector<32x3xf32>
    %c0_145 = arith.constant 0 : index
    %c0_146 = arith.constant 0 : index
    %c56 = arith.constant 56 : index
    %158 = vector.load %arg2[%c0_145, %c0_146, %c56] : memref<1x3x640xf32, #tpu.memory_space<vmem>>, vector<1x3x384xf32>
    %159 = vector.shape_cast %158 : vector<1x3x384xf32> to vector<3x384xf32>
    %cst_147 = arith.constant dense<0.000000e+00> : vector<32x384xf32>
    %160 = tpu.matmul %157, %159, %cst_147 {dimension_numbers = #tpu.dot_dimension_numbers<[1], [0], [0], [1], [0, 0, 1, 1], [], []>} : vector<32x3xf32>, vector<3x384xf32>, vector<32x384xf32> -> vector<32x384xf32>
    %161 = arith.addf %155, %160 : vector<32x384xf32>
    %c27_148 = arith.constant 27 : index
    %c0_149 = arith.constant 0 : index
    %c0_150 = arith.constant 0 : index
    %162 = vector.load %arg3[%c27_148, %c0_149, %c0_150] : memref<81x32x3xf32, #tpu.memory_space<vmem>>, vector<1x32x3xf32>
    %163 = vector.shape_cast %162 : vector<1x32x3xf32> to vector<32x3xf32>
    %c0_151 = arith.constant 0 : index
    %c0_152 = arith.constant 0 : index
    %c72 = arith.constant 72 : index
    %164 = vector.load %arg2[%c0_151, %c0_152, %c72] : memref<1x3x640xf32, #tpu.memory_space<vmem>>, vector<1x3x384xf32>
    %165 = vector.shape_cast %164 : vector<1x3x384xf32> to vector<3x384xf32>
    %cst_153 = arith.constant dense<0.000000e+00> : vector<32x384xf32>
    %166 = tpu.matmul %163, %165, %cst_153 {dimension_numbers = #tpu.dot_dimension_numbers<[1], [0], [0], [1], [0, 0, 1, 1], [], []>} : vector<32x3xf32>, vector<3x384xf32>, vector<32x384xf32> -> vector<32x384xf32>
    %167 = arith.addf %161, %166 : vector<32x384xf32>
    %c28_154 = arith.constant 28 : index
    %c0_155 = arith.constant 0 : index
    %c0_156 = arith.constant 0 : index
    %168 = vector.load %arg3[%c28_154, %c0_155, %c0_156] : memref<81x32x3xf32, #tpu.memory_space<vmem>>, vector<1x32x3xf32>
    %169 = vector.shape_cast %168 : vector<1x32x3xf32> to vector<32x3xf32>
    %c0_157 = arith.constant 0 : index
    %c0_158 = arith.constant 0 : index
    %c73 = arith.constant 73 : index
    %170 = vector.load %arg2[%c0_157, %c0_158, %c73] : memref<1x3x640xf32, #tpu.memory_space<vmem>>, vector<1x3x384xf32>
    %171 = vector.shape_cast %170 : vector<1x3x384xf32> to vector<3x384xf32>
    %cst_159 = arith.constant dense<0.000000e+00> : vector<32x384xf32>
    %172 = tpu.matmul %169, %171, %cst_159 {dimension_numbers = #tpu.dot_dimension_numbers<[1], [0], [0], [1], [0, 0, 1, 1], [], []>} : vector<32x3xf32>, vector<3x384xf32>, vector<32x384xf32> -> vector<32x384xf32>
    %173 = arith.addf %167, %172 : vector<32x384xf32>
    %c29_160 = arith.constant 29 : index
    %c0_161 = arith.constant 0 : index
    %c0_162 = arith.constant 0 : index
    %174 = vector.load %arg3[%c29_160, %c0_161, %c0_162] : memref<81x32x3xf32, #tpu.memory_space<vmem>>, vector<1x32x3xf32>
    %175 = vector.shape_cast %174 : vector<1x32x3xf32> to vector<32x3xf32>
    %c0_163 = arith.constant 0 : index
    %c0_164 = arith.constant 0 : index
    %c74 = arith.constant 74 : index
    %176 = vector.load %arg2[%c0_163, %c0_164, %c74] : memref<1x3x640xf32, #tpu.memory_space<vmem>>, vector<1x3x384xf32>
    %177 = vector.shape_cast %176 : vector<1x3x384xf32> to vector<3x384xf32>
    %cst_165 = arith.constant dense<0.000000e+00> : vector<32x384xf32>
    %178 = tpu.matmul %175, %177, %cst_165 {dimension_numbers = #tpu.dot_dimension_numbers<[1], [0], [0], [1], [0, 0, 1, 1], [], []>} : vector<32x3xf32>, vector<3x384xf32>, vector<32x384xf32> -> vector<32x384xf32>
    %179 = arith.addf %173, %178 : vector<32x384xf32>
    %c30_166 = arith.constant 30 : index
    %c0_167 = arith.constant 0 : index
    %c0_168 = arith.constant 0 : index
    %180 = vector.load %arg3[%c30_166, %c0_167, %c0_168] : memref<81x32x3xf32, #tpu.memory_space<vmem>>, vector<1x32x3xf32>
    %181 = vector.shape_cast %180 : vector<1x32x3xf32> to vector<32x3xf32>
    %c0_169 = arith.constant 0 : index
    %c0_170 = arith.constant 0 : index
    %c75 = arith.constant 75 : index
    %182 = vector.load %arg2[%c0_169, %c0_170, %c75] : memref<1x3x640xf32, #tpu.memory_space<vmem>>, vector<1x3x384xf32>
    %183 = vector.shape_cast %182 : vector<1x3x384xf32> to vector<3x384xf32>
    %cst_171 = arith.constant dense<0.000000e+00> : vector<32x384xf32>
    %184 = tpu.matmul %181, %183, %cst_171 {dimension_numbers = #tpu.dot_dimension_numbers<[1], [0], [0], [1], [0, 0, 1, 1], [], []>} : vector<32x3xf32>, vector<3x384xf32>, vector<32x384xf32> -> vector<32x384xf32>
    %185 = arith.addf %179, %184 : vector<32x384xf32>
    %c31_172 = arith.constant 31 : index
    %c0_173 = arith.constant 0 : index
    %c0_174 = arith.constant 0 : index
    %186 = vector.load %arg3[%c31_172, %c0_173, %c0_174] : memref<81x32x3xf32, #tpu.memory_space<vmem>>, vector<1x32x3xf32>
    %187 = vector.shape_cast %186 : vector<1x32x3xf32> to vector<32x3xf32>
    %c0_175 = arith.constant 0 : index
    %c0_176 = arith.constant 0 : index
    %c76 = arith.constant 76 : index
    %188 = vector.load %arg2[%c0_175, %c0_176, %c76] : memref<1x3x640xf32, #tpu.memory_space<vmem>>, vector<1x3x384xf32>
    %189 = vector.shape_cast %188 : vector<1x3x384xf32> to vector<3x384xf32>
    %cst_177 = arith.constant dense<0.000000e+00> : vector<32x384xf32>
    %190 = tpu.matmul %187, %189, %cst_177 {dimension_numbers = #tpu.dot_dimension_numbers<[1], [0], [0], [1], [0, 0, 1, 1], [], []>} : vector<32x3xf32>, vector<3x384xf32>, vector<32x384xf32> -> vector<32x384xf32>
    %191 = arith.addf %185, %190 : vector<32x384xf32>
    %c32_178 = arith.constant 32 : index
    %c0_179 = arith.constant 0 : index
    %c0_180 = arith.constant 0 : index
    %192 = vector.load %arg3[%c32_178, %c0_179, %c0_180] : memref<81x32x3xf32, #tpu.memory_space<vmem>>, vector<1x32x3xf32>
    %193 = vector.shape_cast %192 : vector<1x32x3xf32> to vector<32x3xf32>
    %c0_181 = arith.constant 0 : index
    %c0_182 = arith.constant 0 : index
    %c77 = arith.constant 77 : index
    %194 = vector.load %arg2[%c0_181, %c0_182, %c77] : memref<1x3x640xf32, #tpu.memory_space<vmem>>, vector<1x3x384xf32>
    %195 = vector.shape_cast %194 : vector<1x3x384xf32> to vector<3x384xf32>
    %cst_183 = arith.constant dense<0.000000e+00> : vector<32x384xf32>
    %196 = tpu.matmul %193, %195, %cst_183 {dimension_numbers = #tpu.dot_dimension_numbers<[1], [0], [0], [1], [0, 0, 1, 1], [], []>} : vector<32x3xf32>, vector<3x384xf32>, vector<32x384xf32> -> vector<32x384xf32>
    %197 = arith.addf %191, %196 : vector<32x384xf32>
    %c33 = arith.constant 33 : index
    %c0_184 = arith.constant 0 : index
    %c0_185 = arith.constant 0 : index
    %198 = vector.load %arg3[%c33, %c0_184, %c0_185] : memref<81x32x3xf32, #tpu.memory_space<vmem>>, vector<1x32x3xf32>
    %199 = vector.shape_cast %198 : vector<1x32x3xf32> to vector<32x3xf32>
    %c0_186 = arith.constant 0 : index
    %c0_187 = arith.constant 0 : index
    %c78 = arith.constant 78 : index
    %200 = vector.load %arg2[%c0_186, %c0_187, %c78] : memref<1x3x640xf32, #tpu.memory_space<vmem>>, vector<1x3x384xf32>
    %201 = vector.shape_cast %200 : vector<1x3x384xf32> to vector<3x384xf32>
    %cst_188 = arith.constant dense<0.000000e+00> : vector<32x384xf32>
    %202 = tpu.matmul %199, %201, %cst_188 {dimension_numbers = #tpu.dot_dimension_numbers<[1], [0], [0], [1], [0, 0, 1, 1], [], []>} : vector<32x3xf32>, vector<3x384xf32>, vector<32x384xf32> -> vector<32x384xf32>
    %203 = arith.addf %197, %202 : vector<32x384xf32>
    %c34 = arith.constant 34 : index
    %c0_189 = arith.constant 0 : index
    %c0_190 = arith.constant 0 : index
    %204 = vector.load %arg3[%c34, %c0_189, %c0_190] : memref<81x32x3xf32, #tpu.memory_space<vmem>>, vector<1x32x3xf32>
    %205 = vector.shape_cast %204 : vector<1x32x3xf32> to vector<32x3xf32>
    %c0_191 = arith.constant 0 : index
    %c0_192 = arith.constant 0 : index
    %c79 = arith.constant 79 : index
    %206 = vector.load %arg2[%c0_191, %c0_192, %c79] : memref<1x3x640xf32, #tpu.memory_space<vmem>>, vector<1x3x384xf32>
    %207 = vector.shape_cast %206 : vector<1x3x384xf32> to vector<3x384xf32>
    %cst_193 = arith.constant dense<0.000000e+00> : vector<32x384xf32>
    %208 = tpu.matmul %205, %207, %cst_193 {dimension_numbers = #tpu.dot_dimension_numbers<[1], [0], [0], [1], [0, 0, 1, 1], [], []>} : vector<32x3xf32>, vector<3x384xf32>, vector<32x384xf32> -> vector<32x384xf32>
    %209 = arith.addf %203, %208 : vector<32x384xf32>
    %c35 = arith.constant 35 : index
    %c0_194 = arith.constant 0 : index
    %c0_195 = arith.constant 0 : index
    %210 = vector.load %arg3[%c35, %c0_194, %c0_195] : memref<81x32x3xf32, #tpu.memory_space<vmem>>, vector<1x32x3xf32>
    %211 = vector.shape_cast %210 : vector<1x32x3xf32> to vector<32x3xf32>
    %c0_196 = arith.constant 0 : index
    %c0_197 = arith.constant 0 : index
    %c80 = arith.constant 80 : index
    %212 = vector.load %arg2[%c0_196, %c0_197, %c80] : memref<1x3x640xf32, #tpu.memory_space<vmem>>, vector<1x3x384xf32>
    %213 = vector.shape_cast %212 : vector<1x3x384xf32> to vector<3x384xf32>
    %cst_198 = arith.constant dense<0.000000e+00> : vector<32x384xf32>
    %214 = tpu.matmul %211, %213, %cst_198 {dimension_numbers = #tpu.dot_dimension_numbers<[1], [0], [0], [1], [0, 0, 1, 1], [], []>} : vector<32x3xf32>, vector<3x384xf32>, vector<32x384xf32> -> vector<32x384xf32>
    %215 = arith.addf %209, %214 : vector<32x384xf32>
    %c36 = arith.constant 36 : index
    %c0_199 = arith.constant 0 : index
    %c0_200 = arith.constant 0 : index
    %216 = vector.load %arg3[%c36, %c0_199, %c0_200] : memref<81x32x3xf32, #tpu.memory_space<vmem>>, vector<1x32x3xf32>
    %217 = vector.shape_cast %216 : vector<1x32x3xf32> to vector<32x3xf32>
    %c0_201 = arith.constant 0 : index
    %c0_202 = arith.constant 0 : index
    %c96 = arith.constant 96 : index
    %218 = vector.load %arg2[%c0_201, %c0_202, %c96] : memref<1x3x640xf32, #tpu.memory_space<vmem>>, vector<1x3x384xf32>
    %219 = vector.shape_cast %218 : vector<1x3x384xf32> to vector<3x384xf32>
    %cst_203 = arith.constant dense<0.000000e+00> : vector<32x384xf32>
    %220 = tpu.matmul %217, %219, %cst_203 {dimension_numbers = #tpu.dot_dimension_numbers<[1], [0], [0], [1], [0, 0, 1, 1], [], []>} : vector<32x3xf32>, vector<3x384xf32>, vector<32x384xf32> -> vector<32x384xf32>
    %221 = arith.addf %215, %220 : vector<32x384xf32>
    %c37 = arith.constant 37 : index
    %c0_204 = arith.constant 0 : index
    %c0_205 = arith.constant 0 : index
    %222 = vector.load %arg3[%c37, %c0_204, %c0_205] : memref<81x32x3xf32, #tpu.memory_space<vmem>>, vector<1x32x3xf32>
    %223 = vector.shape_cast %222 : vector<1x32x3xf32> to vector<32x3xf32>
    %c0_206 = arith.constant 0 : index
    %c0_207 = arith.constant 0 : index
    %c97 = arith.constant 97 : index
    %224 = vector.load %arg2[%c0_206, %c0_207, %c97] : memref<1x3x640xf32, #tpu.memory_space<vmem>>, vector<1x3x384xf32>
    %225 = vector.shape_cast %224 : vector<1x3x384xf32> to vector<3x384xf32>
    %cst_208 = arith.constant dense<0.000000e+00> : vector<32x384xf32>
    %226 = tpu.matmul %223, %225, %cst_208 {dimension_numbers = #tpu.dot_dimension_numbers<[1], [0], [0], [1], [0, 0, 1, 1], [], []>} : vector<32x3xf32>, vector<3x384xf32>, vector<32x384xf32> -> vector<32x384xf32>
    %227 = arith.addf %221, %226 : vector<32x384xf32>
    %c38 = arith.constant 38 : index
    %c0_209 = arith.constant 0 : index
    %c0_210 = arith.constant 0 : index
    %228 = vector.load %arg3[%c38, %c0_209, %c0_210] : memref<81x32x3xf32, #tpu.memory_space<vmem>>, vector<1x32x3xf32>
    %229 = vector.shape_cast %228 : vector<1x32x3xf32> to vector<32x3xf32>
    %c0_211 = arith.constant 0 : index
    %c0_212 = arith.constant 0 : index
    %c98 = arith.constant 98 : index
    %230 = vector.load %arg2[%c0_211, %c0_212, %c98] : memref<1x3x640xf32, #tpu.memory_space<vmem>>, vector<1x3x384xf32>
    %231 = vector.shape_cast %230 : vector<1x3x384xf32> to vector<3x384xf32>
    %cst_213 = arith.constant dense<0.000000e+00> : vector<32x384xf32>
    %232 = tpu.matmul %229, %231, %cst_213 {dimension_numbers = #tpu.dot_dimension_numbers<[1], [0], [0], [1], [0, 0, 1, 1], [], []>} : vector<32x3xf32>, vector<3x384xf32>, vector<32x384xf32> -> vector<32x384xf32>
    %233 = arith.addf %227, %232 : vector<32x384xf32>
    %c39 = arith.constant 39 : index
    %c0_214 = arith.constant 0 : index
    %c0_215 = arith.constant 0 : index
    %234 = vector.load %arg3[%c39, %c0_214, %c0_215] : memref<81x32x3xf32, #tpu.memory_space<vmem>>, vector<1x32x3xf32>
    %235 = vector.shape_cast %234 : vector<1x32x3xf32> to vector<32x3xf32>
    %c0_216 = arith.constant 0 : index
    %c0_217 = arith.constant 0 : index
    %c99 = arith.constant 99 : index
    %236 = vector.load %arg2[%c0_216, %c0_217, %c99] : memref<1x3x640xf32, #tpu.memory_space<vmem>>, vector<1x3x384xf32>
    %237 = vector.shape_cast %236 : vector<1x3x384xf32> to vector<3x384xf32>
    %cst_218 = arith.constant dense<0.000000e+00> : vector<32x384xf32>
    %238 = tpu.matmul %235, %237, %cst_218 {dimension_numbers = #tpu.dot_dimension_numbers<[1], [0], [0], [1], [0, 0, 1, 1], [], []>} : vector<32x3xf32>, vector<3x384xf32>, vector<32x384xf32> -> vector<32x384xf32>
    %239 = arith.addf %233, %238 : vector<32x384xf32>
    %c40 = arith.constant 40 : index
    %c0_219 = arith.constant 0 : index
    %c0_220 = arith.constant 0 : index
    %240 = vector.load %arg3[%c40, %c0_219, %c0_220] : memref<81x32x3xf32, #tpu.memory_space<vmem>>, vector<1x32x3xf32>
    %241 = vector.shape_cast %240 : vector<1x32x3xf32> to vector<32x3xf32>
    %c0_221 = arith.constant 0 : index
    %c0_222 = arith.constant 0 : index
    %c100 = arith.constant 100 : index
    %242 = vector.load %arg2[%c0_221, %c0_222, %c100] : memref<1x3x640xf32, #tpu.memory_space<vmem>>, vector<1x3x384xf32>
    %243 = vector.shape_cast %242 : vector<1x3x384xf32> to vector<3x384xf32>
    %cst_223 = arith.constant dense<0.000000e+00> : vector<32x384xf32>
    %244 = tpu.matmul %241, %243, %cst_223 {dimension_numbers = #tpu.dot_dimension_numbers<[1], [0], [0], [1], [0, 0, 1, 1], [], []>} : vector<32x3xf32>, vector<3x384xf32>, vector<32x384xf32> -> vector<32x384xf32>
    %245 = arith.addf %239, %244 : vector<32x384xf32>
    %c41 = arith.constant 41 : index
    %c0_224 = arith.constant 0 : index
    %c0_225 = arith.constant 0 : index
    %246 = vector.load %arg3[%c41, %c0_224, %c0_225] : memref<81x32x3xf32, #tpu.memory_space<vmem>>, vector<1x32x3xf32>
    %247 = vector.shape_cast %246 : vector<1x32x3xf32> to vector<32x3xf32>
    %c0_226 = arith.constant 0 : index
    %c0_227 = arith.constant 0 : index
    %c101 = arith.constant 101 : index
    %248 = vector.load %arg2[%c0_226, %c0_227, %c101] : memref<1x3x640xf32, #tpu.memory_space<vmem>>, vector<1x3x384xf32>
    %249 = vector.shape_cast %248 : vector<1x3x384xf32> to vector<3x384xf32>
    %cst_228 = arith.constant dense<0.000000e+00> : vector<32x384xf32>
    %250 = tpu.matmul %247, %249, %cst_228 {dimension_numbers = #tpu.dot_dimension_numbers<[1], [0], [0], [1], [0, 0, 1, 1], [], []>} : vector<32x3xf32>, vector<3x384xf32>, vector<32x384xf32> -> vector<32x384xf32>
    %251 = arith.addf %245, %250 : vector<32x384xf32>
    %c42 = arith.constant 42 : index
    %c0_229 = arith.constant 0 : index
    %c0_230 = arith.constant 0 : index
    %252 = vector.load %arg3[%c42, %c0_229, %c0_230] : memref<81x32x3xf32, #tpu.memory_space<vmem>>, vector<1x32x3xf32>
    %253 = vector.shape_cast %252 : vector<1x32x3xf32> to vector<32x3xf32>
    %c0_231 = arith.constant 0 : index
    %c0_232 = arith.constant 0 : index
    %c102 = arith.constant 102 : index
    %254 = vector.load %arg2[%c0_231, %c0_232, %c102] : memref<1x3x640xf32, #tpu.memory_space<vmem>>, vector<1x3x384xf32>
    %255 = vector.shape_cast %254 : vector<1x3x384xf32> to vector<3x384xf32>
    %cst_233 = arith.constant dense<0.000000e+00> : vector<32x384xf32>
    %256 = tpu.matmul %253, %255, %cst_233 {dimension_numbers = #tpu.dot_dimension_numbers<[1], [0], [0], [1], [0, 0, 1, 1], [], []>} : vector<32x3xf32>, vector<3x384xf32>, vector<32x384xf32> -> vector<32x384xf32>
    %257 = arith.addf %251, %256 : vector<32x384xf32>
    %c43 = arith.constant 43 : index
    %c0_234 = arith.constant 0 : index
    %c0_235 = arith.constant 0 : index
    %258 = vector.load %arg3[%c43, %c0_234, %c0_235] : memref<81x32x3xf32, #tpu.memory_space<vmem>>, vector<1x32x3xf32>
    %259 = vector.shape_cast %258 : vector<1x32x3xf32> to vector<32x3xf32>
    %c0_236 = arith.constant 0 : index
    %c0_237 = arith.constant 0 : index
    %c103 = arith.constant 103 : index
    %260 = vector.load %arg2[%c0_236, %c0_237, %c103] : memref<1x3x640xf32, #tpu.memory_space<vmem>>, vector<1x3x384xf32>
    %261 = vector.shape_cast %260 : vector<1x3x384xf32> to vector<3x384xf32>
    %cst_238 = arith.constant dense<0.000000e+00> : vector<32x384xf32>
    %262 = tpu.matmul %259, %261, %cst_238 {dimension_numbers = #tpu.dot_dimension_numbers<[1], [0], [0], [1], [0, 0, 1, 1], [], []>} : vector<32x3xf32>, vector<3x384xf32>, vector<32x384xf32> -> vector<32x384xf32>
    %263 = arith.addf %257, %262 : vector<32x384xf32>
    %c44 = arith.constant 44 : index
    %c0_239 = arith.constant 0 : index
    %c0_240 = arith.constant 0 : index
    %264 = vector.load %arg3[%c44, %c0_239, %c0_240] : memref<81x32x3xf32, #tpu.memory_space<vmem>>, vector<1x32x3xf32>
    %265 = vector.shape_cast %264 : vector<1x32x3xf32> to vector<32x3xf32>
    %c0_241 = arith.constant 0 : index
    %c0_242 = arith.constant 0 : index
    %c104 = arith.constant 104 : index
    %266 = vector.load %arg2[%c0_241, %c0_242, %c104] : memref<1x3x640xf32, #tpu.memory_space<vmem>>, vector<1x3x384xf32>
    %267 = vector.shape_cast %266 : vector<1x3x384xf32> to vector<3x384xf32>
    %cst_243 = arith.constant dense<0.000000e+00> : vector<32x384xf32>
    %268 = tpu.matmul %265, %267, %cst_243 {dimension_numbers = #tpu.dot_dimension_numbers<[1], [0], [0], [1], [0, 0, 1, 1], [], []>} : vector<32x3xf32>, vector<3x384xf32>, vector<32x384xf32> -> vector<32x384xf32>
    %269 = arith.addf %263, %268 : vector<32x384xf32>
    %c45 = arith.constant 45 : index
    %c0_244 = arith.constant 0 : index
    %c0_245 = arith.constant 0 : index
    %270 = vector.load %arg3[%c45, %c0_244, %c0_245] : memref<81x32x3xf32, #tpu.memory_space<vmem>>, vector<1x32x3xf32>
    %271 = vector.shape_cast %270 : vector<1x32x3xf32> to vector<32x3xf32>
    %c0_246 = arith.constant 0 : index
    %c0_247 = arith.constant 0 : index
    %c120 = arith.constant 120 : index
    %272 = vector.load %arg2[%c0_246, %c0_247, %c120] : memref<1x3x640xf32, #tpu.memory_space<vmem>>, vector<1x3x384xf32>
    %273 = vector.shape_cast %272 : vector<1x3x384xf32> to vector<3x384xf32>
    %cst_248 = arith.constant dense<0.000000e+00> : vector<32x384xf32>
    %274 = tpu.matmul %271, %273, %cst_248 {dimension_numbers = #tpu.dot_dimension_numbers<[1], [0], [0], [1], [0, 0, 1, 1], [], []>} : vector<32x3xf32>, vector<3x384xf32>, vector<32x384xf32> -> vector<32x384xf32>
    %275 = arith.addf %269, %274 : vector<32x384xf32>
    %c46 = arith.constant 46 : index
    %c0_249 = arith.constant 0 : index
    %c0_250 = arith.constant 0 : index
    %276 = vector.load %arg3[%c46, %c0_249, %c0_250] : memref<81x32x3xf32, #tpu.memory_space<vmem>>, vector<1x32x3xf32>
    %277 = vector.shape_cast %276 : vector<1x32x3xf32> to vector<32x3xf32>
    %c0_251 = arith.constant 0 : index
    %c0_252 = arith.constant 0 : index
    %c121 = arith.constant 121 : index
    %278 = vector.load %arg2[%c0_251, %c0_252, %c121] : memref<1x3x640xf32, #tpu.memory_space<vmem>>, vector<1x3x384xf32>
    %279 = vector.shape_cast %278 : vector<1x3x384xf32> to vector<3x384xf32>
    %cst_253 = arith.constant dense<0.000000e+00> : vector<32x384xf32>
    %280 = tpu.matmul %277, %279, %cst_253 {dimension_numbers = #tpu.dot_dimension_numbers<[1], [0], [0], [1], [0, 0, 1, 1], [], []>} : vector<32x3xf32>, vector<3x384xf32>, vector<32x384xf32> -> vector<32x384xf32>
    %281 = arith.addf %275, %280 : vector<32x384xf32>
    %c47 = arith.constant 47 : index
    %c0_254 = arith.constant 0 : index
    %c0_255 = arith.constant 0 : index
    %282 = vector.load %arg3[%c47, %c0_254, %c0_255] : memref<81x32x3xf32, #tpu.memory_space<vmem>>, vector<1x32x3xf32>
    %283 = vector.shape_cast %282 : vector<1x32x3xf32> to vector<32x3xf32>
    %c0_256 = arith.constant 0 : index
    %c0_257 = arith.constant 0 : index
    %c122 = arith.constant 122 : index
    %284 = vector.load %arg2[%c0_256, %c0_257, %c122] : memref<1x3x640xf32, #tpu.memory_space<vmem>>, vector<1x3x384xf32>
    %285 = vector.shape_cast %284 : vector<1x3x384xf32> to vector<3x384xf32>
    %cst_258 = arith.constant dense<0.000000e+00> : vector<32x384xf32>
    %286 = tpu.matmul %283, %285, %cst_258 {dimension_numbers = #tpu.dot_dimension_numbers<[1], [0], [0], [1], [0, 0, 1, 1], [], []>} : vector<32x3xf32>, vector<3x384xf32>, vector<32x384xf32> -> vector<32x384xf32>
    %287 = arith.addf %281, %286 : vector<32x384xf32>
    %c48_259 = arith.constant 48 : index
    %c0_260 = arith.constant 0 : index
    %c0_261 = arith.constant 0 : index
    %288 = vector.load %arg3[%c48_259, %c0_260, %c0_261] : memref<81x32x3xf32, #tpu.memory_space<vmem>>, vector<1x32x3xf32>
    %289 = vector.shape_cast %288 : vector<1x32x3xf32> to vector<32x3xf32>
    %c0_262 = arith.constant 0 : index
    %c0_263 = arith.constant 0 : index
    %c123 = arith.constant 123 : index
    %290 = vector.load %arg2[%c0_262, %c0_263, %c123] : memref<1x3x640xf32, #tpu.memory_space<vmem>>, vector<1x3x384xf32>
    %291 = vector.shape_cast %290 : vector<1x3x384xf32> to vector<3x384xf32>
    %cst_264 = arith.constant dense<0.000000e+00> : vector<32x384xf32>
    %292 = tpu.matmul %289, %291, %cst_264 {dimension_numbers = #tpu.dot_dimension_numbers<[1], [0], [0], [1], [0, 0, 1, 1], [], []>} : vector<32x3xf32>, vector<3x384xf32>, vector<32x384xf32> -> vector<32x384xf32>
    %293 = arith.addf %287, %292 : vector<32x384xf32>
    %c49_265 = arith.constant 49 : index
    %c0_266 = arith.constant 0 : index
    %c0_267 = arith.constant 0 : index
    %294 = vector.load %arg3[%c49_265, %c0_266, %c0_267] : memref<81x32x3xf32, #tpu.memory_space<vmem>>, vector<1x32x3xf32>
    %295 = vector.shape_cast %294 : vector<1x32x3xf32> to vector<32x3xf32>
    %c0_268 = arith.constant 0 : index
    %c0_269 = arith.constant 0 : index
    %c124 = arith.constant 124 : index
    %296 = vector.load %arg2[%c0_268, %c0_269, %c124] : memref<1x3x640xf32, #tpu.memory_space<vmem>>, vector<1x3x384xf32>
    %297 = vector.shape_cast %296 : vector<1x3x384xf32> to vector<3x384xf32>
    %cst_270 = arith.constant dense<0.000000e+00> : vector<32x384xf32>
    %298 = tpu.matmul %295, %297, %cst_270 {dimension_numbers = #tpu.dot_dimension_numbers<[1], [0], [0], [1], [0, 0, 1, 1], [], []>} : vector<32x3xf32>, vector<3x384xf32>, vector<32x384xf32> -> vector<32x384xf32>
    %299 = arith.addf %293, %298 : vector<32x384xf32>
    %c50_271 = arith.constant 50 : index
    %c0_272 = arith.constant 0 : index
    %c0_273 = arith.constant 0 : index
    %300 = vector.load %arg3[%c50_271, %c0_272, %c0_273] : memref<81x32x3xf32, #tpu.memory_space<vmem>>, vector<1x32x3xf32>
    %301 = vector.shape_cast %300 : vector<1x32x3xf32> to vector<32x3xf32>
    %c0_274 = arith.constant 0 : index
    %c0_275 = arith.constant 0 : index
    %c125 = arith.constant 125 : index
    %302 = vector.load %arg2[%c0_274, %c0_275, %c125] : memref<1x3x640xf32, #tpu.memory_space<vmem>>, vector<1x3x384xf32>
    %303 = vector.shape_cast %302 : vector<1x3x384xf32> to vector<3x384xf32>
    %cst_276 = arith.constant dense<0.000000e+00> : vector<32x384xf32>
    %304 = tpu.matmul %301, %303, %cst_276 {dimension_numbers = #tpu.dot_dimension_numbers<[1], [0], [0], [1], [0, 0, 1, 1], [], []>} : vector<32x3xf32>, vector<3x384xf32>, vector<32x384xf32> -> vector<32x384xf32>
    %305 = arith.addf %299, %304 : vector<32x384xf32>
    %c51_277 = arith.constant 51 : index
    %c0_278 = arith.constant 0 : index
    %c0_279 = arith.constant 0 : index
    %306 = vector.load %arg3[%c51_277, %c0_278, %c0_279] : memref<81x32x3xf32, #tpu.memory_space<vmem>>, vector<1x32x3xf32>
    %307 = vector.shape_cast %306 : vector<1x32x3xf32> to vector<32x3xf32>
    %c0_280 = arith.constant 0 : index
    %c0_281 = arith.constant 0 : index
    %c126 = arith.constant 126 : index
    %308 = vector.load %arg2[%c0_280, %c0_281, %c126] : memref<1x3x640xf32, #tpu.memory_space<vmem>>, vector<1x3x384xf32>
    %309 = vector.shape_cast %308 : vector<1x3x384xf32> to vector<3x384xf32>
    %cst_282 = arith.constant dense<0.000000e+00> : vector<32x384xf32>
    %310 = tpu.matmul %307, %309, %cst_282 {dimension_numbers = #tpu.dot_dimension_numbers<[1], [0], [0], [1], [0, 0, 1, 1], [], []>} : vector<32x3xf32>, vector<3x384xf32>, vector<32x384xf32> -> vector<32x384xf32>
    %311 = arith.addf %305, %310 : vector<32x384xf32>
    %c52_283 = arith.constant 52 : index
    %c0_284 = arith.constant 0 : index
    %c0_285 = arith.constant 0 : index
    %312 = vector.load %arg3[%c52_283, %c0_284, %c0_285] : memref<81x32x3xf32, #tpu.memory_space<vmem>>, vector<1x32x3xf32>
    %313 = vector.shape_cast %312 : vector<1x32x3xf32> to vector<32x3xf32>
    %c0_286 = arith.constant 0 : index
    %c0_287 = arith.constant 0 : index
    %c127 = arith.constant 127 : index
    %314 = vector.load %arg2[%c0_286, %c0_287, %c127] : memref<1x3x640xf32, #tpu.memory_space<vmem>>, vector<1x3x384xf32>
    %315 = vector.shape_cast %314 : vector<1x3x384xf32> to vector<3x384xf32>
    %cst_288 = arith.constant dense<0.000000e+00> : vector<32x384xf32>
    %316 = tpu.matmul %313, %315, %cst_288 {dimension_numbers = #tpu.dot_dimension_numbers<[1], [0], [0], [1], [0, 0, 1, 1], [], []>} : vector<32x3xf32>, vector<3x384xf32>, vector<32x384xf32> -> vector<32x384xf32>
    %317 = arith.addf %311, %316 : vector<32x384xf32>
    %c53_289 = arith.constant 53 : index
    %c0_290 = arith.constant 0 : index
    %c0_291 = arith.constant 0 : index
    %318 = vector.load %arg3[%c53_289, %c0_290, %c0_291] : memref<81x32x3xf32, #tpu.memory_space<vmem>>, vector<1x32x3xf32>
    %319 = vector.shape_cast %318 : vector<1x32x3xf32> to vector<32x3xf32>
    %c0_292 = arith.constant 0 : index
    %c0_293 = arith.constant 0 : index
    %c128 = arith.constant 128 : index
    %320 = vector.load %arg2[%c0_292, %c0_293, %c128] : memref<1x3x640xf32, #tpu.memory_space<vmem>>, vector<1x3x384xf32>
    %321 = vector.shape_cast %320 : vector<1x3x384xf32> to vector<3x384xf32>
    %cst_294 = arith.constant dense<0.000000e+00> : vector<32x384xf32>
    %322 = tpu.matmul %319, %321, %cst_294 {dimension_numbers = #tpu.dot_dimension_numbers<[1], [0], [0], [1], [0, 0, 1, 1], [], []>} : vector<32x3xf32>, vector<3x384xf32>, vector<32x384xf32> -> vector<32x384xf32>
    %323 = arith.addf %317, %322 : vector<32x384xf32>
    %c54_295 = arith.constant 54 : index
    %c0_296 = arith.constant 0 : index
    %c0_297 = arith.constant 0 : index
    %324 = vector.load %arg3[%c54_295, %c0_296, %c0_297] : memref<81x32x3xf32, #tpu.memory_space<vmem>>, vector<1x32x3xf32>
    %325 = vector.shape_cast %324 : vector<1x32x3xf32> to vector<32x3xf32>
    %c0_298 = arith.constant 0 : index
    %c0_299 = arith.constant 0 : index
    %c144 = arith.constant 144 : index
    %326 = vector.load %arg2[%c0_298, %c0_299, %c144] : memref<1x3x640xf32, #tpu.memory_space<vmem>>, vector<1x3x384xf32>
    %327 = vector.shape_cast %326 : vector<1x3x384xf32> to vector<3x384xf32>
    %cst_300 = arith.constant dense<0.000000e+00> : vector<32x384xf32>
    %328 = tpu.matmul %325, %327, %cst_300 {dimension_numbers = #tpu.dot_dimension_numbers<[1], [0], [0], [1], [0, 0, 1, 1], [], []>} : vector<32x3xf32>, vector<3x384xf32>, vector<32x384xf32> -> vector<32x384xf32>
    %329 = arith.addf %323, %328 : vector<32x384xf32>
    %c55_301 = arith.constant 55 : index
    %c0_302 = arith.constant 0 : index
    %c0_303 = arith.constant 0 : index
    %330 = vector.load %arg3[%c55_301, %c0_302, %c0_303] : memref<81x32x3xf32, #tpu.memory_space<vmem>>, vector<1x32x3xf32>
    %331 = vector.shape_cast %330 : vector<1x32x3xf32> to vector<32x3xf32>
    %c0_304 = arith.constant 0 : index
    %c0_305 = arith.constant 0 : index
    %c145 = arith.constant 145 : index
    %332 = vector.load %arg2[%c0_304, %c0_305, %c145] : memref<1x3x640xf32, #tpu.memory_space<vmem>>, vector<1x3x384xf32>
    %333 = vector.shape_cast %332 : vector<1x3x384xf32> to vector<3x384xf32>
    %cst_306 = arith.constant dense<0.000000e+00> : vector<32x384xf32>
    %334 = tpu.matmul %331, %333, %cst_306 {dimension_numbers = #tpu.dot_dimension_numbers<[1], [0], [0], [1], [0, 0, 1, 1], [], []>} : vector<32x3xf32>, vector<3x384xf32>, vector<32x384xf32> -> vector<32x384xf32>
    %335 = arith.addf %329, %334 : vector<32x384xf32>
    %c56_307 = arith.constant 56 : index
    %c0_308 = arith.constant 0 : index
    %c0_309 = arith.constant 0 : index
    %336 = vector.load %arg3[%c56_307, %c0_308, %c0_309] : memref<81x32x3xf32, #tpu.memory_space<vmem>>, vector<1x32x3xf32>
    %337 = vector.shape_cast %336 : vector<1x32x3xf32> to vector<32x3xf32>
    %c0_310 = arith.constant 0 : index
    %c0_311 = arith.constant 0 : index
    %c146 = arith.constant 146 : index
    %338 = vector.load %arg2[%c0_310, %c0_311, %c146] : memref<1x3x640xf32, #tpu.memory_space<vmem>>, vector<1x3x384xf32>
    %339 = vector.shape_cast %338 : vector<1x3x384xf32> to vector<3x384xf32>
    %cst_312 = arith.constant dense<0.000000e+00> : vector<32x384xf32>
    %340 = tpu.matmul %337, %339, %cst_312 {dimension_numbers = #tpu.dot_dimension_numbers<[1], [0], [0], [1], [0, 0, 1, 1], [], []>} : vector<32x3xf32>, vector<3x384xf32>, vector<32x384xf32> -> vector<32x384xf32>
    %341 = arith.addf %335, %340 : vector<32x384xf32>
    %c57 = arith.constant 57 : index
    %c0_313 = arith.constant 0 : index
    %c0_314 = arith.constant 0 : index
    %342 = vector.load %arg3[%c57, %c0_313, %c0_314] : memref<81x32x3xf32, #tpu.memory_space<vmem>>, vector<1x32x3xf32>
    %343 = vector.shape_cast %342 : vector<1x32x3xf32> to vector<32x3xf32>
    %c0_315 = arith.constant 0 : index
    %c0_316 = arith.constant 0 : index
    %c147 = arith.constant 147 : index
    %344 = vector.load %arg2[%c0_315, %c0_316, %c147] : memref<1x3x640xf32, #tpu.memory_space<vmem>>, vector<1x3x384xf32>
    %345 = vector.shape_cast %344 : vector<1x3x384xf32> to vector<3x384xf32>
    %cst_317 = arith.constant dense<0.000000e+00> : vector<32x384xf32>
    %346 = tpu.matmul %343, %345, %cst_317 {dimension_numbers = #tpu.dot_dimension_numbers<[1], [0], [0], [1], [0, 0, 1, 1], [], []>} : vector<32x3xf32>, vector<3x384xf32>, vector<32x384xf32> -> vector<32x384xf32>
    %347 = arith.addf %341, %346 : vector<32x384xf32>
    %c58 = arith.constant 58 : index
    %c0_318 = arith.constant 0 : index
    %c0_319 = arith.constant 0 : index
    %348 = vector.load %arg3[%c58, %c0_318, %c0_319] : memref<81x32x3xf32, #tpu.memory_space<vmem>>, vector<1x32x3xf32>
    %349 = vector.shape_cast %348 : vector<1x32x3xf32> to vector<32x3xf32>
    %c0_320 = arith.constant 0 : index
    %c0_321 = arith.constant 0 : index
    %c148 = arith.constant 148 : index
    %350 = vector.load %arg2[%c0_320, %c0_321, %c148] : memref<1x3x640xf32, #tpu.memory_space<vmem>>, vector<1x3x384xf32>
    %351 = vector.shape_cast %350 : vector<1x3x384xf32> to vector<3x384xf32>
    %cst_322 = arith.constant dense<0.000000e+00> : vector<32x384xf32>
    %352 = tpu.matmul %349, %351, %cst_322 {dimension_numbers = #tpu.dot_dimension_numbers<[1], [0], [0], [1], [0, 0, 1, 1], [], []>} : vector<32x3xf32>, vector<3x384xf32>, vector<32x384xf32> -> vector<32x384xf32>
    %353 = arith.addf %347, %352 : vector<32x384xf32>
    %c59 = arith.constant 59 : index
    %c0_323 = arith.constant 0 : index
    %c0_324 = arith.constant 0 : index
    %354 = vector.load %arg3[%c59, %c0_323, %c0_324] : memref<81x32x3xf32, #tpu.memory_space<vmem>>, vector<1x32x3xf32>
    %355 = vector.shape_cast %354 : vector<1x32x3xf32> to vector<32x3xf32>
    %c0_325 = arith.constant 0 : index
    %c0_326 = arith.constant 0 : index
    %c149 = arith.constant 149 : index
    %356 = vector.load %arg2[%c0_325, %c0_326, %c149] : memref<1x3x640xf32, #tpu.memory_space<vmem>>, vector<1x3x384xf32>
    %357 = vector.shape_cast %356 : vector<1x3x384xf32> to vector<3x384xf32>
    %cst_327 = arith.constant dense<0.000000e+00> : vector<32x384xf32>
    %358 = tpu.matmul %355, %357, %cst_327 {dimension_numbers = #tpu.dot_dimension_numbers<[1], [0], [0], [1], [0, 0, 1, 1], [], []>} : vector<32x3xf32>, vector<3x384xf32>, vector<32x384xf32> -> vector<32x384xf32>
    %359 = arith.addf %353, %358 : vector<32x384xf32>
    %c60 = arith.constant 60 : index
    %c0_328 = arith.constant 0 : index
    %c0_329 = arith.constant 0 : index
    %360 = vector.load %arg3[%c60, %c0_328, %c0_329] : memref<81x32x3xf32, #tpu.memory_space<vmem>>, vector<1x32x3xf32>
    %361 = vector.shape_cast %360 : vector<1x32x3xf32> to vector<32x3xf32>
    %c0_330 = arith.constant 0 : index
    %c0_331 = arith.constant 0 : index
    %c150 = arith.constant 150 : index
    %362 = vector.load %arg2[%c0_330, %c0_331, %c150] : memref<1x3x640xf32, #tpu.memory_space<vmem>>, vector<1x3x384xf32>
    %363 = vector.shape_cast %362 : vector<1x3x384xf32> to vector<3x384xf32>
    %cst_332 = arith.constant dense<0.000000e+00> : vector<32x384xf32>
    %364 = tpu.matmul %361, %363, %cst_332 {dimension_numbers = #tpu.dot_dimension_numbers<[1], [0], [0], [1], [0, 0, 1, 1], [], []>} : vector<32x3xf32>, vector<3x384xf32>, vector<32x384xf32> -> vector<32x384xf32>
    %365 = arith.addf %359, %364 : vector<32x384xf32>
    %c61 = arith.constant 61 : index
    %c0_333 = arith.constant 0 : index
    %c0_334 = arith.constant 0 : index
    %366 = vector.load %arg3[%c61, %c0_333, %c0_334] : memref<81x32x3xf32, #tpu.memory_space<vmem>>, vector<1x32x3xf32>
    %367 = vector.shape_cast %366 : vector<1x32x3xf32> to vector<32x3xf32>
    %c0_335 = arith.constant 0 : index
    %c0_336 = arith.constant 0 : index
    %c151 = arith.constant 151 : index
    %368 = vector.load %arg2[%c0_335, %c0_336, %c151] : memref<1x3x640xf32, #tpu.memory_space<vmem>>, vector<1x3x384xf32>
    %369 = vector.shape_cast %368 : vector<1x3x384xf32> to vector<3x384xf32>
    %cst_337 = arith.constant dense<0.000000e+00> : vector<32x384xf32>
    %370 = tpu.matmul %367, %369, %cst_337 {dimension_numbers = #tpu.dot_dimension_numbers<[1], [0], [0], [1], [0, 0, 1, 1], [], []>} : vector<32x3xf32>, vector<3x384xf32>, vector<32x384xf32> -> vector<32x384xf32>
    %371 = arith.addf %365, %370 : vector<32x384xf32>
    %c62 = arith.constant 62 : index
    %c0_338 = arith.constant 0 : index
    %c0_339 = arith.constant 0 : index
    %372 = vector.load %arg3[%c62, %c0_338, %c0_339] : memref<81x32x3xf32, #tpu.memory_space<vmem>>, vector<1x32x3xf32>
    %373 = vector.shape_cast %372 : vector<1x32x3xf32> to vector<32x3xf32>
    %c0_340 = arith.constant 0 : index
    %c0_341 = arith.constant 0 : index
    %c152 = arith.constant 152 : index
    %374 = vector.load %arg2[%c0_340, %c0_341, %c152] : memref<1x3x640xf32, #tpu.memory_space<vmem>>, vector<1x3x384xf32>
    %375 = vector.shape_cast %374 : vector<1x3x384xf32> to vector<3x384xf32>
    %cst_342 = arith.constant dense<0.000000e+00> : vector<32x384xf32>
    %376 = tpu.matmul %373, %375, %cst_342 {dimension_numbers = #tpu.dot_dimension_numbers<[1], [0], [0], [1], [0, 0, 1, 1], [], []>} : vector<32x3xf32>, vector<3x384xf32>, vector<32x384xf32> -> vector<32x384xf32>
    %377 = arith.addf %371, %376 : vector<32x384xf32>
    %c63 = arith.constant 63 : index
    %c0_343 = arith.constant 0 : index
    %c0_344 = arith.constant 0 : index
    %378 = vector.load %arg3[%c63, %c0_343, %c0_344] : memref<81x32x3xf32, #tpu.memory_space<vmem>>, vector<1x32x3xf32>
    %379 = vector.shape_cast %378 : vector<1x32x3xf32> to vector<32x3xf32>
    %c0_345 = arith.constant 0 : index
    %c0_346 = arith.constant 0 : index
    %c168 = arith.constant 168 : index
    %380 = vector.load %arg2[%c0_345, %c0_346, %c168] : memref<1x3x640xf32, #tpu.memory_space<vmem>>, vector<1x3x384xf32>
    %381 = vector.shape_cast %380 : vector<1x3x384xf32> to vector<3x384xf32>
    %cst_347 = arith.constant dense<0.000000e+00> : vector<32x384xf32>
    %382 = tpu.matmul %379, %381, %cst_347 {dimension_numbers = #tpu.dot_dimension_numbers<[1], [0], [0], [1], [0, 0, 1, 1], [], []>} : vector<32x3xf32>, vector<3x384xf32>, vector<32x384xf32> -> vector<32x384xf32>
    %383 = arith.addf %377, %382 : vector<32x384xf32>
    %c64 = arith.constant 64 : index
    %c0_348 = arith.constant 0 : index
    %c0_349 = arith.constant 0 : index
    %384 = vector.load %arg3[%c64, %c0_348, %c0_349] : memref<81x32x3xf32, #tpu.memory_space<vmem>>, vector<1x32x3xf32>
    %385 = vector.shape_cast %384 : vector<1x32x3xf32> to vector<32x3xf32>
    %c0_350 = arith.constant 0 : index
    %c0_351 = arith.constant 0 : index
    %c169 = arith.constant 169 : index
    %386 = vector.load %arg2[%c0_350, %c0_351, %c169] : memref<1x3x640xf32, #tpu.memory_space<vmem>>, vector<1x3x384xf32>
    %387 = vector.shape_cast %386 : vector<1x3x384xf32> to vector<3x384xf32>
    %cst_352 = arith.constant dense<0.000000e+00> : vector<32x384xf32>
    %388 = tpu.matmul %385, %387, %cst_352 {dimension_numbers = #tpu.dot_dimension_numbers<[1], [0], [0], [1], [0, 0, 1, 1], [], []>} : vector<32x3xf32>, vector<3x384xf32>, vector<32x384xf32> -> vector<32x384xf32>
    %389 = arith.addf %383, %388 : vector<32x384xf32>
    %c65 = arith.constant 65 : index
    %c0_353 = arith.constant 0 : index
    %c0_354 = arith.constant 0 : index
    %390 = vector.load %arg3[%c65, %c0_353, %c0_354] : memref<81x32x3xf32, #tpu.memory_space<vmem>>, vector<1x32x3xf32>
    %391 = vector.shape_cast %390 : vector<1x32x3xf32> to vector<32x3xf32>
    %c0_355 = arith.constant 0 : index
    %c0_356 = arith.constant 0 : index
    %c170 = arith.constant 170 : index
    %392 = vector.load %arg2[%c0_355, %c0_356, %c170] : memref<1x3x640xf32, #tpu.memory_space<vmem>>, vector<1x3x384xf32>
    %393 = vector.shape_cast %392 : vector<1x3x384xf32> to vector<3x384xf32>
    %cst_357 = arith.constant dense<0.000000e+00> : vector<32x384xf32>
    %394 = tpu.matmul %391, %393, %cst_357 {dimension_numbers = #tpu.dot_dimension_numbers<[1], [0], [0], [1], [0, 0, 1, 1], [], []>} : vector<32x3xf32>, vector<3x384xf32>, vector<32x384xf32> -> vector<32x384xf32>
    %395 = arith.addf %389, %394 : vector<32x384xf32>
    %c66 = arith.constant 66 : index
    %c0_358 = arith.constant 0 : index
    %c0_359 = arith.constant 0 : index
    %396 = vector.load %arg3[%c66, %c0_358, %c0_359] : memref<81x32x3xf32, #tpu.memory_space<vmem>>, vector<1x32x3xf32>
    %397 = vector.shape_cast %396 : vector<1x32x3xf32> to vector<32x3xf32>
    %c0_360 = arith.constant 0 : index
    %c0_361 = arith.constant 0 : index
    %c171 = arith.constant 171 : index
    %398 = vector.load %arg2[%c0_360, %c0_361, %c171] : memref<1x3x640xf32, #tpu.memory_space<vmem>>, vector<1x3x384xf32>
    %399 = vector.shape_cast %398 : vector<1x3x384xf32> to vector<3x384xf32>
    %cst_362 = arith.constant dense<0.000000e+00> : vector<32x384xf32>
    %400 = tpu.matmul %397, %399, %cst_362 {dimension_numbers = #tpu.dot_dimension_numbers<[1], [0], [0], [1], [0, 0, 1, 1], [], []>} : vector<32x3xf32>, vector<3x384xf32>, vector<32x384xf32> -> vector<32x384xf32>
    %401 = arith.addf %395, %400 : vector<32x384xf32>
    %c67 = arith.constant 67 : index
    %c0_363 = arith.constant 0 : index
    %c0_364 = arith.constant 0 : index
    %402 = vector.load %arg3[%c67, %c0_363, %c0_364] : memref<81x32x3xf32, #tpu.memory_space<vmem>>, vector<1x32x3xf32>
    %403 = vector.shape_cast %402 : vector<1x32x3xf32> to vector<32x3xf32>
    %c0_365 = arith.constant 0 : index
    %c0_366 = arith.constant 0 : index
    %c172 = arith.constant 172 : index
    %404 = vector.load %arg2[%c0_365, %c0_366, %c172] : memref<1x3x640xf32, #tpu.memory_space<vmem>>, vector<1x3x384xf32>
    %405 = vector.shape_cast %404 : vector<1x3x384xf32> to vector<3x384xf32>
    %cst_367 = arith.constant dense<0.000000e+00> : vector<32x384xf32>
    %406 = tpu.matmul %403, %405, %cst_367 {dimension_numbers = #tpu.dot_dimension_numbers<[1], [0], [0], [1], [0, 0, 1, 1], [], []>} : vector<32x3xf32>, vector<3x384xf32>, vector<32x384xf32> -> vector<32x384xf32>
    %407 = arith.addf %401, %406 : vector<32x384xf32>
    %c68 = arith.constant 68 : index
    %c0_368 = arith.constant 0 : index
    %c0_369 = arith.constant 0 : index
    %408 = vector.load %arg3[%c68, %c0_368, %c0_369] : memref<81x32x3xf32, #tpu.memory_space<vmem>>, vector<1x32x3xf32>
    %409 = vector.shape_cast %408 : vector<1x32x3xf32> to vector<32x3xf32>
    %c0_370 = arith.constant 0 : index
    %c0_371 = arith.constant 0 : index
    %c173 = arith.constant 173 : index
    %410 = vector.load %arg2[%c0_370, %c0_371, %c173] : memref<1x3x640xf32, #tpu.memory_space<vmem>>, vector<1x3x384xf32>
    %411 = vector.shape_cast %410 : vector<1x3x384xf32> to vector<3x384xf32>
    %cst_372 = arith.constant dense<0.000000e+00> : vector<32x384xf32>
    %412 = tpu.matmul %409, %411, %cst_372 {dimension_numbers = #tpu.dot_dimension_numbers<[1], [0], [0], [1], [0, 0, 1, 1], [], []>} : vector<32x3xf32>, vector<3x384xf32>, vector<32x384xf32> -> vector<32x384xf32>
    %413 = arith.addf %407, %412 : vector<32x384xf32>
    %c69 = arith.constant 69 : index
    %c0_373 = arith.constant 0 : index
    %c0_374 = arith.constant 0 : index
    %414 = vector.load %arg3[%c69, %c0_373, %c0_374] : memref<81x32x3xf32, #tpu.memory_space<vmem>>, vector<1x32x3xf32>
    %415 = vector.shape_cast %414 : vector<1x32x3xf32> to vector<32x3xf32>
    %c0_375 = arith.constant 0 : index
    %c0_376 = arith.constant 0 : index
    %c174 = arith.constant 174 : index
    %416 = vector.load %arg2[%c0_375, %c0_376, %c174] : memref<1x3x640xf32, #tpu.memory_space<vmem>>, vector<1x3x384xf32>
    %417 = vector.shape_cast %416 : vector<1x3x384xf32> to vector<3x384xf32>
    %cst_377 = arith.constant dense<0.000000e+00> : vector<32x384xf32>
    %418 = tpu.matmul %415, %417, %cst_377 {dimension_numbers = #tpu.dot_dimension_numbers<[1], [0], [0], [1], [0, 0, 1, 1], [], []>} : vector<32x3xf32>, vector<3x384xf32>, vector<32x384xf32> -> vector<32x384xf32>
    %419 = arith.addf %413, %418 : vector<32x384xf32>
    %c70 = arith.constant 70 : index
    %c0_378 = arith.constant 0 : index
    %c0_379 = arith.constant 0 : index
    %420 = vector.load %arg3[%c70, %c0_378, %c0_379] : memref<81x32x3xf32, #tpu.memory_space<vmem>>, vector<1x32x3xf32>
    %421 = vector.shape_cast %420 : vector<1x32x3xf32> to vector<32x3xf32>
    %c0_380 = arith.constant 0 : index
    %c0_381 = arith.constant 0 : index
    %c175 = arith.constant 175 : index
    %422 = vector.load %arg2[%c0_380, %c0_381, %c175] : memref<1x3x640xf32, #tpu.memory_space<vmem>>, vector<1x3x384xf32>
    %423 = vector.shape_cast %422 : vector<1x3x384xf32> to vector<3x384xf32>
    %cst_382 = arith.constant dense<0.000000e+00> : vector<32x384xf32>
    %424 = tpu.matmul %421, %423, %cst_382 {dimension_numbers = #tpu.dot_dimension_numbers<[1], [0], [0], [1], [0, 0, 1, 1], [], []>} : vector<32x3xf32>, vector<3x384xf32>, vector<32x384xf32> -> vector<32x384xf32>
    %425 = arith.addf %419, %424 : vector<32x384xf32>
    %c71 = arith.constant 71 : index
    %c0_383 = arith.constant 0 : index
    %c0_384 = arith.constant 0 : index
    %426 = vector.load %arg3[%c71, %c0_383, %c0_384] : memref<81x32x3xf32, #tpu.memory_space<vmem>>, vector<1x32x3xf32>
    %427 = vector.shape_cast %426 : vector<1x32x3xf32> to vector<32x3xf32>
    %c0_385 = arith.constant 0 : index
    %c0_386 = arith.constant 0 : index
    %c176 = arith.constant 176 : index
    %428 = vector.load %arg2[%c0_385, %c0_386, %c176] : memref<1x3x640xf32, #tpu.memory_space<vmem>>, vector<1x3x384xf32>
    %429 = vector.shape_cast %428 : vector<1x3x384xf32> to vector<3x384xf32>
    %cst_387 = arith.constant dense<0.000000e+00> : vector<32x384xf32>
    %430 = tpu.matmul %427, %429, %cst_387 {dimension_numbers = #tpu.dot_dimension_numbers<[1], [0], [0], [1], [0, 0, 1, 1], [], []>} : vector<32x3xf32>, vector<3x384xf32>, vector<32x384xf32> -> vector<32x384xf32>
    %431 = arith.addf %425, %430 : vector<32x384xf32>
    %c72_388 = arith.constant 72 : index
    %c0_389 = arith.constant 0 : index
    %c0_390 = arith.constant 0 : index
    %432 = vector.load %arg3[%c72_388, %c0_389, %c0_390] : memref<81x32x3xf32, #tpu.memory_space<vmem>>, vector<1x32x3xf32>
    %433 = vector.shape_cast %432 : vector<1x32x3xf32> to vector<32x3xf32>
    %c0_391 = arith.constant 0 : index
    %c0_392 = arith.constant 0 : index
    %c192 = arith.constant 192 : index
    %434 = vector.load %arg2[%c0_391, %c0_392, %c192] : memref<1x3x640xf32, #tpu.memory_space<vmem>>, vector<1x3x384xf32>
    %435 = vector.shape_cast %434 : vector<1x3x384xf32> to vector<3x384xf32>
    %cst_393 = arith.constant dense<0.000000e+00> : vector<32x384xf32>
    %436 = tpu.matmul %433, %435, %cst_393 {dimension_numbers = #tpu.dot_dimension_numbers<[1], [0], [0], [1], [0, 0, 1, 1], [], []>} : vector<32x3xf32>, vector<3x384xf32>, vector<32x384xf32> -> vector<32x384xf32>
    %437 = arith.addf %431, %436 : vector<32x384xf32>
    %c73_394 = arith.constant 73 : index
    %c0_395 = arith.constant 0 : index
    %c0_396 = arith.constant 0 : index
    %438 = vector.load %arg3[%c73_394, %c0_395, %c0_396] : memref<81x32x3xf32, #tpu.memory_space<vmem>>, vector<1x32x3xf32>
    %439 = vector.shape_cast %438 : vector<1x32x3xf32> to vector<32x3xf32>
    %c0_397 = arith.constant 0 : index
    %c0_398 = arith.constant 0 : index
    %c193 = arith.constant 193 : index
    %440 = vector.load %arg2[%c0_397, %c0_398, %c193] : memref<1x3x640xf32, #tpu.memory_space<vmem>>, vector<1x3x384xf32>
    %441 = vector.shape_cast %440 : vector<1x3x384xf32> to vector<3x384xf32>
    %cst_399 = arith.constant dense<0.000000e+00> : vector<32x384xf32>
    %442 = tpu.matmul %439, %441, %cst_399 {dimension_numbers = #tpu.dot_dimension_numbers<[1], [0], [0], [1], [0, 0, 1, 1], [], []>} : vector<32x3xf32>, vector<3x384xf32>, vector<32x384xf32> -> vector<32x384xf32>
    %443 = arith.addf %437, %442 : vector<32x384xf32>
    %c74_400 = arith.constant 74 : index
    %c0_401 = arith.constant 0 : index
    %c0_402 = arith.constant 0 : index
    %444 = vector.load %arg3[%c74_400, %c0_401, %c0_402] : memref<81x32x3xf32, #tpu.memory_space<vmem>>, vector<1x32x3xf32>
    %445 = vector.shape_cast %444 : vector<1x32x3xf32> to vector<32x3xf32>
    %c0_403 = arith.constant 0 : index
    %c0_404 = arith.constant 0 : index
    %c194 = arith.constant 194 : index
    %446 = vector.load %arg2[%c0_403, %c0_404, %c194] : memref<1x3x640xf32, #tpu.memory_space<vmem>>, vector<1x3x384xf32>
    %447 = vector.shape_cast %446 : vector<1x3x384xf32> to vector<3x384xf32>
    %cst_405 = arith.constant dense<0.000000e+00> : vector<32x384xf32>
    %448 = tpu.matmul %445, %447, %cst_405 {dimension_numbers = #tpu.dot_dimension_numbers<[1], [0], [0], [1], [0, 0, 1, 1], [], []>} : vector<32x3xf32>, vector<3x384xf32>, vector<32x384xf32> -> vector<32x384xf32>
    %449 = arith.addf %443, %448 : vector<32x384xf32>
    %c75_406 = arith.constant 75 : index
    %c0_407 = arith.constant 0 : index
    %c0_408 = arith.constant 0 : index
    %450 = vector.load %arg3[%c75_406, %c0_407, %c0_408] : memref<81x32x3xf32, #tpu.memory_space<vmem>>, vector<1x32x3xf32>
    %451 = vector.shape_cast %450 : vector<1x32x3xf32> to vector<32x3xf32>
    %c0_409 = arith.constant 0 : index
    %c0_410 = arith.constant 0 : index
    %c195 = arith.constant 195 : index
    %452 = vector.load %arg2[%c0_409, %c0_410, %c195] : memref<1x3x640xf32, #tpu.memory_space<vmem>>, vector<1x3x384xf32>
    %453 = vector.shape_cast %452 : vector<1x3x384xf32> to vector<3x384xf32>
    %cst_411 = arith.constant dense<0.000000e+00> : vector<32x384xf32>
    %454 = tpu.matmul %451, %453, %cst_411 {dimension_numbers = #tpu.dot_dimension_numbers<[1], [0], [0], [1], [0, 0, 1, 1], [], []>} : vector<32x3xf32>, vector<3x384xf32>, vector<32x384xf32> -> vector<32x384xf32>
    %455 = arith.addf %449, %454 : vector<32x384xf32>
    %c76_412 = arith.constant 76 : index
    %c0_413 = arith.constant 0 : index
    %c0_414 = arith.constant 0 : index
    %456 = vector.load %arg3[%c76_412, %c0_413, %c0_414] : memref<81x32x3xf32, #tpu.memory_space<vmem>>, vector<1x32x3xf32>
    %457 = vector.shape_cast %456 : vector<1x32x3xf32> to vector<32x3xf32>
    %c0_415 = arith.constant 0 : index
    %c0_416 = arith.constant 0 : index
    %c196 = arith.constant 196 : index
    %458 = vector.load %arg2[%c0_415, %c0_416, %c196] : memref<1x3x640xf32, #tpu.memory_space<vmem>>, vector<1x3x384xf32>
    %459 = vector.shape_cast %458 : vector<1x3x384xf32> to vector<3x384xf32>
    %cst_417 = arith.constant dense<0.000000e+00> : vector<32x384xf32>
    %460 = tpu.matmul %457, %459, %cst_417 {dimension_numbers = #tpu.dot_dimension_numbers<[1], [0], [0], [1], [0, 0, 1, 1], [], []>} : vector<32x3xf32>, vector<3x384xf32>, vector<32x384xf32> -> vector<32x384xf32>
    %461 = arith.addf %455, %460 : vector<32x384xf32>
    %c77_418 = arith.constant 77 : index
    %c0_419 = arith.constant 0 : index
    %c0_420 = arith.constant 0 : index
    %462 = vector.load %arg3[%c77_418, %c0_419, %c0_420] : memref<81x32x3xf32, #tpu.memory_space<vmem>>, vector<1x32x3xf32>
    %463 = vector.shape_cast %462 : vector<1x32x3xf32> to vector<32x3xf32>
    %c0_421 = arith.constant 0 : index
    %c0_422 = arith.constant 0 : index
    %c197 = arith.constant 197 : index
    %464 = vector.load %arg2[%c0_421, %c0_422, %c197] : memref<1x3x640xf32, #tpu.memory_space<vmem>>, vector<1x3x384xf32>
    %465 = vector.shape_cast %464 : vector<1x3x384xf32> to vector<3x384xf32>
    %cst_423 = arith.constant dense<0.000000e+00> : vector<32x384xf32>
    %466 = tpu.matmul %463, %465, %cst_423 {dimension_numbers = #tpu.dot_dimension_numbers<[1], [0], [0], [1], [0, 0, 1, 1], [], []>} : vector<32x3xf32>, vector<3x384xf32>, vector<32x384xf32> -> vector<32x384xf32>
    %467 = arith.addf %461, %466 : vector<32x384xf32>
    %c78_424 = arith.constant 78 : index
    %c0_425 = arith.constant 0 : index
    %c0_426 = arith.constant 0 : index
    %468 = vector.load %arg3[%c78_424, %c0_425, %c0_426] : memref<81x32x3xf32, #tpu.memory_space<vmem>>, vector<1x32x3xf32>
    %469 = vector.shape_cast %468 : vector<1x32x3xf32> to vector<32x3xf32>
    %c0_427 = arith.constant 0 : index
    %c0_428 = arith.constant 0 : index
    %c198 = arith.constant 198 : index
    %470 = vector.load %arg2[%c0_427, %c0_428, %c198] : memref<1x3x640xf32, #tpu.memory_space<vmem>>, vector<1x3x384xf32>
    %471 = vector.shape_cast %470 : vector<1x3x384xf32> to vector<3x384xf32>
    %cst_429 = arith.constant dense<0.000000e+00> : vector<32x384xf32>
    %472 = tpu.matmul %469, %471, %cst_429 {dimension_numbers = #tpu.dot_dimension_numbers<[1], [0], [0], [1], [0, 0, 1, 1], [], []>} : vector<32x3xf32>, vector<3x384xf32>, vector<32x384xf32> -> vector<32x384xf32>
    %473 = arith.addf %467, %472 : vector<32x384xf32>
    %c79_430 = arith.constant 79 : index
    %c0_431 = arith.constant 0 : index
    %c0_432 = arith.constant 0 : index
    %474 = vector.load %arg3[%c79_430, %c0_431, %c0_432] : memref<81x32x3xf32, #tpu.memory_space<vmem>>, vector<1x32x3xf32>
    %475 = vector.shape_cast %474 : vector<1x32x3xf32> to vector<32x3xf32>
    %c0_433 = arith.constant 0 : index
    %c0_434 = arith.constant 0 : index
    %c199 = arith.constant 199 : index
    %476 = vector.load %arg2[%c0_433, %c0_434, %c199] : memref<1x3x640xf32, #tpu.memory_space<vmem>>, vector<1x3x384xf32>
    %477 = vector.shape_cast %476 : vector<1x3x384xf32> to vector<3x384xf32>
    %cst_435 = arith.constant dense<0.000000e+00> : vector<32x384xf32>
    %478 = tpu.matmul %475, %477, %cst_435 {dimension_numbers = #tpu.dot_dimension_numbers<[1], [0], [0], [1], [0, 0, 1, 1], [], []>} : vector<32x3xf32>, vector<3x384xf32>, vector<32x384xf32> -> vector<32x384xf32>
    %479 = arith.addf %473, %478 : vector<32x384xf32>
    %c80_436 = arith.constant 80 : index
    %c0_437 = arith.constant 0 : index
    %c0_438 = arith.constant 0 : index
    %480 = vector.load %arg3[%c80_436, %c0_437, %c0_438] : memref<81x32x3xf32, #tpu.memory_space<vmem>>, vector<1x32x3xf32>
    %481 = vector.shape_cast %480 : vector<1x32x3xf32> to vector<32x3xf32>
    %c0_439 = arith.constant 0 : index
    %c0_440 = arith.constant 0 : index
    %c200 = arith.constant 200 : index
    %482 = vector.load %arg2[%c0_439, %c0_440, %c200] : memref<1x3x640xf32, #tpu.memory_space<vmem>>, vector<1x3x384xf32>
    %483 = vector.shape_cast %482 : vector<1x3x384xf32> to vector<3x384xf32>
    %cst_441 = arith.constant dense<0.000000e+00> : vector<32x384xf32>
    %484 = tpu.matmul %481, %483, %cst_441 {dimension_numbers = #tpu.dot_dimension_numbers<[1], [0], [0], [1], [0, 0, 1, 1], [], []>} : vector<32x3xf32>, vector<3x384xf32>, vector<32x384xf32> -> vector<32x384xf32>
    %485 = arith.addf %479, %484 : vector<32x384xf32>
    %486 = vector.broadcast %0 : vector<1x384xf32> to vector<32x384xf32>
    %487 = arith.mulf %485, %486 : vector<32x384xf32>
    %cst_442 = arith.constant dense<0.000000e+00> : vector<32xf32>
    %488 = vector.multi_reduction <add>, %487, %cst_442 [1] : vector<32x384xf32> to vector<32xf32>
    %489 = vector.shape_cast %488 : vector<32xf32> to vector<32x1xf32>
    %cst_443 = arith.constant 3.906250e-03 : f32
    %490 = vector.broadcast %cst_443 : f32 to vector<32x1xf32>
    %491 = arith.mulf %489, %490 : vector<32x1xf32>
    %492 = vector.broadcast %491 : vector<32x1xf32> to vector<32x384xf32>
    %493 = arith.subf %485, %492 : vector<32x384xf32>
    %494 = arith.mulf %493, %493 : vector<32x384xf32>
    %495 = vector.broadcast %0 : vector<1x384xf32> to vector<32x384xf32>
    %496 = arith.mulf %494, %495 : vector<32x384xf32>
    %cst_444 = arith.constant dense<0.000000e+00> : vector<32xf32>
    %497 = vector.multi_reduction <add>, %496, %cst_444 [1] : vector<32x384xf32> to vector<32xf32>
    %498 = vector.shape_cast %497 : vector<32xf32> to vector<32x1xf32>
    %cst_445 = arith.constant 3.906250e-03 : f32
    %499 = vector.broadcast %cst_445 : f32 to vector<32x1xf32>
    %500 = arith.mulf %498, %499 : vector<32x1xf32>
    %cst_446 = arith.constant 9.99999974E-6 : f32
    %501 = vector.broadcast %cst_446 : f32 to vector<32x1xf32>
    %502 = arith.addf %500, %501 : vector<32x1xf32>
    %503 = math.rsqrt %502 : vector<32x1xf32>
    %504 = vector.broadcast %503 : vector<32x1xf32> to vector<32x384xf32>
    %505 = arith.mulf %493, %504 : vector<32x384xf32>
    %cst_447 = arith.constant 0.000000e+00 : f32
    %506 = vector.broadcast %cst_447 : f32 to vector<32x384xf32>
    %507 = arith.maximumf %505, %506 : vector<32x384xf32>
    %c0_448 = arith.constant 0 : index
    %c0_449 = arith.constant 0 : index
    %c0_450 = arith.constant 0 : index
    %508 = vector.load %arg5[%c0_448, %c0_449, %c0_450] : memref<1x32x384xf32, #tpu.memory_space<vmem>>, vector<1x32x384xf32>
    %509 = vector.shape_cast %508 : vector<1x32x384xf32> to vector<32x384xf32>
    %510 = vector.shape_cast %507 : vector<32x384xf32> to vector<1x32x384xf32>
    tpu.vector_store %arg5[%c0_448, %c0_449, %c0_450], %510 {strides = array<i32>} : memref<1x32x384xf32, #tpu.memory_space<vmem>>, vector<1x32x384xf32>,
    return
  }
  func.func @transform_0(%arg0: i32, %arg1: i32) -> (i32, i32, i32) {
    %c0_i32 = arith.constant 0 : i32
    %c0_i32_0 = arith.constant 0 : i32
    %c0_i32_1 = arith.constant 0 : i32
    return %arg0, %c0_i32, %c0_i32_0 : i32, i32, i32
  }
  func.func @transform_1(%arg0: i32, %arg1: i32) -> (i32, i32, i32) {
    %c0_i32 = arith.constant 0 : i32
    %c0_i32_0 = arith.constant 0 : i32
    %c0_i32_1 = arith.constant 0 : i32
    return %c0_i32, %arg1, %c0_i32_0 : i32, i32, i32
  }
  func.func @transform_2(%arg0: i32, %arg1: i32) -> (i32, i32) {
    %c0_i32 = arith.constant 0 : i32
    %c0_i32_0 = arith.constant 0 : i32
    %c0_i32_1 = arith.constant 0 : i32
    return %c0_i32, %c0_i32_0 : i32, i32
  }
  func.func @transform_3(%arg0: i32, %arg1: i32) -> (i32, i32, i32) {
    %c0_i32 = arith.constant 0 : i32
    %c0_i32_0 = arith.constant 0 : i32
    return %arg0, %arg1, %c0_i32 : i32, i32, i32
  }
}

</mosaic_0001>

<bundles_post_ra>
// kernel: tpu_custom_call.1
= control target key start
LH: loop header
LB: loop body
LE: loop exit
PB: predicated region body
PF: predicated region fallthrough
CT: control target
= control target key end

     0   :  { %8 = vsyncpa [#allocation3], 0  ;;  %s26217_s0 = inlined_call_operand.hbm [shape: f32[2,3,640], index: 0, kind: input, shape index: {}]   ;;  %s26218_s1 = inlined_call_operand.hbm [shape: f32[81,32,3], index: 1, kind: input, shape index: {}]   ;;  %s26219_s2 = inlined_call_operand.hbm [shape: f32[1,384], index: 2, kind: input, shape index: {}]   ;;  %s26220_s3 = inlined_call_operand.hbm [shape: f32[2,32,384], index: 3, kind: output, shape index: {}]  }
   0x1   :  { %10 = vsyncpa [#allocation3 + $0x1], 0 }
   0x2   :  { %11 = vsyncpa [#allocation6], 0 }
   0x3   :  { %12 = vsyncpa [#allocation4], 0 }
   0x4   :  { %14 = vsyncpa [#allocation4 + $0x1], 0  ;;  %s22546_s12 = smov 0   ;;  %s22548_s13 = smov 0  }
   0x5   :  { %s22550_s14 = smov 0   ;;  %s22552_s15 = smov 0  }
   0x6   :  { %s22554_s16 = smov 0   ;;  %s22556_s17 = smov 0  }
   0x7 LB: > { %s18840_s18 = sadd.s32 4294967295, %s22440_s17   ;;  %s18841_s19 = sadd.s32 4294967294, %s22440_s17   ;;  %s22440_s17 = sphi %s22556_s17, %s20_s17   ;;  %s22436_s16 = sphi %s22554_s16, %s26425_s16   ;;  %s22432_s15 = sphi %s22552_s15, %s26424_s15   ;;  %s22428_s14 = sphi %s22550_s14, %s26423_s14   ;;  %s22424_s13 = sphi %s22548_s13, %s26422_s13   ;;  %s22420_s12 = sphi %s22546_s12, %s26421_s12  }
   0x8   : > { %p52_p0 = scmp.ne.s32.totalorder %s22424_s13, %s22420_s12  ;;  %p22580_p1 = scmp.eq.s32.totalorder %s18840_s18, 0 }
   0x9   : > { %p22584_p2 = scmp.eq.s32.totalorder %s18840_s18, 1  ;;  %p131_p3 = scmp.eq.s32.totalorder %s18841_s19, 1 }
   0xa   : > { %s26297_s20 = scalar_select %p22580_p1, 1, 0 }
   0xb   : > { %p22590_p4 = por %p22580_p1, %p52_p0  ;;  %p18842_p5 = scmp.ge.s32.totalorder %s22440_s17, 1 }
   0xc   : > { %p22595_p6 = por %p131_p3, %p52_p0  ;;  %p138_p7 = scmp.lt.s32.totalorder %s22440_s17, 3 }
   0xd   : > { %s26299_s22 = scalar_select %p22590_p4, 1, 0 }
   0xe   : > { %s26300_s23 = scalar_select %p22595_p6, 1, 0 }
   0xf   : > { %p22600_p8 = pnand %p18842_p5, %p138_p7  ;;  %s22442_s25 = smov [#allocation5]  }
  0x10   : > { %s153_s26 = sshll.u32 %s22442_s25, 4  ;;  %s22443_s28 = smov [#allocation7]   ;;  %s22604_s26 = int_to_ptr.vmem [resolvable:$true] %s153_s26 }
  0x11   : > { %p21776_p9 = pneg %p22600_p8  ;;  %s167_s29 = sshll.u32 %s22443_s28, 4  ;;  %s22615_s29 = int_to_ptr.vmem [resolvable:$true] %s167_s29 }
  0x12   : > { %s22268_s5 = scalar_lea.hbm %s26218_s1, 41472 }
  0x13   : > { %p22611_p11 = pnand %p21776_p9, %p22580_p1  ;;  %p22269_p12 = scmp.ne.s32.totalorder %s26218_s1, %s22268_s5 }
  0x14   : > { %p22275_p5 = scmp.lt.u32.totalorder %s22268_s5, %s26218_s1 }
  0x15   : > { %p22270_p13 = pneg %p22611_p11 }
  0x17   : > { %p22271_p0 = pnand %p22270_p13, %p22269_p12 }
  0x19   : > { %p22272_p3 = pneg %p22271_p0 }
  0x1b   : > { %p22277_p7 = pnand %p22275_p5, %p22272_p3 }
  0x1d   : > { %22280 = shalt.err (!%p22277_p7)
}
  0x1e   : > { %s22281_s10 = scalar_lea.vmem %s22604_s26, 41472  ;;  %p22289_p1 = scmp.lt.s32.totalorder %s22604_s26, %s22604_s26 }
  0x1f   : > { %p22282_p9 = scmp.ne.s32.totalorder %s22604_s26, %s22281_s10  ;;  %p22290_p12 = scmp.lt.s32.totalorder %s22281_s10, %s22281_s10 }
  0x21   : > { %p22284_p10 = pnand %p22282_p9, %p22270_p13  ;;  %p22291_p0 = por %p22290_p12, %p22289_p1 }
  0x23   : > { %p22285_p6 = pneg %p22284_p10 }
  0x25   : > { %p22292_p4 = pnand %p22291_p0, %p22285_p6 }
  0x27   : > { %22295 = shalt.err (!%p22292_p4)
}
  0x28   : > { %s22444_s11 = smov 128   ;;  %s22445_s18 = smov 8  }
  0x29   : > { %21779 = dma.hbm_to_vmem [thread:$0]  (!%p22611_p11), %s26218_s1, 41472, %s22604_s26, [#allocation6], %s22444_s11, %s22444_s11, %s22445_s18  }
  0x2a   : > { %s22296_s4 = scalar_lea.hbm %s26219_s2, 48 }
  0x2b   : > { %p22297_p1 = scmp.ne.s32.totalorder %s26219_s2, %s22296_s4  ;;  %p22303_p10 = scmp.lt.u32.totalorder %s22296_s4, %s26219_s2 }
  0x2d   : > { %p22299_p4 = pnand %p22297_p1, %p22270_p13 }
  0x2f   : > { %p22300_p6 = pneg %p22299_p4 }
  0x31   : > { %p22305_p3 = pnand %p22303_p10, %p22300_p6 }
  0x33   : > { %22308 = shalt.err (!%p22305_p3)
}
  0x34   : > { %s22309_s26 = scalar_lea.vmem %s22615_s29, 48  ;;  %s22316_s9 = scalar_lea.vmem %s22615_s29, 64 }
  0x35   : > { %p22310_p5 = scmp.ne.s32.totalorder %s22615_s29, %s22309_s26  ;;  %p22317_p12 = scmp.lt.s32.totalorder %s22615_s29, %s22615_s29 }
  0x36   : > { %p22318_p0 = scmp.lt.s32.totalorder %s22316_s9, %s22309_s26 }
  0x37   : > { %p22312_p7 = pnand %p22310_p5, %p22270_p13 }
  0x38   : > { %p22319_p1 = por %p22318_p0, %p22317_p12 }
  0x39   : > { %p22313_p9 = pneg %p22312_p7 }
  0x3b   : > { %p22320_p4 = pnand %p22319_p1, %p22313_p9 }
  0x3d   : > { %22323 = shalt.err (!%p22320_p4)
}
  0x3e   : > { %21782 = dma.hbm_to_vmem [thread:$0]  (!%p22611_p11), %s26219_s2, 48, %s22615_s29, [#allocation6]  }
  0x3f   : > { %s32_s18 = sadd.s32 1, %s22436_s16  ;;  %s39_s19 = sadd.s32 1, %s22428_s14 }
  0x40   : > { %p34_p13 = scmp.ge.s32.totalorder %s32_s18, 2  ;;  %p46_p6 = scmp.ne.s32.totalorder %s22428_s14, %s22424_s13 }
  0x41   : > { %p47_p10 = scmp.eq.s32.totalorder %s22440_s17, 0  ;;  %p21793_p3 = scmp.lt.s32.totalorder %s22440_s17, 2 }
  0x42   : > { %s26427_s18 = smov (%p34_p13, %s32_s18), 0  ;;  %p22680_p7 = por %p22584_p2, %p46_p6 }
  0x43   : > { %p48_p5 = por %p47_p10, %p46_p6  ;;  %s36_s25 = ssub.s32 %s22436_s16, %s26427_s18 }
  0x44   : > { %s26303_s27 = scalar_select %p22680_p7, 1, 0 }
  0x45   : > { %s178_s28 = sand.u32 1, %s22428_s14   ;;  %p37_p9 = scmp.eq.s32.totalorder %s36_s25, 0 }
  0x46   : > { %s21759_s29 = smul.u32 20, %s178_s28  ;;  %p22687_p11 = pnand %p21793_p3, %p48_p5 }
  0x47   : > { %s22692_s4 = scalar_select %p37_p9, %s22428_s14, %s39_s19  }
  0x48   : > { %s21760_s5 = smul.u32 320, %s22436_s16  ;;  %s182_s6 = scalar_lea.vmem [#allocation2], %s21759_s29 }
  0x49   : > { %s190_s7 = sshll.u32 %s182_s6, 4  ;;  %s179_s9 = scalar_lea.sflag [#allocation3], %s178_s28  ;;  %s22700_s7 = int_to_ptr.vmem [resolvable:$true] %s190_s7 }
  0x4a   : > { %s22698_s26 = scalar_lea.hbm %s26217_s0, %s21760_s5  ;;  %p22326_p12 = pneg %p22687_p11 }
  0x4b   : > { %s22324_s10 = scalar_lea.hbm %s22698_s26, 320  ;;  %s22329_s25 = scalar_lea.hbm %s26217_s0, 640 }
  0x4c   : > { %p22325_p2 = scmp.ne.s32.totalorder %s22698_s26, %s22324_s10  ;;  %p22330_p4 = scmp.lt.u32.totalorder %s22698_s26, %s26217_s0 }
  0x4d   : > { %p22331_p13 = scmp.lt.u32.totalorder %s22329_s25, %s22324_s10  ;;  %p22333_p10 = scmp.lt.u32.totalorder %s22324_s10, %s22698_s26 }
  0x4e   : > { %p22327_p0 = pnand %p22326_p12, %p22325_p2 }
  0x4f   : > { %p22332_p6 = por %p22331_p13, %p22330_p4 }
  0x50   : > { %p22328_p1 = pneg %p22327_p0 }
  0x51   : > { %p22334_p3 = por %p22333_p10, %p22332_p6 }
  0x53   : > { %p22335_p5 = pnand %p22334_p3, %p22328_p1 }
  0x55   : > { %22338 = shalt.err (!%p22335_p5)
}
  0x56   : > { %s22339_s28 = scalar_lea.vmem %s22700_s7, 320  ;;  %s22446_s6 = smov [#allocation2]  }
  0x57   : > { %p22340_p9 = scmp.ne.s32.totalorder %s22700_s7, %s22339_s28  ;;  %s22344_s21 = sshll.u32 %s22446_s6, 4  ;;  %s22345_s21 = int_to_ptr.vmem [resolvable:$false] %s22344_s21 }
  0x58   : > { %s22346_s8 = scalar_lea.vmem %s22345_s21, 640  ;;  %p22347_p7 = scmp.lt.s32.totalorder %s22700_s7, %s22345_s21 }
  0x59   : > { %p22342_p2 = pnand %p22340_p9, %p22326_p12  ;;  %p22348_p4 = scmp.lt.s32.totalorder %s22346_s8, %s22339_s28 }
  0x5b   : > { %p22343_p0 = pneg %p22342_p2  ;;  %p22349_p13 = por %p22348_p4, %p22347_p7 }
  0x5d   : > { %p22350_p6 = pnand %p22349_p13, %p22343_p0 }
  0x5f   : > { %22353 = shalt.err (!%p22350_p6)
}
  0x60   : > { %21786 = dma.hbm_to_vmem [thread:$0]  (!%p22687_p11), %s22698_s26, 320, %s22700_s7, %s179_s9  }
  0x61   : > { %199 = sbr.rel (%p22600_p8) target bundleno = 1761 (0x6e1), region = 32 }
  0x68   : > { %s22730_s10 = sand.u32 1, %s22424_s13   ;;  %p26305_p7 = scmp.ne.s32.totalorder %s26299_s22, 0 }
  0x69   : > { %s21761_s11 = smul.u32 20, %s22730_s10  ;;  %s202_s19 = scalar_lea.sflag [#allocation3], %s22730_s10 }
  0x6b   : > { %s22734_s25 = scalar_lea.vmem [#allocation2], %s21761_s11 }
  0x6c   : > { %22407 = dma.done.wait (%p26305_p7), %s202_s19, 320  }
  0x6d   : > { %22409 = vsyncadd (%p26305_p7), %s202_s19, 4294966976  ;;  %p26306_p11 = scmp.ne.s32.totalorder %s26297_s20, 0 }
  0x6f   : > { %22411 = dma.done.wait (%p26306_p11), [#allocation6], 41520  }
  0x70   : > { %22413 = vsyncadd (%p26306_p11), [#allocation6], 4294925776  ;;  %v26255_v0 = vmov 0.0   ;;  %v4746_v1 = vld [vmem:[%s22734_s25 + $0x8] sm:$0x77]  ;;  %s22448_s22 = smov 78  }
  0x71   : > { %4845 = vmatprep.mubr.f32.mxu0 %v26255_v0  ;;  %351 = vmatprep.mubr.f32.mxu1 %v26255_v0  ;;  %v4745_v2 = vld [vmem:[%s22734_s25] sm:$0x77]  ;;  %s22449_s20 = smov 127   ;;  %v250_v6 = vld [vmem:[%s22734_s25 + $0x8] sm:$0x77]  ;;  %s22450_s24 = smov 77  }
  0x72   : > { %v22749_v3 = vld [vmem:[%s22734_s25] sm:$0x77]  ;;  %4755 = vrot.lane.b32.xlu0 %v4746_v1, %s22448_s22  ;;  %4751 = vrot.lane.b32.xlu1 %v4745_v2, %s22448_s22  ;;  %v4749_v4 = vcombine.high %v4745_v2, %v4745_v2  ;;  %v4973_v9 = vld [vmem:[%s22734_s25 + $0x8] sm:$0x77]  ;;  %v254_v10 = vcombine.high %v250_v6, %v250_v6  ;;  %s22451_s30 = smov 76   ;;  %s22452_s7 = smov 75  }
  0x73   : > { %v22755_v5 = vcombine.high %v22749_v3, %v22749_v3  ;;  %v4972_v7 = vld [vmem:[%s22734_s25] sm:$0x77]  ;;  %v5200_v13 = vld [vmem:[%s22734_s25 + $0x8] sm:$0x77]  ;;  %s22453_s26 = smov 126   ;;  %s22454_s9 = smov 74  }
  0x74   : > { %v4976_v8 = vcombine.high %v4972_v7, %v4972_v7  ;;  %v5199_v11 = vld [vmem:[%s22734_s25] sm:$0x77]  ;;  %v5427_v16 = vld [vmem:[%s22734_s25 + $0x8] sm:$0x77]  ;;  %s22455_s29 = smov 125   ;;  %s22456_s5 = smov 73  }
  0x75   : > { %v5203_v12 = vcombine.high %v5199_v11, %v5199_v11  ;;  %v5426_v14 = vld [vmem:[%s22734_s25] sm:$0x77]  ;;  %v660_v19 = vld [vmem:[%s22734_s25 + $0x8] sm:$0x77]  ;;  %s22457_s28 = smov 72   ;;  %s22458_s6 = smov 124  }
  0x76   : > { %4753 = vrot.lane.b32.xlu0 %v4749_v4, %s22448_s22  ;;  %257 = vrot.lane.b32.xlu1 %v22755_v5, %s22449_s20  ;;  %v5430_v15 = vcombine.high %v5426_v14, %v5426_v14  ;;  %v659_v17 = vld [vmem:[%s22734_s25] sm:$0x77]  ;;  %v5654_v22 = vld [vmem:[%s22734_s25 + $0x8] sm:$0x77]  ;;  %v664_v24 = vcombine.high %v660_v19, %v660_v19  ;;  %s26268_s21 = smov 56   ;;  %s22460_s8 = smov 123  }
  0x77   : > { %v663_v18 = vcombine.high %v659_v17, %v659_v17  ;;  %v5653_v20 = vld [vmem:[%s22734_s25] sm:$0x77]  ;;  %v887_v28 = vld [vmem:[%s22734_s25 + $0x8] sm:$0x77]  ;;  %s22461_s11 = smov 55   ;;  %s22462_s19 = smov 54  }
  0x78   : > { %v5657_v21 = vcombine.high %v5653_v20, %v5653_v20  ;;  %v886_v23 = vld [vmem:[%s22734_s25] sm:$0x77]  ;;  %v5881_v29 = vld [vmem:[%s22734_s25 + $0x8] sm:$0x77]  ;;  %v891_v30 = vcombine.high %v887_v28, %v887_v28  ;;  %vm4759_vm0 = vcmask 637952   ;;  %vm280_vm1 = vcmask 1042432  }
  0x79   : > { %v890_v25 = vcombine.high %v886_v23, %v886_v23  ;;  %v5880_v26 = vld [vmem:[%s22734_s25] sm:$0x77]  ;;  %v6108_v33 = vld [vmem:[%s22734_s25 + $0x8] sm:$0x77]  ;;  %vm267_vm2 = vcmask 23552   ;;  %vm263_vm3 = vcmask 1039360  }
  0x7a   : > { %259 = vrot.lane.b32.xlu0 %v250_v6, %s22449_s20  ;;  %255 = vrot.lane.b32.xlu1 %v22749_v3, %s22449_s20  ;;  %v5884_v27 = vcombine.high %v5880_v26, %v5880_v26  ;;  %v6107_v31 = vld [vmem:[%s22734_s25] sm:$0x77]  ;;  %v1114_v36 = vld [vmem:[%s22734_s25 + $0x8] sm:$0x77]  ;;  %vm4986_vm4 = vcmask 629760   ;;  %vm5213_vm5 = vcmask 621568  }
  0x7b   : > { %v6111_v32 = vcombine.high %v6107_v31, %v6107_v31  ;;  %v1113_v34 = vld [vmem:[%s22734_s25] sm:$0x77]  ;;  %v6335_v39 = vld [vmem:[%s22734_s25 + $0x8] sm:$0x77]  ;;  %v1118_v40 = vcombine.high %v1114_v36, %v1114_v36  ;;  %vm5440_vm6 = vcmask 613376   ;;  %vm673_vm7 = vcmask 1031168  }
  0x7c   : > { %v1117_v35 = vcombine.high %v1113_v34, %v1113_v34  ;;  %v6334_v37 = vld [vmem:[%s22734_s25] sm:$0x77]  ;;  %v1341_v43 = vld [vmem:[%s22734_s25 + $0x8] sm:$0x77]  ;;  %vm5667_vm8 = vcmask 605184   ;;  %vm5894_vm9 = vcmask 596992  }
  0x7d   : > { %v6338_v38 = vcombine.high %v6334_v37, %v6334_v37  ;;  %v1340_v41 = vld [vmem:[%s22734_s25] sm:$0x77]  ;;  %v6562_v46 = vld [vmem:[%s22734_s25 + $0x8] sm:$0x77]  ;;  %v1345_v48 = vcombine.high %v1341_v43, %v1341_v43  ;;  %vm900_vm10 = vcmask 1022976   ;;  %vm6121_vm11 = vcmask 588800  }
  0x7e   : > { %4980 = vrot.lane.b32.xlu0 %v4976_v8, %s22450_s24  ;;  %4982 = vrot.lane.b32.xlu1 %v4973_v9, %s22450_s24  ;;  %v1344_v42 = vcombine.high %v1340_v41, %v1340_v41  ;;  %v6561_v44 = vld [vmem:[%s22734_s25] sm:$0x77]  ;;  %v6789_v50 = vld [vmem:[%s22734_s25 + $0x8] sm:$0x77]  ;;  %vm1127_vm12 = vcmask 1014784   ;;  %vm26283_vm13 = vcmask 457728  }
  0x7f   : > { %v6565_v45 = vcombine.high %v6561_v44, %v6561_v44  ;;  %v6788_v47 = vld [vmem:[%s22734_s25] sm:$0x77]  ;;  %v1568_v53 = vld [vmem:[%s22734_s25 + $0x8] sm:$0x77]  ;;  %vm6575_vm14 = vcmask 449536   ;;  %vm1354_vm15 = vcmask 1006592  }
  0x80   : > { %v6792_v49 = vcombine.high %v6788_v47, %v6788_v47  ;;  %v1567_v51 = vld [vmem:[%s22734_s25] sm:$0x77]  ;;  %v7016_v56 = vld [vmem:[%s22734_s25 + $0x8] sm:$0x77]  ;;  %v1572_v58 = vcombine.high %v1568_v53, %v1568_v53  ;;  %p26418_p12 = scmp.ne.s32.totalorder %s26303_s27, 0 }
  0x81   : > { %v1571_v52 = vcombine.high %v1567_v51, %v1567_v51  ;;  %v7015_v54 = vld [vmem:[%s22734_s25] sm:$0x77]  ;;  %v1795_v62 = vld [vmem:[%s22734_s25 + $0x8] sm:$0x77] }
  0x82   : > { %4978 = vrot.lane.b32.xlu0 %v4972_v7, %s22450_s24  ;;  %261 = vrot.lane.b32.xlu1 %v254_v10, %s22449_s20  ;;  %s22463_s20 = smov 122   ;;  %v7019_v55 = vcombine.high %v7015_v54, %v7015_v54  ;;  %v1794_v57 = vld [vmem:[%s22734_s25] sm:$0x77]  ;;  %v7243_v2 = vld [vmem:[%s22734_s25 + $0x8] sm:$0x77]  ;;  %v1799_v10 = vcombine.high %v1795_v62, %v1795_v62 }
  0x83   : > { %v1798_v59 = vcombine.high %v1794_v57, %v1794_v57  ;;  %v7242_v60 = vld [vmem:[%s22734_s25] sm:$0x77]  ;;  %v4741_v9 = vld [vmem:[#allocation5 + $0x280] sm:$0xff] }
  0x84   : > { %v7246_v61 = vcombine.high %v7242_v60, %v7242_v60 }
  0x86   : > { %5207 = vrot.lane.b32.xlu0 %v5203_v12, %s22451_s30  ;;  %5209 = vrot.lane.b32.xlu1 %v5200_v13, %s22451_s30 }
  0x8a   : > { %5205 = vrot.lane.b32.xlu0 %v5199_v11, %s22451_s30  ;;  %5434 = vrot.lane.b32.xlu1 %v5430_v15, %s22452_s7  ;;  %v7469_v11 = vld [vmem:[%s22734_s25] sm:$0x77] }
  0x8e   : > { %5436 = vrot.lane.b32.xlu0 %v5427_v16, %s22452_s7  ;;  %5432 = vrot.lane.b32.xlu1 %v5426_v14, %s22452_s7  ;;  %v4742_v16 = vld [vmem:[#allocation5 + $0x288] sm:$0xff] }
  0x92   : > { %667 = vrot.lane.b32.xlu0 %v663_v18, %s22453_s26  ;;  %669 = vrot.lane.b32.xlu1 %v660_v19, %s22453_s26  ;;  %v7473_v18 = vcombine.high %v7469_v11, %v7469_v11 }
  0x96   : > { %665 = vrot.lane.b32.xlu0 %v659_v17, %s22453_s26  ;;  %5661 = vrot.lane.b32.xlu1 %v5657_v21, %s22454_s9  ;;  %v22848_v17 = vld [vmem:[#allocation5 + $0x20] sm:$0xff] }
  0x97   : > { %v7470_v21 = vld [vmem:[%s22734_s25 + $0x8] sm:$0x77] }
  0x9a   : > { %5663 = vrot.lane.b32.xlu0 %v5654_v22, %s22454_s9  ;;  %5659 = vrot.lane.b32.xlu1 %v5653_v20, %s22454_s9  ;;  %v2021_v22 = vld [vmem:[%s22734_s25] sm:$0x77] }
  0x9e   : > { %671 = vrot.lane.b32.xlu0 %v664_v24, %s22453_s26  ;;  %894 = vrot.lane.b32.xlu1 %v890_v25, %s22455_s29  ;;  %s22464_s26 = smov 53   ;;  %v4743_v24 = vld [vmem:[#allocation5 + $0x290] sm:$0xff]  ;;  %v247_v25 = vld [vmem:[#allocation5 + $0x28] sm:$0xff] }
  0xa2   : > { %896 = vrot.lane.b32.xlu0 %v887_v28, %s22455_s29  ;;  %5888 = vrot.lane.b32.xlu1 %v5884_v27, %s22456_s5 }
  0xa6   : > { %5890 = vrot.lane.b32.xlu0 %v5881_v29, %s22456_s5  ;;  %892 = vrot.lane.b32.xlu1 %v886_v23, %s22455_s29 }
  0xaa   : > { %5886 = vrot.lane.b32.xlu0 %v5880_v26, %s22456_s5  ;;  %898 = vrot.lane.b32.xlu1 %v891_v30, %s22455_s29  ;;  %s22465_s29 = smov 121   ;;  %v2025_v26 = vcombine.high %v2021_v22, %v2021_v22 }
  0xae   : > { %6115 = vrot.lane.b32.xlu0 %v6111_v32, %s22457_s28  ;;  %6117 = vrot.lane.b32.xlu1 %v6108_v33, %s22457_s28  ;;  %v248_v32 = vld [vmem:[#allocation5 + $0x30] sm:$0xff] }
  0xaf   : > { %v2022_v33 = vld [vmem:[%s22734_s25 + $0x8] sm:$0x77] }
  0xb2   : > { %6113 = vrot.lane.b32.xlu0 %v6107_v31, %s22457_s28  ;;  %1121 = vrot.lane.b32.xlu1 %v1117_v35, %s22458_s6  ;;  %v4968_v31 = vld [vmem:[#allocation5 + $0x2a0] sm:$0xff] }
  0xb6   : > { %1123 = vrot.lane.b32.xlu0 %v1114_v36, %s22458_s6  ;;  %1119 = vrot.lane.b32.xlu1 %v1113_v34, %s22458_s6  ;;  %v7696_v34 = vld [vmem:[%s22734_s25] sm:$0x77] }
  0xba   : > { %6342 = vrot.lane.b32.xlu0 %v6338_v38, %s26268_s21  ;;  %6344 = vrot.lane.b32.xlu1 %v6335_v39, %s26268_s21  ;;  %v249_v39 = vld [vmem:[#allocation5 + $0x38] sm:$0xff] }
  0xbe   : > { %6340 = vrot.lane.b32.xlu0 %v6334_v37, %s26268_s21  ;;  %1125 = vrot.lane.b32.xlu1 %v1118_v40, %s22458_s6  ;;  %s22466_s6 = smov 52   ;;  %v4969_v37 = vld [vmem:[#allocation5 + $0x2a8] sm:$0xff]  ;;  %v7700_v40 = vcombine.high %v7696_v34, %v7696_v34 }
  0xc2   : > { %1348 = vrot.lane.b32.xlu0 %v1344_v42, %s22460_s8  ;;  %1350 = vrot.lane.b32.xlu1 %v1341_v43, %s22460_s8  ;;  %v7697_v43 = vld [vmem:[%s22734_s25 + $0x8] sm:$0x77] }
  0xc6   : > { %6569 = vrot.lane.b32.xlu0 %v6565_v45, %s22461_s11  ;;  %6571 = vrot.lane.b32.xlu1 %v6562_v46, %s22461_s11  ;;  %v4970_v45 = vld [vmem:[#allocation5 + $0x2b0] sm:$0xff]  ;;  %v2026_v46 = vcombine.high %v2022_v33, %v2022_v33 }
  0xca   : > { %1346 = vrot.lane.b32.xlu0 %v1340_v41, %s22460_s8  ;;  %6567 = vrot.lane.b32.xlu1 %v6561_v44, %s22461_s11 }
  0xce   : > { %1352 = vrot.lane.b32.xlu0 %v1345_v48, %s22460_s8  ;;  %6796 = vrot.lane.b32.xlu1 %v6792_v49, %s22462_s19  ;;  %s22467_s8 = smov 51   ;;  %v4971_v49 = vld [vmem:[#allocation5 + $0x2b8] sm:$0xff] }
  0xd2   : > { %6798 = vrot.lane.b32.xlu0 %v6789_v50, %s22462_s19  ;;  %6794 = vrot.lane.b32.xlu1 %v6788_v47, %s22462_s19  ;;  %v244_v50 = vld [vmem:[%s22734_s25 + $0x8] sm:$0x7] }
  0xd6   : > { %1575 = vrot.lane.b32.xlu0 %v1571_v52, %s22463_s20  ;;  %1577 = vrot.lane.b32.xlu1 %v1568_v53, %s22463_s20  ;;  %v7923_v52 = vld [vmem:[%s22734_s25] sm:$0x77] }
  0xda   : > { %1573 = vrot.lane.b32.xlu0 %v1567_v51, %s22463_s20  ;;  %7023 = vrot.lane.b32.xlu1 %v7019_v55, %s22464_s26  ;;  %v2249_v55 = vld [vmem:[%s22734_s25 + $0x8] sm:$0x77] }
  0xde   : > { %7025 = vrot.lane.b32.xlu0 %v7016_v56, %s22464_s26  ;;  %7021 = vrot.lane.b32.xlu1 %v7015_v54, %s22464_s26 }
  0xe2   : > { %1579 = vrot.lane.b32.xlu0 %v1572_v58, %s22463_s20  ;;  %1802 = vrot.lane.b32.xlu1 %v1798_v59, %s22465_s29  ;;  %s22468_s20 = smov 120   ;;  %v7927_v58 = vcombine.high %v7923_v52, %v7923_v52 }
  0xe4   : > { %v22825_v63 = vpop.permute.xlu0 %4755  ;;  %v4752_v1 = vpop.permute.xlu1 %4751 }
  0xe6   : > { %1804 = vrot.lane.b32.xlu0 %v1795_v62, %s22465_s29  ;;  %7250 = vrot.lane.b32.xlu1 %v7246_v61, %s22466_s6  ;;  %v7924_v61 = vld [vmem:[%s22734_s25 + $0x8] sm:$0x77]  ;;  %v5196_v62 = vld [vmem:[#allocation5 + $0x2c8] sm:$0xff] }
  0xe8   : > { %v4754_v4 = vpop.permute.xlu0 %4753  ;;  %v258_v6 = vpop.permute.xlu1 %257 }
  0xe9   : > { %v22832_v7 = vsel %vm4759_vm0, %v4754_v4, %v22825_v63  ;;  %v22835_v8 = vsel %vm4759_vm0, %v4752_v1, %v4754_v4 }
  0xea   : > { %19070 = vmatprep.subr.msk.mxu0 %vm280_vm1, %v22832_v7  ;;  %7252 = vrot.lane.b32.xlu0 %v7243_v2, %s22466_s6  ;;  %v240_v2 = vld [vmem:[#allocation5 + $0x8] sm:$0xff] }
  0xeb   : > { %1800 = vrot.lane.b32.xlu1 %v1794_v57, %s22465_s29  ;;  %19071 = vmatpush1.msk.msra.mxu0 %vm280_vm1, %v22835_v8  ;;  %v5195_v57 = vld [vmem:[#allocation5 + $0x2c0] sm:$0xff] }
  0xec   : > { %19072 = vmatmul.mubr.msk.f32.vlgmr.msra.gmra.mrb[0].mxu0 %vm267_vm2, %v4741_v9  ;;  %v260_v12 = vpop.permute.xlu0 %259  ;;  %v256_v13 = vpop.permute.xlu1 %255 }
  0xed   : > { %v265_v14 = vsel %vm263_vm3, %v258_v6, %v260_v12  ;;  %v264_v15 = vsel %vm263_vm3, %v256_v13, %v258_v6  ;;  %4851 = vmatprep.mubr.f32.mxu0 %v26255_v0  ;;  %v2253_v13 = vcombine.high %v2249_v55, %v2249_v55 }
  0xee   : > { %7248 = vrot.lane.b32.xlu0 %v7242_v60, %s22466_s6  ;;  %18850 = vmatprep.subr.msk.mxu1 %vm280_vm1, %v265_v14  ;;  %v241_v14 = vld [vmem:[#allocation5 + $0x10] sm:$0xff] }
  0xef   : > { %1806 = vrot.lane.b32.xlu1 %v1799_v10, %s22465_s29  ;;  %18851 = vmatpush1.msk.msra.mxu1 %vm280_vm1, %v264_v15  ;;  %s26225_s29 = smov 50   ;;  %v8150_v10 = vld [vmem:[%s22734_s25] sm:$0x77] }
  0xf0   : > { %19073 = vmatmul.mubr.msk.f32.gmra.mrb[2].mxu0 %vm267_vm2, %v4742_v16  ;;  %v4981_v19 = vpop.permute.xlu0 %4980  ;;  %18852 = vmatmul.mubr.msk.f32.vlgmr.msra.gmra.mrb[0].mxu1 %vm267_vm2, %v22848_v17  ;;  %v22857_v20 = vpop.permute.xlu1 %4982  ;;  %v8154_v15 = vcombine.high %v8150_v10, %v8150_v10 }
  0xf1   : > { %v4988_v23 = vsel %vm4986_vm4, %v4981_v19, %v22857_v20  ;;  %357 = vmatprep.mubr.f32.mxu1 %v26255_v0  ;;  %4857 = vmatprep.mubr.f32.mxu0 %v26255_v0 }
  0xf2   : > { %7477 = vrot.lane.b32.xlu0 %v7473_v18, %s22467_s8  ;;  %19081 = vmatprep.subr.msk.mxu0 %vm280_vm1, %v4988_v23  ;;  %v5198_v18 = vld [vmem:[#allocation5 + $0x2d8] sm:$0xff] }
  0xf3   : > { %7479 = vrot.lane.b32.xlu1 %v7470_v21, %s22467_s8  ;;  %v8151_v21 = vld [vmem:[%s22734_s25 + $0x8] sm:$0x77] }
  0xf4   : > { %19074 = vmatmul.mubr.msk.f32.gmra.mrb[4].mxu0 %vm267_vm2, %v4743_v24  ;;  %v4979_v27 = vpop.permute.xlu0 %4978  ;;  %18853 = vmatmul.mubr.msk.f32.gmra.mrb[2].mxu1 %vm267_vm2, %v247_v25  ;;  %v262_v28 = vpop.permute.xlu1 %261 }
  0xf5   : > { %v4987_v29 = vsel %vm4986_vm4, %v4979_v27, %v4981_v19  ;;  %v266_v30 = vsel %vm263_vm3, %v260_v12, %v262_v28  ;;  %363 = vmatprep.mubr.f32.mxu1 %v26255_v0  ;;  %5072 = vmatprep.mubr.f32.mxu0 %v26255_v0  ;;  %v242_v19 = vld [vmem:[#allocation5 + $0x18] sm:$0xff]  ;;  %vm6802_vm3 = vcmask 441344  }
  0xf6   : > { %7475 = vrot.lane.b32.xlu0 %v7469_v11, %s22467_s8  ;;  %20149 = vmatprep.subr.msk.mxu1 %vm280_vm1, %v266_v30  ;;  %v5197_v11 = vld [vmem:[#allocation5 + $0x2d0] sm:$0xff] }
  0xf7   : > { %2029 = vrot.lane.b32.xlu1 %v2025_v26, %s22468_s20  ;;  %19082 = vmatpush1.msk.msra.mxu0 %vm280_vm1, %v4987_v29 }
  0xf8   : > { %20150 = vmatpush3.msk.msra.mxu1 %vm280_vm1, %v266_v30  ;;  %v5208_v35 = vpop.permute.xlu0 %5207  ;;  %19083 = vmatmul.mubr.msk.f32.vlgmr.msra.gmra.mrb[0].mxu0 %vm267_vm2, %v4968_v31  ;;  %v22882_v36 = vpop.permute.xlu1 %5209  ;;  %v2476_v30 = vld [vmem:[%s22734_s25 + $0x8] sm:$0x77]  ;;  %v8377_v31 = vld [vmem:[%s22734_s25] sm:$0x77] }
  0xf9   : > { %18854 = vmatmul.mubr.msk.f32.gmra.mrb[4].mxu1 %vm267_vm2, %v248_v32  ;;  %5078 = vmatprep.mubr.f32.mxu0 %v26255_v0  ;;  %v5215_v38 = vsel %vm5213_vm5, %v5208_v35, %v22882_v36 }
  0xfa   : > { %2031 = vrot.lane.b32.xlu0 %v2022_v33, %s22468_s20  ;;  %369 = vmatprep.mubr.f32.mxu1 %v26255_v0  ;;  %v5423_v33 = vld [vmem:[#allocation5 + $0x2e8] sm:$0xff] }
  0xfb   : > { %2027 = vrot.lane.b32.xlu1 %v2021_v22, %s22468_s20  ;;  %19092 = vmatprep.subr.msk.mxu0 %vm280_vm1, %v5215_v38  ;;  %v2475_v22 = vld [vmem:[%s22734_s25] sm:$0x77] }
  0xfc   : > { %v5206_v41 = vpop.permute.xlu0 %5205  ;;  %19084 = vmatmul.mubr.msk.f32.gmra.mrb[2].mxu0 %vm267_vm2, %v4969_v37  ;;  %v5435_v42 = vpop.permute.xlu1 %5434  ;;  %18861 = vmatprep.subr.msk.mxu1 %vm280_vm1, %v22755_v5  ;;  %v2248_v5 = vld [vmem:[%s22734_s25] sm:$0x77]  ;;  %v2479_v26 = vcombine.high %v2475_v22, %v2475_v22 }
  0xfd   : > { %v5214_v44 = vsel %vm5213_vm5, %v5206_v41, %v5208_v35  ;;  %18855 = vmatmul.mubr.msk.f32.gmra.mrb[6].mxu1 %vm267_vm2, %v249_v39  ;;  %5084 = vmatprep.mubr.f32.mxu0 %v26255_v0  ;;  %v2252_v51 = vcombine.high %v2248_v5, %v2248_v5  ;;  %v655_v41 = vld [vmem:[#allocation5 + $0x40] sm:$0xff] }
  0xfe   : > { %7704 = vrot.lane.b32.xlu0 %v7700_v40, %s26225_s29  ;;  %20151 = vmatprep.mubr.msk.f32.mxu1 %vm267_vm2, %v22848_v17 }
  0xff   : > { %7706 = vrot.lane.b32.xlu1 %v7697_v43, %s26225_s29  ;;  %19093 = vmatpush1.msk.msra.mxu0 %vm280_vm1, %v5214_v44 }
 0x100   : > { %v22905_v47 = vpop.permute.xlu0 %5436  ;;  %19085 = vmatmul.mubr.msk.f32.gmra.mrb[4].mxu0 %vm267_vm2, %v4970_v45  ;;  %v5433_v48 = vpop.permute.xlu1 %5432  ;;  %v2702_v45 = vld [vmem:[%s22734_s25] sm:$0x77] }
 0x101   : > { %20152 = vmatmul.mubr.msk.f32.vlgmr.msra.gmra.mrb[8].mxu1 %vm267_vm2, %v247_v25  ;;  %5090 = vmatprep.mubr.f32.mxu0 %v26255_v0  ;;  %v5442_v56 = vsel %vm5440_vm6, %v5435_v42, %v22905_v47  ;;  %v5441_v4 = vsel %vm5440_vm6, %v5433_v48, %v5435_v42  ;;  %v5422_v25 = vld [vmem:[#allocation5 + $0x2e0] sm:$0xff]  ;;  %v2480_v48 = vcombine.high %v2476_v30, %v2476_v30 }
 0x102   : > { %7702 = vrot.lane.b32.xlu0 %v7696_v34, %s26225_s29  ;;  %20154 = vmatprep.mubr.msk.f32.mxu1 %vm267_vm2, %v248_v32  ;;  %s26226_s29 = smov 49   ;;  %v8381_v34 = vcombine.high %v8377_v31, %v8377_v31  ;;  %v8378_v42 = vld [vmem:[%s22734_s25 + $0x8] sm:$0x77] }
 0x103   : > { %2033 = vrot.lane.b32.xlu1 %v2026_v46, %s22468_s20  ;;  %18862 = vmatpush1.msk.msra.mxu1 %vm280_vm1, %v22749_v3  ;;  %s26227_s20 = smov 104   ;;  %v239_v3 = vld [vmem:[#allocation5] sm:$0xff]  ;;  %v5425_v46 = vld [vmem:[#allocation5 + $0x2f8] sm:$0xff] }
 0x104   : > { %v22917_v53 = vpop.permute.xlu0 %667  ;;  %19086 = vmatmul.mubr.msk.f32.gmra.mrb[6].mxu0 %vm267_vm2, %v4971_v49  ;;  %v22920_v54 = vpop.permute.xlu1 %669  ;;  %20157 = vmatprep.subr.msk.mxu1 %vm280_vm1, %v244_v50  ;;  %v656_v49 = vld [vmem:[#allocation5 + $0x48] sm:$0xff] }
 0x105   : > { %20155 = vmatmul.mubr.msk.f32.gmra.mrb[10].mxu1 %vm267_vm2, %v249_v39  ;;  %5299 = vmatprep.mubr.f32.mxu0 %v26255_v0  ;;  %v675_v1 = vsel %vm673_vm7, %v22917_v53, %v22920_v54  ;;  %v5424_v39 = vld [vmem:[#allocation5 + $0x2f0] sm:$0xff] }
 0x106   : > { %2256 = vrot.lane.b32.xlu0 %v2252_v51, %s26227_s20  ;;  %544 = vmatprep.mubr.f32.mxu1 %v26255_v0 }
 0x107   : > { %2258 = vrot.lane.b32.xlu1 %v2249_v55, %s26227_s20  ;;  %19103 = vmatprep.subr.msk.mxu0 %vm280_vm1, %v5442_v56  ;;  %v657_v55 = vld [vmem:[#allocation5 + $0x50] sm:$0xff] }
 0x108   : > { %v666_v59 = vpop.permute.xlu0 %665  ;;  %19094 = vmatmul.mubr.msk.f32.vlgmr.msra.gmra.mrb[0].mxu0 %vm267_vm2, %v5195_v57  ;;  %v22933_v60 = vpop.permute.xlu1 %5661  ;;  %v2703_v56 = vld [vmem:[%s22734_s25 + $0x8] sm:$0x77] }
 0x109   : > { %18863 = vmatmul.mubr.msk.f32.vlgmr.msra.gmra.mrb[0].mxu1 %vm267_vm2, %v239_v3  ;;  %5305 = vmatprep.mubr.f32.mxu0 %v26255_v0  ;;  %v674_v27 = vsel %vm673_vm7, %v666_v59, %v22917_v53  ;;  %v8604_v53 = vld [vmem:[%s22734_s25] sm:$0x77] }
 0x10a   : > { %7931 = vrot.lane.b32.xlu0 %v7927_v58, %s26226_s29  ;;  %550 = vmatprep.mubr.f32.mxu1 %v26255_v0  ;;  %v8608_v57 = vcombine.high %v8604_v53, %v8604_v53 }
 0x10b   : > { %7933 = vrot.lane.b32.xlu1 %v7924_v61, %s26226_s29  ;;  %20158 = vmatpush3.msk.msra.mxu1 %vm280_vm1, %v244_v50  ;;  %v2706_v50 = vcombine.high %v2702_v45, %v2702_v45 }
 0x10c   : > { %v22946_v6 = vpop.permute.xlu0 %5663  ;;  %19095 = vmatmul.mubr.msk.f32.gmra.mrb[2].mxu0 %vm267_vm2, %v5196_v62  ;;  %v5660_v9 = vpop.permute.xlu1 %5659  ;;  %18872 = vmatprep.subr.msk.mxu1 %vm280_vm1, %v675_v1  ;;  %v658_v62 = vld [vmem:[#allocation5 + $0x58] sm:$0xff] }
 0x10d   : > { %18864 = vmatmul.mubr.msk.f32.gmra.mrb[2].mxu1 %vm267_vm2, %v240_v2  ;;  %5311 = vmatprep.mubr.f32.mxu0 %v26255_v0  ;;  %v5669_v12 = vsel %vm5667_vm8, %v22933_v60, %v22946_v6  ;;  %v5668_v35 = vsel %vm5667_vm8, %v5660_v9, %v22933_v60  ;;  %v5650_v60 = vld [vmem:[#allocation5 + $0x308] sm:$0xff]  ;;  %v8605_v1 = vld [vmem:[%s22734_s25 + $0x8] sm:$0x77] }
 0x10e   : > { %2254 = vrot.lane.b32.xlu0 %v2248_v5, %s26227_s20  ;;  %556 = vmatprep.mubr.f32.mxu1 %v26255_v0  ;;  %v5651_v9 = vld [vmem:[#allocation5 + $0x310] sm:$0xff] }
 0x10f   : > { %7929 = vrot.lane.b32.xlu1 %v7923_v52, %s26226_s29  ;;  %19104 = vmatpush1.msk.msra.mxu0 %vm280_vm1, %v5441_v4  ;;  %s26229_s29 = smov 48  }
 0x110   : > { %v672_v16 = vpop.permute.xlu0 %671  ;;  %19096 = vmatmul.mubr.msk.f32.gmra.mrb[4].mxu0 %vm267_vm2, %v5197_v11  ;;  %v22961_v17 = vpop.permute.xlu1 %894  ;;  %19114 = vmatprep.subr.msk.mxu0 %vm280_vm1, %v5669_v12  ;;  %v2707_v11 = vcombine.high %v2703_v56, %v2703_v56  ;;  %v8831_v12 = vld [vmem:[%s22734_s25] sm:$0x77] }
 0x111   : > { %18865 = vmatmul.mubr.msk.f32.gmra.mrb[4].mxu1 %vm267_vm2, %v241_v14  ;;  %5317 = vmatprep.mubr.f32.mxu0 %v26255_v0  ;;  %v676_v32 = vsel %vm673_vm7, %v22920_v54, %v672_v16  ;;  %v5649_v54 = vld [vmem:[#allocation5 + $0x300] sm:$0xff]  ;;  %v5652_v16 = vld [vmem:[#allocation5 + $0x318] sm:$0xff]  ;;  %vm1581_vm7 = vcmask 998400  }
 0x112   : > { %2260 = vrot.lane.b32.xlu0 %v2253_v13, %s26227_s20  ;;  %562 = vmatprep.mubr.f32.mxu1 %v26255_v0  ;;  %s22473_s20 = smov 103  }
 0x113   : > { %8158 = vrot.lane.b32.xlu1 %v8154_v15, %s26229_s29 }
 0x114   : > { %v22971_v23 = vpop.permute.xlu0 %896  ;;  %19097 = vmatmul.mubr.msk.f32.gmra.mrb[6].mxu0 %vm267_vm2, %v5198_v18  ;;  %v22974_v24 = vpop.permute.xlu1 %5888 }
 0x115   : > { %18866 = vmatmul.mubr.msk.f32.gmra.mrb[6].mxu1 %vm267_vm2, %v242_v19  ;;  %5526 = vmatprep.mubr.f32.mxu0 %v26255_v0  ;;  %v902_v5 = vsel %vm900_vm10, %v22961_v17, %v22971_v23 }
 0x116   : > { %8160 = vrot.lane.b32.xlu0 %v8151_v21, %s26229_s29  ;;  %20159 = vmatprep.mubr.msk.f32.mxu1 %vm267_vm2, %v239_v3  ;;  %v8832_v21 = vld [vmem:[%s22734_s25 + $0x8] sm:$0x77] }
 0x117   : > { %8156 = vrot.lane.b32.xlu1 %v8150_v10, %s26229_s29  ;;  %s26230_s29 = smov 32  }
 0x118   : > { %v22983_v28 = vpop.permute.xlu0 %5890  ;;  %19105 = vmatmul.mubr.msk.f32.vlgmr.msra.gmra.mrb[0].mxu0 %vm267_vm2, %v5422_v25  ;;  %v22986_v29 = vpop.permute.xlu1 %892 }
 0x119   : > { %20160 = vmatmul.mubr.msk.f32.vlgmr.msra.gmra.mrb[8].mxu1 %vm267_vm2, %v240_v2  ;;  %5532 = vmatprep.mubr.f32.mxu0 %v26255_v0  ;;  %v5896_v40 = vsel %vm5894_vm9, %v22974_v24, %v22983_v28  ;;  %v901_v10 = vsel %vm900_vm10, %v22986_v29, %v22961_v17  ;;  %v8835_v17 = vcombine.high %v8831_v12, %v8831_v12  ;;  %v5877_v29 = vld [vmem:[#allocation5 + $0x328] sm:$0xff] }
 0x11a   : > { %2483 = vrot.lane.b32.xlu0 %v2479_v26, %s22473_s20  ;;  %18873 = vmatpush1.msk.msra.mxu1 %vm280_vm1, %v674_v27 }
 0x11b   : > { %2485 = vrot.lane.b32.xlu1 %v2476_v30, %s22473_s20  ;;  %20162 = vmatprep.mubr.msk.f32.mxu1 %vm267_vm2, %v241_v14 }
 0x11c   : > { %20165 = vmatprep.subr.msk.mxu1 %vm280_vm1, %v676_v32  ;;  %v5887_v37 = vpop.permute.xlu0 %5886  ;;  %19106 = vmatmul.mubr.msk.f32.gmra.mrb[2].mxu0 %vm267_vm2, %v5423_v33  ;;  %v23002_v38 = vpop.permute.xlu1 %898  ;;  %v9058_v33 = vld [vmem:[%s22734_s25] sm:$0x77] }
 0x11d   : > { %20163 = vmatmul.mubr.msk.f32.gmra.mrb[10].mxu1 %vm267_vm2, %v242_v19  ;;  %5538 = vmatprep.mubr.f32.mxu0 %v26255_v0  ;;  %v5895_v3 = vsel %vm5894_vm9, %v5887_v37, %v22974_v24  ;;  %v903_v13 = vsel %vm900_vm10, %v22971_v23, %v23002_v38  ;;  %v5876_v23 = vld [vmem:[#allocation5 + $0x320] sm:$0xff]  ;;  %v5878_v38 = vld [vmem:[#allocation5 + $0x330] sm:$0xff]  ;;  %vm7029_vm10 = vcmask 433152  }
 0x11e   : > { %2481 = vrot.lane.b32.xlu0 %v2475_v22, %s22473_s20  ;;  %759 = vmatprep.mubr.f32.mxu1 %v26255_v0  ;;  %v2929_v22 = vld [vmem:[%s22734_s25] sm:$0x77]  ;;  %v882_v24 = vld [vmem:[#allocation5 + $0x60] sm:$0xff] }
 0x11f   : > { %8385 = vrot.lane.b32.xlu1 %v8381_v34, %s26230_s29  ;;  %19115 = vmatpush1.msk.msra.mxu0 %vm280_vm1, %v5668_v35  ;;  %v2933_v25 = vcombine.high %v2929_v22, %v2929_v22 }
 0x120   : > { %v23014_v43 = vpop.permute.xlu0 %6115  ;;  %19107 = vmatmul.mubr.msk.f32.gmra.mrb[4].mxu0 %vm267_vm2, %v5424_v39  ;;  %v23017_v44 = vpop.permute.xlu1 %6117  ;;  %19125 = vmatprep.subr.msk.mxu0 %vm280_vm1, %v5896_v40  ;;  %v884_v40 = vld [vmem:[#allocation5 + $0x70] sm:$0xff] }
 0x121   : > { %18874 = vmatmul.mubr.msk.f32.vlgmr.msra.gmra.mrb[0].mxu1 %vm267_vm2, %v655_v41  ;;  %5544 = vmatprep.mubr.f32.mxu0 %v26255_v0  ;;  %v6123_v61 = vsel %vm6121_vm11, %v23014_v43, %v23017_v44 }
 0x122   : > { %20166 = vmatpush3.msk.msra.mxu1 %vm280_vm1, %v676_v32  ;;  %8387 = vrot.lane.b32.xlu0 %v8378_v42, %s26230_s29  ;;  %v2930_v32 = vld [vmem:[%s22734_s25 + $0x8] sm:$0x77] }
 0x123   : > { %8383 = vrot.lane.b32.xlu1 %v8377_v31, %s26230_s29  ;;  %765 = vmatprep.mubr.f32.mxu1 %v26255_v0  ;;  %s22475_s29 = smov 102   ;;  %v883_v31 = vld [vmem:[#allocation5 + $0x68] sm:$0xff] }
 0x124   : > { %v23030_v51 = vpop.permute.xlu0 %6113  ;;  %19108 = vmatmul.mubr.msk.f32.gmra.mrb[6].mxu0 %vm267_vm2, %v5425_v46  ;;  %v23033_v52 = vpop.permute.xlu1 %1121  ;;  %18883 = vmatprep.subr.msk.mxu1 %vm280_vm1, %v902_v5  ;;  %v5879_v46 = vld [vmem:[#allocation5 + $0x338] sm:$0xff] }
 0x125   : > { %18875 = vmatmul.mubr.msk.f32.gmra.mrb[2].mxu1 %vm267_vm2, %v656_v49  ;;  %5753 = vmatprep.mubr.f32.mxu0 %v26255_v0  ;;  %v6122_v34 = vsel %vm6121_vm11, %v23030_v51, %v23014_v43  ;;  %v885_v5 = vld [vmem:[#allocation5 + $0x78] sm:$0xff] }
 0x126   : > { %2487 = vrot.lane.b32.xlu0 %v2480_v48, %s22473_s20  ;;  %771 = vmatprep.mubr.f32.mxu1 %v26255_v0  ;;  %s26231_s20 = smov 31   ;;  %v2934_v48 = vcombine.high %v2930_v32, %v2930_v32 }
 0x127   : > { %2710 = vrot.lane.b32.xlu1 %v2706_v50, %s22475_s29 }
 0x128   : > { %v23045_v58 = vpop.permute.xlu0 %1123  ;;  %19116 = vmatmul.mubr.msk.f32.vlgmr.msra.gmra.mrb[0].mxu0 %vm267_vm2, %v5649_v54  ;;  %v23048_v59 = vpop.permute.xlu1 %1119 }
 0x129   : > { %18876 = vmatmul.mubr.msk.f32.gmra.mrb[4].mxu1 %vm267_vm2, %v657_v55  ;;  %5759 = vmatprep.mubr.f32.mxu0 %v26255_v0  ;;  %v1129_v30 = vsel %vm1127_vm12, %v23033_v52, %v23045_v58 }
 0x12a   : > { %2712 = vrot.lane.b32.xlu0 %v2703_v56, %s22475_s29  ;;  %777 = vmatprep.mubr.f32.mxu1 %v26255_v0  ;;  %v9285_v56 = vld [vmem:[%s22734_s25] sm:$0x77] }
 0x12b   : > { %8612 = vrot.lane.b32.xlu1 %v8608_v57, %s26231_s20  ;;  %19126 = vmatpush1.msk.msra.mxu0 %vm280_vm1, %v5895_v3 }
 0x12c   : > { %v23060_v2 = vpop.permute.xlu0 %6342  ;;  %19117 = vmatmul.mubr.msk.f32.gmra.mrb[2].mxu0 %vm267_vm2, %v5650_v60  ;;  %v23063_v4 = vpop.permute.xlu1 %6344  ;;  %19136 = vmatprep.subr.msk.mxu0 %vm280_vm1, %v6123_v61  ;;  %v3157_v60 = vld [vmem:[%s22734_s25 + $0x8] sm:$0x77] }
 0x12d   : > { %18877 = vmatmul.mubr.msk.f32.gmra.mrb[6].mxu1 %vm267_vm2, %v658_v62  ;;  %5765 = vmatprep.mubr.f32.mxu0 %v26255_v0  ;;  %v6350_v39 = vsel %vm26283_vm13, %v23060_v2, %v23063_v4 }
 0x12e   : > { %8614 = vrot.lane.b32.xlu0 %v8605_v1, %s26231_s20  ;;  %20167 = vmatprep.mubr.msk.f32.mxu1 %vm267_vm2, %v655_v41  ;;  %v9062_v41 = vcombine.high %v9058_v33, %v9058_v33 }
 0x12f   : > { %2708 = vrot.lane.b32.xlu1 %v2702_v45, %s22475_s29  ;;  %v9059_v45 = vld [vmem:[%s22734_s25 + $0x8] sm:$0x77] }
 0x130   : > { %v23078_v14 = vpop.permute.xlu0 %6340  ;;  %19118 = vmatmul.mubr.msk.f32.gmra.mrb[4].mxu0 %vm267_vm2, %v5651_v9  ;;  %v23081_v15 = vpop.permute.xlu1 %1125  ;;  %v9286_v9 = vld [vmem:[%s22734_s25 + $0x8] sm:$0x77] }
 0x131   : > { %20168 = vmatmul.mubr.msk.f32.vlgmr.msra.gmra.mrb[8].mxu1 %vm267_vm2, %v656_v49  ;;  %5771 = vmatprep.mubr.f32.mxu0 %v26255_v0  ;;  %v3156_v49 = vld [vmem:[%s22734_s25] sm:$0x77]  ;;  %v1130_v61 = vsel %vm1127_vm12, %v23045_v58, %v23081_v15  ;;  %v6349_v58 = vsel %vm26283_vm13, %v23078_v14, %v23060_v2  ;;  %v1109_v2 = vld [vmem:[#allocation5 + $0x80] sm:$0xff] }
 0x132   : > { %18884 = vmatpush1.msk.msra.mxu1 %vm280_vm1, %v901_v10  ;;  %8610 = vrot.lane.b32.xlu0 %v8604_v53, %s26231_s20  ;;  %s26232_s20 = smov 30   ;;  %v6103_v53 = vld [vmem:[#allocation5 + $0x340] sm:$0xff]  ;;  %v3160_v54 = vcombine.high %v3156_v49, %v3156_v49  ;;  %v6105_v10 = vld [vmem:[#allocation5 + $0x350] sm:$0xff]  ;;  %v6106_v15 = vld [vmem:[#allocation5 + $0x358] sm:$0xff] }
 0x133   : > { %20173 = vmatprep.subr.msk.mxu1 %vm280_vm1, %v903_v13  ;;  %2714 = vrot.lane.b32.xlu1 %v2707_v11, %s22475_s29  ;;  %s22478_s29 = smov 101   ;;  %v9512_v14 = vld [vmem:[%s22734_s25] sm:$0x77] }
 0x134   : > { %20170 = vmatprep.mubr.msk.f32.mxu1 %vm267_vm2, %v657_v55  ;;  %v23090_v18 = vpop.permute.xlu0 %1348  ;;  %19119 = vmatmul.mubr.msk.f32.gmra.mrb[6].mxu0 %vm267_vm2, %v5652_v16  ;;  %v23093_v19 = vpop.permute.xlu1 %1350  ;;  %v1128_v55 = vsel %vm1127_vm12, %v23048_v59, %v23033_v52  ;;  %v6104_v52 = vld [vmem:[#allocation5 + $0x348] sm:$0xff]  ;;  %v9289_v59 = vcombine.high %v9285_v56, %v9285_v56  ;;  %vm26241_vm12 = vcmask 424960  }
 0x135   : > { %20171 = vmatmul.mubr.msk.f32.gmra.mrb[10].mxu1 %vm267_vm2, %v658_v62  ;;  %5980 = vmatprep.mubr.f32.mxu0 %v26255_v0  ;;  %v1356_v16 = vsel %vm1354_vm15, %v23090_v18, %v23093_v19 }
 0x136   : > { %8839 = vrot.lane.b32.xlu0 %v8835_v17, %s26232_s20  ;;  %986 = vmatprep.mubr.f32.mxu1 %v26255_v0  ;;  %v3161_v17 = vcombine.high %v3157_v60, %v3157_v60 }
 0x137   : > { %8841 = vrot.lane.b32.xlu1 %v8832_v21, %s26232_s20  ;;  %v1110_v21 = vld [vmem:[#allocation5 + $0x88] sm:$0xff] }
 0x138   : > { %v23102_v26 = vpop.permute.xlu0 %6569  ;;  %19127 = vmatmul.mubr.msk.f32.vlgmr.msra.gmra.mrb[0].mxu0 %vm267_vm2, %v5876_v23  ;;  %v23105_v27 = vpop.permute.xlu1 %6571 }
 0x139   : > { %18885 = vmatmul.mubr.msk.f32.vlgmr.msra.gmra.mrb[0].mxu1 %vm267_vm2, %v882_v24  ;;  %5986 = vmatprep.mubr.f32.mxu0 %v26255_v0  ;;  %v6577_v11 = vsel %vm6575_vm14, %v23102_v26, %v23105_v27 }
 0x13a   : > { %20174 = vmatpush3.msk.msra.mxu1 %vm280_vm1, %v903_v13  ;;  %8837 = vrot.lane.b32.xlu0 %v8831_v12, %s26232_s20  ;;  %s26233_s20 = smov 29  }
 0x13b   : > { %2937 = vrot.lane.b32.xlu1 %v2933_v25, %s22478_s29  ;;  %992 = vmatprep.mubr.f32.mxu1 %v26255_v0  ;;  %v6330_v25 = vld [vmem:[#allocation5 + $0x360] sm:$0xff] }
 0x13c   : > { %v23121_v35 = vpop.permute.xlu0 %1346  ;;  %19128 = vmatmul.mubr.msk.f32.gmra.mrb[2].mxu0 %vm267_vm2, %v5877_v29  ;;  %v23124_v37 = vpop.permute.xlu1 %6567  ;;  %18894 = vmatprep.subr.msk.mxu1 %vm280_vm1, %v1129_v30  ;;  %v1111_v29 = vld [vmem:[#allocation5 + $0x90] sm:$0xff] }
 0x13d   : > { %18886 = vmatmul.mubr.msk.f32.gmra.mrb[2].mxu1 %vm267_vm2, %v883_v31  ;;  %5992 = vmatprep.mubr.f32.mxu0 %v26255_v0  ;;  %v9513_v30 = vld [vmem:[%s22734_s25 + $0x8] sm:$0x77] }
 0x13e   : > { %2939 = vrot.lane.b32.xlu0 %v2930_v32, %s22478_s29  ;;  %998 = vmatprep.mubr.f32.mxu1 %v26255_v0  ;;  %v6576_v32 = vsel %vm6575_vm14, %v23124_v37, %v23102_v26  ;;  %v1112_v26 = vld [vmem:[#allocation5 + $0x98] sm:$0xff] }
 0x13f   : > { %2935 = vrot.lane.b32.xlu1 %v2929_v22, %s22478_s29  ;;  %19137 = vmatpush1.msk.msra.mxu0 %vm280_vm1, %v6122_v34  ;;  %v9516_v22 = vcombine.high %v9512_v14, %v9512_v14 }
 0x140   : > { %v23136_v42 = vpop.permute.xlu0 %1352  ;;  %19129 = vmatmul.mubr.msk.f32.gmra.mrb[4].mxu0 %vm267_vm2, %v5878_v38  ;;  %v23139_v43 = vpop.permute.xlu1 %6796  ;;  %19147 = vmatprep.subr.msk.mxu0 %vm280_vm1, %v6350_v39  ;;  %v6331_v38 = vld [vmem:[#allocation5 + $0x368] sm:$0xff] }
 0x141   : > { %18887 = vmatmul.mubr.msk.f32.gmra.mrb[4].mxu1 %vm267_vm2, %v884_v40  ;;  %5998 = vmatprep.mubr.f32.mxu0 %v26255_v0 }
 0x142   : > { %9066 = vrot.lane.b32.xlu0 %v9062_v41, %s26233_s20  ;;  %1004 = vmatprep.mubr.f32.mxu1 %v26255_v0  ;;  %v3384_v41 = vld [vmem:[%s22734_s25 + $0x8] sm:$0x77] }
 0x143   : > { %9068 = vrot.lane.b32.xlu1 %v9059_v45, %s26233_s20  ;;  %v9739_v45 = vld [vmem:[%s22734_s25] sm:$0x77] }
 0x144   : > { %v23149_v50 = vpop.permute.xlu0 %6798  ;;  %19130 = vmatmul.mubr.msk.f32.gmra.mrb[6].mxu0 %vm267_vm2, %v5879_v46  ;;  %v23152_v51 = vpop.permute.xlu1 %6794 }
 0x145   : > { %18888 = vmatmul.mubr.msk.f32.gmra.mrb[6].mxu1 %vm267_vm2, %v885_v5  ;;  %6207 = vmatprep.mubr.f32.mxu0 %v26255_v0  ;;  %v6804_v39 = vsel %vm6802_vm3, %v23139_v43, %v23149_v50 }
 0x146   : > { %9064 = vrot.lane.b32.xlu0 %v9058_v33, %s26233_s20  ;;  %20175 = vmatprep.mubr.msk.f32.mxu1 %vm267_vm2, %v882_v24  ;;  %s26234_s20 = smov 28  }
 0x147   : > { %2941 = vrot.lane.b32.xlu1 %v2934_v48, %s22478_s29  ;;  %s22480_s29 = smov 100   ;;  %v1355_v48 = vsel %vm1354_vm15, %v23121_v35, %v23090_v18  ;;  %v9740_v18 = vld [vmem:[%s22734_s25 + $0x8] sm:$0x77]  ;;  %v3610_v35 = vld [vmem:[%s22734_s25] sm:$0x77] }
 0x148   : > { %v23163_v57 = vpop.permute.xlu0 %1575  ;;  %19138 = vmatmul.mubr.msk.f32.vlgmr.msra.gmra.mrb[0].mxu0 %vm267_vm2, %v6103_v53  ;;  %v23166_v3 = vpop.permute.xlu1 %1577  ;;  %v1357_v53 = vsel %vm1354_vm15, %v23093_v19, %v23136_v42  ;;  %vm1808_vm15 = vcmask 990208  }
 0x149   : > { %20176 = vmatmul.mubr.msk.f32.vlgmr.msra.gmra.mrb[8].mxu1 %vm267_vm2, %v883_v31  ;;  %6213 = vmatprep.mubr.f32.mxu0 %v26255_v0  ;;  %v3383_v31 = vld [vmem:[%s22734_s25] sm:$0x77] }
 0x14a   : > { %3164 = vrot.lane.b32.xlu0 %v3160_v54, %s22480_s29  ;;  %18895 = vmatpush1.msk.msra.mxu1 %vm280_vm1, %v1128_v55  ;;  %v3387_v37 = vcombine.high %v3383_v31, %v3383_v31 }
 0x14b   : > { %3166 = vrot.lane.b32.xlu1 %v3157_v60, %s22480_s29  ;;  %20178 = vmatprep.mubr.msk.f32.mxu1 %vm267_vm2, %v884_v40  ;;  %v6557_v60 = vld [vmem:[#allocation5 + $0x380] sm:$0xff] }
 0x14c   : > { %20181 = vmatprep.subr.msk.mxu1 %vm280_vm1, %v1130_v61  ;;  %v23182_v62 = vpop.permute.xlu0 %1573  ;;  %19139 = vmatmul.mubr.msk.f32.gmra.mrb[2].mxu0 %vm267_vm2, %v6104_v52  ;;  %v23185_v1 = vpop.permute.xlu1 %7023  ;;  %v1336_v52 = vld [vmem:[#allocation5 + $0xa0] sm:$0xff] }
 0x14d   : > { %20179 = vmatmul.mubr.msk.f32.gmra.mrb[10].mxu1 %vm267_vm2, %v885_v5  ;;  %6219 = vmatprep.mubr.f32.mxu0 %v26255_v0  ;;  %v6332_v5 = vld [vmem:[#allocation5 + $0x370] sm:$0xff] }
 0x14e   : > { %9293 = vrot.lane.b32.xlu0 %v9289_v59, %s26234_s20  ;;  %1213 = vmatprep.mubr.f32.mxu1 %v26255_v0  ;;  %v3614_v59 = vcombine.high %v3610_v35, %v3610_v35 }
 0x14f   : > { %9295 = vrot.lane.b32.xlu1 %v9286_v9, %s26234_s20  ;;  %19148 = vmatpush1.msk.msra.mxu0 %vm280_vm1, %v6349_v58  ;;  %v9966_v9 = vld [vmem:[%s22734_s25] sm:$0x77] }
 0x150   : > { %v23197_v12 = vpop.permute.xlu0 %7025  ;;  %19140 = vmatmul.mubr.msk.f32.gmra.mrb[4].mxu0 %vm267_vm2, %v6105_v10  ;;  %v23200_v13 = vpop.permute.xlu1 %7021  ;;  %19158 = vmatprep.subr.msk.mxu0 %vm280_vm1, %v6577_v11  ;;  %v6558_v11 = vld [vmem:[#allocation5 + $0x388] sm:$0xff] }
 0x151   : > { %18896 = vmatmul.mubr.msk.f32.vlgmr.msra.gmra.mrb[0].mxu1 %vm267_vm2, %v1109_v2  ;;  %6225 = vmatprep.mubr.f32.mxu0 %v26255_v0 }
 0x152   : > { %20182 = vmatpush3.msk.msra.mxu1 %vm280_vm1, %v1130_v61  ;;  %3162 = vrot.lane.b32.xlu0 %v3156_v49, %s22480_s29  ;;  %v9743_v49 = vcombine.high %v9739_v45, %v9739_v45  ;;  %v3388_v61 = vcombine.high %v3384_v41, %v3384_v41 }
 0x153   : > { %9291 = vrot.lane.b32.xlu1 %v9285_v56, %s26234_s20  ;;  %1219 = vmatprep.mubr.f32.mxu1 %v26255_v0  ;;  %s26235_s20 = smov 27   ;;  %v6333_v56 = vld [vmem:[#allocation5 + $0x378] sm:$0xff] }
 0x154   : > { %v23213_v23 = vpop.permute.xlu0 %1579  ;;  %19141 = vmatmul.mubr.msk.f32.gmra.mrb[6].mxu0 %vm267_vm2, %v6106_v15  ;;  %v23216_v24 = vpop.permute.xlu1 %1802  ;;  %18905 = vmatprep.subr.msk.mxu1 %vm280_vm1, %v1356_v16  ;;  %v3611_v15 = vld [vmem:[%s22734_s25 + $0x8] sm:$0x77]  ;;  %v9970_v16 = vcombine.high %v9966_v9, %v9966_v9 }
 0x155   : > { %18897 = vmatmul.mubr.msk.f32.gmra.mrb[2].mxu1 %vm267_vm2, %v1110_v21  ;;  %6434 = vmatprep.mubr.f32.mxu0 %v26255_v0 }
 0x156   : > { %3168 = vrot.lane.b32.xlu0 %v3161_v17, %s22480_s29  ;;  %1225 = vmatprep.mubr.f32.mxu1 %v26255_v0  ;;  %s22483_s29 = smov 99   ;;  %v6803_v17 = vsel %vm6802_vm3, %v23152_v51, %v23139_v43  ;;  %v1338_v43 = vld [vmem:[#allocation5 + $0xb0] sm:$0xff] }
 0x157   : > { %9520 = vrot.lane.b32.xlu1 %v9516_v22, %s26235_s20  ;;  %v9967_v51 = vld [vmem:[%s22734_s25 + $0x8] sm:$0x77] }
 0x158   : > { %v23229_v33 = vpop.permute.xlu0 %1804  ;;  %19149 = vmatmul.mubr.msk.f32.vlgmr.msra.gmra.mrb[0].mxu0 %vm267_vm2, %v6330_v25  ;;  %v23232_v34 = vpop.permute.xlu1 %7250  ;;  %v6559_v25 = vld [vmem:[#allocation5 + $0x390] sm:$0xff] }
 0x159   : > { %18898 = vmatmul.mubr.msk.f32.gmra.mrb[4].mxu1 %vm267_vm2, %v1111_v29  ;;  %6440 = vmatprep.mubr.f32.mxu0 %v26255_v0 }
 0x15a   : > { %9522 = vrot.lane.b32.xlu0 %v9513_v30, %s26235_s20  ;;  %1231 = vmatprep.mubr.f32.mxu1 %v26255_v0 }
 0x15b   : > { %9518 = vrot.lane.b32.xlu1 %v9512_v14, %s26235_s20  ;;  %19159 = vmatpush1.msk.msra.mxu0 %vm280_vm1, %v6576_v32  ;;  %s26236_s20 = smov 26   ;;  %v1337_v14 = vld [vmem:[#allocation5 + $0xa8] sm:$0xff]  ;;  %v6560_v32 = vld [vmem:[#allocation5 + $0x398] sm:$0xff] }
 0x15c   : > { %v23243_v40 = vpop.permute.xlu0 %7252  ;;  %19150 = vmatmul.mubr.msk.f32.gmra.mrb[2].mxu0 %vm267_vm2, %v6331_v38  ;;  %19169 = vmatprep.subr.msk.mxu0 %vm280_vm1, %v6804_v39  ;;  %v1339_v38 = vld [vmem:[#allocation5 + $0xb8] sm:$0xff]  ;;  %v3615_v39 = vcombine.high %v3611_v15, %v3611_v15 }
 0x15d   : > { %v23249_v46 = vpop.permute.xlu1 %1800  ;;  %18899 = vmatmul.mubr.msk.f32.gmra.mrb[6].mxu1 %vm267_vm2, %v1112_v26  ;;  %6446 = vmatprep.mubr.f32.mxu0 %v26255_v0 }
 0x15e   : > { %3391 = vrot.lane.b32.xlu0 %v3387_v37, %s22483_s29  ;;  %20183 = vmatprep.mubr.msk.f32.mxu1 %vm267_vm2, %v1109_v2  ;;  %v1583_v2 = vsel %vm1581_vm7, %v23163_v57, %v23166_v3 }
 0x15f   : > { %3393 = vrot.lane.b32.xlu1 %v3384_v41, %s22483_s29 }
 0x160   : > { %v23262_v54 = vpop.permute.xlu0 %7248  ;;  %19151 = vmatmul.mubr.msk.f32.gmra.mrb[4].mxu0 %vm267_vm2, %v6332_v5 }
 0x161   : > { %v23265_v55 = vpop.permute.xlu1 %1806  ;;  %20184 = vmatmul.mubr.msk.f32.vlgmr.msra.gmra.mrb[8].mxu1 %vm267_vm2, %v1110_v21  ;;  %6452 = vmatprep.mubr.f32.mxu0 %v26255_v0 }
 0x162   : > { %18906 = vmatpush1.msk.msra.mxu1 %vm280_vm1, %v1355_v48  ;;  %3389 = vrot.lane.b32.xlu0 %v3383_v31, %s22483_s29  ;;  %v1582_v48 = vsel %vm1581_vm7, %v23182_v62, %v23163_v57 }
 0x163   : > { %20189 = vmatprep.subr.msk.mxu1 %vm280_vm1, %v1357_v53  ;;  %9747 = vrot.lane.b32.xlu1 %v9743_v49, %s26236_s20 }
 0x164   : > { %20186 = vmatprep.mubr.msk.f32.mxu1 %vm267_vm2, %v1111_v29  ;;  %v23275_v19 = vpop.permute.xlu0 %7477  ;;  %19152 = vmatmul.mubr.msk.f32.gmra.mrb[6].mxu0 %vm267_vm2, %v6333_v56  ;;  %v7031_v29 = vsel %vm7029_vm10, %v23185_v1, %v23197_v12  ;;  %v3837_v56 = vld [vmem:[%s22734_s25] sm:$0x77] }
 0x165   : > { %v23279_v42 = vpop.permute.xlu1 %7479  ;;  %20187 = vmatmul.mubr.msk.f32.gmra.mrb[10].mxu1 %vm267_vm2, %v1112_v26  ;;  %6661 = vmatprep.mubr.f32.mxu0 %v26255_v0  ;;  %v10193_v26 = vld [vmem:[%s22734_s25] sm:$0x77]  ;;  %v3841_v57 = vcombine.high %v3837_v56, %v3837_v56 }
 0x166   : > { %9749 = vrot.lane.b32.xlu0 %v9740_v18, %s26236_s20  ;;  %1440 = vmatprep.mubr.f32.mxu1 %v26255_v0  ;;  %v10197_v5 = vcombine.high %v10193_v26, %v10193_v26  ;;  %v1584_v18 = vsel %vm1581_vm7, %v23166_v3, %v23213_v23  ;;  %v7030_v3 = vsel %vm7029_vm10, %v23200_v13, %v23185_v1  ;;  %v1563_v1 = vld [vmem:[#allocation5 + $0xc0] sm:$0xff]  ;;  %vm26244_vm7 = vcmask 416768  }
 0x167   : > { %9745 = vrot.lane.b32.xlu1 %v9739_v45, %s26236_s20  ;;  %s22485_s20 = smov 98   ;;  %v6784_v45 = vld [vmem:[#allocation5 + $0x3a0] sm:$0xff] }
 0x168   : > { %v23286_v58 = vpop.permute.xlu0 %7475  ;;  %19160 = vmatmul.mubr.msk.f32.vlgmr.msra.gmra.mrb[0].mxu0 %vm267_vm2, %v6557_v60  ;;  %v6785_v60 = vld [vmem:[#allocation5 + $0x3a8] sm:$0xff]  ;;  %v3838_v13 = vld [vmem:[%s22734_s25 + $0x8] sm:$0x77] }
 0x169   : > { %v23290_v10 = vpop.permute.xlu1 %2029  ;;  %18907 = vmatmul.mubr.msk.f32.vlgmr.msra.gmra.mrb[0].mxu1 %vm267_vm2, %v1336_v52  ;;  %6667 = vmatprep.mubr.f32.mxu0 %v26255_v0 }
 0x16a   : > { %20190 = vmatpush3.msk.msra.mxu1 %vm280_vm1, %v1357_v53  ;;  %3395 = vrot.lane.b32.xlu0 %v3388_v61, %s22483_s29  ;;  %s26237_s29 = smov 25   ;;  %v10194_v53 = vld [vmem:[%s22734_s25 + $0x8] sm:$0x77] }
 0x16b   : > { %3618 = vrot.lane.b32.xlu1 %v3614_v59, %s22485_s20  ;;  %1446 = vmatprep.mubr.f32.mxu1 %v26255_v0  ;;  %v6786_v61 = vld [vmem:[#allocation5 + $0x3b0] sm:$0xff] }
 0x16c   : > { %v23305_v21 = vpop.permute.xlu0 %2031  ;;  %19161 = vmatmul.mubr.msk.f32.gmra.mrb[2].mxu0 %vm267_vm2, %v6558_v11  ;;  %18916 = vmatprep.subr.msk.mxu1 %vm280_vm1, %v1583_v2  ;;  %v10420_v59 = vld [vmem:[%s22734_s25] sm:$0x77] }
 0x16d   : > { %v23309_v22 = vpop.permute.xlu1 %2027  ;;  %18908 = vmatmul.mubr.msk.f32.gmra.mrb[2].mxu1 %vm267_vm2, %v1337_v14  ;;  %6673 = vmatprep.mubr.f32.mxu0 %v26255_v0  ;;  %v6787_v2 = vld [vmem:[#allocation5 + $0x3b8] sm:$0xff] }
 0x16e   : > { %3620 = vrot.lane.b32.xlu0 %v3611_v15, %s22485_s20  ;;  %1452 = vmatprep.mubr.f32.mxu1 %v26255_v0  ;;  %v1564_v15 = vld [vmem:[#allocation5 + $0xc8] sm:$0xff] }
 0x16f   : > { %9974 = vrot.lane.b32.xlu1 %v9970_v16, %s26237_s29  ;;  %19170 = vmatpush1.msk.msra.mxu0 %vm280_vm1, %v6803_v17  ;;  %v10424_v16 = vcombine.high %v10420_v59, %v10420_v59  ;;  %v10421_v17 = vld [vmem:[%s22734_s25 + $0x8] sm:$0x77] }
 0x170   : > { %v23321_v30 = vpop.permute.xlu0 %7704  ;;  %19162 = vmatmul.mubr.msk.f32.gmra.mrb[4].mxu0 %vm267_vm2, %v6559_v25  ;;  %19180 = vmatprep.subr.msk.mxu0 %vm280_vm1, %v7031_v29  ;;  %v7011_v29 = vld [vmem:[#allocation5 + $0x3c0] sm:$0xff] }
 0x171   : > { %v23325_v31 = vpop.permute.xlu1 %7706  ;;  %18909 = vmatmul.mubr.msk.f32.gmra.mrb[4].mxu1 %vm267_vm2, %v1338_v43  ;;  %6679 = vmatprep.mubr.f32.mxu0 %v26255_v0 }
 0x172   : > { %9976 = vrot.lane.b32.xlu0 %v9967_v51, %s26237_s29  ;;  %1458 = vmatprep.mubr.f32.mxu1 %v26255_v0  ;;  %v3842_v51 = vcombine.high %v3838_v13, %v3838_v13 }
 0x173   : > { %3616 = vrot.lane.b32.xlu1 %v3610_v35, %s22485_s20 }
 0x174   : > { %v23333_v37 = vpop.permute.xlu0 %7702  ;;  %19163 = vmatmul.mubr.msk.f32.gmra.mrb[6].mxu0 %vm267_vm2, %v6560_v32 }
 0x175   : > { %v23336_v41 = vpop.permute.xlu1 %2033  ;;  %18910 = vmatmul.mubr.msk.f32.gmra.mrb[6].mxu1 %vm267_vm2, %v1339_v38  ;;  %6888 = vmatprep.mubr.f32.mxu0 %v26255_v0 }
 0x176   : > { %9972 = vrot.lane.b32.xlu0 %v9966_v9, %s26237_s29  ;;  %20191 = vmatprep.mubr.msk.f32.mxu1 %vm267_vm2, %v1336_v52  ;;  %s26238_s29 = smov 24   ;;  %v7258_v52 = vsel %vm26241_vm12, %v23232_v34, %v23243_v40 }
 0x177   : > { %3622 = vrot.lane.b32.xlu1 %v3615_v39, %s22485_s20  ;;  %s22488_s20 = smov 97   ;;  %v7257_v39 = vsel %vm26241_vm12, %v23262_v54, %v23232_v34  ;;  %v10647_v34 = vld [vmem:[%s22734_s25] sm:$0x77]  ;;  %v4065_v54 = vld [vmem:[%s22734_s25 + $0x8] sm:$0x77]  ;;  %vm26248_vm12 = vcmask 408576  }
 0x178   : > { %v23346_v49 = vpop.permute.xlu0 %2256  ;;  %19171 = vmatmul.mubr.msk.f32.vlgmr.msra.gmra.mrb[0].mxu0 %vm267_vm2, %v6784_v45  ;;  %v7485_v45 = vsel %vm26244_vm7, %v23275_v19, %v23279_v42 }
 0x179   : > { %v23354_v35 = vpop.permute.xlu1 %2258  ;;  %20192 = vmatmul.mubr.msk.f32.vlgmr.msra.gmra.mrb[8].mxu1 %vm267_vm2, %v1337_v14  ;;  %6894 = vmatprep.mubr.f32.mxu0 %v26255_v0  ;;  %v1810_v14 = vsel %vm1808_vm15, %v23216_v24, %v23229_v33 }
 0x17a   : > { %10201 = vrot.lane.b32.xlu0 %v10197_v5, %s26238_s29  ;;  %18917 = vmatpush1.msk.msra.mxu1 %vm280_vm1, %v1582_v48  ;;  %v1566_v5 = vld [vmem:[#allocation5 + $0xd8] sm:$0xff] }
 0x17b   : > { %10203 = vrot.lane.b32.xlu1 %v10194_v53, %s26238_s29  ;;  %20194 = vmatprep.mubr.msk.f32.mxu1 %vm267_vm2, %v1338_v43  ;;  %v1565_v43 = vld [vmem:[#allocation5 + $0xd0] sm:$0xff] }
 0x17c   : > { %20197 = vmatprep.subr.msk.mxu1 %vm280_vm1, %v1584_v18  ;;  %v23366_v62 = vpop.permute.xlu0 %7931  ;;  %19172 = vmatmul.mubr.msk.f32.gmra.mrb[2].mxu0 %vm267_vm2, %v6785_v60  ;;  %v10651_v60 = vcombine.high %v10647_v34, %v10647_v34 }
 0x17d   : > { %v23369_v23 = vpop.permute.xlu1 %7933  ;;  %20195 = vmatmul.mubr.msk.f32.gmra.mrb[10].mxu1 %vm267_vm2, %v1339_v38  ;;  %6900 = vmatprep.mubr.f32.mxu0 %v26255_v0  ;;  %v4064_v38 = vld [vmem:[%s22734_s25] sm:$0x77] }
 0x17e   : > { %10199 = vrot.lane.b32.xlu0 %v10193_v26, %s26238_s29  ;;  %1667 = vmatprep.mubr.f32.mxu1 %v26255_v0  ;;  %s26240_s29 = smov 8   ;;  %v7012_v26 = vld [vmem:[#allocation5 + $0x3c8] sm:$0xff]  ;;  %v4068_v48 = vcombine.high %v4064_v38, %v4064_v38 }
 0x17f   : > { %3845 = vrot.lane.b32.xlu1 %v3841_v57, %s22488_s20  ;;  %19181 = vmatpush1.msk.msra.mxu0 %vm280_vm1, %v7030_v3  ;;  %v1809_v57 = vsel %vm1808_vm15, %v23249_v46, %v23216_v24  ;;  %v1811_v3 = vsel %vm1808_vm15, %v23229_v33, %v23265_v55  ;;  %v10874_v33 = vld [vmem:[%s22734_s25] sm:$0x77]  ;;  %v7238_v46 = vld [vmem:[#allocation5 + $0x3e0] sm:$0xff]  ;;  %vm2035_vm15 = vcmask 982016   ;;  %v4069_v55 = vcombine.high %v4065_v54, %v4065_v54 }
 0x180   : > { %19173 = vmatmul.mubr.msk.f32.gmra.mrb[4].mxu0 %vm267_vm2, %v6786_v61  ;;  %19191 = vmatprep.subr.msk.mxu0 %vm280_vm1, %v7258_v52  ;;  %v23384_v9 = vpop.permute.xlu0 %2254  ;;  %v10648_v61 = vld [vmem:[%s22734_s25 + $0x8] sm:$0x77] }
 0x181   : > { %v23386_v11 = vpop.permute.xlu1 %7929  ;;  %18918 = vmatmul.mubr.msk.f32.vlgmr.msra.gmra.mrb[0].mxu1 %vm267_vm2, %v1563_v1  ;;  %6906 = vmatprep.mubr.f32.mxu0 %v26255_v0 }
 0x182   : > { %20198 = vmatpush3.msk.msra.mxu1 %vm280_vm1, %v1584_v18  ;;  %3847 = vrot.lane.b32.xlu0 %v3838_v13, %s22488_s20  ;;  %v7013_v18 = vld [vmem:[#allocation5 + $0x3d0] sm:$0xff]  ;;  %v1790_v13 = vld [vmem:[#allocation5 + $0xe0] sm:$0xff] }
 0x183   : > { %3843 = vrot.lane.b32.xlu1 %v3837_v56, %s22488_s20  ;;  %1673 = vmatprep.mubr.f32.mxu1 %v26255_v0 }
 0x184   : > { %19174 = vmatmul.mubr.msk.f32.gmra.mrb[6].mxu0 %vm267_vm2, %v6787_v2  ;;  %18927 = vmatprep.subr.msk.mxu1 %vm280_vm1, %v1810_v14  ;;  %v23406_v32 = vpop.permute.xlu0 %2260  ;;  %v10878_v2 = vcombine.high %v10874_v33, %v10874_v33 }
 0x185   : > { %v23400_v25 = vpop.permute.xlu1 %8158  ;;  %18919 = vmatmul.mubr.msk.f32.gmra.mrb[2].mxu1 %vm267_vm2, %v1564_v15  ;;  %7115 = vmatprep.mubr.f32.mxu0 %v26255_v0 }
 0x186   : > { %10428 = vrot.lane.b32.xlu0 %v10424_v16, %s26240_s29  ;;  %1679 = vmatprep.mubr.f32.mxu1 %v26255_v0  ;;  %v2037_v16 = vsel %vm2035_vm15, %v23290_v10, %v23305_v21 }
 0x187   : > { %10430 = vrot.lane.b32.xlu1 %v10421_v17, %s26240_s29  ;;  %v1791_v17 = vld [vmem:[#allocation5 + $0xe8] sm:$0xff] }
 0x188   : > { %19182 = vmatmul.mubr.msk.f32.vlgmr.msra.gmra.mrb[0].mxu0 %vm267_vm2, %v7011_v29  ;;  %v23429_v56 = vpop.permute.xlu0 %8160  ;;  %v10875_v29 = vld [vmem:[%s22734_s25 + $0x8] sm:$0x77] }
 0x189   : > { %18920 = vmatmul.mubr.msk.f32.gmra.mrb[4].mxu1 %vm267_vm2, %v1565_v43  ;;  %7121 = vmatprep.mubr.f32.mxu0 %v26255_v0  ;;  %v23421_v53 = vpop.permute.xlu1 %8156  ;;  %26307 = vst [vmem:[#allocation12_spill] sm:$0xff] %v23429_v56 }
 0x18a   : > { %10426 = vrot.lane.b32.xlu0 %v10420_v59, %s26240_s29  ;;  %1685 = vmatprep.mubr.f32.mxu1 %v26255_v0  ;;  %s22490_s29 = smov 96  }
 0x18b   : > { %3849 = vrot.lane.b32.xlu1 %v3842_v51, %s22488_s20  ;;  %19192 = vmatpush1.msk.msra.mxu0 %vm280_vm1, %v7257_v39  ;;  %s26242_s20 = smov 7   ;;  %v7484_v51 = vsel %vm26244_vm7, %v23286_v58, %v23275_v19  ;;  %v7240_v39 = vld [vmem:[#allocation5 + $0x3f0] sm:$0xff]  ;;  %vm26251_vm7 = vcmask 400384  }
 0x18c   : > { %19183 = vmatmul.mubr.msk.f32.gmra.mrb[2].mxu0 %vm267_vm2, %v7012_v26  ;;  %19202 = vmatprep.subr.msk.mxu0 %vm280_vm1, %v7485_v45  ;;  %v23450_v24 = vpop.permute.xlu0 %2483  ;;  %v7712_v26 = vsel %vm26248_vm12, %v23321_v30, %v23325_v31  ;;  %v1792_v19 = vld [vmem:[#allocation5 + $0xf0] sm:$0xff] }
 0x18d   : > { %18921 = vmatmul.mubr.msk.f32.gmra.mrb[6].mxu1 %vm267_vm2, %v1566_v5  ;;  %7127 = vmatprep.mubr.f32.mxu0 %v26255_v0  ;;  %v23444_v52 = vpop.permute.xlu1 %2485 }
 0x18e   : > { %4072 = vrot.lane.b32.xlu0 %v4068_v48, %s22490_s29  ;;  %20199 = vmatprep.mubr.msk.f32.mxu1 %vm267_vm2, %v1563_v1  ;;  %v7014_v1 = vld [vmem:[#allocation5 + $0x3d8] sm:$0xff] }
 0x18f   : > { %4074 = vrot.lane.b32.xlu1 %v4065_v54, %s22490_s29  ;;  %v11101_v48 = vld [vmem:[%s22734_s25] sm:$0x77] }
 0x190   : > { %19184 = vmatmul.mubr.msk.f32.gmra.mrb[4].mxu0 %vm267_vm2, %v7013_v18  ;;  %v23465_v14 = vpop.permute.xlu0 %2481  ;;  %v1793_v54 = vld [vmem:[#allocation5 + $0xf8] sm:$0xff] }
 0x191   : > { %20200 = vmatmul.mubr.msk.f32.vlgmr.msra.gmra.mrb[8].mxu1 %vm267_vm2, %v1564_v15  ;;  %7133 = vmatprep.mubr.f32.mxu0 %v26255_v0  ;;  %v23461_v59 = vpop.permute.xlu1 %8385  ;;  %v7239_v15 = vld [vmem:[#allocation5 + $0x3e8] sm:$0xff] }
 0x192   : > { %18928 = vmatpush1.msk.msra.mxu1 %vm280_vm1, %v1809_v57  ;;  %10655 = vrot.lane.b32.xlu0 %v10651_v60, %s26242_s20  ;;  %v11105_v60 = vcombine.high %v11101_v48, %v11101_v48 }
 0x193   : > { %20205 = vmatprep.subr.msk.mxu1 %vm280_vm1, %v1811_v3  ;;  %10657 = vrot.lane.b32.xlu1 %v10648_v61, %s26242_s20  ;;  %v2036_v61 = vsel %vm2035_vm15, %v23309_v22, %v23290_v10 }
 0x194   : > { %20202 = vmatprep.mubr.msk.f32.mxu1 %vm267_vm2, %v1565_v43  ;;  %19185 = vmatmul.mubr.msk.f32.gmra.mrb[6].mxu0 %vm267_vm2, %v7014_v1  ;;  %v4291_v43 = vld [vmem:[%s22734_s25] sm:$0x77]  ;;  %v23492_v45 = vpop.permute.xlu0 %8387  ;;  %v11102_v1 = vld [vmem:[%s22734_s25 + $0x8] sm:$0x77] }
 0x195   : > { %20203 = vmatmul.mubr.msk.f32.gmra.mrb[10].mxu1 %vm267_vm2, %v1566_v5  ;;  %7342 = vmatprep.mubr.f32.mxu0 %v26255_v0  ;;  %v4295_v58 = vcombine.high %v4291_v43, %v4291_v43  ;;  %26308 = vst [vmem:[#allocation13_spill] sm:$0xff] %v23492_v45  ;;  %v4292_v5 = vld [vmem:[%s22734_s25 + $0x8] sm:$0x77] }
 0x196   : > { %4070 = vrot.lane.b32.xlu0 %v4064_v38, %s22490_s29  ;;  %1894 = vmatprep.mubr.f32.mxu1 %v26255_v0  ;;  %v23483_v38 = vpop.permute.xlu1 %8383  ;;  %v4296_v10 = vcombine.high %v4292_v5, %v4292_v5 }
 0x197   : > { %10653 = vrot.lane.b32.xlu1 %v10647_v34, %s26242_s20  ;;  %s26243_s20 = smov 6   ;;  %v7241_v34 = vld [vmem:[#allocation5 + $0x3f8] sm:$0xff] }
 0x198   : > { %19193 = vmatmul.mubr.msk.f32.vlgmr.msra.gmra.mrb[0].mxu0 %vm267_vm2, %v7238_v46  ;;  %v23508_v57 = vpop.permute.xlu0 %2487  ;;  %v2038_v46 = vsel %vm2035_vm15, %v23305_v21, %v23336_v41  ;;  %v7711_v41 = vsel %vm26248_vm12, %v23333_v37, %v23321_v30  ;;  %vm26250_vm15 = vcmask 850944   ;;  %v2017_v30 = vld [vmem:[#allocation5 + $0x100] sm:$0xff]  ;;  %vm26252_vm12 = vcmask 392192  }
 0x199   : > { %18929 = vmatmul.mubr.msk.f32.vlgmr.msra.gmra.mrb[0].mxu1 %vm267_vm2, %v1790_v13  ;;  %7348 = vmatprep.mubr.f32.mxu0 %v26255_v0 }
 0x19a   : > { %20206 = vmatpush3.msk.msra.mxu1 %vm280_vm1, %v1811_v3  ;;  %4076 = vrot.lane.b32.xlu0 %v4069_v55, %s22490_s29  ;;  %s26246_s29 = smov 80   ;;  %v23504_v18 = vpop.permute.xlu1 %2710  ;;  %v7465_v3 = vld [vmem:[#allocation5 + $0x400] sm:$0xff] }
 0x19b   : > { %10882 = vrot.lane.b32.xlu1 %v10878_v2, %s26243_s20  ;;  %1900 = vmatprep.mubr.f32.mxu1 %v26255_v0  ;;  %v11328_v2 = vld [vmem:[%s22734_s25] sm:$0x77] }
 0x19c   : > { %19194 = vmatmul.mubr.msk.f32.gmra.mrb[2].mxu0 %vm267_vm2, %v7239_v15  ;;  %18938 = vmatprep.subr.msk.mxu1 %vm280_vm1, %v2037_v16  ;;  %v23530_v22 = vpop.permute.xlu0 %2712  ;;  %v7467_v15 = vld [vmem:[#allocation5 + $0x410] sm:$0xff]  ;;  %v7939_v16 = vsel %vm26251_vm7, %v23366_v62, %v23369_v23 }
 0x19d   : > { %18930 = vmatmul.mubr.msk.f32.gmra.mrb[2].mxu1 %vm267_vm2, %v1791_v17  ;;  %7354 = vmatprep.mubr.f32.mxu0 %v26255_v0 }
 0x19e   : > { %10884 = vrot.lane.b32.xlu0 %v10875_v29, %s26243_s20  ;;  %1906 = vmatprep.mubr.f32.mxu1 %v26255_v0  ;;  %v23524_v55 = vpop.permute.xlu1 %8612  ;;  %v11332_v29 = vcombine.high %v11328_v2, %v11328_v2 }
 0x19f   : > { %10880 = vrot.lane.b32.xlu1 %v10874_v33, %s26243_s20  ;;  %19203 = vmatpush1.msk.msra.mxu0 %vm280_vm1, %v7484_v51  ;;  %s26245_s20 = smov 5   ;;  %v4518_v33 = vld [vmem:[%s22734_s25] sm:$0x77] }
 0x1a0   : > { %19195 = vmatmul.mubr.msk.f32.gmra.mrb[4].mxu0 %vm267_vm2, %v7240_v39  ;;  %19213 = vmatprep.subr.msk.mxu0 %vm280_vm1, %v7712_v26  ;;  %v4522_v21 = vcombine.high %v4518_v33, %v4518_v33  ;;  %v7468_v51 = vld [vmem:[#allocation5 + $0x418] sm:$0xff]  ;;  %v2264_v39 = vsel %vm26250_vm15, %v23346_v49, %v23354_v35  ;;  %v2018_v26 = vld [vmem:[#allocation5 + $0x108] sm:$0xff] }
 0x1a1   : > { %18931 = vmatmul.mubr.msk.f32.gmra.mrb[4].mxu1 %vm267_vm2, %v1792_v19  ;;  %7360 = vmatprep.mubr.f32.mxu0 %v26255_v0 }
 0x1a2   : > { %4299 = vrot.lane.b32.xlu0 %v4295_v58, %s26246_s29  ;;  %1912 = vmatprep.mubr.f32.mxu1 %v26255_v0  ;;  %v23547_v37 = vpop.permute.xlu1 %2708 }
 0x1a3   : > { %4301 = vrot.lane.b32.xlu1 %v4292_v5, %s26246_s29  ;;  %v7692_v5 = vld [vmem:[#allocation5 + $0x420] sm:$0xff] }
 0x1a4   : > { %19196 = vmatmul.mubr.msk.f32.gmra.mrb[6].mxu0 %vm267_vm2, %v7241_v34 }
 0x1a5   : > { %18932 = vmatmul.mubr.msk.f32.gmra.mrb[6].mxu1 %vm267_vm2, %v1793_v54  ;;  %7569 = vmatprep.mubr.f32.mxu0 %v26255_v0 }
 0x1a6   : > { %4297 = vrot.lane.b32.xlu0 %v4291_v43, %s26246_s29  ;;  %20207 = vmatprep.mubr.msk.f32.mxu1 %vm267_vm2, %v1790_v13  ;;  %v7466_v13 = vld [vmem:[#allocation5 + $0x408] sm:$0xff]  ;;  %v23554_v43 = vpop.permute.xlu0 %8614  ;;  %v23568_v58 = vpop.permute.xlu1 %2714 }
 0x1a7   : > { %11109 = vrot.lane.b32.xlu1 %v11105_v60, %s26245_s20  ;;  %26309 = vst [vmem:[#allocation14_spill] sm:$0xff] %v23554_v43  ;;  %v11555_v60 = vld [vmem:[%s22734_s25] sm:$0x77] }
 0x1a8   : > { %19204 = vmatmul.mubr.msk.f32.vlgmr.msra.gmra.mrb[0].mxu0 %vm267_vm2, %v7465_v3  ;;  %v7938_v3 = vsel %vm26251_vm7, %v23386_v11, %v23366_v62  ;;  %v23595_v62 = vld [vmem:[%s22734_s25 + $0x8] sm:$0x77]  ;;  %vm26253_vm7 = vcmask 261120  }
 0x1a9   : > { %20208 = vmatmul.mubr.msk.f32.vlgmr.msra.gmra.mrb[8].mxu1 %vm267_vm2, %v1791_v17  ;;  %7575 = vmatprep.mubr.f32.mxu0 %v26255_v0  ;;  %v4519_v17 = vld [vmem:[%s22734_s25 + $0x8] sm:$0x77] }
 0x1aa   : > { %11111 = vrot.lane.b32.xlu0 %v11102_v1, %s26245_s20  ;;  %18939 = vmatpush1.msk.msra.mxu1 %vm280_vm1, %v2036_v61  ;;  %v23574_v34 = vpop.permute.xlu0 %8610  ;;  %v7693_v61 = vld [vmem:[#allocation5 + $0x428] sm:$0xff]  ;;  %v8166_v1 = vsel %vm26252_vm12, %v23400_v25, %v23429_v56 }
 0x1ab   : > { %11107 = vrot.lane.b32.xlu1 %v11101_v48, %s26245_s20  ;;  %20210 = vmatprep.mubr.msk.f32.mxu1 %vm267_vm2, %v1792_v19  ;;  %s22495_s20 = smov 79   ;;  %v11329_v19 = vld [vmem:[%s22734_s25 + $0x8] sm:$0x77] }
 0x1ac   : > { %20213 = vmatprep.subr.msk.mxu1 %vm280_vm1, %v2038_v46  ;;  %19205 = vmatmul.mubr.msk.f32.gmra.mrb[2].mxu0 %vm267_vm2, %v7466_v13  ;;  %v2019_v48 = vld [vmem:[#allocation5 + $0x110] sm:$0xff]  ;;  %v23589_v13 = vpop.permute.xlu1 %8841 }
 0x1ad   : > { %20211 = vmatmul.mubr.msk.f32.gmra.mrb[10].mxu1 %vm267_vm2, %v1793_v54  ;;  %7581 = vmatprep.mubr.f32.mxu0 %v26255_v0  ;;  %v4523_v54 = vcombine.high %v4519_v17, %v4519_v17  ;;  %26310 = vst [vmem:[#allocation15_spill] sm:$0xff] %v23589_v13 }
 0x1ae   : > { %4303 = vrot.lane.b32.xlu0 %v4296_v10, %s26246_s29  ;;  %2121 = vmatprep.mubr.f32.mxu1 %v26255_v0  ;;  %s26249_s29 = smov 4   ;;  %v23598_v11 = vpop.permute.xlu0 %8839  ;;  %v7694_v10 = vld [vmem:[#allocation5 + $0x430] sm:$0xff] }
 0x1af   : > { %4526 = vrot.lane.b32.xlu1 %v4522_v21, %s22495_s20  ;;  %19214 = vmatpush1.msk.msra.mxu0 %vm280_vm1, %v7711_v41  ;;  %v22094_v21 = vld [vmem:[%s22734_s25 + $0x8] sm:$0x77] }
 0x1b0   : > { %19206 = vmatmul.mubr.msk.f32.gmra.mrb[4].mxu0 %vm267_vm2, %v7467_v15  ;;  %19224 = vmatprep.subr.msk.mxu0 %vm280_vm1, %v7939_v16  ;;  %v4750_v41 = vcombine.high %v22094_v21, %v22094_v21  ;;  %v11781_v15 = vld [vmem:[%s22734_s25] sm:$0x77]  ;;  %v2265_v16 = vsel %vm26250_vm15, %v23354_v35, %v23406_v32  ;;  %v23628_v35 = vld [vmem:[%s22734_s25 + $0x8] sm:$0x77]  ;;  %v8393_v21 = vsel %vm26253_vm7, %v23461_v59, %v23492_v45 }
 0x1b1   : > { %18940 = vmatmul.mubr.msk.f32.vlgmr.msra.gmra.mrb[0].mxu1 %vm267_vm2, %v2017_v30  ;;  %7587 = vmatprep.mubr.f32.mxu0 %v26255_v0  ;;  %v7919_v32 = vld [vmem:[#allocation5 + $0x440] sm:$0xff] }
 0x1b2   : > { %20214 = vmatpush3.msk.msra.mxu1 %vm280_vm1, %v2038_v46  ;;  %4528 = vrot.lane.b32.xlu0 %v4519_v17, %s22495_s20  ;;  %v11559_v46 = vcombine.high %v11555_v60, %v11555_v60  ;;  %v23615_v17 = vpop.permute.xlu1 %2937 }
 0x1b3   : > { %11336 = vrot.lane.b32.xlu1 %v11332_v29, %s26249_s29  ;;  %2127 = vmatprep.mubr.f32.mxu1 %v26255_v0  ;;  %v2244_v29 = vld [vmem:[#allocation5 + $0x120] sm:$0xff] }
 0x1b4   : > { %19207 = vmatmul.mubr.msk.f32.gmra.mrb[6].mxu0 %vm267_vm2, %v7468_v51  ;;  %18949 = vmatprep.subr.msk.mxu1 %vm280_vm1, %v2264_v39  ;;  %v22095_v51 = vld [vmem:[%s22734_s25 + $0x8] sm:$0x77] }
 0x1b5   : > { %18941 = vmatmul.mubr.msk.f32.gmra.mrb[2].mxu1 %vm267_vm2, %v2018_v26  ;;  %7796 = vmatprep.mubr.f32.mxu0 %v26255_v0  ;;  %v4977_v39 = vcombine.high %v22095_v51, %v22095_v51 }
 0x1b6   : > { %11338 = vrot.lane.b32.xlu0 %v11329_v19, %s26249_s29  ;;  %2133 = vmatprep.mubr.f32.mxu1 %v26255_v0  ;;  %v12008_v19 = vld [vmem:[%s22734_s25] sm:$0x77] }
 0x1b7   : > { %4524 = vrot.lane.b32.xlu1 %v4518_v33, %s22495_s20  ;;  %v2020_v33 = vld [vmem:[#allocation5 + $0x118] sm:$0xff] }
 0x1b8   : > { %19215 = vmatmul.mubr.msk.f32.vlgmr.msra.gmra.mrb[0].mxu0 %vm267_vm2, %v7692_v5 }
 0x1b9   : > { %18942 = vmatmul.mubr.msk.f32.gmra.mrb[4].mxu1 %vm267_vm2, %v2019_v48  ;;  %7802 = vmatprep.mubr.f32.mxu0 %v26255_v0 }
 0x1ba   : > { %11334 = vrot.lane.b32.xlu0 %v11328_v2, %s26249_s29  ;;  %2139 = vmatprep.mubr.f32.mxu1 %v26255_v0  ;;  %s22497_s29 = smov 3   ;;  %v2263_v2 = vsel %vm26250_vm15, %v23384_v9, %v23346_v49  ;;  %v11785_v49 = vcombine.high %v11781_v15, %v11781_v15  ;;  %v23621_v9 = vpop.permute.xlu0 %8837  ;;  %vm2489_vm15 = vcmask 842752  }
 0x1bb   : > { %4530 = vrot.lane.b32.xlu1 %v4523_v54, %s22495_s20  ;;  %19225 = vmatpush1.msk.msra.mxu0 %vm280_vm1, %v7938_v3  ;;  %s22498_s20 = smov 2   ;;  %v2491_v54 = vsel %vm2489_vm15, %v23450_v24, %v23444_v52 }
 0x1bc   : > { %19216 = vmatmul.mubr.msk.f32.gmra.mrb[2].mxu0 %vm267_vm2, %v7693_v61  ;;  %19235 = vmatprep.subr.msk.mxu0 %vm280_vm1, %v8166_v1  ;;  %v2245_v61 = vld [vmem:[#allocation5 + $0x128] sm:$0xff]  ;;  %v12012_v1 = vcombine.high %v12008_v19, %v12008_v19 }
 0x1bd   : > { %18943 = vmatmul.mubr.msk.f32.gmra.mrb[6].mxu1 %vm267_vm2, %v2020_v33  ;;  %7808 = vmatprep.mubr.f32.mxu0 %v26255_v0 }
 0x1be   : > { %11563 = vrot.lane.b32.xlu0 %v11559_v46, %s22497_s29  ;;  %20215 = vmatprep.mubr.msk.f32.mxu1 %vm267_vm2, %v2017_v30  ;;  %v7695_v30 = vld [vmem:[#allocation5 + $0x438] sm:$0xff]  ;;  %v23641_v5 = vpop.permute.xlu0 %2939 }
 0x1bf   : > { %11565 = vrot.lane.b32.xlu1 %v23595_v62, %s22497_s29 }
 0x1c0   : > { %19217 = vmatmul.mubr.msk.f32.gmra.mrb[4].mxu0 %vm267_vm2, %v7694_v10  ;;  %v7921_v10 = vld [vmem:[#allocation5 + $0x450] sm:$0xff] }
 0x1c1   : > { %20216 = vmatmul.mubr.msk.f32.vlgmr.msra.gmra.mrb[8].mxu1 %vm267_vm2, %v2018_v26  ;;  %7814 = vmatprep.mubr.f32.mxu0 %v26255_v0  ;;  %v23635_v26 = vpop.permute.xlu1 %2935 }
 0x1c2   : > { %18950 = vmatpush1.msk.msra.mxu1 %vm280_vm1, %v2263_v2  ;;  %11561 = vrot.lane.b32.xlu0 %v11555_v60, %s22497_s29  ;;  %v22096_v60 = vld [vmem:[%s22734_s25 + $0x8] sm:$0x77] }
 0x1c3   : > { %20221 = vmatprep.subr.msk.mxu1 %vm280_vm1, %v2265_v16  ;;  %4757 = vrot.lane.b32.xlu1 %v4750_v41, %s22448_s22  ;;  %v5204_v3 = vcombine.high %v22096_v60, %v22096_v60  ;;  %s22499_s22 = smov 1   ;;  %v23672_v41 = vld [vmem:[%s22734_s25 + $0x8] sm:$0x77] }
 0x1c4   : > { %20218 = vmatprep.mubr.msk.f32.mxu1 %vm267_vm2, %v2019_v48  ;;  %19218 = vmatmul.mubr.msk.f32.gmra.mrb[6].mxu0 %vm267_vm2, %v7695_v30  ;;  %v7920_v48 = vld [vmem:[#allocation5 + $0x448] sm:$0xff]  ;;  %v7922_v2 = vld [vmem:[#allocation5 + $0x458] sm:$0xff] }
 0x1c5   : > { %20219 = vmatmul.mubr.msk.f32.gmra.mrb[10].mxu1 %vm267_vm2, %v2020_v33  ;;  %8023 = vmatprep.mubr.f32.mxu0 %v26255_v0  ;;  %v8165_v33 = vsel %vm26252_vm12, %v23421_v53, %v23400_v25  ;;  %v23658_v46 = vpop.permute.xlu1 %9068  ;;  %v2246_v25 = vld [vmem:[#allocation5 + $0x130] sm:$0xff]  ;;  %v23667_v53 = vpop.permute.xlu0 %9066  ;;  %v2247_v30 = vld [vmem:[#allocation5 + $0x138] sm:$0xff]  ;;  %vm26254_vm12 = vcmask 252928  }
 0x1c6   : > { %11789 = vrot.lane.b32.xlu0 %v11785_v49, %s22498_s20  ;;  %2348 = vmatprep.mubr.f32.mxu1 %v26255_v0  ;;  %26311 = vst [vmem:[#allocation16_spill] sm:$0xff] %v23658_v46  ;;  %v22098_v49 = vld [vmem:[%s22734_s25 + $0x8] sm:$0x77] }
 0x1c7   : > { %11791 = vrot.lane.b32.xlu1 %v23628_v35, %s22498_s20 }
 0x1c8   : > { %19226 = vmatmul.mubr.msk.f32.vlgmr.msra.gmra.mrb[0].mxu0 %vm267_vm2, %v7919_v32  ;;  %v5658_v32 = vcombine.high %v22098_v49, %v22098_v49  ;;  %v8149_v49 = vld [vmem:[#allocation5 + $0x478] sm:$0xff] }
 0x1c9   : > { %18951 = vmatmul.mubr.msk.f32.vlgmr.msra.gmra.mrb[0].mxu1 %vm267_vm2, %v2244_v29  ;;  %8029 = vmatprep.mubr.f32.mxu0 %v26255_v0  ;;  %v23683_v51 = vpop.permute.xlu1 %2941 }
 0x1ca   : > { %20222 = vmatpush3.msk.msra.mxu1 %vm280_vm1, %v2265_v16  ;;  %11787 = vrot.lane.b32.xlu0 %v11781_v15, %s22498_s20  ;;  %v22097_v15 = vld [vmem:[%s22734_s25 + $0x8] sm:$0x77] }
 0x1cb   : > { %4984 = vrot.lane.b32.xlu1 %v4977_v39, %s22450_s24  ;;  %2354 = vmatprep.mubr.f32.mxu1 %v26255_v0  ;;  %v5431_v16 = vcombine.high %v22097_v15, %v22097_v15  ;;  %v23687_v39 = vpop.permute.xlu0 %9064  ;;  %s22500_s24 = smov 112  }
 0x1cc   : > { %19227 = vmatmul.mubr.msk.f32.gmra.mrb[2].mxu0 %vm267_vm2, %v7920_v48  ;;  %18960 = vmatprep.subr.msk.mxu1 %vm280_vm1, %v2491_v54  ;;  %v8146_v48 = vld [vmem:[#allocation5 + $0x460] sm:$0xff] }
 0x1cd   : > { %18952 = vmatmul.mubr.msk.f32.gmra.mrb[2].mxu1 %vm267_vm2, %v2245_v61  ;;  %8035 = vmatprep.mubr.f32.mxu0 %v26255_v0  ;;  %v22099_v54 = vld [vmem:[%s22734_s25 + $0x8] sm:$0x77] }
 0x1ce   : > { %5211 = vrot.lane.b32.xlu0 %v5204_v3, %s22451_s30  ;;  %2360 = vmatprep.mubr.f32.mxu1 %v26255_v0  ;;  %v5885_v60 = vcombine.high %v22099_v54, %v22099_v54  ;;  %v22100_v3 = vld [vmem:[%s22734_s25 + $0x8] sm:$0x77]  ;;  %s22501_s30 = smov 111  }
 0x1cf   : > { %12016 = vrot.lane.b32.xlu1 %v12012_v1, %s22499_s22  ;;  %19236 = vmatpush1.msk.msra.mxu0 %vm280_vm1, %v8165_v33  ;;  %v6112_v1 = vcombine.high %v22100_v3, %v22100_v3  ;;  %v12449_v33 = vld [vmem:[%s22734_s25 + $0x4] sm:$0x77] }
 0x1d0   : > { %19228 = vmatmul.mubr.msk.f32.gmra.mrb[4].mxu0 %vm267_vm2, %v7921_v10  ;;  %19246 = vmatprep.subr.msk.mxu0 %vm280_vm1, %v8393_v21  ;;  %v2492_v10 = vsel %vm2489_vm15, %v23444_v52, %v23508_v57  ;;  %v23704_v21 = vpop.permute.xlu1 %3166  ;;  %v8392_v52 = vsel %vm26253_vm7, %v23483_v38, %v23461_v59  ;;  %v23720_v57 = vld [vmem:[%s22734_s25 + $0xc] sm:$0x77]  ;;  %vm26259_vm7 = vcmask 244736  }
 0x1d1   : > { %18953 = vmatmul.mubr.msk.f32.gmra.mrb[4].mxu1 %vm267_vm2, %v2246_v25  ;;  %8041 = vmatprep.mubr.f32.mxu0 %v26255_v0  ;;  %v2471_v59 = vld [vmem:[#allocation5 + $0x140] sm:$0xff] }
 0x1d2   : > { %12018 = vrot.lane.b32.xlu0 %v23672_v41, %s22499_s22  ;;  %2366 = vmatprep.mubr.f32.mxu1 %v26255_v0  ;;  %v22101_v38 = vld [vmem:[%s22734_s25 + $0x8] sm:$0x77] }
 0x1d3   : > { %12014 = vrot.lane.b32.xlu1 %v12008_v19, %s22499_s22  ;;  %v2490_v19 = vsel %vm2489_vm15, %v23465_v14, %v23450_v24  ;;  %v12453_v24 = vcombine.high %v12449_v33, %v12449_v33  ;;  %v23710_v14 = vpop.permute.xlu0 %3164  ;;  %vm2716_vm15 = vcmask 834560  }
 0x1d4   : > { %19229 = vmatmul.mubr.msk.f32.gmra.mrb[6].mxu0 %vm267_vm2, %v7922_v2  ;;  %v6339_v2 = vcombine.high %v22101_v38, %v22101_v38  ;;  %v23730_v15 = vpop.permute.xlu1 %9295 }
 0x1d5   : > { %18954 = vmatmul.mubr.msk.f32.gmra.mrb[6].mxu1 %vm267_vm2, %v2247_v30  ;;  %8250 = vmatprep.mubr.f32.mxu0 %v26255_v0  ;;  %26312 = vst [vmem:[#allocation17_spill] sm:$0xff] %v23730_v15 }
 0x1d6   : > { %5438 = vrot.lane.b32.xlu0 %v5431_v16, %s22452_s7  ;;  %20223 = vmatprep.mubr.msk.f32.mxu1 %vm267_vm2, %v2244_v29  ;;  %v8147_v29 = vld [vmem:[#allocation5 + $0x468] sm:$0xff]  ;;  %v12676_v16 = vld [vmem:[%s22734_s25 + $0x4] sm:$0x77]  ;;  %s22502_s7 = smov 110  }
 0x1d7   : > { %5665 = vrot.lane.b32.xlu1 %v5658_v32, %s22454_s9  ;;  %v2718_v32 = vsel %vm2716_vm15, %v23504_v18, %v23530_v22  ;;  %v12680_v3 = vcombine.high %v12676_v16, %v12676_v16  ;;  %s22503_s9 = smov 109  }
 0x1d8   : > { %19237 = vmatmul.mubr.msk.f32.vlgmr.msra.gmra.mrb[0].mxu0 %vm267_vm2, %v8146_v48  ;;  %v22102_v48 = vld [vmem:[%s22734_s25 + $0x8] sm:$0x77] }
 0x1d9   : > { %20224 = vmatmul.mubr.msk.f32.vlgmr.msra.gmra.mrb[8].mxu1 %vm267_vm2, %v2245_v61  ;;  %8256 = vmatprep.mubr.f32.mxu0 %v26255_v0  ;;  %v8148_v61 = vld [vmem:[#allocation5 + $0x470] sm:$0xff]  ;;  %v6566_v54 = vcombine.high %v22102_v48, %v22102_v48 }
 0x1da   : > { %5892 = vrot.lane.b32.xlu0 %v5885_v60, %s22456_s5  ;;  %18961 = vmatpush1.msk.msra.mxu1 %vm280_vm1, %v2490_v19  ;;  %v2472_v60 = vld [vmem:[#allocation5 + $0x148] sm:$0xff]  ;;  %v8373_v19 = vld [vmem:[#allocation5 + $0x480] sm:$0xff]  ;;  %s26314_s5 = smov 50  }
 0x1db   : > { %6119 = vrot.lane.b32.xlu1 %v6112_v1, %s22457_s28  ;;  %20226 = vmatprep.mubr.msk.f32.mxu1 %vm267_vm2, %v2246_v25  ;;  %v8620_v25 = vsel %vm26254_vm12, %v23524_v55, %v23554_v43  ;;  %v23752_v1 = vpop.permute.xlu1 %9291  ;;  %s26315_s28 = smov 49  }
 0x1dc   : > { %20229 = vmatprep.subr.msk.mxu1 %vm280_vm1, %v2492_v10  ;;  %19238 = vmatmul.mubr.msk.f32.gmra.mrb[2].mxu0 %vm267_vm2, %v8147_v29  ;;  %v23762_v29 = vld [vmem:[%s22734_s25 + $0xc] sm:$0x77] }
 0x1dd   : > { %20227 = vmatmul.mubr.msk.f32.gmra.mrb[10].mxu1 %vm267_vm2, %v2247_v30  ;;  %8262 = vmatprep.mubr.f32.mxu0 %v26255_v0  ;;  %v23738_v30 = vpop.permute.xlu0 %9293 }
 0x1de   : > { %12457 = vrot.lane.b32.xlu0 %v12453_v24, %s22500_s24  ;;  %2575 = vmatprep.mubr.f32.mxu1 %v26255_v0  ;;  %v8619_v24 = vsel %vm26254_vm12, %v23574_v34, %v23524_v55  ;;  %v22104_v55 = vld [vmem:[%s22734_s25 + $0x8] sm:$0x77]  ;;  %vm26260_vm12 = vcmask 236544  }
 0x1df   : > { %12459 = vrot.lane.b32.xlu1 %v23720_v57, %s22500_s24  ;;  %19247 = vmatpush1.msk.msra.mxu0 %vm280_vm1, %v8392_v52  ;;  %v8374_v52 = vld [vmem:[#allocation5 + $0x488] sm:$0xff]  ;;  %v7020_v34 = vcombine.high %v22104_v55, %v22104_v55 }
 0x1e0   : > { %19239 = vmatmul.mubr.msk.f32.gmra.mrb[4].mxu0 %vm267_vm2, %v8148_v61  ;;  %19257 = vmatprep.subr.msk.mxu0 %vm280_vm1, %v8620_v25  ;;  %v8847_v61 = vsel %vm26259_vm7, %v23598_v11, %v23589_v13  ;;  %v22103_v25 = vld [vmem:[%s22734_s25 + $0x8] sm:$0x77] }
 0x1e1   : > { %18962 = vmatmul.mubr.msk.f32.vlgmr.msra.gmra.mrb[0].mxu1 %vm267_vm2, %v2471_v59  ;;  %8268 = vmatprep.mubr.f32.mxu0 %v26255_v0  ;;  %v6793_v38 = vcombine.high %v22103_v25, %v22103_v25 }
 0x1e2   : > { %20230 = vmatpush3.msk.msra.mxu1 %vm280_vm1, %v2492_v10  ;;  %12455 = vrot.lane.b32.xlu0 %v12449_v33, %s22500_s24  ;;  %v2473_v33 = vld [vmem:[#allocation5 + $0x150] sm:$0xff]  ;;  %v23758_v10 = vpop.permute.xlu0 %3162 }
 0x1e3   : > { %6346 = vrot.lane.b32.xlu1 %v6339_v2, %s26268_s21  ;;  %2581 = vmatprep.mubr.f32.mxu1 %v26255_v0  ;;  %v2474_v2 = vld [vmem:[#allocation5 + $0x158] sm:$0xff]  ;;  %s26331_s21 = smov 8  }
 0x1e4   : > { %19240 = vmatmul.mubr.msk.f32.gmra.mrb[6].mxu0 %vm267_vm2, %v8149_v49  ;;  %18971 = vmatprep.subr.msk.mxu1 %vm280_vm1, %v2718_v32  ;;  %v23778_v49 = vpop.permute.xlu1 %9520  ;;  %v12903_v32 = vld [vmem:[%s22734_s25 + $0x4] sm:$0x77] }
 0x1e5   : > { %18963 = vmatmul.mubr.msk.f32.gmra.mrb[2].mxu1 %vm267_vm2, %v2472_v60  ;;  %8477 = vmatprep.mubr.f32.mxu0 %v26255_v0 }
 0x1e6   : > { %6573 = vrot.lane.b32.xlu0 %v6566_v54, %s22461_s11  ;;  %2587 = vmatprep.mubr.f32.mxu1 %v26255_v0  ;;  %v23785_v48 = vpop.permute.xlu0 %3168  ;;  %v8375_v54 = vld [vmem:[#allocation5 + $0x490] sm:$0xff]  ;;  %s22504_s11 = smov 108  }
 0x1e7   : > { %12684 = vrot.lane.b32.xlu1 %v12680_v3, %s22501_s30  ;;  %v2717_v3 = vsel %vm2716_vm15, %v23547_v37, %v23504_v18  ;;  %v22105_v18 = vld [vmem:[%s22734_s25 + $0x8] sm:$0x77] }
 0x1e8   : > { %19248 = vmatmul.mubr.msk.f32.vlgmr.msra.gmra.mrb[0].mxu0 %vm267_vm2, %v8373_v19  ;;  %v2719_v19 = vsel %vm2716_vm15, %v23530_v22, %v23568_v58  ;;  %v7247_v22 = vcombine.high %v22105_v18, %v22105_v18  ;;  %v13130_v58 = vld [vmem:[%s22734_s25 + $0x4] sm:$0x77]  ;;  %vm2943_vm15 = vcmask 826368   ;;  %v9074_v18 = vsel %vm26260_vm12, %v23667_v53, %v23658_v46 }
 0x1e9   : > { %18964 = vmatmul.mubr.msk.f32.gmra.mrb[4].mxu1 %vm267_vm2, %v2473_v33  ;;  %8483 = vmatprep.mubr.f32.mxu0 %v26255_v0 }
 0x1ea   : > { %12686 = vrot.lane.b32.xlu0 %v23762_v29, %s22501_s30  ;;  %2593 = vmatprep.mubr.f32.mxu1 %v26255_v0  ;;  %v23809_v37 = vpop.permute.xlu0 %9522 }
 0x1eb   : > { %12682 = vrot.lane.b32.xlu1 %v12676_v16, %s22501_s30  ;;  %19258 = vmatpush1.msk.msra.mxu0 %vm280_vm1, %v8619_v24  ;;  %v12907_v16 = vcombine.high %v12903_v32, %v12903_v32  ;;  %v23800_v24 = vld [vmem:[%s22734_s25 + $0xc] sm:$0x77]  ;;  %26313 = vst [vmem:[#allocation18_spill] sm:$0xff] %v23809_v37 }
 0x1ec   : > { %19249 = vmatmul.mubr.msk.f32.gmra.mrb[2].mxu0 %vm267_vm2, %v8374_v52  ;;  %19268 = vmatprep.subr.msk.mxu0 %vm280_vm1, %v8847_v61  ;;  %v23802_v52 = vpop.permute.xlu1 %9518  ;;  %v22106_v61 = vld [vmem:[%s22734_s25 + $0x8] sm:$0x77] }
 0x1ed   : > { %18965 = vmatmul.mubr.msk.f32.gmra.mrb[6].mxu1 %vm267_vm2, %v2474_v2  ;;  %8489 = vmatprep.mubr.f32.mxu0 %v26255_v0  ;;  %v7474_v25 = vcombine.high %v22106_v61, %v22106_v61 }
 0x1ee   : > { %6800 = vrot.lane.b32.xlu0 %v6793_v38, %s22462_s19  ;;  %20231 = vmatprep.mubr.msk.f32.mxu1 %vm267_vm2, %v2471_v59  ;;  %v8376_v59 = vld [vmem:[#allocation5 + $0x498] sm:$0xff]  ;;  %v2698_v38 = vld [vmem:[#allocation5 + $0x160] sm:$0xff]  ;;  %s26318_s19 = smov 48  }
 0x1ef   : > { %7027 = vrot.lane.b32.xlu1 %v7020_v34, %s22464_s26  ;;  %v8601_v34 = vld [vmem:[#allocation5 + $0x4a8] sm:$0xff]  ;;  %s26319_s26 = smov 32  }
 0x1f0   : > { %19250 = vmatmul.mubr.msk.f32.gmra.mrb[4].mxu0 %vm267_vm2, %v8375_v54  ;;  %v23822_v55 = vpop.permute.xlu1 %3393  ;;  %v2699_v54 = vld [vmem:[#allocation5 + $0x168] sm:$0xff] }
 0x1f1   : > { %20232 = vmatmul.mubr.msk.f32.vlgmr.msra.gmra.mrb[8].mxu1 %vm267_vm2, %v2472_v60  ;;  %8495 = vmatprep.mubr.f32.mxu0 %v26255_v0  ;;  %v8600_v60 = vld [vmem:[#allocation5 + $0x4a0] sm:$0xff] }
 0x1f2   : > { %18972 = vmatpush1.msk.msra.mxu1 %vm280_vm1, %v2717_v3  ;;  %12911 = vrot.lane.b32.xlu0 %v12907_v16, %s22502_s7  ;;  %v23838_v16 = vld [vmem:[%s22734_s25 + $0xc] sm:$0x77]  ;;  %v8846_v3 = vsel %vm26259_vm7, %v23621_v9, %v23598_v11  ;;  %v2700_v11 = vld [vmem:[#allocation5 + $0x170] sm:$0xff]  ;;  %vm26264_vm7 = vcmask 228352  }
 0x1f3   : > { %20237 = vmatprep.subr.msk.mxu1 %vm280_vm1, %v2719_v19  ;;  %12913 = vrot.lane.b32.xlu1 %v23800_v24, %s22502_s7  ;;  %v22108_v9 = vld [vmem:[%s22734_s25 + $0x8] sm:$0x77] }
 0x1f4   : > { %20234 = vmatprep.mubr.msk.f32.mxu1 %vm267_vm2, %v2473_v33  ;;  %19251 = vmatmul.mubr.msk.f32.gmra.mrb[6].mxu0 %vm267_vm2, %v8376_v59  ;;  %v13134_v33 = vcombine.high %v13130_v58, %v13130_v58  ;;  %v8602_v59 = vld [vmem:[#allocation5 + $0x4b0] sm:$0xff]  ;;  %v7928_v61 = vcombine.high %v22108_v9, %v22108_v9 }
 0x1f5   : > { %20235 = vmatmul.mubr.msk.f32.gmra.mrb[10].mxu1 %vm267_vm2, %v2474_v2  ;;  %8704 = vmatprep.mubr.f32.mxu0 %v26255_v0  ;;  %v23826_v2 = vpop.permute.xlu0 %3391 }
 0x1f6   : > { %12909 = vrot.lane.b32.xlu0 %v12903_v32, %s22502_s7  ;;  %2802 = vmatprep.mubr.f32.mxu1 %v26255_v0  ;;  %v2945_v32 = vsel %vm2943_vm15, %v23615_v17, %v23641_v5 }
 0x1f7   : > { %7254 = vrot.lane.b32.xlu1 %v7247_v22, %s22466_s6  ;;  %v22107_v22 = vld [vmem:[%s22734_s25 + $0x8] sm:$0x77]  ;;  %s22505_s6 = smov 107  }
 0x1f8   : > { %19259 = vmatmul.mubr.msk.f32.vlgmr.msra.gmra.mrb[0].mxu0 %vm267_vm2, %v8600_v60  ;;  %v7701_v60 = vcombine.high %v22107_v22, %v22107_v22 }
 0x1f9   : > { %18973 = vmatmul.mubr.msk.f32.vlgmr.msra.gmra.mrb[0].mxu1 %vm267_vm2, %v2698_v38  ;;  %8710 = vmatprep.mubr.f32.mxu0 %v26255_v0 }
 0x1fa   : > { %20238 = vmatpush3.msk.msra.mxu1 %vm280_vm1, %v2719_v19  ;;  %7481 = vrot.lane.b32.xlu0 %v7474_v25, %s22467_s8  ;;  %v23845_v19 = vpop.permute.xlu1 %9747  ;;  %v23857_v25 = vpop.permute.xlu0 %3389  ;;  %s26320_s8 = smov 31  }
 0x1fb   : > { %13138 = vrot.lane.b32.xlu1 %v13134_v33, %s22503_s9  ;;  %2808 = vmatprep.mubr.f32.mxu1 %v26255_v0  ;;  %v13357_v33 = vld [vmem:[%s22734_s25 + $0x4] sm:$0x77] }
 0x1fc   : > { %19260 = vmatmul.mubr.msk.f32.gmra.mrb[2].mxu0 %vm267_vm2, %v8601_v34  ;;  %18982 = vmatprep.subr.msk.mxu1 %vm280_vm1, %v2945_v32  ;;  %v8603_v34 = vld [vmem:[#allocation5 + $0x4b8] sm:$0xff]  ;;  %v13361_v22 = vcombine.high %v13357_v33, %v13357_v33 }
 0x1fd   : > { %18974 = vmatmul.mubr.msk.f32.gmra.mrb[2].mxu1 %vm267_vm2, %v2699_v54  ;;  %8716 = vmatprep.mubr.f32.mxu0 %v26255_v0  ;;  %v2701_v32 = vld [vmem:[#allocation5 + $0x178] sm:$0xff] }
 0x1fe   : > { %13140 = vrot.lane.b32.xlu0 %v23838_v16, %s22503_s9  ;;  %2814 = vmatprep.mubr.f32.mxu1 %v26255_v0 }
 0x1ff   : > { %13136 = vrot.lane.b32.xlu1 %v13130_v58, %s22503_s9  ;;  %19269 = vmatpush1.msk.msra.mxu0 %vm280_vm1, %v8846_v3  ;;  %v23868_v58 = vpop.permute.xlu1 %9745  ;;  %v23873_v3 = vld [vmem:[%s22734_s25 + $0xc] sm:$0x77] }
 0x200   : > { %19261 = vmatmul.mubr.msk.f32.gmra.mrb[4].mxu0 %vm267_vm2, %v8602_v59  ;;  %19279 = vmatprep.subr.msk.mxu0 %vm280_vm1, %v9074_v18  ;;  %v23875_v59 = vpop.permute.xlu0 %9749  ;;  %v8827_v18 = vld [vmem:[#allocation5 + $0x4c0] sm:$0xff] }
 0x201   : > { %18975 = vmatmul.mubr.msk.f32.gmra.mrb[4].mxu1 %vm267_vm2, %v2700_v11  ;;  %8722 = vmatprep.mubr.f32.mxu0 %v26255_v0  ;;  %26316 = vst [vmem:[#allocation19_spill] sm:$0xff] %v23875_v59 }
 0x202   : > { %7708 = vrot.lane.b32.xlu0 %v7701_v60, %s26314_s5  ;;  %2820 = vmatprep.mubr.f32.mxu1 %v26255_v0  ;;  %v22109_v60 = vld [vmem:[%s22734_s25 + $0x8] sm:$0x77]  ;;  %s26322_s5 = smov 30  }
 0x203   : > { %7935 = vrot.lane.b32.xlu1 %v7928_v61, %s26315_s28  ;;  %v8155_v9 = vcombine.high %v22109_v60, %v22109_v60  ;;  %v2944_v61 = vsel %vm2943_vm15, %v23635_v26, %v23615_v17  ;;  %v23892_v46 = vpop.permute.xlu1 %3618  ;;  %v22110_v60 = vld [vmem:[%s22734_s25 + $0x8] sm:$0x77]  ;;  %s22506_s28 = smov 106  }
 0x204   : > { %19262 = vmatmul.mubr.msk.f32.gmra.mrb[6].mxu0 %vm267_vm2, %v8603_v34  ;;  %v13584_v34 = vld [vmem:[%s22734_s25 + $0x4] sm:$0x77]  ;;  %v8382_v13 = vcombine.high %v22110_v60, %v22110_v60  ;;  %v23899_v17 = vpop.permute.xlu0 %3395 }
 0x205   : > { %18976 = vmatmul.mubr.msk.f32.gmra.mrb[6].mxu1 %vm267_vm2, %v2701_v32  ;;  %8931 = vmatprep.mubr.f32.mxu0 %v26255_v0  ;;  %v2946_v0 = vsel %vm2943_vm15, %v23641_v5, %v23683_v51  ;;  %v13588_v26 = vcombine.high %v13584_v34, %v13584_v34  ;;  %v9073_v5 = vsel %vm26260_vm12, %v23687_v39, %v23667_v53  ;;  %v8829_v51 = vld [vmem:[#allocation5 + $0x4d0] sm:$0xff]  ;;  %vm3170_vm15 = vcmask 818176   ;;  %v2925_v53 = vld [vmem:[#allocation5 + $0x180] sm:$0xff] }
 0x206   : > { %13365 = vrot.lane.b32.xlu0 %v13361_v22, %s22504_s11  ;;  %20239 = vmatprep.mubr.msk.f32.mxu1 %vm267_vm2, %v2698_v38  ;;  %v26317_v38 = vmov 0.0   ;;  %v8828_v22 = vld [vmem:[#allocation5 + $0x4c8] sm:$0xff]  ;;  %vm26267_vm12 = vcmask 220160  }
 0x207   : > { %13367 = vrot.lane.b32.xlu1 %v23873_v3, %s22504_s11  ;;  %v23915_v39 = vpop.permute.xlu1 %9974 }
 0x208   : > { %19270 = vmatmul.mubr.msk.f32.vlgmr.msra.gmra.mrb[0].mxu0 %vm267_vm2, %v8827_v18  ;;  %v22111_v18 = vld [vmem:[%s22734_s25 + $0x8] sm:$0x77] }
 0x209   : > { %20240 = vmatmul.mubr.msk.f32.vlgmr.msra.gmra.mrb[8].mxu1 %vm267_vm2, %v2699_v54  ;;  %8937 = vmatprep.mubr.f32.mxu0 %v26317_v38  ;;  %v9301_v54 = vsel %vm26264_vm7, %v23738_v30, %v23730_v15 }
 0x20a   : > { %13363 = vrot.lane.b32.xlu0 %v13357_v33, %s22504_s11  ;;  %18983 = vmatpush1.msk.msra.mxu1 %vm280_vm1, %v2944_v61  ;;  %v23924_v33 = vpop.permute.xlu0 %3620  ;;  %v2926_v61 = vld [vmem:[#allocation5 + $0x188] sm:$0xff] }
 0x20b   : > { %8162 = vrot.lane.b32.xlu1 %v8155_v9, %s26318_s19  ;;  %20242 = vmatprep.mubr.msk.f32.mxu1 %vm267_vm2, %v2700_v11  ;;  %v23920_v11 = vld [vmem:[%s22734_s25 + $0xc] sm:$0x77]  ;;  %v8609_v9 = vcombine.high %v22111_v18, %v22111_v18  ;;  %s26323_s19 = smov 29  }
 0x20c   : > { %20245 = vmatprep.subr.msk.mxu1 %vm280_vm1, %v2946_v0  ;;  %19271 = vmatmul.mubr.msk.f32.gmra.mrb[2].mxu0 %vm267_vm2, %v8828_v22  ;;  %v22112_v22 = vld [vmem:[%s22734_s25 + $0x8] sm:$0x77]  ;;  %v9055_v18 = vld [vmem:[#allocation5 + $0x4e8] sm:$0xff] }
 0x20d   : > { %20243 = vmatmul.mubr.msk.f32.gmra.mrb[10].mxu1 %vm267_vm2, %v2701_v32  ;;  %8943 = vmatprep.mubr.f32.mxu0 %v26317_v38  ;;  %v3172_v32 = vsel %vm3170_vm15, %v23710_v14, %v23704_v21  ;;  %v8836_v60 = vcombine.high %v22112_v22, %v22112_v22 }
 0x20e   : > { %8389 = vrot.lane.b32.xlu0 %v8382_v13, %s26319_s26  ;;  %3029 = vmatprep.mubr.f32.mxu1 %v26317_v38  ;;  %v8830_v13 = vld [vmem:[#allocation5 + $0x4d8] sm:$0xff]  ;;  %s26325_s26 = smov 28  }
 0x20f   : > { %13592 = vrot.lane.b32.xlu1 %v13588_v26, %s22505_s6  ;;  %19280 = vmatpush1.msk.msra.mxu0 %vm280_vm1, %v9073_v5  ;;  %v13811_v26 = vld [vmem:[%s22734_s25 + $0x4] sm:$0x77]  ;;  %v23941_v5 = vpop.permute.xlu1 %3616 }
 0x210   : > { %19272 = vmatmul.mubr.msk.f32.gmra.mrb[4].mxu0 %vm267_vm2, %v8829_v51  ;;  %19290 = vmatprep.subr.msk.mxu0 %vm280_vm1, %v9301_v54  ;;  %v13815_v51 = vcombine.high %v13811_v26, %v13811_v26  ;;  %v23947_v54 = vpop.permute.xlu0 %9976 }
 0x211   : > { %18984 = vmatmul.mubr.msk.f32.vlgmr.msra.gmra.mrb[0].mxu1 %vm267_vm2, %v2925_v53  ;;  %8949 = vmatprep.mubr.f32.mxu0 %v26317_v38  ;;  %26321 = vst [vmem:[#allocation20_spill] sm:$0xff] %v23947_v54 }
 0x212   : > { %20246 = vmatpush3.msk.msra.mxu1 %vm280_vm1, %v2946_v0  ;;  %13594 = vrot.lane.b32.xlu0 %v23920_v11, %s22505_s6  ;;  %v9054_v0 = vld [vmem:[#allocation5 + $0x4e0] sm:$0xff] }
 0x213   : > { %13590 = vrot.lane.b32.xlu1 %v13584_v34, %s22505_s6  ;;  %3035 = vmatprep.mubr.f32.mxu1 %v26317_v38  ;;  %v2927_v34 = vld [vmem:[#allocation5 + $0x190] sm:$0xff] }
 0x214   : > { %19273 = vmatmul.mubr.msk.f32.gmra.mrb[6].mxu0 %vm267_vm2, %v8830_v13  ;;  %18993 = vmatprep.subr.msk.mxu1 %vm280_vm1, %v3172_v32  ;;  %v9300_v13 = vsel %vm26264_vm7, %v23752_v1, %v23738_v30  ;;  %v23955_v32 = vld [vmem:[%s22734_s25 + $0xc] sm:$0x77]  ;;  %vm26271_vm7 = vcmask 211968  }
 0x215   : > { %18985 = vmatmul.mubr.msk.f32.gmra.mrb[2].mxu1 %vm267_vm2, %v2926_v61  ;;  %9158 = vmatprep.mubr.f32.mxu0 %v26317_v38  ;;  %v2928_v30 = vld [vmem:[#allocation5 + $0x198] sm:$0xff] }
 0x216   : > { %8616 = vrot.lane.b32.xlu0 %v8609_v9, %s26320_s8  ;;  %3041 = vmatprep.mubr.f32.mxu1 %v26317_v38  ;;  %v9528_v9 = vsel %vm26267_vm12, %v23778_v49, %v23809_v37  ;;  %v22113_v1 = vld [vmem:[%s22734_s25 + $0x8] sm:$0x77]  ;;  %v23973_v37 = vpop.permute.xlu0 %9972  ;;  %s22507_s8 = smov 105  }
 0x217   : > { %8843 = vrot.lane.b32.xlu1 %v8836_v60, %s26322_s5  ;;  %v9063_v22 = vcombine.high %v22113_v1, %v22113_v1  ;;  %v23965_v60 = vpop.permute.xlu1 %3622  ;;  %v22114_v1 = vld [vmem:[%s22734_s25 + $0x8] sm:$0x77]  ;;  %s26326_s5 = smov 27  }
 0x218   : > { %19281 = vmatmul.mubr.msk.f32.vlgmr.msra.gmra.mrb[0].mxu0 %vm267_vm2, %v9054_v0  ;;  %v14038_v0 = vld [vmem:[%s22734_s25 + $0x4] sm:$0x77]  ;;  %v9290_v15 = vcombine.high %v22114_v1, %v22114_v1  ;;  %v9282_v1 = vld [vmem:[#allocation5 + $0x508] sm:$0xff] }
 0x219   : > { %18986 = vmatmul.mubr.msk.f32.gmra.mrb[4].mxu1 %vm267_vm2, %v2927_v34  ;;  %9164 = vmatprep.mubr.f32.mxu0 %v26317_v38 }
 0x21a   : > { %13819 = vrot.lane.b32.xlu0 %v13815_v51, %s22506_s28  ;;  %3047 = vmatprep.mubr.f32.mxu1 %v26317_v38  ;;  %v9056_v51 = vld [vmem:[#allocation5 + $0x4f0] sm:$0xff] }
 0x21b   : > { %13821 = vrot.lane.b32.xlu1 %v23955_v32, %s22506_s28  ;;  %19291 = vmatpush1.msk.msra.mxu0 %vm280_vm1, %v9300_v13  ;;  %v3171_v13 = vsel %vm3170_vm15, %v23758_v10, %v23710_v14  ;;  %v23988_v43 = vpop.permute.xlu1 %10203  ;;  %v23994_v14 = vpop.permute.xlu0 %10201  ;;  %v22115_v10 = vld [vmem:[%s22734_s25 + $0x8] sm:$0x77] }
 0x21c   : > { %19282 = vmatmul.mubr.msk.f32.gmra.mrb[2].mxu0 %vm267_vm2, %v9055_v18  ;;  %19301 = vmatprep.subr.msk.mxu0 %vm280_vm1, %v9528_v9  ;;  %v14042_v18 = vcombine.high %v14038_v0, %v14038_v0  ;;  %v3173_v9 = vsel %vm3170_vm15, %v23704_v21, %v23785_v48  ;;  %26324 = vst [vmem:[#allocation21_spill] sm:$0xff] %v23988_v43  ;;  %v23999_v21 = vld [vmem:[%s22734_s25 + $0xc] sm:$0x77]  ;;  %vm3397_vm15 = vcmask 809984  }
 0x21d   : > { %18987 = vmatmul.mubr.msk.f32.gmra.mrb[6].mxu1 %vm267_vm2, %v2928_v30  ;;  %9170 = vmatprep.mubr.f32.mxu0 %v26317_v38  ;;  %v9517_v48 = vcombine.high %v22115_v10, %v22115_v10  ;;  %v9283_v10 = vld [vmem:[#allocation5 + $0x510] sm:$0xff] }
 0x21e   : > { %13817 = vrot.lane.b32.xlu0 %v13811_v26, %s22506_s28  ;;  %20247 = vmatprep.mubr.msk.f32.mxu1 %vm267_vm2, %v2925_v53  ;;  %v9057_v53 = vld [vmem:[#allocation5 + $0x4f8] sm:$0xff] }
 0x21f   : > { %9070 = vrot.lane.b32.xlu1 %v9063_v22, %s26323_s19  ;;  %v22116_v26 = vld [vmem:[%s22734_s25 + $0x8] sm:$0x77]  ;;  %s26327_s19 = smov 26  }
 0x220   : > { %19283 = vmatmul.mubr.msk.f32.gmra.mrb[4].mxu0 %vm267_vm2, %v9056_v51  ;;  %v9744_v22 = vcombine.high %v22116_v26, %v22116_v26  ;;  %v24010_v51 = vpop.permute.xlu1 %3845 }
 0x221   : > { %20248 = vmatmul.mubr.msk.f32.vlgmr.msra.gmra.mrb[8].mxu1 %vm267_vm2, %v2926_v61  ;;  %9176 = vmatprep.mubr.f32.mxu0 %v26317_v38  ;;  %v3152_v61 = vld [vmem:[#allocation5 + $0x1a0] sm:$0xff] }
 0x222   : > { %18994 = vmatpush1.msk.msra.mxu1 %vm280_vm1, %v3171_v13  ;;  %9297 = vrot.lane.b32.xlu0 %v9290_v15, %s26325_s26  ;;  %v9281_v15 = vld [vmem:[#allocation5 + $0x500] sm:$0xff]  ;;  %v3399_v13 = vsel %vm3397_vm15, %v23826_v2, %v23822_v55  ;;  %s26328_s26 = smov 104  }
 0x223   : > { %20253 = vmatprep.subr.msk.mxu1 %vm280_vm1, %v3173_v9  ;;  %14046 = vrot.lane.b32.xlu1 %v14042_v18, %s22507_s8 }
 0x224   : > { %20250 = vmatprep.mubr.msk.f32.mxu1 %vm267_vm2, %v2927_v34  ;;  %19284 = vmatmul.mubr.msk.f32.gmra.mrb[6].mxu0 %vm267_vm2, %v9057_v53  ;;  %v14265_v34 = vld [vmem:[%s22734_s25 + $0x4] sm:$0x77]  ;;  %v9527_v53 = vsel %vm26267_vm12, %v23802_v52, %v23778_v49  ;;  %vm26276_vm12 = vcmask 203776  }
 0x225   : > { %20251 = vmatmul.mubr.msk.f32.gmra.mrb[10].mxu1 %vm267_vm2, %v2928_v30  ;;  %9385 = vmatprep.mubr.f32.mxu0 %v26317_v38  ;;  %v24015_v30 = vpop.permute.xlu0 %10199  ;;  %v14269_v18 = vcombine.high %v14265_v34, %v14265_v34  ;;  %v3154_v49 = vld [vmem:[#allocation5 + $0x1b0] sm:$0xff] }
 0x226   : > { %14048 = vrot.lane.b32.xlu0 %v23999_v21, %s22507_s8  ;;  %3256 = vmatprep.mubr.f32.mxu1 %v26317_v38  ;;  %v22117_v52 = vld [vmem:[%s22734_s25 + $0x8] sm:$0x77] }
 0x227   : > { %14044 = vrot.lane.b32.xlu1 %v14038_v0, %s22507_s8  ;;  %v3153_v0 = vld [vmem:[#allocation5 + $0x1a8] sm:$0xff]  ;;  %v9971_v26 = vcombine.high %v22117_v52, %v22117_v52  ;;  %v3155_v52 = vld [vmem:[#allocation5 + $0x1b8] sm:$0xff] }
 0x228   : > { %19292 = vmatmul.mubr.msk.f32.vlgmr.msra.gmra.mrb[0].mxu0 %vm267_vm2, %v9281_v15  ;;  %v24031_v15 = vld [vmem:[%s22734_s25 + $0xc] sm:$0x77] }
 0x229   : > { %18995 = vmatmul.mubr.msk.f32.vlgmr.msra.gmra.mrb[0].mxu1 %vm267_vm2, %v3152_v61  ;;  %9391 = vmatprep.mubr.f32.mxu0 %v26317_v38 }
 0x22a   : > { %20254 = vmatpush3.msk.msra.mxu1 %vm280_vm1, %v3173_v9  ;;  %9524 = vrot.lane.b32.xlu0 %v9517_v48, %s26326_s5  ;;  %v24034_v9 = vpop.permute.xlu1 %3843  ;;  %v9755_v48 = vsel %vm26271_vm7, %v23845_v19, %v23875_v59  ;;  %s26329_s5 = smov 25  }
 0x22b   : > { %9751 = vrot.lane.b32.xlu1 %v9744_v22, %s26327_s19  ;;  %3262 = vmatprep.mubr.f32.mxu1 %v26317_v38  ;;  %v24044_v22 = vpop.permute.xlu0 %3847  ;;  %s26330_s19 = smov 24  }
 0x22c   : > { %19293 = vmatmul.mubr.msk.f32.gmra.mrb[2].mxu0 %vm267_vm2, %v9282_v1  ;;  %19004 = vmatprep.subr.msk.mxu1 %vm280_vm1, %v3399_v13  ;;  %v14491_v1 = vld [vmem:[%s22734_s25 + $0x4] sm:$0x77] }
 0x22d   : > { %18996 = vmatmul.mubr.msk.f32.gmra.mrb[2].mxu1 %vm267_vm2, %v3153_v0  ;;  %9397 = vmatprep.mubr.f32.mxu0 %v26317_v38  ;;  %v9284_v13 = vld [vmem:[#allocation5 + $0x518] sm:$0xff] }
 0x22e   : > { %14273 = vrot.lane.b32.xlu0 %v14269_v18, %s26328_s26  ;;  %3268 = vmatprep.mubr.f32.mxu1 %v26317_v38  ;;  %v22118_v18 = vld [vmem:[%s22734_s25 + $0x8] sm:$0x77]  ;;  %v24057_v45 = vpop.permute.xlu1 %10430 }
 0x22f   : > { %14275 = vrot.lane.b32.xlu1 %v24031_v15, %s26328_s26  ;;  %19302 = vmatpush1.msk.msra.mxu0 %vm280_vm1, %v9527_v53  ;;  %v10198_v59 = vcombine.high %v22118_v18, %v22118_v18  ;;  %v14495_v53 = vcombine.high %v14491_v1, %v14491_v1  ;;  %v22120_v18 = vld [vmem:[%s22734_s25 + $0x8] sm:$0x77] }
 0x230   : > { %19294 = vmatmul.mubr.msk.f32.gmra.mrb[4].mxu0 %vm267_vm2, %v9283_v10  ;;  %19312 = vmatprep.subr.msk.mxu0 %vm280_vm1, %v9755_v48  ;;  %v24061_v10 = vpop.permute.xlu0 %10428  ;;  %v9508_v48 = vld [vmem:[#allocation5 + $0x520] sm:$0xff] }
 0x231   : > { %18997 = vmatmul.mubr.msk.f32.gmra.mrb[4].mxu1 %vm267_vm2, %v3154_v49  ;;  %9403 = vmatprep.mubr.f32.mxu0 %v26317_v38 }
 0x232   : > { %14271 = vrot.lane.b32.xlu0 %v14265_v34, %s26328_s26  ;;  %3274 = vmatprep.mubr.f32.mxu1 %v26317_v38  ;;  %v3398_v34 = vsel %vm3397_vm15, %v23857_v25, %v23826_v2  ;;  %v22119_v2 = vld [vmem:[%s22734_s25 + $0x8] sm:$0x77] }
 0x233   : > { %9978 = vrot.lane.b32.xlu1 %v9971_v26, %s26329_s5  ;;  %s26270_s5 = smov 88   ;;  %v24072_v26 = vld [vmem:[%s22734_s25 + $0xc] sm:$0x77]  ;;  %v10425_v25 = vcombine.high %v22119_v2, %v22119_v2 }
 0x234   : > { %19295 = vmatmul.mubr.msk.f32.gmra.mrb[6].mxu0 %vm267_vm2, %v9284_v13  ;;  %v3400_v13 = vsel %vm3397_vm15, %v23822_v55, %v23899_v17  ;;  %v14718_v55 = vld [vmem:[%s22734_s25 + $0x4] sm:$0x77]  ;;  %v9754_v17 = vsel %vm26271_vm7, %v23868_v58, %v23845_v19  ;;  %vm3624_vm15 = vcmask 801792   ;;  %vm26277_vm7 = vcmask 195584  }
 0x235   : > { %18998 = vmatmul.mubr.msk.f32.gmra.mrb[6].mxu1 %vm267_vm2, %v3155_v52  ;;  %9612 = vmatprep.mubr.f32.mxu0 %v26317_v38  ;;  %v3379_v19 = vld [vmem:[#allocation5 + $0x1c0] sm:$0xff]  ;;  %v14722_v58 = vcombine.high %v14718_v55, %v14718_v55  ;;  %v3626_v2 = vsel %vm3624_vm15, %v23892_v46, %v23924_v33 }
 0x236   : > { %10205 = vrot.lane.b32.xlu0 %v10198_v59, %s26330_s19  ;;  %20255 = vmatprep.mubr.msk.f32.mxu1 %vm267_vm2, %v3152_v61  ;;  %v24078_v59 = vpop.permute.xlu1 %3849  ;;  %v9509_v61 = vld [vmem:[#allocation5 + $0x528] sm:$0xff] }
 0x237   : > { %14499 = vrot.lane.b32.xlu1 %v14495_v53, %s26270_s5  ;;  %v10652_v53 = vcombine.high %v22120_v18, %v22120_v18  ;;  %v22121_v18 = vld [vmem:[%s22734_s25 + $0x8] sm:$0x77] }
 0x238   : > { %19303 = vmatmul.mubr.msk.f32.vlgmr.msra.gmra.mrb[0].mxu0 %vm267_vm2, %v9508_v48  ;;  %v24087_v48 = vpop.permute.xlu0 %10426 }
 0x239   : > { %20256 = vmatmul.mubr.msk.f32.vlgmr.msra.gmra.mrb[8].mxu1 %vm267_vm2, %v3153_v0  ;;  %9618 = vmatprep.mubr.f32.mxu0 %v26317_v38  ;;  %v9510_v0 = vld [vmem:[#allocation5 + $0x530] sm:$0xff] }
 0x23a   : > { %14501 = vrot.lane.b32.xlu0 %v24072_v26, %s26270_s5  ;;  %19005 = vmatpush1.msk.msra.mxu1 %vm280_vm1, %v3398_v34 }
 0x23b   : > { %14497 = vrot.lane.b32.xlu1 %v14491_v1, %s26270_s5  ;;  %20258 = vmatprep.mubr.msk.f32.mxu1 %vm267_vm2, %v3154_v49  ;;  %v9982_v1 = vsel %vm26276_vm12, %v23915_v39, %v23947_v54  ;;  %v24104_v49 = vpop.permute.xlu1 %4074  ;;  %s26332_s5 = smov 7   ;;  %v9981_v54 = vsel %vm26276_vm12, %v23973_v37, %v23915_v39  ;;  %v24154_v37 = vld [vmem:[%s22734_s25 + $0xc] sm:$0x77]  ;;  %vm26278_vm12 = vcmask 64512  }
 0x23c   : > { %20261 = vmatprep.subr.msk.mxu1 %vm280_vm1, %v3400_v13  ;;  %19304 = vmatmul.mubr.msk.f32.gmra.mrb[2].mxu0 %vm267_vm2, %v9509_v61  ;;  %v24113_v34 = vpop.permute.xlu0 %4072  ;;  %v9511_v61 = vld [vmem:[#allocation5 + $0x538] sm:$0xff] }
 0x23d   : > { %20259 = vmatmul.mubr.msk.f32.gmra.mrb[10].mxu1 %vm267_vm2, %v3155_v52  ;;  %9624 = vmatprep.mubr.f32.mxu0 %v26317_v38  ;;  %v24110_v52 = vld [vmem:[%s22734_s25 + $0xc] sm:$0x77] }
 0x23e   : > { %10432 = vrot.lane.b32.xlu0 %v10425_v25, %s26331_s21  ;;  %3483 = vmatprep.mubr.f32.mxu1 %v26317_v38  ;;  %s26273_s21 = smov 87   ;;  %v3380_v25 = vld [vmem:[#allocation5 + $0x1c8] sm:$0xff] }
 0x23f   : > { %10659 = vrot.lane.b32.xlu1 %v10652_v53, %s26332_s5  ;;  %19313 = vmatpush1.msk.msra.mxu0 %vm280_vm1, %v9754_v17  ;;  %v10879_v53 = vcombine.high %v22121_v18, %v22121_v18  ;;  %v14945_v17 = vld [vmem:[%s22734_s25 + $0x4] sm:$0x77]  ;;  %s26333_s5 = smov 6  }
 0x240   : > { %19305 = vmatmul.mubr.msk.f32.gmra.mrb[4].mxu0 %vm267_vm2, %v9510_v0  ;;  %19323 = vmatprep.subr.msk.mxu0 %vm280_vm1, %v9982_v1  ;;  %v24129_v0 = vpop.permute.xlu1 %10657  ;;  %v22122_v1 = vld [vmem:[%s22734_s25 + $0x8] sm:$0x77] }
 0x241   : > { %19006 = vmatmul.mubr.msk.f32.vlgmr.msra.gmra.mrb[0].mxu1 %vm267_vm2, %v3379_v19  ;;  %9630 = vmatprep.mubr.f32.mxu0 %v26317_v38  ;;  %v3381_v18 = vld [vmem:[#allocation5 + $0x1d0] sm:$0xff] }
 0x242   : > { %20262 = vmatpush3.msk.msra.mxu1 %vm280_vm1, %v3400_v13  ;;  %14726 = vrot.lane.b32.xlu0 %v14722_v58, %s26273_s21  ;;  %v9735_v13 = vld [vmem:[#allocation5 + $0x540] sm:$0xff]  ;;  %v11106_v58 = vcombine.high %v22122_v1, %v22122_v1  ;;  %v10209_v1 = vsel %vm26277_vm7, %v23994_v14, %v23988_v43 }
 0x243   : > { %14728 = vrot.lane.b32.xlu1 %v24110_v52, %s26273_s21  ;;  %3489 = vmatprep.mubr.f32.mxu1 %v26317_v38 }
 0x244   : > { %19306 = vmatmul.mubr.msk.f32.gmra.mrb[6].mxu0 %vm267_vm2, %v9511_v61  ;;  %19015 = vmatprep.subr.msk.mxu1 %vm280_vm1, %v3626_v2  ;;  %v24136_v61 = vpop.permute.xlu0 %10655  ;;  %v14949_v2 = vcombine.high %v14945_v17, %v14945_v17  ;;  %v24150_v56 = vpop.permute.xlu1 %10653 }
 0x245   : > { %19007 = vmatmul.mubr.msk.f32.gmra.mrb[2].mxu1 %vm267_vm2, %v3380_v25  ;;  %9839 = vmatprep.mubr.f32.mxu0 %v26317_v38 }
 0x246   : > { %14724 = vrot.lane.b32.xlu0 %v14718_v55, %s26273_s21  ;;  %3495 = vmatprep.mubr.f32.mxu1 %v26317_v38  ;;  %v9736_v55 = vld [vmem:[#allocation5 + $0x548] sm:$0xff]  ;;  %s26334_s21 = smov 5  }
 0x247   : > { %10886 = vrot.lane.b32.xlu1 %v10879_v53, %s26333_s5  ;;  %v3382_v53 = vld [vmem:[#allocation5 + $0x1d8] sm:$0xff]  ;;  %s22510_s5 = smov 86  }
 0x248   : > { %19314 = vmatmul.mubr.msk.f32.vlgmr.msra.gmra.mrb[0].mxu0 %vm267_vm2, %v9735_v13  ;;  %v24159_v39 = vpop.permute.xlu0 %4070  ;;  %v9737_v13 = vld [vmem:[#allocation5 + $0x550] sm:$0xff] }
 0x249   : > { %19008 = vmatmul.mubr.msk.f32.gmra.mrb[4].mxu1 %vm267_vm2, %v3381_v18  ;;  %9845 = vmatprep.mubr.f32.mxu0 %v26317_v38 }
 0x24a   : > { %11113 = vrot.lane.b32.xlu0 %v11106_v58, %s26334_s21  ;;  %3501 = vmatprep.mubr.f32.mxu1 %v26317_v38  ;;  %v22123_v58 = vld [vmem:[%s22734_s25 + $0x8] sm:$0x77]  ;;  %s26335_s21 = smov 4  }
 0x24b   : > { %14953 = vrot.lane.b32.xlu1 %v14949_v2, %s22510_s5  ;;  %19324 = vmatpush1.msk.msra.mxu0 %vm280_vm1, %v9981_v54  ;;  %v11333_v43 = vcombine.high %v22123_v58, %v22123_v58  ;;  %v11560_v54 = vcombine.high %v23595_v62, %v23595_v62  ;;  %v3625_v2 = vsel %vm3624_vm15, %v23941_v5, %v23892_v46  ;;  %v24178_v58 = vpop.permute.xlu1 %10882  ;;  %v9738_v62 = vld [vmem:[#allocation5 + $0x558] sm:$0xff] }
 0x24c   : > { %19315 = vmatmul.mubr.msk.f32.gmra.mrb[2].mxu0 %vm267_vm2, %v9736_v55  ;;  %19334 = vmatprep.subr.msk.mxu0 %vm280_vm1, %v10209_v1  ;;  %v15172_v55 = vld [vmem:[%s22734_s25 + $0x4] sm:$0x77]  ;;  %v3627_v1 = vsel %vm3624_vm15, %v23924_v33, %v23965_v60  ;;  %v24184_v5 = vpop.permute.xlu0 %4076  ;;  %v24191_v33 = vld [vmem:[%s22734_s25 + $0xc] sm:$0x77]  ;;  %vm3851_vm15 = vcmask 793600  }
 0x24d   : > { %19009 = vmatmul.mubr.msk.f32.gmra.mrb[6].mxu1 %vm267_vm2, %v3382_v53  ;;  %9851 = vmatprep.mubr.f32.mxu0 %v26317_v38  ;;  %v15176_v46 = vcombine.high %v15172_v55, %v15172_v55  ;;  %v9962_v60 = vld [vmem:[#allocation5 + $0x560] sm:$0xff] }
 0x24e   : > { %14955 = vrot.lane.b32.xlu0 %v24154_v37, %s22510_s5  ;;  %20263 = vmatprep.mubr.msk.f32.mxu1 %vm267_vm2, %v3379_v19  ;;  %v11786_v19 = vcombine.high %v23628_v35, %v23628_v35  ;;  %v9963_v35 = vld [vmem:[#allocation5 + $0x568] sm:$0xff] }
 0x24f   : > { %14951 = vrot.lane.b32.xlu1 %v14945_v17, %s22510_s5  ;;  %v10208_v17 = vsel %vm26277_vm7, %v24015_v30, %v23994_v14  ;;  %v3607_v14 = vld [vmem:[#allocation5 + $0x1e8] sm:$0xff]  ;;  %vm26279_vm7 = vcmask 56320  }
 0x250   : > { %19316 = vmatmul.mubr.msk.f32.gmra.mrb[4].mxu0 %vm267_vm2, %v9737_v13  ;;  %v3853_v13 = vsel %vm3851_vm15, %v24010_v51, %v24044_v22 }
 0x251   : > { %20264 = vmatmul.mubr.msk.f32.vlgmr.msra.gmra.mrb[8].mxu1 %vm267_vm2, %v3380_v25  ;;  %9857 = vmatprep.mubr.f32.mxu0 %v26317_v38  ;;  %v24199_v25 = vpop.permute.xlu1 %10880 }
 0x252   : > { %19016 = vmatpush1.msk.msra.mxu1 %vm280_vm1, %v3625_v2  ;;  %11340 = vrot.lane.b32.xlu0 %v11333_v43, %s26335_s21  ;;  %v3606_v43 = vld [vmem:[#allocation5 + $0x1e0] sm:$0xff]  ;;  %s22511_s21 = smov 85  }
 0x253   : > { %20269 = vmatprep.subr.msk.mxu1 %vm280_vm1, %v3627_v1  ;;  %11567 = vrot.lane.b32.xlu1 %v11560_v54, %s22497_s29  ;;  %v10436_v54 = vsel %vm26278_vm12, %v24061_v10, %v24057_v45  ;;  %s22512_s29 = smov 84  }
 0x254   : > { %20266 = vmatprep.mubr.msk.f32.mxu1 %vm267_vm2, %v3381_v18  ;;  %19317 = vmatmul.mubr.msk.f32.gmra.mrb[6].mxu0 %vm267_vm2, %v9738_v62  ;;  %v15399_v18 = vld [vmem:[%s22734_s25 + $0x4] sm:$0x77]  ;;  %v12013_v62 = vcombine.high %v23672_v41, %v23672_v41 }
 0x255   : > { %20267 = vmatmul.mubr.msk.f32.gmra.mrb[10].mxu1 %vm267_vm2, %v3382_v53  ;;  %10066 = vmatprep.mubr.f32.mxu0 %v26317_v38  ;;  %v24208_v53 = vpop.permute.xlu0 %10884  ;;  %v15403_v30 = vcombine.high %v15399_v18, %v15399_v18  ;;  %v24224_v2 = vpop.permute.xlu1 %4301  ;;  %v9965_v41 = vld [vmem:[#allocation5 + $0x578] sm:$0xff] }
 0x256   : > { %3710 = vmatprep.mubr.f32.mxu1 %v26317_v38  ;;  %15180 = vrot.lane.b32.xlu0 %v15176_v46, %s22511_s21  ;;  %v3608_v46 = vld [vmem:[#allocation5 + $0x1f0] sm:$0xff] }
 0x257   : > { %15182 = vrot.lane.b32.xlu1 %v24191_v33, %s22511_s21 }
 0x258   : > { %19325 = vmatmul.mubr.msk.f32.vlgmr.msra.gmra.mrb[0].mxu0 %vm267_vm2, %v9962_v60 }
 0x259   : > { %19017 = vmatmul.mubr.msk.f32.vlgmr.msra.gmra.mrb[0].mxu1 %vm267_vm2, %v3606_v43  ;;  %10072 = vmatprep.mubr.f32.mxu0 %v26317_v38  ;;  %v24232_v60 = vpop.permute.xlu0 %4299 }
 0x25a   : > { %20270 = vmatpush3.msk.msra.mxu1 %vm280_vm1, %v3627_v1  ;;  %3716 = vmatprep.mubr.f32.mxu1 %v26317_v38  ;;  %v9964_v1 = vld [vmem:[#allocation5 + $0x570] sm:$0xff] }
 0x25b   : > { %11793 = vrot.lane.b32.xlu1 %v11786_v19, %s22498_s20  ;;  %19335 = vmatpush1.msk.msra.mxu0 %vm280_vm1, %v10208_v17  ;;  %v15626_v19 = vld [vmem:[%s22734_s25 + $0x4] sm:$0x77]  ;;  %s22513_s20 = smov 83  }
 0x25c   : > { %19326 = vmatmul.mubr.msk.f32.gmra.mrb[2].mxu0 %vm267_vm2, %v9963_v35  ;;  %19026 = vmatprep.subr.msk.mxu1 %vm280_vm1, %v3853_v13  ;;  %v3609_v17 = vld [vmem:[#allocation5 + $0x1f8] sm:$0xff]  ;;  %v15630_v13 = vcombine.high %v15626_v19, %v15626_v19 }
 0x25d   : > { %19018 = vmatmul.mubr.msk.f32.gmra.mrb[2].mxu1 %vm267_vm2, %v3607_v14  ;;  %10078 = vmatprep.mubr.f32.mxu0 %v26317_v38  ;;  %v24245_v35 = vld [vmem:[%s22734_s25 + $0xc] sm:$0x77] }
 0x25e   : > { %3722 = vmatprep.mubr.f32.mxu1 %v26317_v38  ;;  %15178 = vrot.lane.b32.xlu0 %v15172_v55, %s22511_s21  ;;  %v24242_v55 = vpop.permute.xlu1 %11109 }
 0x25f   : > { %19345 = vmatprep.subr.msk.mxu0 %vm280_vm1, %v10436_v54  ;;  %15407 = vrot.lane.b32.xlu1 %v15403_v30, %s22512_s29  ;;  %v24249_v30 = vpop.permute.xlu0 %4297  ;;  %v10189_v54 = vld [vmem:[#allocation5 + $0x580] sm:$0xff] }
 0x260   : > { %19327 = vmatmul.mubr.msk.f32.gmra.mrb[4].mxu0 %vm267_vm2, %v9964_v1  ;;  %v10435_v1 = vsel %vm26278_vm12, %v24087_v48, %v24061_v10  ;;  %v12454_v10 = vcombine.high %v23720_v57, %v23720_v57  ;;  %v10191_v57 = vld [vmem:[#allocation5 + $0x590] sm:$0xff]  ;;  %vm26280_vm12 = vcmask 48128  }
 0x261   : > { %19019 = vmatmul.mubr.msk.f32.gmra.mrb[4].mxu1 %vm267_vm2, %v3608_v46  ;;  %10084 = vmatprep.mubr.f32.mxu0 %v26317_v38 }
 0x262   : > { %3728 = vmatprep.mubr.f32.mxu1 %v26317_v38  ;;  %12020 = vrot.lane.b32.xlu0 %v12013_v62, %s22499_s22  ;;  %v3854_v62 = vsel %vm3851_vm15, %v24044_v22, %v24078_v59  ;;  %v3833_v59 = vld [vmem:[#allocation5 + $0x200] sm:$0xff]  ;;  %s22514_s22 = smov 82  }
 0x263   : > { %15405 = vrot.lane.b32.xlu1 %v15399_v18, %s22512_s29  ;;  %v3852_v18 = vsel %vm3851_vm15, %v24034_v9, %v24010_v51  ;;  %v10190_v51 = vld [vmem:[#allocation5 + $0x588] sm:$0xff]  ;;  %v10663_v9 = vsel %vm26279_vm7, %v24136_v61, %v24129_v0  ;;  %v24278_v22 = vpop.permute.xlu0 %11111  ;;  %vm4078_vm15 = vcmask 785408  }
 0x264   : > { %19328 = vmatmul.mubr.msk.f32.gmra.mrb[6].mxu0 %vm267_vm2, %v9965_v41  ;;  %v24298_v41 = vld [vmem:[%s22734_s25 + $0xc] sm:$0x77] }
 0x265   : > { %19020 = vmatmul.mubr.msk.f32.gmra.mrb[6].mxu1 %vm267_vm2, %v3609_v17  ;;  %10293 = vmatprep.mubr.f32.mxu0 %v26317_v38 }
 0x266   : > { %20271 = vmatprep.mubr.msk.f32.mxu1 %vm267_vm2, %v3606_v43  ;;  %15409 = vrot.lane.b32.xlu0 %v24245_v35, %s22512_s29  ;;  %v24267_v43 = vpop.permute.xlu1 %11107 }
 0x267   : > { %15634 = vrot.lane.b32.xlu1 %v15630_v13, %s22513_s20  ;;  %v12681_v13 = vcombine.high %v23762_v29, %v23762_v29  ;;  %v24319_v29 = vld [vmem:[%s22734_s25 + $0xc] sm:$0x77] }
 0x268   : > { %19336 = vmatmul.mubr.msk.f32.vlgmr.msra.gmra.mrb[0].mxu0 %vm267_vm2, %v10189_v54  ;;  %v15853_v54 = vld [vmem:[%s22734_s25 + $0x4] sm:$0x77] }
 0x269   : > { %20272 = vmatmul.mubr.msk.f32.vlgmr.msra.gmra.mrb[8].mxu1 %vm267_vm2, %v3607_v14  ;;  %10299 = vmatprep.mubr.f32.mxu0 %v26317_v38  ;;  %v12908_v14 = vcombine.high %v23800_v24, %v23800_v24  ;;  %v3834_v24 = vld [vmem:[#allocation5 + $0x208] sm:$0xff] }
 0x26a   : > { %19027 = vmatpush1.msk.msra.mxu1 %vm280_vm1, %v3852_v18  ;;  %20274 = vmatprep.mubr.msk.f32.mxu1 %vm267_vm2, %v3608_v46  ;;  %v24288_v48 = vpop.permute.xlu1 %4526  ;;  %v4080_v46 = vsel %vm4078_vm15, %v24113_v34, %v24104_v49 }
 0x26b   : > { %20277 = vmatprep.subr.msk.mxu1 %vm280_vm1, %v3854_v62  ;;  %19346 = vmatpush1.msk.msra.mxu0 %vm280_vm1, %v10435_v1  ;;  %v10416_v1 = vld [vmem:[#allocation5 + $0x5a0] sm:$0xff] }
 0x26c   : > { %19337 = vmatmul.mubr.msk.f32.gmra.mrb[2].mxu0 %vm267_vm2, %v10190_v51  ;;  %19356 = vmatprep.subr.msk.mxu0 %vm280_vm1, %v10663_v9  ;;  %v10662_v51 = vsel %vm26279_vm7, %v24150_v56, %v24136_v61  ;;  %v10417_v56 = vld [vmem:[#allocation5 + $0x5a8] sm:$0xff]  ;;  %v16080_v61 = vld [vmem:[%s22734_s25 + $0x4] sm:$0x77]  ;;  %vm11115_vm7 = vcmask 39936  }
 0x26d   : > { %20275 = vmatmul.mubr.msk.f32.gmra.mrb[10].mxu1 %vm267_vm2, %v3609_v17  ;;  %10305 = vmatprep.mubr.f32.mxu0 %v26317_v38  ;;  %v24300_v17 = vpop.permute.xlu0 %4303 }
 0x26e   : > { %3937 = vmatprep.mubr.f32.mxu1 %v26317_v38  ;;  %12461 = vrot.lane.b32.xlu0 %v12454_v10, %s22500_s24  ;;  %v24314_v18 = vpop.permute.xlu1 %11336  ;;  %v15857_v10 = vcombine.high %v15853_v54, %v15853_v54  ;;  %s22515_s24 = smov 81  }
 0x26f   : > { %15632 = vrot.lane.b32.xlu1 %v15626_v19, %s22513_s20  ;;  %v10192_v19 = vld [vmem:[#allocation5 + $0x598] sm:$0xff] }
 0x270   : > { %19338 = vmatmul.mubr.msk.f32.gmra.mrb[4].mxu0 %vm267_vm2, %v10191_v57  ;;  %v13135_v57 = vcombine.high %v23838_v16, %v23838_v16 }
 0x271   : > { %19028 = vmatmul.mubr.msk.f32.vlgmr.msra.gmra.mrb[0].mxu1 %vm267_vm2, %v3833_v59  ;;  %10311 = vmatprep.mubr.f32.mxu0 %v26317_v38  ;;  %v24325_v9 = vpop.permute.xlu0 %4528 }
 0x272   : > { %20278 = vmatpush3.msk.msra.mxu1 %vm280_vm1, %v3854_v62  ;;  %3943 = vmatprep.mubr.f32.mxu1 %v26317_v38  ;;  %v3835_v62 = vld [vmem:[#allocation5 + $0x210] sm:$0xff]  ;;  %v24341_v16 = vpop.permute.xlu1 %4524 }
 0x273   : > { %19037 = vmatprep.subr.msk.mxu1 %vm280_vm1, %v4080_v46  ;;  %15636 = vrot.lane.b32.xlu0 %v24298_v41, %s22513_s20  ;;  %v3836_v46 = vld [vmem:[#allocation5 + $0x218] sm:$0xff] }
 0x274   : > { %19339 = vmatmul.mubr.msk.f32.gmra.mrb[6].mxu0 %vm267_vm2, %v10192_v19  ;;  %12915 = vrot.lane.b32.xlu1 %v12908_v14, %s22502_s7  ;;  %v10890_v14 = vsel %vm26280_vm12, %v24178_v58, %v24208_v53  ;;  %v16084_v19 = vcombine.high %v16080_v61, %v16080_v61  ;;  %s22516_s7 = smov 64  }
 0x275   : > { %19029 = vmatmul.mubr.msk.f32.gmra.mrb[2].mxu1 %vm267_vm2, %v3834_v24  ;;  %10520 = vmatprep.mubr.f32.mxu0 %v26317_v38 }
 0x276   : > { %3949 = vmatprep.mubr.f32.mxu1 %v26317_v38 }
 0x277   : > { %12688 = vrot.lane.b32.xlu0 %v12681_v13, %s22501_s30  ;;  %v24347_v13 = vpop.permute.xlu0 %11338  ;;  %s26336_s30 = smov 80  }
 0x278   : > { %19347 = vmatmul.mubr.msk.f32.vlgmr.msra.gmra.mrb[0].mxu0 %vm267_vm2, %v10416_v1  ;;  %15863 = vrot.lane.b32.xlu1 %v24319_v29, %s22514_s22  ;;  %v10418_v1 = vld [vmem:[#allocation5 + $0x5b0] sm:$0xff] }
 0x279   : > { %19030 = vmatmul.mubr.msk.f32.gmra.mrb[4].mxu1 %vm267_vm2, %v3835_v62  ;;  %10526 = vmatprep.mubr.f32.mxu0 %v26317_v38 }
 0x27a   : > { %3955 = vmatprep.mubr.f32.mxu1 %v26317_v38  ;;  %19357 = vmatpush1.msk.msra.mxu0 %vm280_vm1, %v10662_v51  ;;  %v13362_v51 = vcombine.high %v23873_v3, %v23873_v3  ;;  %v10419_v3 = vld [vmem:[#allocation5 + $0x5b8] sm:$0xff] }
 0x27b   : > { %19367 = vmatprep.subr.msk.mxu0 %vm280_vm1, %v10890_v14  ;;  %15861 = vrot.lane.b32.xlu0 %v15857_v10, %s22514_s22  ;;  %v4079_v10 = vsel %vm4078_vm15, %v24159_v39, %v24113_v34  ;;  %v24369_v34 = vpop.permute.xlu0 %11334  ;;  %v24377_v39 = vld [vmem:[%s22734_s25 + $0xc] sm:$0x77] }
 0x27c   : > { %19348 = vmatmul.mubr.msk.f32.gmra.mrb[2].mxu0 %vm267_vm2, %v10417_v56  ;;  %13142 = vrot.lane.b32.xlu1 %v13135_v57, %s22503_s9  ;;  %v4081_v57 = vsel %vm4078_vm15, %v24104_v49, %v24184_v5  ;;  %v13816_v49 = vcombine.high %v23955_v32, %v23955_v32  ;;  %vm26281_vm15 = vcmask 654336   ;;  %v10643_v5 = vld [vmem:[#allocation5 + $0x5c0] sm:$0xff]  ;;  %v10889_v32 = vsel %vm26280_vm12, %v24199_v25, %v24178_v58  ;;  %v10644_v56 = vld [vmem:[#allocation5 + $0x5c8] sm:$0xff]  ;;  %s26337_s9 = smov 88  }
 0x27d   : > { %19031 = vmatmul.mubr.msk.f32.gmra.mrb[6].mxu1 %vm267_vm2, %v3836_v46  ;;  %10532 = vmatprep.mubr.f32.mxu0 %v26317_v38  ;;  %v11117_v58 = vsel %vm11115_vm7, %v24242_v55, %v24278_v22  ;;  %v13589_v25 = vcombine.high %v23920_v11, %v23920_v11  ;;  %v10645_v11 = vld [vmem:[#allocation5 + $0x5d0] sm:$0xff]  ;;  %vm26282_vm12 = vcmask 31744  }
 0x27e   : > { %20279 = vmatprep.mubr.msk.f32.mxu1 %vm267_vm2, %v3833_v59  ;;  %v24363_v59 = vpop.permute.xlu1 %4530 }
 0x27f   : > { %15859 = vrot.lane.b32.xlu0 %v15853_v54, %s22514_s22  ;;  %v24395_v14 = vpop.permute.xlu0 %11563 }
 0x280   : > { %19349 = vmatmul.mubr.msk.f32.gmra.mrb[4].mxu0 %vm267_vm2, %v10418_v1  ;;  %16088 = vrot.lane.b32.xlu1 %v16084_v19, %s22515_s24  ;;  %v24412_v19 = vld [vmem:[%s22734_s25 + $0xc] sm:$0x77] }
 0x281   : > { %20280 = vmatmul.mubr.msk.f32.vlgmr.msra.gmra.mrb[8].mxu1 %vm267_vm2, %v3834_v24  ;;  %10538 = vmatprep.mubr.f32.mxu0 %v26317_v38  ;;  %v4060_v24 = vld [vmem:[#allocation5 + $0x220] sm:$0xff] }
 0x282   : > { %19038 = vmatpush1.msk.msra.mxu1 %vm280_vm1, %v4079_v10  ;;  %20282 = vmatprep.mubr.msk.f32.mxu1 %vm267_vm2, %v3835_v62  ;;  %v24383_v54 = vpop.permute.xlu1 %11565  ;;  %v4307_v62 = vsel %vm26281_vm15, %v24232_v60, %v24224_v2 }
 0x283   : > { %20285 = vmatprep.subr.msk.mxu1 %vm280_vm1, %v4081_v57  ;;  %13369 = vrot.lane.b32.xlu0 %v13362_v51, %s22504_s11  ;;  %v4062_v51 = vld [vmem:[#allocation5 + $0x230] sm:$0xff]  ;;  %s26338_s11 = smov 87  }
 0x284   : > { %19350 = vmatmul.mubr.msk.f32.gmra.mrb[6].mxu0 %vm267_vm2, %v10419_v3  ;;  %16086 = vrot.lane.b32.xlu1 %v16080_v61, %s22515_s24  ;;  %v4061_v61 = vld [vmem:[#allocation5 + $0x228] sm:$0xff]  ;;  %v24422_v3 = vpop.permute.xlu0 %11561 }
 0x285   : > { %20283 = vmatmul.mubr.msk.f32.gmra.mrb[10].mxu1 %vm267_vm2, %v3836_v46  ;;  %10747 = vmatprep.mubr.f32.mxu0 %v26317_v38  ;;  %v16307_v46 = vld [vmem:[%s22734_s25 + $0x4] sm:$0x77] }
 0x286   : > { %4164 = vmatprep.mubr.f32.mxu1 %v26317_v38  ;;  %v24414_v1 = vpop.permute.xlu1 %4757  ;;  %v16311_v10 = vcombine.high %v16307_v46, %v16307_v46 }
 0x287   : > { %16090 = vrot.lane.b32.xlu0 %v24377_v39, %s22515_s24 }
 0x288   : > { %19358 = vmatmul.mubr.msk.f32.vlgmr.msra.gmra.mrb[0].mxu0 %vm267_vm2, %v10643_v5  ;;  %13823 = vrot.lane.b32.xlu1 %v13816_v49, %s22506_s28  ;;  %v10646_v49 = vld [vmem:[#allocation5 + $0x5d8] sm:$0xff]  ;;  %s22518_s28 = smov 62  }
 0x289   : > { %19039 = vmatmul.mubr.msk.f32.vlgmr.msra.gmra.mrb[0].mxu1 %vm267_vm2, %v4060_v24  ;;  %10753 = vmatprep.mubr.f32.mxu0 %v26317_v38  ;;  %v4063_v5 = vld [vmem:[#allocation5 + $0x238] sm:$0xff] }
 0x28a   : > { %20286 = vmatpush3.msk.msra.mxu1 %vm280_vm1, %v4081_v57  ;;  %4170 = vmatprep.mubr.f32.mxu1 %v26317_v38  ;;  %v14043_v57 = vcombine.high %v23999_v21, %v23999_v21  ;;  %v24435_v21 = vpop.permute.xlu0 %11789 }
 0x28b   : > { %19368 = vmatpush1.msk.msra.mxu0 %vm280_vm1, %v10889_v32  ;;  %19048 = vmatprep.subr.msk.mxu1 %vm280_vm1, %v4307_v62  ;;  %v24431_v32 = vpop.permute.xlu1 %11791  ;;  %v10870_v62 = vld [vmem:[#allocation5 + $0x5e0] sm:$0xff] }
 0x28c   : > { %19359 = vmatmul.mubr.msk.f32.gmra.mrb[2].mxu0 %vm267_vm2, %v10644_v56  ;;  %19378 = vmatprep.subr.msk.mxu0 %vm280_vm1, %v11117_v58  ;;  %v4306_v56 = vsel %vm26281_vm15, %v24249_v30, %v24232_v60  ;;  %v11116_v58 = vsel %vm11115_vm7, %v24267_v43, %v24242_v55  ;;  %v14270_v60 = vcombine.high %v24031_v15, %v24031_v15  ;;  %v10872_v15 = vld [vmem:[#allocation5 + $0x5f0] sm:$0xff]  ;;  %v4287_v55 = vld [vmem:[#allocation5 + $0x240] sm:$0xff] }
 0x28d   : > { %19040 = vmatmul.mubr.msk.f32.gmra.mrb[2].mxu1 %vm267_vm2, %v4061_v61  ;;  %10759 = vmatprep.mubr.f32.mxu0 %v26317_v38  ;;  %v24475_v43 = vld [vmem:[%s22734_s25 + $0xc] sm:$0x77] }
 0x28e   : > { %4176 = vmatprep.mubr.f32.mxu1 %v26317_v38  ;;  %13596 = vrot.lane.b32.xlu0 %v13589_v25, %s22505_s6  ;;  %v4308_v25 = vsel %vm26281_vm15, %v24224_v2, %v24300_v17  ;;  %v24460_v2 = vpop.permute.xlu0 %11787  ;;  %vm4532_vm15 = vcmask 646144   ;;  %s22517_s6 = smov 63  }
 0x28f   : > { %16317 = vrot.lane.b32.xlu1 %v24412_v19, %s26336_s30  ;;  %v4534_v30 = vsel %vm4532_vm15, %v24288_v48, %v24325_v9 }
 0x290   : > { %19360 = vmatmul.mubr.msk.f32.gmra.mrb[4].mxu0 %vm267_vm2, %v10645_v11  ;;  %v4288_v11 = vld [vmem:[#allocation5 + $0x248] sm:$0xff] }
 0x291   : > { %19041 = vmatmul.mubr.msk.f32.gmra.mrb[4].mxu1 %vm267_vm2, %v4062_v51  ;;  %10765 = vmatprep.mubr.f32.mxu0 %v26317_v38 }
 0x292   : > { %4182 = vmatprep.mubr.f32.mxu1 %v26317_v38  ;;  %16315 = vrot.lane.b32.xlu0 %v16311_v10, %s26336_s30  ;;  %v24477_v17 = vpop.permute.xlu0 %5211  ;;  %v11097_v10 = vld [vmem:[#allocation5 + $0x600] sm:$0xff] }
 0x293   : > { %14050 = vrot.lane.b32.xlu1 %v14043_v57, %s22507_s8  ;;  %v4289_v57 = vld [vmem:[#allocation5 + $0x250] sm:$0xff]  ;;  %s22519_s8 = smov 61  }
 0x294   : > { %19361 = vmatmul.mubr.msk.f32.gmra.mrb[6].mxu0 %vm267_vm2, %v10646_v49  ;;  %v24495_v49 = vpop.permute.xlu1 %4984 }
 0x295   : > { %19042 = vmatmul.mubr.msk.f32.gmra.mrb[6].mxu1 %vm267_vm2, %v4063_v5  ;;  %10974 = vmatprep.mubr.f32.mxu0 %v26317_v38 }
 0x296   : > { %20287 = vmatprep.mubr.msk.f32.mxu1 %vm267_vm2, %v4060_v24  ;;  %16313 = vrot.lane.b32.xlu0 %v16307_v46, %s26336_s30  ;;  %v10871_v24 = vld [vmem:[#allocation5 + $0x5e8] sm:$0xff]  ;;  %v11344_v46 = vsel %vm26282_vm12, %v24314_v18, %v24347_v13 }
 0x298   : > { %19369 = vmatmul.mubr.msk.f32.vlgmr.msra.gmra.mrb[0].mxu0 %vm267_vm2, %v10870_v62  ;;  %v16533_v62 = vld [vmem:[%s22734_s25 + $0x4] sm:$0x77] }
 0x299   : > { %20288 = vmatmul.mubr.msk.f32.vlgmr.msra.gmra.mrb[8].mxu1 %vm267_vm2, %v4061_v61  ;;  %10980 = vmatprep.mubr.f32.mxu0 %v26317_v38  ;;  %v10873_v61 = vld [vmem:[#allocation5 + $0x5f8] sm:$0xff] }
 0x29a   : > { %19049 = vmatpush1.msk.msra.mxu1 %vm280_vm1, %v4306_v56  ;;  %20290 = vmatprep.mubr.msk.f32.mxu1 %vm267_vm2, %v4062_v51  ;;  %v14496_v51 = vcombine.high %v24072_v26, %v24072_v26  ;;  %v11343_v26 = vsel %vm26282_vm12, %v24369_v34, %v24314_v18  ;;  %v11570_v56 = vsel %vm267_vm2, %v24395_v14, %v24383_v54  ;;  %v4290_v18 = vld [vmem:[#allocation5 + $0x258] sm:$0xff]  ;;  %v24512_v34 = vpop.permute.xlu1 %12016  ;;  %vm12022_vm12 = vcmask 7168  }
 0x29b   : > { %20293 = vmatprep.subr.msk.mxu1 %vm280_vm1, %v4308_v25  ;;  %19379 = vmatpush1.msk.msra.mxu0 %vm280_vm1, %v11116_v58  ;;  %v16537_v58 = vcombine.high %v16533_v62, %v16533_v62 }
 0x29c   : > { %19370 = vmatmul.mubr.msk.f32.gmra.mrb[2].mxu0 %vm267_vm2, %v10871_v24  ;;  %19389 = vmatprep.subr.msk.mxu0 %vm280_vm1, %v11344_v46  ;;  %v11099_v24 = vld [vmem:[#allocation5 + $0x610] sm:$0xff]  ;;  %v4533_v46 = vsel %vm4532_vm15, %v24341_v16, %v24288_v48  ;;  %v11569_v16 = vsel %vm267_vm2, %v24422_v3, %v24395_v14  ;;  %v24554_v14 = vld [vmem:[%s22734_s25 + $0xc] sm:$0x77] }
 0x29d   : > { %20291 = vmatmul.mubr.msk.f32.gmra.mrb[10].mxu1 %vm267_vm2, %v4063_v5  ;;  %10986 = vmatprep.mubr.f32.mxu0 %v26317_v38  ;;  %v24497_v5 = vpop.permute.xlu0 %12018 }
 0x29e   : > { %4391 = vmatprep.mubr.f32.mxu1 %v26317_v38  ;;  %14277 = vrot.lane.b32.xlu0 %v14270_v60, %s26328_s26  ;;  %v14723_v60 = vcombine.high %v24110_v52, %v24110_v52  ;;  %v24531_v48 = vpop.permute.xlu1 %12014  ;;  %v11324_v52 = vld [vmem:[#allocation5 + $0x620] sm:$0xff]  ;;  %s22520_s26 = smov 60  }
 0x29f   : > { %16541 = vrot.lane.b32.xlu1 %v16537_v58, %s22516_s7 }
 0x2a0   : > { %19371 = vmatmul.mubr.msk.f32.gmra.mrb[4].mxu0 %vm267_vm2, %v10872_v15  ;;  %v4535_v15 = vsel %vm4532_vm15, %v24325_v9, %v24363_v59  ;;  %vm11795_vm15 = vcmask 15360   ;;  %v4514_v9 = vld [vmem:[#allocation5 + $0x260] sm:$0xff]  ;;  %v11325_v59 = vld [vmem:[#allocation5 + $0x628] sm:$0xff] }
 0x2a1   : > { %19050 = vmatmul.mubr.msk.f32.vlgmr.msra.gmra.mrb[0].mxu1 %vm267_vm2, %v4287_v55  ;;  %10992 = vmatprep.mubr.f32.mxu0 %v26317_v38  ;;  %v11796_v58 = vsel %vm11795_vm15, %v24460_v2, %v24435_v21 }
 0x2a2   : > { %20294 = vmatpush3.msk.msra.mxu1 %vm280_vm1, %v4308_v25  ;;  %4397 = vmatprep.mubr.f32.mxu1 %v26317_v38  ;;  %v11098_v25 = vld [vmem:[#allocation5 + $0x608] sm:$0xff]  ;;  %v24556_v3 = vpop.permute.xlu1 %5665 }
 0x2a3   : > { %19059 = vmatprep.subr.msk.mxu1 %vm280_vm1, %v4534_v30  ;;  %16543 = vrot.lane.b32.xlu0 %v24475_v43, %s22516_s7  ;;  %v11797_v30 = vsel %vm11795_vm15, %v24435_v21, %v24431_v32 }
 0x2a4   : > { %19372 = vmatmul.mubr.msk.f32.gmra.mrb[6].mxu0 %vm267_vm2, %v10873_v61  ;;  %16539 = vrot.lane.b32.xlu1 %v16533_v62, %s22516_s7  ;;  %v4515_v61 = vld [vmem:[#allocation5 + $0x268] sm:$0xff]  ;;  %v24578_v62 = vpop.permute.xlu0 %5438 }
 0x2a5   : > { %19051 = vmatmul.mubr.msk.f32.gmra.mrb[2].mxu1 %vm267_vm2, %v4288_v11  ;;  %11201 = vmatprep.mubr.f32.mxu0 %v26317_v38 }
 0x2a6   : > { %4403 = vmatprep.mubr.f32.mxu1 %v26317_v38 }
 0x2a7   : > { %14503 = vrot.lane.b32.xlu0 %v14496_v51, %s26337_s9  ;;  %v14950_v51 = vcombine.high %v24154_v37, %v24154_v37  ;;  %v4517_v37 = vld [vmem:[#allocation5 + $0x278] sm:$0xff] }
 0x2a8   : > { %19380 = vmatmul.mubr.msk.f32.vlgmr.msra.gmra.mrb[0].mxu0 %vm267_vm2, %v11097_v10  ;;  %14730 = vrot.lane.b32.xlu1 %v14723_v60, %s26338_s11  ;;  %v11327_v10 = vld [vmem:[#allocation5 + $0x638] sm:$0xff]  ;;  %v24600_v2 = vpop.permute.xlu0 %5892  ;;  %v22124_v60 = vld [vmem:[#allocation5 + $0x280] sm:$0xff]  ;;  %s18719_s11 = scalar_lea.sflag [#allocation4], %s22730_s10 }
 0x2a9   : > { %19052 = vmatmul.mubr.msk.f32.gmra.mrb[4].mxu1 %vm267_vm2, %v4289_v57  ;;  %11207 = vmatprep.mubr.f32.mxu0 %v26317_v38 }
 0x2aa   : > { %4409 = vmatprep.mubr.f32.mxu1 %v26317_v38  ;;  %19390 = vmatpush1.msk.msra.mxu0 %vm280_vm1, %v11343_v26  ;;  %v11551_v26 = vld [vmem:[#allocation5 + $0x640] sm:$0xff] }
 0x2ab   : > { %19400 = vmatprep.subr.msk.mxu0 %vm280_vm1, %v11570_v56  ;;  %v16760_v56 = vld [vmem:[%s22734_s25 + $0x4] sm:$0x77] }
 0x2ac   : > { %19381 = vmatmul.mubr.msk.f32.gmra.mrb[2].mxu0 %vm267_vm2, %v11098_v25  ;;  %16770 = vrot.lane.b32.xlu1 %v24554_v14, %s22517_s6  ;;  %v11552_v25 = vld [vmem:[#allocation5 + $0x648] sm:$0xff]  ;;  %v16764_v21 = vcombine.high %v16760_v56, %v16760_v56 }
 0x2ad   : > { %19053 = vmatmul.mubr.msk.f32.gmra.mrb[6].mxu1 %vm267_vm2, %v4290_v18  ;;  %11213 = vmatprep.mubr.f32.mxu0 %v26317_v38 }
 0x2ae   : > { %20295 = vmatprep.mubr.msk.f32.mxu1 %vm267_vm2, %v4287_v55  ;;  %v11100_v55 = vld [vmem:[#allocation5 + $0x618] sm:$0xff]  ;;  %16768 = vrot.lane.b32.xlu0 %v16764_v21, %s22517_s6 }
 0x2b0   : > { %19382 = vmatmul.mubr.msk.f32.gmra.mrb[4].mxu0 %vm267_vm2, %v11099_v24  ;;  %v4762_v24 = vsel %vm4759_vm0, %v22825_v63, %v24414_v1  ;;  %v11553_v63 = vld [vmem:[#allocation5 + $0x650] sm:$0xff]  ;;  %v11554_v1 = vld [vmem:[#allocation5 + $0x658] sm:$0xff]  ;;  %vm12463_vm0 = vcmask 916480  }
 0x2b1   : > { %20296 = vmatmul.mubr.msk.f32.vlgmr.msra.gmra.mrb[8].mxu1 %vm267_vm2, %v4288_v11  ;;  %11219 = vmatprep.mubr.f32.mxu0 %v26317_v38  ;;  %v11326_v11 = vld [vmem:[#allocation5 + $0x630] sm:$0xff] }
 0x2b2   : > { %19060 = vmatpush1.msk.msra.mxu1 %vm280_vm1, %v4533_v46  ;;  %20298 = vmatprep.mubr.msk.f32.mxu1 %vm267_vm2, %v4289_v57  ;;  %v24570_v57 = vpop.permute.xlu1 %6119  ;;  %v4989_v46 = vsel %vm4986_vm4, %v22857_v20, %v24495_v49  ;;  %v11777_v20 = vld [vmem:[#allocation5 + $0x660] sm:$0xff]  ;;  %v5216_v49 = vsel %vm5213_vm5, %v22882_v36, %v24477_v17  ;;  %v11778_v36 = vld [vmem:[#allocation5 + $0x668] sm:$0xff]  ;;  %vm12690_vm4 = vcmask 908288   ;;  %vm12917_vm5 = vcmask 900096  }
 0x2b3   : > { %20301 = vmatprep.subr.msk.mxu1 %vm280_vm1, %v4535_v15  ;;  %14957 = vrot.lane.b32.xlu1 %v14950_v51, %s22510_s5  ;;  %v24644_v17 = vld [vmem:[%s22734_s25 + $0xc] sm:$0x77]  ;;  %v5443_v51 = vsel %vm5440_vm6, %v22905_v47, %v24578_v62  ;;  %vm13144_vm6 = vcmask 891904   ;;  %s22521_s5 = smov 59  }
 0x2b4   : > { %19383 = vmatmul.mubr.msk.f32.gmra.mrb[6].mxu0 %vm267_vm2, %v11100_v55  ;;  %v15177_v55 = vcombine.high %v24191_v33, %v24191_v33  ;;  %16766 = vrot.lane.b32.xlu0 %v16760_v56, %s22517_s6  ;;  %v22126_v33 = vld [vmem:[#allocation5 + $0x290] sm:$0xff]  ;;  %v11780_v47 = vld [vmem:[#allocation5 + $0x678] sm:$0xff]  ;;  %v12004_v62 = vld [vmem:[#allocation5 + $0x680] sm:$0xff]  ;;  %v5670_v56 = vsel %vm5667_vm8, %v22946_v6, %v24556_v3  ;;  %vm26339_vm8 = vcmask 424960  }
 0x2b5   : > { %20299 = vmatmul.mubr.msk.f32.gmra.mrb[10].mxu1 %vm267_vm2, %v4290_v18  ;;  %11428 = vmatprep.mubr.f32.mxu0 %v26317_v38  ;;  %v12024_v18 = vsel %vm12022_vm12, %v24512_v34, %v24497_v5  ;;  %v12005_v6 = vld [vmem:[#allocation5 + $0x688] sm:$0xff]  ;;  %v22135_v3 = vld [vmem:[#allocation5 + $0x2e0] sm:$0xff] }
 0x2b6   : > { %4618 = vmatprep.mubr.f32.mxu1 %v26317_v38 }
 0x2b8   : > { %19391 = vmatmul.mubr.msk.f32.vlgmr.msra.gmra.mrb[0].mxu0 %vm267_vm2, %v11324_v52  ;;  %v24622_v52 = vld [vmem:[%s22734_s25 + $0x4] sm:$0x77] }
 0x2b9   : > { %19061 = vmatmul.mubr.msk.f32.vlgmr.msra.gmra.mrb[0].mxu1 %vm267_vm2, %v4514_v9  ;;  %11434 = vmatprep.mubr.f32.mxu0 %v26317_v38 }
 0x2ba   : > { %20302 = vmatpush3.msk.msra.mxu1 %vm280_vm1, %v4535_v15  ;;  %4624 = vmatprep.mubr.f32.mxu1 %v26317_v38  ;;  %v24614_v15 = vpop.permute.xlu0 %12457 }
 0x2bb   : > { %20797 = vmatprep.subr.msk.mxu1 %vm280_vm1, %v22832_v7  ;;  %19401 = vmatpush1.msk.msra.mxu0 %vm280_vm1, %v11569_v16  ;;  %v4516_v7 = vld [vmem:[#allocation5 + $0x270] sm:$0xff]  ;;  %v12023_v16 = vsel %vm12022_vm12, %v24531_v48, %v24512_v34  ;;  %v15404_v34 = vcombine.high %v24245_v35, %v24245_v35  ;;  %v22128_v48 = vld [vmem:[#allocation5 + $0x2a8] sm:$0xff] }
 0x2bc   : > { %19392 = vmatmul.mubr.msk.f32.gmra.mrb[2].mxu0 %vm267_vm2, %v11325_v59  ;;  %19411 = vmatprep.subr.msk.mxu0 %vm280_vm1, %v11797_v30  ;;  %v12239_v59 = vcombine.high %v24622_v52, %v24622_v52  ;;  %v22129_v35 = vld [vmem:[#allocation5 + $0x2b0] sm:$0xff] }
 0x2bd   : > { %19062 = vmatmul.mubr.msk.f32.gmra.mrb[2].mxu1 %vm267_vm2, %v4515_v61  ;;  %11440 = vmatprep.mubr.f32.mxu0 %v26317_v38 }
 0x2be   : > { %4630 = vmatprep.mubr.f32.mxu1 %v26317_v38  ;;  %15184 = vrot.lane.b32.xlu0 %v15177_v55, %s22511_s21  ;;  %v24639_v30 = vpop.permute.xlu0 %12455  ;;  %v22137_v55 = vld [vmem:[#allocation5 + $0x2f0] sm:$0xff]  ;;  %s22522_s21 = smov 58  }
 0x2c0   : > { %19393 = vmatmul.mubr.msk.f32.gmra.mrb[4].mxu0 %vm267_vm2, %v11326_v11  ;;  %v11779_v11 = vld [vmem:[#allocation5 + $0x670] sm:$0xff] }
 0x2c1   : > { %19063 = vmatmul.mubr.msk.f32.gmra.mrb[4].mxu1 %vm267_vm2, %v4516_v7  ;;  %11446 = vmatprep.mubr.f32.mxu0 %v26317_v38 }
 0x2c2   : > { %4636 = vmatprep.mubr.f32.mxu1 %v26317_v38  ;;  %16997 = vrot.lane.b32.xlu0 %v24644_v17, %s22518_s28 }
 0x2c4   : > { %19394 = vmatmul.mubr.msk.f32.gmra.mrb[6].mxu0 %vm267_vm2, %v11327_v10  ;;  %v22130_v10 = vld [vmem:[#allocation5 + $0x2b8] sm:$0xff] }
 0x2c5   : > { %19064 = vmatmul.mubr.msk.f32.gmra.mrb[6].mxu1 %vm267_vm2, %v4517_v37  ;;  %11654 = vmatprep.mubr.f32.mxu0 %v26317_v38 }
 0x2c6   : > { %20303 = vmatprep.mubr.msk.f32.mxu1 %vm267_vm2, %v4514_v9  ;;  %v22125_v9 = vld [vmem:[#allocation5 + $0x288] sm:$0xff] }
 0x2c8   : > { %19402 = vmatmul.mubr.msk.f32.vlgmr.msra.gmra.mrb[0].mxu0 %vm267_vm2, %v11551_v26  ;;  %v22132_v26 = vld [vmem:[#allocation5 + $0x2c8] sm:$0xff] }
 0x2c9   : > { %20304 = vmatmul.mubr.msk.f32.vlgmr.msra.gmra.mrb[8].mxu1 %vm267_vm2, %v4515_v61  ;;  %11660 = vmatprep.mubr.f32.mxu0 %v26317_v38  ;;  %v22127_v61 = vld [vmem:[#allocation5 + $0x2a0] sm:$0xff] }
 0x2ca   : > { %20798 = vmatpush1.msk.msra.mxu1 %vm280_vm1, %v22835_v8  ;;  %20306 = vmatprep.mubr.msk.f32.mxu1 %vm267_vm2, %v4516_v7  ;;  %v4744_v8 = vld [vmem:[#allocation5 + $0x298] sm:$0xff]  ;;  %v24661_v7 = vpop.permute.xlu0 %6573 }
 0x2cb   : > { %20309 = vmatprep.subr.msk.mxu1 %vm280_vm1, %v4762_v24  ;;  %19412 = vmatpush1.msk.msra.mxu0 %vm280_vm1, %v11796_v58  ;;  %v22133_v58 = vld [vmem:[#allocation5 + $0x2d0] sm:$0xff] }
 0x2cc   : > { %19403 = vmatmul.mubr.msk.f32.gmra.mrb[2].mxu0 %vm267_vm2, %v11552_v25  ;;  %19422 = vmatprep.subr.msk.mxu0 %vm280_vm1, %v12024_v18  ;;  %v24677_v25 = vpop.permute.xlu1 %12459  ;;  %v16987_v18 = vld [vmem:[%s22734_s25 + $0x4] sm:$0x77] }
 0x2cd   : > { %20307 = vmatmul.mubr.msk.f32.gmra.mrb[10].mxu1 %vm267_vm2, %v4517_v37  ;;  %11666 = vmatprep.mubr.f32.mxu0 %v26317_v38  ;;  %v22131_v37 = vld [vmem:[#allocation5 + $0x2c0] sm:$0xff]  ;;  %v16991_v21 = vcombine.high %v16987_v18, %v16987_v18 }
 0x2ce   : > { %4863 = vmatprep.mubr.f32.mxu1 %v26317_v38  ;;  %15411 = vrot.lane.b32.xlu0 %v15404_v34, %s22512_s29  ;;  %s22523_s29 = smov 57  }
 0x2cf   : > { %16995 = vrot.lane.b32.xlu1 %v16991_v21, %s22518_s28 }
 0x2d0   : > { %19404 = vmatmul.mubr.msk.f32.gmra.mrb[4].mxu0 %vm267_vm2, %v11553_v63  ;;  %v22134_v63 = vld [vmem:[#allocation5 + $0x2d8] sm:$0xff] }
 0x2d1   : > { %19075 = vmatmul.mubr.msk.f32.vlgmr.msra.gmra.mrb[6].mxu1 %vm267_vm2, %v4744_v8  ;;  %11672 = vmatprep.mubr.f32.mxu0 %v26317_v38 }
 0x2d2   : > { %20310 = vmatpush3.msk.msra.mxu1 %vm280_vm1, %v4762_v24  ;;  %20311 = vmatprep.mubr.msk.f32.mxu1 %vm267_vm2, %v22124_v60  ;;  %v12465_v24 = vsel %vm12463_vm0, %v24614_v15, %v24677_v25  ;;  %v5897_v60 = vsel %vm5894_vm9, %v22983_v28, %v24600_v2  ;;  %v12007_v28 = vld [vmem:[#allocation5 + $0x698] sm:$0xff]  ;;  %v22139_v2 = vld [vmem:[#allocation5 + $0x300] sm:$0xff]  ;;  %vm13371_vm9 = vcmask 883712  }
 0x2d3   : > { %20317 = vmatprep.subr.msk.mxu1 %vm280_vm1, %v4989_v46 }
 0x2d4   : > { %19405 = vmatmul.mubr.msk.f32.gmra.mrb[6].mxu0 %vm267_vm2, %v11554_v1  ;;  %v22136_v1 = vld [vmem:[#allocation5 + $0x2e8] sm:$0xff] }
 0x2d5   : > { %20312 = vmatmul.mubr.msk.f32.vlgmr.msra.gmra.mrb[8].mxu1 %vm267_vm2, %v22125_v9  ;;  %11881 = vmatprep.mubr.f32.mxu0 %v26317_v38  ;;  %v22138_v9 = vld [vmem:[#allocation5 + $0x2f8] sm:$0xff] }
 0x2d6   : > { %20318 = vmatpush3.msk.msra.mxu1 %vm280_vm1, %v4989_v46  ;;  %20314 = vmatprep.mubr.msk.f32.mxu1 %vm267_vm2, %v22126_v33  ;;  %v12006_v46 = vld [vmem:[#allocation5 + $0x690] sm:$0xff]  ;;  %v6124_v33 = vsel %vm6121_vm11, %v23017_v44, %v24570_v57  ;;  %v22142_v44 = vld [vmem:[#allocation5 + $0x318] sm:$0xff]  ;;  %v12232_v57 = vld [vmem:[#allocation5 + $0x6a8] sm:$0xff]  ;;  %vm26340_vm11 = vcmask 416768  }
 0x2d7   : > { %20325 = vmatprep.subr.msk.mxu1 %vm280_vm1, %v5216_v49 }
 0x2d8   : > { %19413 = vmatmul.mubr.msk.f32.vlgmr.msra.gmra.mrb[0].mxu0 %vm267_vm2, %v11777_v20 }
 0x2d9   : > { %20315 = vmatmul.mubr.msk.f32.gmra.mrb[10].mxu1 %vm267_vm2, %v4744_v8  ;;  %11887 = vmatprep.mubr.f32.mxu0 %v26317_v38  ;;  %v6347_v8 = vpop.permute.xlu1 %6346 }
 0x2da   : > { %20319 = vmatprep.mubr.msk.f32.mxu1 %vm267_vm2, %v22127_v61  ;;  %19423 = vmatpush1.msk.msra.mxu0 %vm280_vm1, %v12023_v16  ;;  %v22141_v16 = vld [vmem:[#allocation5 + $0x310] sm:$0xff] }
 0x2db   : > { %19433 = vmatprep.subr.msk.mxu0 %vm280_vm1, %v12239_v59  ;;  %16993 = vrot.lane.b32.xlu1 %v16987_v18, %s22518_s28  ;;  %v12464_v59 = vsel %vm12463_vm0, %v24639_v30, %v24614_v15  ;;  %v15858_v15 = vcombine.high %v24319_v29, %v24319_v29  ;;  %v22144_v30 = vld [vmem:[#allocation5 + $0x328] sm:$0xff]  ;;  %v22145_v29 = vld [vmem:[#allocation5 + $0x330] sm:$0xff]  ;;  %v6578_v18 = vsel %vm6575_vm14, %v23105_v27, %v24661_v7  ;;  %v22151_v7 = vld [vmem:[#allocation5 + $0x360] sm:$0xff]  ;;  %vm26341_vm14 = vcmask 408576  }
 0x2dc   : > { %19414 = vmatmul.mubr.msk.f32.gmra.mrb[2].mxu0 %vm267_vm2, %v11778_v36  ;;  %v24720_v36 = vpop.permute.xlu0 %12686  ;;  %v12446_v27 = vld [vmem:[#allocation5 + $0x6c8] sm:$0xff] }
 0x2dd   : > { %20320 = vmatmul.mubr.msk.f32.vlgmr.msra.gmra.mrb[8].mxu1 %vm267_vm2, %v22128_v48  ;;  %11893 = vmatprep.mubr.f32.mxu0 %v26317_v38  ;;  %v12685_v20 = vpop.permute.xlu1 %12684  ;;  %v24729_v48 = vld [vmem:[%s22734_s25 + $0xc] sm:$0x77] }
 0x2de   : > { %20326 = vmatpush3.msk.msra.mxu1 %vm280_vm1, %v5216_v49  ;;  %20322 = vmatprep.mubr.msk.f32.mxu1 %vm267_vm2, %v22129_v35  ;;  %v12231_v49 = vld [vmem:[#allocation5 + $0x6a0] sm:$0xff]  ;;  %v12692_v61 = vsel %vm12690_vm4, %v12685_v20, %v24720_v36  ;;  %v6351_v35 = vsel %vm26283_vm13, %v23063_v4, %v6347_v8  ;;  %v12234_v4 = vld [vmem:[#allocation5 + $0x6b8] sm:$0xff]  ;;  %vm26360_vm13 = vcmask 850944  }
 0x2df   : > { %20333 = vmatprep.subr.msk.mxu1 %vm280_vm1, %v5443_v51 }
 0x2e0   : > { %19415 = vmatmul.mubr.msk.f32.gmra.mrb[4].mxu0 %vm267_vm2, %v11779_v11  ;;  %v22143_v11 = vld [vmem:[#allocation5 + $0x320] sm:$0xff] }
 0x2e1   : > { %20323 = vmatmul.mubr.msk.f32.gmra.mrb[10].mxu1 %vm267_vm2, %v22130_v10  ;;  %11899 = vmatprep.mubr.f32.mxu0 %v26317_v38  ;;  %v12683_v34 = vpop.permute.xlu1 %12682  ;;  %v6801_v10 = vpop.permute.xlu0 %6800 }
 0x2e2   : > { %20327 = vmatprep.mubr.msk.f32.mxu1 %vm267_vm2, %v22131_v37  ;;  %v22146_v37 = vld [vmem:[#allocation5 + $0x338] sm:$0xff]  ;;  %v12691_v21 = vsel %vm12690_vm4, %v12683_v34, %v12685_v20 }
 0x2e4   : > { %19416 = vmatmul.mubr.msk.f32.gmra.mrb[6].mxu0 %vm267_vm2, %v11780_v47 }
 0x2e5   : > { %20328 = vmatmul.mubr.msk.f32.vlgmr.msra.gmra.mrb[8].mxu1 %vm267_vm2, %v22132_v26  ;;  %12108 = vmatprep.mubr.f32.mxu0 %v26317_v38  ;;  %v24745_v47 = vpop.permute.xlu1 %7027  ;;  %v22147_v26 = vld [vmem:[#allocation5 + $0x340] sm:$0xff] }
 0x2e6   : > { %20334 = vmatpush3.msk.msra.mxu1 %vm280_vm1, %v5443_v51  ;;  %20330 = vmatprep.mubr.msk.f32.mxu1 %vm267_vm2, %v22133_v58  ;;  %v12233_v51 = vld [vmem:[#allocation5 + $0x6b0] sm:$0xff]  ;;  %v12445_v58 = vld [vmem:[#allocation5 + $0x6c0] sm:$0xff] }
 0x2e7   : > { %20341 = vmatprep.subr.msk.mxu1 %vm280_vm1, %v5670_v56 }
 0x2e8   : > { %19424 = vmatmul.mubr.msk.f32.vlgmr.msra.gmra.mrb[0].mxu0 %vm267_vm2, %v12004_v62  ;;  %v12912_v62 = vpop.permute.xlu0 %12911 }
 0x2e9   : > { %20331 = vmatmul.mubr.msk.f32.gmra.mrb[10].mxu1 %vm267_vm2, %v22134_v63  ;;  %12114 = vmatprep.mubr.f32.mxu0 %v26317_v38  ;;  %v24762_v63 = vpop.permute.xlu1 %12913 }
 0x2ea   : > { %20335 = vmatprep.mubr.msk.f32.mxu1 %vm267_vm2, %v22135_v3  ;;  %19434 = vmatpush1.msk.msra.mxu0 %vm280_vm1, %v24622_v52  ;;  %v15631_v52 = vcombine.high %v24298_v41, %v24298_v41  ;;  %v22140_v41 = vld [vmem:[#allocation5 + $0x308] sm:$0xff]  ;;  %v12919_v3 = vsel %vm12917_vm5, %v12912_v62, %v24762_v63 }
 0x2eb   : > { %19444 = vmatprep.subr.msk.mxu0 %vm280_vm1, %v12465_v24  ;;  %v22149_v24 = vld [vmem:[#allocation5 + $0x350] sm:$0xff] }
 0x2ec   : > { %19425 = vmatmul.mubr.msk.f32.gmra.mrb[2].mxu0 %vm267_vm2, %v12005_v6  ;;  %15638 = vrot.lane.b32.xlu1 %v15631_v52, %s22513_s20  ;;  %v17214_v6 = vld [vmem:[%s22734_s25 + $0x4] sm:$0x77]  ;;  %v6805_v52 = vsel %vm6802_vm3, %v23149_v50, %v6801_v10  ;;  %vm13598_vm3 = vcmask 875520   ;;  %s26373_s20 = smov 56  }
 0x2ed   : > { %20336 = vmatmul.mubr.msk.f32.vlgmr.msra.gmra.mrb[8].mxu1 %vm267_vm2, %v22136_v1  ;;  %12120 = vmatprep.mubr.f32.mxu0 %v26317_v38  ;;  %v17218_v8 = vcombine.high %v17214_v6, %v17214_v6  ;;  %v22150_v1 = vld [vmem:[#allocation5 + $0x358] sm:$0xff]  ;;  %v12674_v10 = vld [vmem:[#allocation5 + $0x6f0] sm:$0xff] }
 0x2ee   : > { %20342 = vmatpush3.msk.msra.mxu1 %vm280_vm1, %v5670_v56  ;;  %20338 = vmatprep.mubr.msk.f32.mxu1 %vm267_vm2, %v22137_v55  ;;  %v22148_v56 = vld [vmem:[#allocation5 + $0x348] sm:$0xff]  ;;  %v12447_v55 = vld [vmem:[#allocation5 + $0x6d0] sm:$0xff]  ;;  %v12448_v50 = vld [vmem:[#allocation5 + $0x6d8] sm:$0xff] }
 0x2ef   : > { %20349 = vmatprep.subr.msk.mxu1 %vm280_vm1, %v5897_v60  ;;  %17222 = vrot.lane.b32.xlu0 %v17218_v8, %s22519_s8  ;;  %v17441_v8 = vld [vmem:[%s22734_s25 + $0x4] sm:$0x77] }
 0x2f0   : > { %19426 = vmatmul.mubr.msk.f32.gmra.mrb[4].mxu0 %vm267_vm2, %v12006_v46  ;;  %17224 = vrot.lane.b32.xlu1 %v24729_v48, %s22519_s8  ;;  %v12910_v46 = vpop.permute.xlu0 %12909 }
 0x2f1   : > { %20339 = vmatmul.mubr.msk.f32.gmra.mrb[10].mxu1 %vm267_vm2, %v22138_v9  ;;  %12126 = vmatprep.mubr.f32.mxu0 %v26317_v38  ;;  %v22153_v9 = vld [vmem:[#allocation5 + $0x370] sm:$0xff]  ;;  %v12918_v34 = vsel %vm12917_vm5, %v12910_v46, %v12912_v62  ;;  %v22163_v62 = vld [vmem:[#allocation5 + $0x3c0] sm:$0xff] }
 0x2f2   : > { %20343 = vmatprep.mubr.msk.f32.mxu1 %vm267_vm2, %v22139_v2  ;;  %v16085_v2 = vcombine.high %v24377_v39, %v24377_v39  ;;  %v22167_v46 = vld [vmem:[#allocation5 + $0x3e0] sm:$0xff] }
 0x2f3   : > { %17220 = vrot.lane.b32.xlu0 %v17214_v6, %s22519_s8 }
 0x2f4   : > { %19427 = vmatmul.mubr.msk.f32.gmra.mrb[6].mxu0 %vm267_vm2, %v12007_v28  ;;  %15865 = vrot.lane.b32.xlu1 %v15858_v15, %s22514_s22  ;;  %v7255_v28 = vpop.permute.xlu1 %7254  ;;  %v24787_v20 = vpop.permute.xlu0 %7481  ;;  %v24811_v15 = vld [vmem:[%s22734_s25 + $0xc] sm:$0x77] }
 0x2f5   : > { %20344 = vmatmul.mubr.msk.f32.vlgmr.msra.gmra.mrb[8].mxu1 %vm267_vm2, %v22140_v41  ;;  %12322 = vmatprep.mubr.f32.mxu0 %v26317_v38  ;;  %v22154_v41 = vld [vmem:[#allocation5 + $0x378] sm:$0xff] }
 0x2f6   : > { %20350 = vmatpush3.msk.msra.mxu1 %vm280_vm1, %v5897_v60  ;;  %20346 = vmatprep.mubr.msk.f32.mxu1 %vm267_vm2, %v22141_v16  ;;  %v22152_v60 = vld [vmem:[#allocation5 + $0x368] sm:$0xff]  ;;  %v12672_v16 = vld [vmem:[#allocation5 + $0x6e0] sm:$0xff] }
 0x2f7   : > { %20357 = vmatprep.subr.msk.mxu1 %vm280_vm1, %v6124_v33  ;;  %16092 = vrot.lane.b32.xlu0 %v16085_v2, %s22515_s24  ;;  %s21763_s24 = smul.u32 1536, %s22432_s15 }
 0x2f8   : > { %19435 = vmatmul.mubr.msk.f32.vlgmr.msra.gmra.mrb[0].mxu0 %vm267_vm2, %v12231_v49  ;;  %v22155_v49 = vld [vmem:[#allocation5 + $0x380] sm:$0xff]  ;;  %v13139_v39 = vpop.permute.xlu1 %13138 }
 0x2f9   : > { %20347 = vmatmul.mubr.msk.f32.gmra.mrb[10].mxu1 %vm267_vm2, %v22142_v44  ;;  %12328 = vmatprep.mubr.f32.mxu0 %v26317_v38  ;;  %v24802_v44 = vpop.permute.xlu0 %13140  ;;  %s26162_s9 = scalar_lea.hbm %s26220_s3, %s21763_s24 }
 0x2fa   : > { %20351 = vmatprep.mubr.msk.f32.mxu1 %vm267_vm2, %v22143_v11  ;;  %19445 = vmatpush1.msk.msra.mxu0 %vm280_vm1, %v12464_v59  ;;  %v7032_v59 = vsel %vm7029_vm10, %v23197_v12, %v24745_v47  ;;  %v22158_v11 = vld [vmem:[#allocation5 + $0x398] sm:$0xff]  ;;  %v12673_v12 = vld [vmem:[#allocation5 + $0x6e8] sm:$0xff]  ;;  %v7259_v47 = vsel %vm26339_vm8, %v23243_v40, %v7255_v28  ;;  %v22169_v28 = vld [vmem:[#allocation5 + $0x3f0] sm:$0xff]  ;;  %vm26342_vm10 = vcmask 400384   ;;  %vm26344_vm8 = vcmask 392192  }
 0x2fb   : > { %19455 = vmatprep.subr.msk.mxu0 %vm280_vm1, %v12692_v61  ;;  %v22157_v61 = vld [vmem:[#allocation5 + $0x390] sm:$0xff]  ;;  %17451 = vrot.lane.b32.xlu0 %v24811_v15, %s22520_s26  ;;  %v12675_v40 = vld [vmem:[#allocation5 + $0x6f8] sm:$0xff] }
 0x2fc   : > { %19436 = vmatmul.mubr.msk.f32.gmra.mrb[2].mxu0 %vm267_vm2, %v12232_v57  ;;  %v13146_v57 = vsel %vm13144_vm6, %v13139_v39, %v24802_v44 }
 0x2fd   : > { %20352 = vmatmul.mubr.msk.f32.vlgmr.msra.gmra.mrb[8].mxu1 %vm267_vm2, %v22144_v30  ;;  %12334 = vmatprep.mubr.f32.mxu0 %v26317_v38  ;;  %v22159_v30 = vld [vmem:[#allocation5 + $0x3a0] sm:$0xff] }
 0x2fe   : > { %20358 = vmatpush3.msk.msra.mxu1 %vm280_vm1, %v6124_v33  ;;  %20354 = vmatprep.mubr.msk.f32.mxu1 %vm267_vm2, %v22145_v29  ;;  %v22156_v33 = vld [vmem:[#allocation5 + $0x388] sm:$0xff] }
 0x2ff   : > { %20365 = vmatprep.subr.msk.mxu1 %vm280_vm1, %v6351_v35  ;;  %v22160_v29 = vld [vmem:[#allocation5 + $0x3a8] sm:$0xff] }
 0x300   : > { %19437 = vmatmul.mubr.msk.f32.gmra.mrb[4].mxu0 %vm267_vm2, %v12233_v51  ;;  %v13137_v51 = vpop.permute.xlu1 %13136 }
 0x301   : > { %20355 = vmatmul.mubr.msk.f32.gmra.mrb[10].mxu1 %vm267_vm2, %v22146_v37  ;;  %12340 = vmatprep.mubr.f32.mxu0 %v26317_v38  ;;  %v7709_v37 = vpop.permute.xlu0 %7708  ;;  %v13145_v6 = vsel %vm13144_vm6, %v13137_v51, %v13139_v39  ;;  %v22172_v39 = vld [vmem:[#allocation5 + $0x408] sm:$0xff] }
 0x302   : > { %20359 = vmatprep.mubr.msk.f32.mxu1 %vm267_vm2, %v22147_v26  ;;  %v22162_v26 = vld [vmem:[#allocation5 + $0x3b8] sm:$0xff] }
 0x304   : > { %19438 = vmatmul.mubr.msk.f32.gmra.mrb[6].mxu0 %vm267_vm2, %v12234_v4  ;;  %v24830_v4 = vpop.permute.xlu1 %7935 }
 0x305   : > { %20360 = vmatmul.mubr.msk.f32.vlgmr.msra.gmra.mrb[8].mxu1 %vm267_vm2, %v22148_v56  ;;  %12549 = vmatprep.mubr.f32.mxu0 %v26317_v38  ;;  %v13366_v56 = vpop.permute.xlu0 %13365 }
 0x306   : > { %20366 = vmatpush3.msk.msra.mxu1 %vm280_vm1, %v6351_v35  ;;  %20362 = vmatprep.mubr.msk.f32.mxu1 %vm267_vm2, %v22149_v24  ;;  %v16312_v35 = vcombine.high %v24412_v19, %v24412_v19  ;;  %v22161_v19 = vld [vmem:[#allocation5 + $0x3b0] sm:$0xff]  ;;  %v7486_v24 = vsel %vm26340_vm11, %v23279_v42, %v24787_v20  ;;  %v24853_v42 = vld [vmem:[#allocation5 + $0x708] sm:$0xff]  ;;  %v16538_v20 = vcombine.high %v24475_v43, %v24475_v43  ;;  %vm13825_vm11 = vcmask 867328  }
 0x307   : > { %20373 = vmatprep.subr.msk.mxu1 %vm280_vm1, %v6578_v18 }
 0x308   : > { %19446 = vmatmul.mubr.msk.f32.vlgmr.msra.gmra.mrb[0].mxu0 %vm267_vm2, %v12445_v58  ;;  %16319 = vrot.lane.b32.xlu0 %v16312_v35, %s26336_s30  ;;  %v22164_v58 = vld [vmem:[#allocation5 + $0x3c8] sm:$0xff]  ;;  %v16765_v35 = vcombine.high %v24554_v14, %v24554_v14  ;;  %v22177_v14 = vld [vmem:[#allocation5 + $0x430] sm:$0xff] }
 0x309   : > { %20363 = vmatmul.mubr.msk.f32.gmra.mrb[10].mxu1 %vm267_vm2, %v22150_v1  ;;  %12555 = vmatprep.mubr.f32.mxu0 %v26317_v38 }
 0x30a   : > { %20367 = vmatprep.mubr.msk.f32.mxu1 %vm267_vm2, %v22151_v7  ;;  %19456 = vmatpush1.msk.msra.mxu0 %vm280_vm1, %v12691_v21  ;;  %v22165_v21 = vld [vmem:[#allocation5 + $0x3d0] sm:$0xff]  ;;  %v22166_v7 = vld [vmem:[#allocation5 + $0x3d8] sm:$0xff] }
 0x30b   : > { %19466 = vmatprep.subr.msk.mxu0 %vm280_vm1, %v12919_v3  ;;  %v24844_v3 = vpop.permute.xlu1 %13367 }
 0x30c   : > { %19447 = vmatmul.mubr.msk.f32.gmra.mrb[2].mxu0 %vm267_vm2, %v12446_v27  ;;  %v13373_v1 = vsel %vm13371_vm9, %v13366_v56, %v24844_v3  ;;  %v17445_v27 = vcombine.high %v17441_v8, %v17441_v8 }
 0x30d   : > { %20368 = vmatmul.mubr.msk.f32.vlgmr.msra.gmra.mrb[8].mxu1 %vm267_vm2, %v22152_v60  ;;  %12561 = vmatprep.mubr.f32.mxu0 %v26317_v38  ;;  %v13364_v60 = vpop.permute.xlu0 %13363 }
 0x30e   : > { %20374 = vmatpush3.msk.msra.mxu1 %vm280_vm1, %v6578_v18  ;;  %20370 = vmatprep.mubr.msk.f32.mxu1 %vm267_vm2, %v22153_v9  ;;  %v12899_v18 = vld [vmem:[#allocation5 + $0x700] sm:$0xff]  ;;  %v7713_v9 = vsel %vm26341_vm14, %v23325_v31, %v7709_v37  ;;  %v24879_v31 = vld [vmem:[#allocation5 + $0x718] sm:$0xff]  ;;  %vm26346_vm14 = vcmask 261120  }
 0x30f   : > { %20381 = vmatprep.subr.msk.mxu1 %vm280_vm1, %v6805_v52  ;;  %17449 = vrot.lane.b32.xlu1 %v17445_v27, %s22520_s26  ;;  %v8163_v2 = vpop.permute.xlu1 %8162  ;;  %v17668_v27 = vld [vmem:[%s22734_s25 + $0x4] sm:$0x77] }
 0x310   : > { %19448 = vmatmul.mubr.msk.f32.gmra.mrb[4].mxu0 %vm267_vm2, %v12447_v55  ;;  %v22168_v55 = vld [vmem:[#allocation5 + $0x3e8] sm:$0xff] }
 0x311   : > { %20371 = vmatmul.mubr.msk.f32.gmra.mrb[10].mxu1 %vm267_vm2, %v22154_v41  ;;  %12567 = vmatprep.mubr.f32.mxu0 %v26317_v38  ;;  %v24875_v41 = vpop.permute.xlu0 %8389 }
 0x312   : > { %20375 = vmatprep.mubr.msk.f32.mxu1 %vm267_vm2, %v22155_v49  ;;  %v22171_v49 = vld [vmem:[#allocation5 + $0x400] sm:$0xff] }
 0x313   : > { %17447 = vrot.lane.b32.xlu1 %v17441_v8, %s22520_s26  ;;  %v13593_v43 = vpop.permute.xlu1 %13592 }
 0x314   : > { %19449 = vmatmul.mubr.msk.f32.gmra.mrb[6].mxu0 %vm267_vm2, %v12448_v50  ;;  %v22170_v50 = vld [vmem:[#allocation5 + $0x3f8] sm:$0xff] }
 0x315   : > { %20376 = vmatmul.mubr.msk.f32.vlgmr.msra.gmra.mrb[8].mxu1 %vm267_vm2, %v22156_v33  ;;  %12776 = vmatprep.mubr.f32.mxu0 %v26317_v38  ;;  %v24887_v33 = vld [vmem:[#allocation5 + $0x720] sm:$0xff] }
 0x316   : > { %20382 = vmatpush3.msk.msra.mxu1 %vm280_vm1, %v6805_v52  ;;  %20378 = vmatprep.mubr.msk.f32.mxu1 %vm267_vm2, %v22157_v61  ;;  %v24863_v52 = vld [vmem:[#allocation5 + $0x710] sm:$0xff]  ;;  %v13372_v61 = vsel %vm13371_vm9, %v13364_v60, %v13366_v56  ;;  %v22182_v60 = vld [vmem:[#allocation5 + $0x458] sm:$0xff] }
 0x317   : > { %20389 = vmatprep.subr.msk.mxu1 %vm280_vm1, %v7032_v59  ;;  %16545 = vrot.lane.b32.xlu1 %v16538_v20, %s22516_s7  ;;  %v13591_v51 = vpop.permute.xlu1 %13590  ;;  %v24969_v20 = vld [vmem:[#allocation5 + $0x750] sm:$0xff] }
 0x318   : > { %19457 = vmatmul.mubr.msk.f32.vlgmr.msra.gmra.mrb[0].mxu0 %vm267_vm2, %v12672_v16  ;;  %v7940_v16 = vsel %vm26342_vm10, %v23369_v23, %v24830_v4  ;;  %v24904_v23 = vld [vmem:[#allocation5 + $0x728] sm:$0xff]  ;;  %v13599_v8 = vsel %vm13598_vm3, %v13591_v51, %v13593_v43  ;;  %vm26348_vm10 = vcmask 252928   ;;  %v26349_v51 = vld [vmem:[#allocation15_spill] sm:$0xff] }
 0x319   : > { %20379 = vmatmul.mubr.msk.f32.gmra.mrb[10].mxu1 %vm267_vm2, %v22158_v11  ;;  %12782 = vmatprep.mubr.f32.mxu0 %v26317_v38  ;;  %v22174_v11 = vld [vmem:[#allocation5 + $0x418] sm:$0xff] }
 0x31a   : > { %20383 = vmatprep.mubr.msk.f32.mxu1 %vm267_vm2, %v22159_v30  ;;  %19467 = vmatpush1.msk.msra.mxu0 %vm280_vm1, %v12918_v34  ;;  %v24895_v34 = vpop.permute.xlu0 %13594  ;;  %v22175_v30 = vld [vmem:[#allocation5 + $0x420] sm:$0xff] }
 0x31b   : > { %19477 = vmatprep.subr.msk.mxu0 %vm280_vm1, %v13146_v57  ;;  %v13600_v57 = vsel %vm13598_vm3, %v13593_v43, %v24895_v34  ;;  %v24930_v4 = vpop.permute.xlu1 %8843 }
 0x31c   : > { %19458 = vmatmul.mubr.msk.f32.gmra.mrb[2].mxu0 %vm267_vm2, %v12673_v12  ;;  %v24907_v12 = vld [vmem:[%s22734_s25 + $0xc] sm:$0x77] }
 0x31d   : > { %20384 = vmatmul.mubr.msk.f32.vlgmr.msra.gmra.mrb[8].mxu1 %vm267_vm2, %v22160_v29  ;;  %12788 = vmatprep.mubr.f32.mxu0 %v26317_v38  ;;  %v22176_v29 = vld [vmem:[#allocation5 + $0x428] sm:$0xff] }
 0x31e   : > { %20390 = vmatpush3.msk.msra.mxu1 %vm280_vm1, %v7032_v59  ;;  %20386 = vmatprep.mubr.msk.f32.mxu1 %vm267_vm2, %v22161_v19  ;;  %v22173_v59 = vld [vmem:[#allocation5 + $0x410] sm:$0xff]  ;;  %v8617_v37 = vpop.permute.xlu0 %8616 }
 0x31f   : > { %20397 = vmatprep.subr.msk.mxu1 %vm280_vm1, %v7259_v47  ;;  %17678 = vrot.lane.b32.xlu1 %v24907_v12, %s22521_s5 }
 0x320   : > { %19459 = vmatmul.mubr.msk.f32.gmra.mrb[4].mxu0 %vm267_vm2, %v12674_v10  ;;  %v24920_v10 = vld [vmem:[#allocation5 + $0x730] sm:$0xff] }
 0x321   : > { %20387 = vmatmul.mubr.msk.f32.gmra.mrb[10].mxu1 %vm267_vm2, %v22162_v26  ;;  %12794 = vmatprep.mubr.f32.mxu0 %v26317_v38  ;;  %v22178_v26 = vld [vmem:[#allocation5 + $0x438] sm:$0xff] }
 0x322   : > { %20391 = vmatprep.mubr.msk.f32.mxu1 %vm267_vm2, %v22163_v62  ;;  %v22179_v62 = vld [vmem:[#allocation5 + $0x440] sm:$0xff]  ;;  %v13820_v56 = vpop.permute.xlu0 %13819 }
 0x323   : > { %16772 = vrot.lane.b32.xlu1 %v16765_v35, %s22517_s6 }
 0x324   : > { %19460 = vmatmul.mubr.msk.f32.gmra.mrb[6].mxu0 %vm267_vm2, %v12675_v40  ;;  %v24934_v40 = vld [vmem:[#allocation5 + $0x738] sm:$0xff] }
 0x325   : > { %20392 = vmatmul.mubr.msk.f32.vlgmr.msra.gmra.mrb[8].mxu1 %vm267_vm2, %v22164_v58  ;;  %13003 = vmatprep.mubr.f32.mxu0 %v26317_v38  ;;  %v22180_v58 = vld [vmem:[#allocation5 + $0x448] sm:$0xff] }
 0x326   : > { %20398 = vmatpush3.msk.msra.mxu1 %vm280_vm1, %v7259_v47  ;;  %20394 = vmatprep.mubr.msk.f32.mxu1 %vm267_vm2, %v22165_v21  ;;  %v26343_v47 = vld [vmem:[#allocation12_spill] sm:$0xff] }
 0x327   : > { %20405 = vmatprep.subr.msk.mxu1 %vm280_vm1, %v7486_v24  ;;  %v8167_v19 = vsel %vm26344_vm8, %v26343_v47, %v8163_v2  ;;  %v22184_v2 = vld [vmem:[#allocation5 + $0x468] sm:$0xff]  ;;  %vm14052_vm8 = vcmask 859136  }
 0x328   : > { %19468 = vmatmul.mubr.msk.f32.vlgmr.msra.gmra.mrb[0].mxu0 %vm267_vm2, %v12899_v18  ;;  %v24941_v18 = vld [vmem:[#allocation5 + $0x740] sm:$0xff] }
 0x329   : > { %20395 = vmatmul.mubr.msk.f32.gmra.mrb[10].mxu1 %vm267_vm2, %v22166_v7  ;;  %13009 = vmatprep.mubr.f32.mxu0 %v26317_v38 }
 0x32a   : > { %20399 = vmatprep.mubr.msk.f32.mxu1 %vm267_vm2, %v22167_v46  ;;  %19478 = vmatpush1.msk.msra.mxu0 %vm280_vm1, %v13145_v6  ;;  %v22181_v6 = vld [vmem:[#allocation5 + $0x450] sm:$0xff]  ;;  %v17672_v46 = vcombine.high %v17668_v27, %v17668_v27 }
 0x32b   : > { %19488 = vmatprep.subr.msk.mxu0 %vm280_vm1, %v13373_v1  ;;  %v24949_v1 = vpop.permute.xlu1 %13821 }
 0x32c   : > { %19469 = vmatmul.mubr.msk.f32.gmra.mrb[2].mxu0 %vm267_vm2, %v24853_v42  ;;  %v13827_v7 = vsel %vm13825_vm11, %v13820_v56, %v24949_v1  ;;  %17676 = vrot.lane.b32.xlu0 %v17672_v46, %s22521_s5  ;;  %v22194_v46 = vld [vmem:[#allocation5 + $0x4b8] sm:$0xff] }
 0x32d   : > { %20400 = vmatmul.mubr.msk.f32.vlgmr.msra.gmra.mrb[8].mxu1 %vm267_vm2, %v22168_v55  ;;  %13015 = vmatprep.mubr.f32.mxu0 %v26317_v38  ;;  %v24959_v55 = vld [vmem:[#allocation5 + $0x748] sm:$0xff] }
 0x32e   : > { %20406 = vmatpush3.msk.msra.mxu1 %vm280_vm1, %v7486_v24  ;;  %20402 = vmatprep.mubr.msk.f32.mxu1 %vm267_vm2, %v22169_v28  ;;  %v26345_v24 = vld [vmem:[#allocation13_spill] sm:$0xff]  ;;  %v13818_v28 = vpop.permute.xlu0 %13817 }
 0x32f   : > { %20413 = vmatprep.subr.msk.mxu1 %vm280_vm1, %v7713_v9  ;;  %v8394_v21 = vsel %vm26346_vm14, %v26345_v24, %v24875_v41  ;;  %v26347_v41 = vld [vmem:[#allocation14_spill] sm:$0xff]  ;;  %v9071_v43 = vpop.permute.xlu1 %9070  ;;  %vm26350_vm14 = vcmask 244736   ;;  %v13826_v47 = vsel %vm13825_vm11, %v13818_v28, %v13820_v56  ;;  %v22192_v24 = vld [vmem:[#allocation5 + $0x4a8] sm:$0xff] }
 0x330   : > { %19470 = vmatmul.mubr.msk.f32.gmra.mrb[4].mxu0 %vm267_vm2, %v24863_v52  ;;  %17674 = vrot.lane.b32.xlu0 %v17668_v27, %s22521_s5  ;;  %v8848_v35 = vsel %vm26350_vm14, %v26349_v51, %v24930_v4  ;;  %v25010_v4 = vld [vmem:[#allocation5 + $0x768] sm:$0xff]  ;;  %vm26354_vm14 = vcmask 228352  }
 0x331   : > { %20403 = vmatmul.mubr.msk.f32.gmra.mrb[10].mxu1 %vm267_vm2, %v22170_v50  ;;  %13021 = vmatprep.mubr.f32.mxu0 %v26317_v38  ;;  %v8621_v50 = vsel %vm26348_vm10, %v26347_v41, %v8617_v37  ;;  %v22190_v37 = vld [vmem:[#allocation5 + $0x498] sm:$0xff]  ;;  %vm26352_vm10 = vcmask 236544   ;;  %v25047_v41 = vld [vmem:[#allocation5 + $0x780] sm:$0xff] }
 0x332   : > { %20407 = vmatprep.mubr.msk.f32.mxu1 %vm267_vm2, %v22171_v49  ;;  %v22185_v49 = vld [vmem:[#allocation5 + $0x470] sm:$0xff] }
 0x334   : > { %19471 = vmatmul.mubr.msk.f32.gmra.mrb[6].mxu0 %vm267_vm2, %v24879_v31 }
 0x335   : > { %20408 = vmatmul.mubr.msk.f32.vlgmr.msra.gmra.mrb[8].mxu1 %vm267_vm2, %v22172_v39  ;;  %13230 = vmatprep.mubr.f32.mxu0 %v26317_v38  ;;  %v16992_v39 = vcombine.high %v24644_v17, %v24644_v17  ;;  %v14047_v17 = vpop.permute.xlu1 %14046 }
 0x336   : > { %20414 = vmatpush3.msk.msra.mxu1 %vm280_vm1, %v7713_v9  ;;  %20410 = vmatprep.mubr.msk.f32.mxu1 %vm267_vm2, %v22173_v59  ;;  %v22183_v9 = vld [vmem:[#allocation5 + $0x460] sm:$0xff]  ;;  %v22186_v59 = vld [vmem:[#allocation5 + $0x478] sm:$0xff] }
 0x337   : > { %20421 = vmatprep.subr.msk.mxu1 %vm280_vm1, %v7940_v16  ;;  %16999 = vrot.lane.b32.xlu0 %v16992_v39, %s22518_s28  ;;  %s22524_s28 = smov [#allocation8]  }
 0x338   : > { %19479 = vmatmul.mubr.msk.f32.vlgmr.msra.gmra.mrb[0].mxu0 %vm267_vm2, %v24887_v33 }
 0x339   : > { %20411 = vmatmul.mubr.msk.f32.gmra.mrb[10].mxu1 %vm267_vm2, %v22174_v11  ;;  %13236 = vmatprep.mubr.f32.mxu0 %v26317_v38  ;;  %v22188_v11 = vld [vmem:[#allocation5 + $0x488] sm:$0xff]  ;;  %v14045_v56 = vpop.permute.xlu1 %14044 }
 0x33a   : > { %20415 = vmatprep.mubr.msk.f32.mxu1 %vm267_vm2, %v22175_v30  ;;  %19489 = vmatpush1.msk.msra.mxu0 %vm280_vm1, %v13372_v61  ;;  %v24985_v61 = vld [vmem:[#allocation5 + $0x758] sm:$0xff]  ;;  %v24993_v30 = vld [vmem:[#allocation5 + $0x760] sm:$0xff]  ;;  %v14053_v39 = vsel %vm14052_vm8, %v14045_v56, %v14047_v17  ;;  %v22201_v56 = vld [vmem:[#allocation5 + $0x4f0] sm:$0xff] }
 0x33b   : > { %19499 = vmatprep.subr.msk.mxu0 %vm280_vm1, %v13600_v57  ;;  %v22187_v57 = vld [vmem:[#allocation5 + $0x480] sm:$0xff] }
 0x33c   : > { %19480 = vmatmul.mubr.msk.f32.gmra.mrb[2].mxu0 %vm267_vm2, %v24904_v23 }
 0x33d   : > { %20416 = vmatmul.mubr.msk.f32.vlgmr.msra.gmra.mrb[8].mxu1 %vm267_vm2, %v22176_v29  ;;  %13242 = vmatprep.mubr.f32.mxu0 %v26317_v38  ;;  %v22189_v29 = vld [vmem:[#allocation5 + $0x490] sm:$0xff] }
 0x33e   : > { %20422 = vmatpush3.msk.msra.mxu1 %vm280_vm1, %v7940_v16  ;;  %20418 = vmatprep.mubr.msk.f32.mxu1 %vm267_vm2, %v22177_v14  ;;  %v24981_v16 = vpop.permute.xlu0 %9297 }
 0x33f   : > { %20429 = vmatprep.subr.msk.mxu1 %vm280_vm1, %v8167_v19 }
 0x340   : > { %19481 = vmatmul.mubr.msk.f32.gmra.mrb[4].mxu0 %vm267_vm2, %v24920_v10 }
 0x341   : > { %20419 = vmatmul.mubr.msk.f32.gmra.mrb[10].mxu1 %vm267_vm2, %v22178_v26  ;;  %13248 = vmatprep.mubr.f32.mxu0 %v26317_v38  ;;  %v25013_v26 = vld [vmem:[%s22734_s25 + $0xc] sm:$0x77] }
 0x342   : > { %20423 = vmatprep.mubr.msk.f32.mxu1 %vm267_vm2, %v22179_v62  ;;  %v22191_v62 = vld [vmem:[#allocation5 + $0x4a0] sm:$0xff]  ;;  %17905 = vrot.lane.b32.xlu0 %v25013_v26, %s22522_s21 }
 0x344   : > { %19482 = vmatmul.mubr.msk.f32.gmra.mrb[6].mxu0 %vm267_vm2, %v24934_v40 }
 0x345   : > { %20424 = vmatmul.mubr.msk.f32.vlgmr.msra.gmra.mrb[8].mxu1 %vm267_vm2, %v22180_v58  ;;  %13457 = vmatprep.mubr.f32.mxu0 %v26317_v38  ;;  %v17219_v58 = vcombine.high %v24729_v48, %v24729_v48  ;;  %v22193_v48 = vld [vmem:[#allocation5 + $0x4b0] sm:$0xff] }
 0x346   : > { %20430 = vmatpush3.msk.msra.mxu1 %vm280_vm1, %v8167_v19  ;;  %20426 = vmatprep.mubr.msk.f32.mxu1 %vm267_vm2, %v22181_v6  ;;  %v25001_v19 = vpop.permute.xlu0 %14048  ;;  %v26351_v6 = vld [vmem:[#allocation16_spill] sm:$0xff] }
 0x347   : > { %20437 = vmatprep.subr.msk.mxu1 %vm280_vm1, %v8394_v21  ;;  %v14054_v14 = vsel %vm14052_vm8, %v14047_v17, %v25001_v19  ;;  %17226 = vrot.lane.b32.xlu0 %v17219_v58, %s22519_s8  ;;  %v22199_v17 = vld [vmem:[#allocation5 + $0x4e0] sm:$0xff]  ;;  %s22358_s8 = sshll.u32 %s22524_s28, 4  ;;  %s22359_s8 = int_to_ptr.vmem [resolvable:$false] %s22358_s8 }
 0x348   : > { %19490 = vmatmul.mubr.msk.f32.vlgmr.msra.gmra.mrb[0].mxu0 %vm267_vm2, %v24941_v18 }
 0x349   : > { %20427 = vmatmul.mubr.msk.f32.gmra.mrb[10].mxu1 %vm267_vm2, %v22182_v60  ;;  %13463 = vmatprep.mubr.f32.mxu0 %v26317_v38  ;;  %v25040_v60 = vld [vmem:[#allocation5 + $0x778] sm:$0xff] }
 0x34a   : > { %20431 = vmatprep.mubr.msk.f32.mxu1 %vm267_vm2, %v22183_v9  ;;  %19500 = vmatpush1.msk.msra.mxu0 %vm280_vm1, %v13599_v8  ;;  %v9075_v8 = vsel %vm26352_vm10, %v26351_v6, %v9071_v43  ;;  %v9525_v27 = vpop.permute.xlu0 %9524  ;;  %v22195_v9 = vld [vmem:[#allocation5 + $0x4c0] sm:$0xff]  ;;  %v22197_v43 = vld [vmem:[#allocation5 + $0x4d0] sm:$0xff]  ;;  %vm26355_vm10 = vcmask 850944  }
 0x34b   : > { %19510 = vmatprep.subr.msk.mxu0 %vm280_vm1, %v13827_v7  ;;  %v25036_v7 = vpop.permute.xlu1 %9751 }
 0x34c   : > { %19491 = vmatmul.mubr.msk.f32.gmra.mrb[2].mxu0 %vm267_vm2, %v24959_v55 }
 0x34d   : > { %20432 = vmatmul.mubr.msk.f32.vlgmr.msra.gmra.mrb[8].mxu1 %vm267_vm2, %v22184_v2  ;;  %13469 = vmatprep.mubr.f32.mxu0 %v26317_v38  ;;  %v22196_v2 = vld [vmem:[#allocation5 + $0x4c8] sm:$0xff] }
 0x34e   : > { %20438 = vmatpush3.msk.msra.mxu1 %vm280_vm1, %v8394_v21  ;;  %20434 = vmatprep.mubr.msk.f32.mxu1 %vm267_vm2, %v22185_v49  ;;  %v25026_v21 = vld [vmem:[#allocation5 + $0x770] sm:$0xff]  ;;  %v14274_v28 = vpop.permute.xlu0 %14273 }
 0x34f   : > { %20445 = vmatprep.subr.msk.mxu1 %vm280_vm1, %v8621_v50 }
 0x350   : > { %19492 = vmatmul.mubr.msk.f32.gmra.mrb[4].mxu0 %vm267_vm2, %v24969_v20 }
 0x351   : > { %20435 = vmatmul.mubr.msk.f32.gmra.mrb[10].mxu1 %vm267_vm2, %v22186_v59  ;;  %13475 = vmatprep.mubr.f32.mxu0 %v26317_v38  ;;  %v25055_v59 = vpop.permute.xlu1 %14275 }
 0x352   : > { %20439 = vmatprep.mubr.msk.f32.mxu1 %vm267_vm2, %v22187_v57  ;;  %v17895_v57 = vld [vmem:[%s22734_s25 + $0x4] sm:$0x77] }
 0x353   : > { %v17899_v51 = vcombine.high %v17895_v57, %v17895_v57 }
 0x354   : > { %19493 = vmatmul.mubr.msk.f32.gmra.mrb[6].mxu0 %vm267_vm2, %v24985_v61 }
 0x355   : > { %20440 = vmatmul.mubr.msk.f32.vlgmr.msra.gmra.mrb[8].mxu1 %vm267_vm2, %v22188_v11  ;;  %13684 = vmatprep.mubr.f32.mxu0 %v26317_v38  ;;  %v14280_v11 = vsel %vm26355_vm10, %v14274_v28, %v25055_v59  ;;  %v9979_v58 = vpop.permute.xlu1 %9978  ;;  %vm26284_vm10 = vcmask 719872  }
 0x356   : > { %20446 = vmatpush3.msk.msra.mxu1 %vm280_vm1, %v8621_v50  ;;  %20442 = vmatprep.mubr.msk.f32.mxu1 %vm267_vm2, %v22189_v29  ;;  %v26353_v50 = vld [vmem:[#allocation17_spill] sm:$0xff]  ;;  %v14272_v29 = vpop.permute.xlu0 %14271 }
 0x357   : > { %20453 = vmatprep.subr.msk.mxu1 %vm280_vm1, %v8848_v35  ;;  %v9302_v49 = vsel %vm26354_vm14, %v26353_v50, %v24981_v16  ;;  %v22198_v16 = vld [vmem:[#allocation5 + $0x4d8] sm:$0xff]  ;;  %17903 = vrot.lane.b32.xlu1 %v17899_v51, %s22522_s21  ;;  %vm26357_vm14 = vcmask 220160  }
 0x358   : > { %19501 = vmatmul.mubr.msk.f32.vlgmr.msra.gmra.mrb[0].mxu0 %vm267_vm2, %v24993_v30  ;;  %v25119_v51 = vld [vmem:[%s22734_s25 + $0xc] sm:$0x77] }
 0x359   : > { %20443 = vmatmul.mubr.msk.f32.gmra.mrb[10].mxu1 %vm267_vm2, %v22190_v37  ;;  %13690 = vmatprep.mubr.f32.mxu0 %v26317_v38  ;;  %v26356_v37 = vld [vmem:[#allocation18_spill] sm:$0xff] }
 0x35a   : > { %20447 = vmatprep.mubr.msk.f32.mxu1 %vm267_vm2, %v22191_v62  ;;  %19511 = vmatpush1.msk.msra.mxu0 %vm280_vm1, %v13826_v47  ;;  %v22200_v47 = vld [vmem:[#allocation5 + $0x4e8] sm:$0xff]  ;;  %v9529_v62 = vsel %vm26357_vm14, %v26356_v37, %v9525_v27  ;;  %v25087_v6 = vpop.permute.xlu0 %10205  ;;  %v22203_v27 = vld [vmem:[#allocation5 + $0x500] sm:$0xff]  ;;  %vm26359_vm14 = vcmask 211968  }
 0x35b   : > { %19521 = vmatprep.subr.msk.mxu0 %vm280_vm1, %v14054_v14  ;;  %v25075_v14 = vld [vmem:[#allocation5 + $0x790] sm:$0xff]  ;;  %17901 = vrot.lane.b32.xlu1 %v17895_v57, %s22522_s21  ;;  %v26361_v37 = vld [vmem:[#allocation20_spill] sm:$0xff] }
 0x35c   : > { %19502 = vmatmul.mubr.msk.f32.gmra.mrb[2].mxu0 %vm267_vm2, %v25010_v4 }
 0x35d   : > { %20448 = vmatmul.mubr.msk.f32.vlgmr.msra.gmra.mrb[8].mxu1 %vm267_vm2, %v22192_v24  ;;  %13696 = vmatprep.mubr.f32.mxu0 %v26317_v38  ;;  %v17446_v24 = vcombine.high %v24811_v15, %v24811_v15  ;;  %v14500_v15 = vpop.permute.xlu1 %14499 }
 0x35e   : > { %20454 = vmatpush3.msk.msra.mxu1 %vm280_vm1, %v8848_v35  ;;  %20450 = vmatprep.mubr.msk.f32.mxu1 %vm267_vm2, %v22193_v48  ;;  %v25065_v35 = vld [vmem:[#allocation5 + $0x788] sm:$0xff]  ;;  %v25091_v48 = vld [vmem:[#allocation5 + $0x798] sm:$0xff] }
 0x35f   : > { %20461 = vmatprep.subr.msk.mxu1 %vm280_vm1, %v9075_v8  ;;  %17453 = vrot.lane.b32.xlu1 %v17446_v24, %s22520_s26  ;;  %s22360_s26 = scalar_lea.vmem %s22359_s8, 3072 }
 0x360   : > { %19503 = vmatmul.mubr.msk.f32.gmra.mrb[4].mxu0 %vm267_vm2, %v25026_v21 }
 0x361   : > { %20451 = vmatmul.mubr.msk.f32.gmra.mrb[10].mxu1 %vm267_vm2, %v22194_v46  ;;  %13702 = vmatprep.mubr.f32.mxu0 %v26317_v38  ;;  %v22204_v46 = vld [vmem:[#allocation5 + $0x508] sm:$0xff] }
 0x362   : > { %20455 = vmatprep.mubr.msk.f32.mxu1 %vm267_vm2, %v22195_v9  ;;  %v25099_v9 = vld [vmem:[#allocation5 + $0x7a0] sm:$0xff] }
 0x363   : > { %18132 = vrot.lane.b32.xlu1 %v25119_v51, %s22523_s29 }
 0x364   : > { %19504 = vmatmul.mubr.msk.f32.gmra.mrb[6].mxu0 %vm267_vm2, %v25040_v60 }
 0x365   : > { %20456 = vmatmul.mubr.msk.f32.vlgmr.msra.gmra.mrb[8].mxu1 %vm267_vm2, %v22196_v2  ;;  %13911 = vmatprep.mubr.f32.mxu0 %v26317_v38  ;;  %v26358_v2 = vld [vmem:[#allocation19_spill] sm:$0xff] }
 0x366   : > { %20462 = vmatpush3.msk.msra.mxu1 %vm280_vm1, %v9075_v8  ;;  %20458 = vmatprep.mubr.msk.f32.mxu1 %vm267_vm2, %v22197_v43  ;;  %v22202_v8 = vld [vmem:[#allocation5 + $0x4f8] sm:$0xff]  ;;  %v9756_v50 = vsel %vm26359_vm14, %v26358_v2, %v25036_v7  ;;  %v14279_v43 = vsel %vm26360_vm13, %v14272_v29, %v14274_v28  ;;  %v25116_v7 = vld [vmem:[#allocation5 + $0x7a8] sm:$0xff]  ;;  %v22207_v28 = vld [vmem:[#allocation5 + $0x520] sm:$0xff]  ;;  %vm26362_vm13 = vcmask 203776   ;;  %vm14732_vm14 = vcmask 711680  }
 0x367   : > { %20469 = vmatprep.subr.msk.mxu1 %vm280_vm1, %v9302_v49  ;;  %v22208_v29 = vld [vmem:[#allocation5 + $0x528] sm:$0xff] }
 0x368   : > { %19512 = vmatmul.mubr.msk.f32.vlgmr.msra.gmra.mrb[0].mxu0 %vm267_vm2, %v25047_v41  ;;  %v22212_v2 = vld [vmem:[#allocation5 + $0x548] sm:$0xff] }
 0x369   : > { %20459 = vmatmul.mubr.msk.f32.gmra.mrb[10].mxu1 %vm267_vm2, %v22198_v16  ;;  %13917 = vmatprep.mubr.f32.mxu0 %v26317_v38  ;;  %v14498_v16 = vpop.permute.xlu1 %14497 }
 0x36a   : > { %20463 = vmatprep.mubr.msk.f32.mxu1 %vm267_vm2, %v22199_v17  ;;  %19522 = vmatpush1.msk.msra.mxu0 %vm280_vm1, %v14053_v39  ;;  %v25107_v39 = vpop.permute.xlu0 %14501  ;;  %v17673_v17 = vcombine.high %v24907_v12, %v24907_v12  ;;  %v22209_v12 = vld [vmem:[#allocation5 + $0x530] sm:$0xff] }
 0x36b   : > { %19532 = vmatprep.subr.msk.mxu0 %vm280_vm1, %v14280_v11  ;;  %v14507_v57 = vsel %vm26284_vm10, %v14500_v15, %v25107_v39  ;;  %v22206_v11 = vld [vmem:[#allocation5 + $0x518] sm:$0xff] }
 0x36c   : > { %19513 = vmatmul.mubr.msk.f32.gmra.mrb[2].mxu0 %vm267_vm2, %v25065_v35  ;;  %17680 = vrot.lane.b32.xlu1 %v17673_v17, %s22521_s5  ;;  %v18122_v17 = vld [vmem:[%s22734_s25 + $0x4] sm:$0x77] }
 0x36d   : > { %20464 = vmatmul.mubr.msk.f32.vlgmr.msra.gmra.mrb[8].mxu1 %vm267_vm2, %v22200_v47  ;;  %13923 = vmatprep.mubr.f32.mxu0 %v26317_v38  ;;  %v25132_v47 = vld [vmem:[#allocation5 + $0x7b0] sm:$0xff]  ;;  %v25142_v24 = vpop.permute.xlu1 %10659 }
 0x36e   : > { %20470 = vmatpush3.msk.msra.mxu1 %vm280_vm1, %v9302_v49  ;;  %20466 = vmatprep.mubr.msk.f32.mxu1 %vm267_vm2, %v22201_v56  ;;  %v22205_v49 = vld [vmem:[#allocation5 + $0x510] sm:$0xff]  ;;  %v10433_v56 = vpop.permute.xlu0 %10432 }
 0x36f   : > { %20477 = vmatprep.subr.msk.mxu1 %vm280_vm1, %v9529_v62 }
 0x370   : > { %19514 = vmatmul.mubr.msk.f32.gmra.mrb[4].mxu0 %vm267_vm2, %v25075_v14 }
 0x371   : > { %20467 = vmatmul.mubr.msk.f32.gmra.mrb[10].mxu1 %vm267_vm2, %v22202_v8  ;;  %13929 = vmatprep.mubr.f32.mxu0 %v26317_v38  ;;  %v22210_v8 = vld [vmem:[#allocation5 + $0x538] sm:$0xff] }
 0x372   : > { %20471 = vmatprep.mubr.msk.f32.mxu1 %vm267_vm2, %v22203_v27  ;;  %v22211_v27 = vld [vmem:[#allocation5 + $0x540] sm:$0xff] }
 0x374   : > { %19515 = vmatmul.mubr.msk.f32.gmra.mrb[6].mxu0 %vm267_vm2, %v25091_v48 }
 0x375   : > { %20472 = vmatmul.mubr.msk.f32.vlgmr.msra.gmra.mrb[8].mxu1 %vm267_vm2, %v22204_v46  ;;  %14138 = vmatprep.mubr.f32.mxu0 %v26317_v38  ;;  %v25151_v46 = vpop.permute.xlu0 %14726 }
 0x376   : > { %20478 = vmatpush3.msk.msra.mxu1 %vm280_vm1, %v9529_v62  ;;  %20474 = vmatprep.mubr.msk.f32.mxu1 %vm267_vm2, %v22205_v49  ;;  %v9983_v62 = vsel %vm26362_vm13, %v26361_v37, %v9979_v58  ;;  %v25146_v58 = vld [vmem:[#allocation5 + $0x7b8] sm:$0xff]  ;;  %v26363_v49 = vld [vmem:[#allocation21_spill] sm:$0xff]  ;;  %vm26364_vm13 = vcmask 195584  }
 0x377   : > { %20485 = vmatprep.subr.msk.mxu1 %vm280_vm1, %v9756_v50  ;;  %v22214_v37 = vld [vmem:[#allocation5 + $0x558] sm:$0xff] }
 0x378   : > { %19523 = vmatmul.mubr.msk.f32.vlgmr.msra.gmra.mrb[0].mxu0 %vm267_vm2, %v25099_v9 }
 0x379   : > { %20475 = vmatmul.mubr.msk.f32.gmra.mrb[10].mxu1 %vm267_vm2, %v22206_v11  ;;  %14144 = vmatprep.mubr.f32.mxu0 %v26317_v38  ;;  %v14506_v11 = vsel %vm26284_vm10, %v14498_v16, %v14500_v15  ;;  %v22215_v15 = vld [vmem:[#allocation5 + $0x560] sm:$0xff]  ;;  %v14725_v16 = vpop.permute.xlu0 %14724  ;;  %vm26372_vm10 = vcmask 56320  }
 0x37a   : > { %20479 = vmatprep.mubr.msk.f32.mxu1 %vm267_vm2, %v22207_v28  ;;  %19533 = vmatpush1.msk.msra.mxu0 %vm280_vm1, %v14279_v43  ;;  %v10210_v43 = vsel %vm26364_vm13, %v26363_v49, %v25087_v6  ;;  %v25163_v28 = vpop.permute.xlu1 %14728  ;;  %v18126_v6 = vcombine.high %v18122_v17, %v18122_v17  ;;  %vm26367_vm13 = vcmask 64512  }
 0x37b   : > { %19543 = vmatprep.subr.msk.mxu0 %vm280_vm1, %v14507_v57  ;;  %v22213_v57 = vld [vmem:[#allocation5 + $0x550] sm:$0xff]  ;;  %v10437_v49 = vsel %vm26367_vm13, %v24057_v45, %v10433_v56  ;;  %v22218_v56 = vld [vmem:[#allocation5 + $0x578] sm:$0xff]  ;;  %vm14959_vm13 = vcmask 703488  }
 0x37c   : > { %19524 = vmatmul.mubr.msk.f32.gmra.mrb[2].mxu0 %vm267_vm2, %v25116_v7  ;;  %18130 = vrot.lane.b32.xlu0 %v18126_v6, %s22523_s29 }
 0x37d   : > { %20480 = vmatmul.mubr.msk.f32.vlgmr.msra.gmra.mrb[8].mxu1 %vm267_vm2, %v22208_v29  ;;  %14150 = vmatprep.mubr.f32.mxu0 %v26317_v38  ;;  %v14734_v29 = vsel %vm14732_vm14, %v25151_v46, %v25163_v28  ;;  %v25202_v6 = vpop.permute.xlu0 %11113 }
 0x37e   : > { %20486 = vmatpush3.msk.msra.mxu1 %vm280_vm1, %v9756_v50  ;;  %20482 = vmatprep.mubr.msk.f32.mxu1 %vm267_vm2, %v22209_v12  ;;  %v25155_v50 = vld [vmem:[#allocation5 + $0x7c0] sm:$0xff] }
 0x37f   : > { %20493 = vmatprep.subr.msk.mxu1 %vm280_vm1, %v9983_v62 }
 0x380   : > { %19525 = vmatmul.mubr.msk.f32.gmra.mrb[4].mxu0 %vm267_vm2, %v25132_v47  ;;  %18128 = vrot.lane.b32.xlu0 %v18122_v17, %s22523_s29 }
 0x381   : > { %20483 = vmatmul.mubr.msk.f32.gmra.mrb[10].mxu1 %vm267_vm2, %v22210_v8  ;;  %14156 = vmatprep.mubr.f32.mxu0 %v26317_v38 }
 0x382   : > { %20487 = vmatprep.mubr.msk.f32.mxu1 %vm267_vm2, %v22211_v27  ;;  %v22216_v27 = vld [vmem:[#allocation5 + $0x568] sm:$0xff] }
 0x384   : > { %19526 = vmatmul.mubr.msk.f32.gmra.mrb[6].mxu0 %vm267_vm2, %v25146_v58 }
 0x385   : > { %20488 = vmatmul.mubr.msk.f32.vlgmr.msra.gmra.mrb[8].mxu1 %vm267_vm2, %v22212_v2  ;;  %14364 = vmatprep.mubr.f32.mxu0 %v26317_v38  ;;  %v25188_v2 = vld [vmem:[#allocation5 + $0x7d0] sm:$0xff] }
 0x386   : > { %20494 = vmatpush3.msk.msra.mxu1 %vm280_vm1, %v9983_v62  ;;  %20490 = vmatprep.mubr.msk.f32.mxu1 %vm267_vm2, %v22213_v57  ;;  %v25174_v62 = vld [vmem:[#allocation5 + $0x7c8] sm:$0xff]  ;;  %v22217_v57 = vld [vmem:[#allocation5 + $0x570] sm:$0xff] }
 0x387   : > { %20501 = vmatprep.subr.msk.mxu1 %vm280_vm1, %v10210_v43 }
 0x388   : > { %19534 = vmatmul.mubr.msk.f32.vlgmr.msra.gmra.mrb[0].mxu0 %vm267_vm2, %v25155_v50 }
 0x389   : > { %20491 = vmatmul.mubr.msk.f32.gmra.mrb[10].mxu1 %vm267_vm2, %v22214_v37  ;;  %14370 = vmatprep.mubr.f32.mxu0 %v26317_v38  ;;  %v22219_v37 = vld [vmem:[#allocation5 + $0x580] sm:$0xff] }
 0x38a   : > { %20495 = vmatprep.mubr.msk.f32.mxu1 %vm267_vm2, %v22215_v15  ;;  %19544 = vmatpush1.msk.msra.mxu0 %vm280_vm1, %v14506_v11  ;;  %v17900_v11 = vcombine.high %v25013_v26, %v25013_v26  ;;  %v10887_v26 = vpop.permute.xlu1 %10886 }
 0x38b   : > { %19554 = vmatprep.subr.msk.mxu0 %vm280_vm1, %v14734_v29 }
 0x38c   : > { %v25180_v12 = vpop.f32.mrb[0].mxu1  ;;  %19535 = vmatmul.mubr.msk.f32.gmra.mrb[2].mxu0 %vm267_vm2, %v25174_v62  ;;  %17907 = vrot.lane.b32.xlu0 %v17900_v11, %s22522_s21  ;;  %v10664_v11 = vsel %vm26372_vm10, %v24129_v0, %v25142_v24  ;;  %v22222_v0 = vld [vmem:[#allocation5 + $0x598] sm:$0xff]  ;;  %v25238_v24 = vld [vmem:[#allocation5 + $0x7e8] sm:$0xff]  ;;  %vm26374_vm10 = vcmask 48128  }
 0x38d   : > { %26365 = vst [vmem:[#allocation12_spill] sm:$0xff] %v25180_v12  ;;  %v25184_v8 = vpop.f32.mrb[1].mxu1  ;;  %20496 = vmatmul.mubr.msk.f32.vlgmr.msra.gmra.mrb[8].mxu1 %vm267_vm2, %v22216_v27  ;;  %14376 = vmatprep.mubr.f32.mxu0 %v26317_v38  ;;  %v22220_v27 = vld [vmem:[#allocation5 + $0x588] sm:$0xff] }
 0x38e   : > { %26366 = vst [vmem:[#allocation13_spill] sm:$0xff] %v25184_v8  ;;  %20502 = vmatpush3.msk.msra.mxu1 %vm280_vm1, %v10210_v43  ;;  %20498 = vmatprep.mubr.msk.f32.mxu1 %vm267_vm2, %v22217_v57  ;;  %v25208_v43 = vld [vmem:[#allocation5 + $0x7d8] sm:$0xff]  ;;  %v25220_v57 = vld [vmem:[#allocation5 + $0x7e0] sm:$0xff] }
 0x38f   : > { %20509 = vmatprep.subr.msk.mxu1 %vm280_vm1, %v10437_v49 }
 0x390   : > { %v25198_v29 = vpop.f32.mrb[2].mxu1  ;;  %19536 = vmatmul.mubr.msk.f32.gmra.mrb[4].mxu0 %vm267_vm2, %v25188_v2 }
 0x391   : > { %26368 = vst [vmem:[#allocation14_spill] sm:$0xff] %v25198_v29  ;;  %v25204_v45 = vpop.f32.mrb[3].mxu1  ;;  %20499 = vmatmul.mubr.msk.f32.gmra.mrb[10].mxu1 %vm267_vm2, %v22218_v56  ;;  %14382 = vmatprep.mubr.f32.mxu0 %v26317_v38  ;;  %v22221_v56 = vld [vmem:[#allocation5 + $0x590] sm:$0xff] }
 0x392   : > { %26369 = vst [vmem:[#allocation15_spill] sm:$0xff] %v25204_v45  ;;  %20503 = vmatprep.mubr.msk.f32.mxu1 %vm267_vm2, %v22219_v37  ;;  %v14733_v37 = vsel %vm14732_vm14, %v14725_v16, %v25151_v46  ;;  %v22223_v46 = vld [vmem:[#allocation5 + $0x5a0] sm:$0xff]  ;;  %v18127_v16 = vcombine.high %v25119_v51, %v25119_v51  ;;  %v22225_v51 = vld [vmem:[#allocation5 + $0x5b0] sm:$0xff]  ;;  %v22228_v45 = vld [vmem:[#allocation5 + $0x5c8] sm:$0xff] }
 0x394   : > { %v25212_v17 = vpop.f32.mrb[4].mxu1  ;;  %19537 = vmatmul.mubr.msk.f32.gmra.mrb[6].mxu0 %vm267_vm2, %v25208_v43 }
 0x395   : > { %26370 = vst [vmem:[#allocation16_spill] sm:$0xff] %v25212_v17  ;;  %v25216_v15 = vpop.f32.mrb[5].mxu1  ;;  %20504 = vmatmul.mubr.msk.f32.vlgmr.msra.gmra.mrb[8].mxu1 %vm267_vm2, %v22220_v27  ;;  %14591 = vmatprep.mubr.f32.mxu0 %v26317_v38  ;;  %v25229_v17 = vpop.permute.xlu0 %14955 }
 0x396   : > { %26371 = vst [vmem:[#allocation17_spill] sm:$0xff] %v25216_v15  ;;  %20510 = vmatpush3.msk.msra.mxu1 %vm280_vm1, %v10437_v49  ;;  %20506 = vmatprep.mubr.msk.f32.mxu1 %vm267_vm2, %v22221_v56  ;;  %v14954_v15 = vpop.permute.xlu1 %14953  ;;  %v25241_v49 = vld [vmem:[%s22734_s25 + $0xc] sm:$0x77] }
 0x397   : > { %20517 = vmatprep.subr.msk.mxu1 %vm280_vm1, %v10664_v11  ;;  %v14961_v27 = vsel %vm14959_vm13, %v14954_v15, %v25229_v17  ;;  %18359 = vrot.lane.b32.xlu0 %v25241_v49, %s26373_s20 }
 0x398   : > { %19545 = vmatmul.mubr.msk.f32.vlgmr.msra.gmra.mrb[0].mxu0 %vm267_vm2, %v25220_v57 }
 0x399   : > { %20507 = vmatmul.mubr.msk.f32.gmra.mrb[10].mxu1 %vm267_vm2, %v22222_v0  ;;  %14597 = vmatprep.mubr.f32.mxu0 %v26317_v38  ;;  %v22224_v0 = vld [vmem:[#allocation5 + $0x5a8] sm:$0xff] }
 0x39a   : > { %20511 = vmatprep.mubr.msk.f32.mxu1 %vm267_vm2, %v22223_v46  ;;  %19555 = vmatpush1.msk.msra.mxu0 %vm280_vm1, %v14733_v37  ;;  %v14952_v56 = vpop.permute.xlu1 %14951  ;;  %v25254_v46 = vld [vmem:[#allocation5 + $0x7f0] sm:$0xff]  ;;  %v10891_v37 = vsel %vm26374_vm10, %v24208_v53, %v10887_v26  ;;  %v22227_v53 = vld [vmem:[#allocation5 + $0x5c0] sm:$0xff]  ;;  %v11341_v26 = vpop.permute.xlu0 %11340  ;;  %vm15186_vm10 = vcmask 695296  }
 0x39b   : > { %19565 = vmatprep.subr.msk.mxu0 %vm280_vm1, %v14961_v27  ;;  %18134 = vrot.lane.b32.xlu0 %v18127_v16, %s22523_s29  ;;  %v22226_v27 = vld [vmem:[#allocation5 + $0x5b8] sm:$0xff]  ;;  %v14960_v29 = vsel %vm14959_vm13, %v14952_v56, %v14954_v15  ;;  %v22231_v15 = vld [vmem:[#allocation5 + $0x5e0] sm:$0xff] }
 0x39c   : > { %19546 = vmatmul.mubr.msk.f32.gmra.mrb[2].mxu0 %vm267_vm2, %v25238_v24 }
 0x39d   : > { %20512 = vmatmul.mubr.msk.f32.vlgmr.msra.gmra.mrb[8].mxu1 %vm267_vm2, %v22224_v0  ;;  %14603 = vmatprep.mubr.f32.mxu0 %v26317_v38  ;;  %v25266_v0 = vld [vmem:[#allocation5 + $0x7f8] sm:$0xff] }
 0x39e   : > { %20518 = vmatpush3.msk.msra.mxu1 %vm280_vm1, %v10664_v11  ;;  %20514 = vmatprep.mubr.msk.f32.mxu1 %vm267_vm2, %v22225_v51  ;;  %v11568_v11 = vpop.permute.xlu1 %11567 }
 0x39f   : > { %20525 = vmatprep.subr.msk.mxu1 %vm280_vm1, %v10891_v37 }
 0x3a0   : > { %19547 = vmatmul.mubr.msk.f32.gmra.mrb[4].mxu0 %vm267_vm2, %v25254_v46 }
 0x3a1   : > { %20515 = vmatmul.mubr.msk.f32.gmra.mrb[10].mxu1 %vm267_vm2, %v22226_v27  ;;  %14609 = vmatprep.mubr.f32.mxu0 %v26317_v38  ;;  %v25277_v27 = vld [vmem:[#allocation5 + $0x800] sm:$0xff] }
 0x3a2   : > { %20519 = vmatprep.mubr.msk.f32.mxu1 %vm267_vm2, %v22227_v53  ;;  %v11118_v53 = vsel %vm11115_vm7, %v24278_v22, %v25202_v6  ;;  %v25285_v8 = vpop.permute.xlu1 %15182  ;;  %v22230_v6 = vld [vmem:[#allocation5 + $0x5d8] sm:$0xff]  ;;  %vm26378_vm7 = vcmask 31744  }
 0x3a4   : > { %v25269_v51 = vpop.f32.mrb[6].mxu1  ;;  %19548 = vmatmul.mubr.msk.f32.gmra.mrb[6].mxu0 %vm267_vm2, %v25266_v0 }
 0x3a5   : > { %26375 = vst [vmem:[#allocation18_spill] sm:$0xff] %v25269_v51  ;;  %v25273_v16 = vpop.f32.mrb[7].mxu1  ;;  %20520 = vmatmul.mubr.msk.f32.vlgmr.msra.gmra.mrb[8].mxu1 %vm267_vm2, %v22228_v45  ;;  %14818 = vmatprep.mubr.f32.mxu0 %v26317_v38  ;;  %v22229_v51 = vld [vmem:[#allocation5 + $0x5d0] sm:$0xff] }
 0x3a6   : > { %26376 = vst [vmem:[#allocation19_spill] sm:$0xff] %v25273_v16  ;;  %20526 = vmatpush3.msk.msra.mxu1 %vm280_vm1, %v10891_v37  ;;  %20522 = vmatprep.mubr.msk.f32.mxu1 %vm267_vm2, %v22229_v51  ;;  %v15181_v16 = vpop.permute.xlu0 %15180  ;;  %v18349_v45 = vld [vmem:[%s22734_s25 + $0x4] sm:$0x77]  ;;  %v25295_v37 = vld [vmem:[#allocation5 + $0x808] sm:$0xff] }
 0x3a7   : > { %20533 = vmatprep.subr.msk.mxu1 %vm280_vm1, %v11118_v53  ;;  %v15188_v12 = vsel %vm15186_vm10, %v15181_v16, %v25285_v8  ;;  %v18353_v22 = vcombine.high %v18349_v45, %v18349_v45  ;;  %v22232_v51 = vld [vmem:[#allocation5 + $0x5e8] sm:$0xff] }
 0x3a8   : > { %19556 = vmatmul.mubr.msk.f32.vlgmr.msra.gmra.mrb[0].mxu0 %vm267_vm2, %v25277_v27 }
 0x3a9   : > { %20523 = vmatmul.mubr.msk.f32.gmra.mrb[10].mxu1 %vm267_vm2, %v22230_v6  ;;  %14824 = vmatprep.mubr.f32.mxu0 %v26317_v38  ;;  %v25305_v6 = vld [vmem:[#allocation5 + $0x810] sm:$0xff] }
 0x3aa   : > { %20527 = vmatprep.mubr.msk.f32.mxu1 %vm267_vm2, %v22231_v15  ;;  %19566 = vmatpush1.msk.msra.mxu0 %vm280_vm1, %v14960_v29  ;;  %v15179_v56 = vpop.permute.xlu0 %15178  ;;  %26377 = vst [vmem:[#allocation20_spill] sm:$0xff] %v25305_v6  ;;  %v11345_v15 = vsel %vm26378_vm7, %v24347_v13, %v11341_v26  ;;  %v22233_v29 = vld [vmem:[#allocation5 + $0x5f0] sm:$0xff]  ;;  %v25319_v13 = vld [vmem:[#allocation5 + $0x818] sm:$0xff]  ;;  %v22235_v26 = vld [vmem:[#allocation5 + $0x600] sm:$0xff]  ;;  %vm15413_vm7 = vcmask 687104  }
 0x3ab   : > { %19576 = vmatprep.subr.msk.mxu0 %vm280_vm1, %v15188_v12  ;;  %18357 = vrot.lane.b32.xlu1 %v18353_v22, %s26373_s20  ;;  %v18354_v12 = vcombine.high %v25241_v49, %v25241_v49  ;;  %v22234_v22 = vld [vmem:[#allocation5 + $0x5f8] sm:$0xff]  ;;  %26379 = vst [vmem:[#allocation21_spill] sm:$0xff] %v25319_v13  ;;  %v22236_v49 = vld [vmem:[#allocation5 + $0x608] sm:$0xff] }
 0x3ac   : > { %19557 = vmatmul.mubr.msk.f32.gmra.mrb[2].mxu0 %vm267_vm2, %v25295_v37 }
 0x3ad   : > { %20528 = vmatmul.mubr.msk.f32.vlgmr.msra.gmra.mrb[8].mxu1 %vm267_vm2, %v22232_v51  ;;  %14830 = vmatprep.mubr.f32.mxu0 %v26317_v38 }
 0x3ae   : > { %20534 = vmatpush3.msk.msra.mxu1 %vm280_vm1, %v11118_v53  ;;  %20530 = vmatprep.mubr.msk.f32.mxu1 %vm267_vm2, %v22233_v29  ;;  %v11794_v53 = vpop.permute.xlu1 %11793  ;;  %v12021_v51 = vpop.permute.xlu0 %12020  ;;  %v11571_v29 = vsel %vm267_vm2, %v24383_v54, %v11568_v11  ;;  %v25343_v54 = vld [vmem:[#allocation5 + $0x828] sm:$0xff]  ;;  %v22239_v11 = vld [vmem:[#allocation5 + $0x620] sm:$0xff] }
 0x3af   : > { %20541 = vmatprep.subr.msk.mxu1 %vm280_vm1, %v11345_v15  ;;  %18355 = vrot.lane.b32.xlu1 %v18349_v45, %s26373_s20  ;;  %v25327_v45 = vld [vmem:[#allocation5 + $0x820] sm:$0xff] }
 0x3b0   : > { %19558 = vmatmul.mubr.msk.f32.gmra.mrb[4].mxu0 %vm267_vm2, %v25305_v6  ;;  %v22238_v6 = vld [vmem:[#allocation5 + $0x618] sm:$0xff] }
 0x3b1   : > { %20531 = vmatmul.mubr.msk.f32.gmra.mrb[10].mxu1 %vm267_vm2, %v22234_v22  ;;  %14836 = vmatprep.mubr.f32.mxu0 %v26317_v38  ;;  %v22237_v22 = vld [vmem:[#allocation5 + $0x610] sm:$0xff] }
 0x3b2   : > { %20535 = vmatprep.mubr.msk.f32.mxu1 %vm267_vm2, %v22235_v26  ;;  %v25334_v26 = vpop.permute.xlu0 %15409 }
 0x3b3   : > { %18361 = vrot.lane.b32.xlu1 %v18354_v12, %s26373_s20  ;;  %v15187_v12 = vsel %vm15186_vm10, %v15179_v56, %v15181_v16  ;;  %v22240_v16 = vld [vmem:[#allocation5 + $0x628] sm:$0xff]  ;;  %v25352_v56 = vld [vmem:[#allocation5 + $0x830] sm:$0xff] }
 0x3b4   : > { %19559 = vmatmul.mubr.msk.f32.gmra.mrb[6].mxu0 %vm267_vm2, %v25319_v13  ;;  %v15408_v13 = vpop.permute.xlu1 %15407  ;;  %26380 = vst [vmem:[#allocation22_spill] sm:$0xff] %v25352_v56 }
 0x3b5   : > { %20536 = vmatmul.mubr.msk.f32.vlgmr.msra.gmra.mrb[8].mxu1 %vm267_vm2, %v22236_v49  ;;  %15045 = vmatprep.mubr.f32.mxu0 %v26317_v38  ;;  %v15415_v49 = vsel %vm15413_vm7, %v15408_v13, %v25334_v26 }
 0x3b6   : > { %20542 = vmatpush3.msk.msra.mxu1 %vm280_vm1, %v11345_v15  ;;  %20538 = vmatprep.mubr.msk.f32.mxu1 %vm267_vm2, %v22237_v22  ;;  %v22241_v15 = vld [vmem:[#allocation5 + $0x630] sm:$0xff] }
 0x3b7   : > { %20549 = vmatprep.subr.msk.mxu1 %vm280_vm1, %v11571_v29 }
 0x3b8   : > { %19567 = vmatmul.mubr.msk.f32.vlgmr.msra.gmra.mrb[0].mxu0 %vm267_vm2, %v25327_v45  ;;  %v15406_v22 = vpop.permute.xlu1 %15405 }
 0x3b9   : > { %20539 = vmatmul.mubr.msk.f32.gmra.mrb[10].mxu1 %vm267_vm2, %v22238_v6  ;;  %15051 = vmatprep.mubr.f32.mxu0 %v26317_v38  ;;  %v11798_v6 = vsel %vm11795_vm15, %v24431_v32, %v11794_v53  ;;  %v12462_v32 = vpop.permute.xlu0 %12461  ;;  %vm15640_vm15 = vcmask 678912   ;;  %v22244_v53 = vld [vmem:[#allocation5 + $0x648] sm:$0xff] }
 0x3ba   : > { %20543 = vmatprep.mubr.msk.f32.mxu1 %vm267_vm2, %v22239_v11  ;;  %19577 = vmatpush1.msk.msra.mxu0 %vm280_vm1, %v15187_v12  ;;  %v22242_v12 = vld [vmem:[#allocation5 + $0x638] sm:$0xff]  ;;  %v22243_v11 = vld [vmem:[#allocation5 + $0x640] sm:$0xff] }
 0x3bb   : > { %19587 = vmatprep.subr.msk.mxu0 %vm280_vm1, %v15415_v49  ;;  %v25363_v49 = vld [vmem:[#allocation5 + $0x838] sm:$0xff] }
 0x3bc   : > { %19568 = vmatmul.mubr.msk.f32.gmra.mrb[2].mxu0 %vm267_vm2, %v25343_v54  ;;  %26381 = vst [vmem:[#allocation23_spill] sm:$0xff] %v25363_v49 }
 0x3bd   : > { %20544 = vmatmul.mubr.msk.f32.vlgmr.msra.gmra.mrb[8].mxu1 %vm267_vm2, %v22240_v16  ;;  %15057 = vmatprep.mubr.f32.mxu0 %v26317_v38  ;;  %v12025_v16 = vsel %vm12022_vm12, %v24497_v5, %v12021_v51  ;;  %v22246_v5 = vld [vmem:[#allocation5 + $0x658] sm:$0xff]  ;;  %v25386_v51 = vld [vmem:[#allocation5 + $0x848] sm:$0xff]  ;;  %vm15867_vm12 = vcmask 670720  }
 0x3be   : > { %20550 = vmatpush3.msk.msra.mxu1 %vm280_vm1, %v11571_v29  ;;  %20546 = vmatprep.mubr.msk.f32.mxu1 %vm267_vm2, %v22241_v15  ;;  %v25370_v29 = vld [vmem:[#allocation5 + $0x840] sm:$0xff]  ;;  %v22245_v15 = vld [vmem:[#allocation5 + $0x650] sm:$0xff]  ;;  %26384 = vst [vmem:[#allocation26_spill] sm:$0xff] %v25386_v51 }
 0x3bf   : > { %20557 = vmatprep.subr.msk.mxu1 %vm280_vm1, %v11798_v6  ;;  %26382 = vst [vmem:[#allocation24_spill] sm:$0xff] %v25370_v29 }
 0x3c0   : > { %19569 = vmatmul.mubr.msk.f32.gmra.mrb[4].mxu0 %vm267_vm2, %v25352_v56  ;;  %v22254_v56 = vld [vmem:[#allocation5 + $0x698] sm:$0xff] }
 0x3c1   : > { %20547 = vmatmul.mubr.msk.f32.gmra.mrb[10].mxu1 %vm267_vm2, %v22242_v12  ;;  %15063 = vmatprep.mubr.f32.mxu0 %v26317_v38  ;;  %v25376_v12 = vpop.permute.xlu0 %15636 }
 0x3c2   : > { %20551 = vmatprep.mubr.msk.f32.mxu1 %vm267_vm2, %v22243_v11  ;;  %26383 = vst [vmem:[#allocation25_spill] sm:$0xff] %v25376_v12  ;;  %v15414_v11 = vsel %vm15413_vm7, %v15406_v22, %v15408_v13  ;;  %v12236_v13 = vld [vmem:[%s22734_s25 + $0xc] sm:$0x7]  ;;  %s21762_s25 = smul.u32 96, %s22730_s10 }
 0x3c4   : > { %19570 = vmatmul.mubr.msk.f32.gmra.mrb[6].mxu0 %vm267_vm2, %v25363_v49  ;;  %v15635_v49 = vpop.permute.xlu1 %15634  ;;  %s26140_s22 = scalar_lea.vmem [#allocation8], %s21762_s25 }
 0x3c5   : > { %20552 = vmatmul.mubr.msk.f32.vlgmr.msra.gmra.mrb[8].mxu1 %vm267_vm2, %v22244_v53  ;;  %15272 = vmatprep.mubr.f32.mxu0 %v26317_v38  ;;  %v15642_v53 = vsel %vm15640_vm15, %v15635_v49, %v25376_v12  ;;  %v22249_v12 = vld [vmem:[#allocation5 + $0x670] sm:$0xff]  ;;  %s18735_s30 = sshll.u32 %s26140_s22, 4  ;;  %s26164_s30 = int_to_ptr.vmem [resolvable:$true] %s18735_s30 }
 0x3c6   : > { %20558 = vmatpush3.msk.msra.mxu1 %vm280_vm1, %v11798_v6  ;;  %20554 = vmatprep.mubr.msk.f32.mxu1 %vm267_vm2, %v22245_v15  ;;  %v22247_v6 = vld [vmem:[#allocation5 + $0x660] sm:$0xff]  ;;  %v22248_v15 = vld [vmem:[#allocation5 + $0x668] sm:$0xff]  ;;  %s22354_s6 = scalar_lea.vmem %s26164_s30, 1536  ;;  %p22361_p3 = scmp.lt.s32.totalorder %s26164_s30, %s22359_s8 }
 0x3c7   : > { %20565 = vmatprep.subr.msk.mxu1 %vm280_vm1, %v12025_v16  ;;  %p22355_p8 = scmp.ne.s32.totalorder %s26164_s30, %s22354_s6  ;;  %p22362_p5 = scmp.lt.s32.totalorder %s22360_s26, %s22354_s6 }
 0x3c8   : > { %19578 = vmatmul.mubr.msk.f32.vlgmr.msra.gmra.mrb[0].mxu0 %vm267_vm2, %v25370_v29  ;;  %v15633_v22 = vpop.permute.xlu1 %15632 }
 0x3c9   : > { %20555 = vmatmul.mubr.msk.f32.gmra.mrb[10].mxu1 %vm267_vm2, %v22246_v5  ;;  %15278 = vmatprep.mubr.f32.mxu0 %v26317_v38  ;;  %v25396_v5 = vld [vmem:[#allocation5 + $0x850] sm:$0xff]  ;;  %p22356_p1 = pnand %p22355_p8, %p26418_p12  ;;  %p22363_p9 = por %p22362_p5, %p22361_p3 }
 0x3ca   : > { %20559 = vmatprep.mubr.msk.f32.mxu1 %vm267_vm2, %v22247_v6  ;;  %19588 = vmatpush1.msk.msra.mxu0 %vm280_vm1, %v15414_v11  ;;  %26385 = vst [vmem:[#allocation27_spill] sm:$0xff] %v25396_v5  ;;  %v22250_v11 = vld [vmem:[#allocation5 + $0x678] sm:$0xff]  ;;  %v22251_v6 = vld [vmem:[#allocation5 + $0x680] sm:$0xff] }
 0x3cb   : > { %19598 = vmatprep.subr.msk.mxu0 %vm280_vm1, %v15642_v53  ;;  %v25405_v53 = vld [vmem:[#allocation5 + $0x858] sm:$0xff]  ;;  %p22357_p10 = pneg %p22356_p1 }
 0x3cc   : > { %19579 = vmatmul.mubr.msk.f32.gmra.mrb[2].mxu0 %vm267_vm2, %v25386_v51  ;;  %26386 = vst [vmem:[#allocation28_spill] sm:$0xff] %v25405_v53  ;;  %v22253_v51 = vld [vmem:[#allocation5 + $0x690] sm:$0xff] }
 0x3cd   : > { %20560 = vmatmul.mubr.msk.f32.vlgmr.msra.gmra.mrb[8].mxu1 %vm267_vm2, %v22248_v15  ;;  %15284 = vmatprep.mubr.f32.mxu0 %v26317_v38  ;;  %v12689_v15 = vpop.permute.xlu0 %12688  ;;  %p22364_p2 = pnand %p22363_p9, %p22357_p10 }
 0x3ce   : > { %20566 = vmatpush3.msk.msra.mxu1 %vm280_vm1, %v12025_v16  ;;  %20562 = vmatprep.mubr.msk.f32.mxu1 %vm267_vm2, %v22249_v12  ;;  %v12916_v16 = vpop.permute.xlu1 %12915  ;;  %v22252_v12 = vld [vmem:[#allocation5 + $0x688] sm:$0xff] }
 0x3cf   : > { %20573 = vmatprep.subr.msk.mxu1 %vm280_vm1, %v12236_v13 }
 0x3d0   : > { %19580 = vmatmul.mubr.msk.f32.gmra.mrb[4].mxu0 %vm267_vm2, %v25396_v5  ;;  %v25412_v5 = vld [vmem:[#allocation5 + $0x860] sm:$0xff] }
 0x3d1   : > { %20563 = vmatmul.mubr.msk.f32.gmra.mrb[10].mxu1 %vm267_vm2, %v22250_v11  ;;  %15290 = vmatprep.mubr.f32.mxu0 %v26317_v38  ;;  %v12466_v11 = vsel %vm12463_vm0, %v24677_v25, %v12462_v32  ;;  %v25428_v25 = vld [vmem:[#allocation5 + $0x868] sm:$0xff]  ;;  %v22255_v32 = vld [vmem:[#allocation5 + $0x6a0] sm:$0xff]  ;;  %vm16094_vm0 = vcmask 662528  }
 0x3d2   : > { %20567 = vmatprep.mubr.msk.f32.mxu1 %vm267_vm2, %v22251_v6  ;;  %v15641_v6 = vsel %vm15640_vm15, %v15633_v22, %v15635_v49  ;;  %v25419_v29 = vpop.permute.xlu1 %15863  ;;  %v22257_v22 = vld [vmem:[#allocation5 + $0x6b0] sm:$0xff] }
 0x3d3   : > { %26387 = vst [vmem:[#allocation29_spill] sm:$0xff] %v25419_v29 }
 0x3d4   : > { %19581 = vmatmul.mubr.msk.f32.gmra.mrb[6].mxu0 %vm267_vm2, %v25405_v53  ;;  %v15862_v53 = vpop.permute.xlu0 %15861 }
 0x3d5   : > { %20568 = vmatmul.mubr.msk.f32.vlgmr.msra.gmra.mrb[8].mxu1 %vm267_vm2, %v22252_v12  ;;  %15499 = vmatprep.mubr.f32.mxu0 %v26317_v38  ;;  %v15869_v12 = vsel %vm15867_vm12, %v15862_v53, %v25419_v29  ;;  %v22262_v29 = vld [vmem:[#allocation5 + $0x6d8] sm:$0xff] }
 0x3d6   : > { %20574 = vmatpush3.msk.msra.mxu1 %vm280_vm1, %v12236_v13  ;;  %20570 = vmatprep.mubr.msk.f32.mxu1 %vm267_vm2, %v22253_v51  ;;  %v22256_v51 = vld [vmem:[#allocation5 + $0x6a8] sm:$0xff]  ;;  %v12693_v13 = vsel %vm12690_vm4, %v24720_v36, %v12689_v15  ;;  %v13143_v36 = vpop.permute.xlu1 %13142  ;;  %vm26390_vm4 = vcmask 654336  }
 0x3d7   : > { %20581 = vmatprep.subr.msk.mxu1 %vm280_vm1, %v12466_v11 }
 0x3d8   : > { %19589 = vmatmul.mubr.msk.f32.vlgmr.msra.gmra.mrb[0].mxu0 %vm267_vm2, %v25412_v5  ;;  %v15860_v49 = vpop.permute.xlu0 %15859 }
 0x3d9   : > { %20571 = vmatmul.mubr.msk.f32.gmra.mrb[10].mxu1 %vm267_vm2, %v22254_v56  ;;  %15505 = vmatprep.mubr.f32.mxu0 %v26317_v38  ;;  %v25437_v56 = vld [vmem:[#allocation5 + $0x870] sm:$0xff] }
 0x3da   : > { %20575 = vmatprep.mubr.msk.f32.mxu1 %vm267_vm2, %v22255_v32  ;;  %19599 = vmatpush1.msk.msra.mxu0 %vm280_vm1, %v15641_v6  ;;  %26388 = vst [vmem:[#allocation30_spill] sm:$0xff] %v25437_v56  ;;  %v22258_v6 = vld [vmem:[#allocation5 + $0x6b8] sm:$0xff]  ;;  %v22259_v32 = vld [vmem:[#allocation5 + $0x6c0] sm:$0xff] }
 0x3db   : > { %19609 = vmatprep.subr.msk.mxu0 %vm280_vm1, %v15869_v12  ;;  %v25448_v12 = vld [vmem:[#allocation5 + $0x878] sm:$0xff] }
 0x3dc   : > { %19590 = vmatmul.mubr.msk.f32.gmra.mrb[2].mxu0 %vm267_vm2, %v25428_v25  ;;  %26389 = vst [vmem:[#allocation31_spill] sm:$0xff] %v25448_v12  ;;  %v13370_v15 = vpop.permute.xlu0 %13369 }
 0x3dd   : > { %20576 = vmatmul.mubr.msk.f32.vlgmr.msra.gmra.mrb[8].mxu1 %vm267_vm2, %v22256_v51  ;;  %15511 = vmatprep.mubr.f32.mxu0 %v26317_v38  ;;  %v25455_v51 = vld [vmem:[#allocation5 + $0x880] sm:$0xff] }
 0x3de   : > { %20582 = vmatpush3.msk.msra.mxu1 %vm280_vm1, %v12466_v11  ;;  %20578 = vmatprep.mubr.msk.f32.mxu1 %vm267_vm2, %v22257_v22  ;;  %v22260_v11 = vld [vmem:[#allocation5 + $0x6c8] sm:$0xff]  ;;  %v12920_v22 = vsel %vm12917_vm5, %v24762_v63, %v12916_v16  ;;  %v22263_v16 = vld [vmem:[#allocation5 + $0x6e0] sm:$0xff]  ;;  %vm16547_vm5 = vcmask 523264  }
 0x3df   : > { %20589 = vmatprep.subr.msk.mxu1 %vm280_vm1, %v12693_v13  ;;  %v25471_v63 = vld [vmem:[#allocation5 + $0x888] sm:$0xff] }
 0x3e0   : > { %19591 = vmatmul.mubr.msk.f32.gmra.mrb[4].mxu0 %vm267_vm2, %v25437_v56  ;;  %v25462_v56 = vpop.permute.xlu0 %16090 }
 0x3e1   : > { %20579 = vmatmul.mubr.msk.f32.gmra.mrb[10].mxu1 %vm267_vm2, %v22258_v6  ;;  %15517 = vmatprep.mubr.f32.mxu0 %v26317_v38  ;;  %v22261_v6 = vld [vmem:[#allocation5 + $0x6d0] sm:$0xff] }
 0x3e2   : > { %20583 = vmatprep.mubr.msk.f32.mxu1 %vm267_vm2, %v22259_v32  ;;  %v15868_v32 = vsel %vm15867_vm12, %v15860_v49, %v15862_v53  ;;  %v22264_v49 = vld [vmem:[#allocation5 + $0x6e8] sm:$0xff] }
 0x3e4   : > { %19592 = vmatmul.mubr.msk.f32.gmra.mrb[6].mxu0 %vm267_vm2, %v25448_v12  ;;  %v16089_v12 = vpop.permute.xlu1 %16088 }
 0x3e5   : > { %20584 = vmatmul.mubr.msk.f32.vlgmr.msra.gmra.mrb[8].mxu1 %vm267_vm2, %v22260_v11  ;;  %15726 = vmatprep.mubr.f32.mxu0 %v26317_v38  ;;  %v16096_v11 = vsel %vm16094_vm0, %v16089_v12, %v25462_v56 }
 0x3e6   : > { %20590 = vmatpush3.msk.msra.mxu1 %vm280_vm1, %v12693_v13  ;;  %20586 = vmatprep.mubr.msk.f32.mxu1 %vm267_vm2, %v22261_v6  ;;  %v13147_v13 = vsel %vm13144_vm6, %v24802_v44, %v13143_v36  ;;  %v22265_v6 = vld [vmem:[#allocation5 + $0x6f0] sm:$0xff]  ;;  %v13597_v44 = vpop.permute.xlu0 %13596  ;;  %vm26391_vm6 = vmmov %vm26390_vm4 }
 0x3e7   : > { %20597 = vmatprep.subr.msk.mxu1 %vm280_vm1, %v12920_v22 }
 0x3e8   : > { %19600 = vmatmul.mubr.msk.f32.vlgmr.msra.gmra.mrb[0].mxu0 %vm267_vm2, %v25455_v51  ;;  %v16087_v53 = vpop.permute.xlu1 %16086 }
 0x3e9   : > { %20587 = vmatmul.mubr.msk.f32.gmra.mrb[10].mxu1 %vm267_vm2, %v22262_v29  ;;  %15732 = vmatprep.mubr.f32.mxu0 %v26317_v38  ;;  %v25480_v29 = vld [vmem:[#allocation5 + $0x890] sm:$0xff] }
 0x3ea   : > { %20591 = vmatprep.mubr.msk.f32.mxu1 %vm267_vm2, %v22263_v16  ;;  %19610 = vmatpush1.msk.msra.mxu0 %vm280_vm1, %v15868_v32  ;;  %v22266_v32 = vld [vmem:[#allocation5 + $0x6f8] sm:$0xff]  ;;  %v22267_v16 = vld [vmem:[#allocation5 + $0x700] sm:$0xff] }
 0x3eb   : > { %19620 = vmatprep.subr.msk.mxu0 %vm280_vm1, %v16096_v11  ;;  %v25491_v11 = vld [vmem:[#allocation5 + $0x898] sm:$0xff] }
 0x3ec   : > { %19601 = vmatmul.mubr.msk.f32.gmra.mrb[2].mxu0 %vm267_vm2, %v25471_v63  ;;  %v13824_v36 = vpop.permute.xlu1 %13823 }
 0x3ed   : > { %20592 = vmatmul.mubr.msk.f32.vlgmr.msra.gmra.mrb[8].mxu1 %vm267_vm2, %v22264_v49  ;;  %15738 = vmatprep.mubr.f32.mxu0 %v26317_v38  ;;  %v13374_v49 = vsel %vm13371_vm9, %v24844_v3, %v13370_v15  ;;  %v25517_v3 = vld [vmem:[#allocation5 + $0x8a8] sm:$0xff]  ;;  %vm16774_vm9 = vcmask 515072  }
 0x3ee   : > { %20598 = vmatpush3.msk.msra.mxu1 %vm280_vm1, %v12920_v22  ;;  %20594 = vmatprep.mubr.msk.f32.mxu1 %vm267_vm2, %v22265_v6  ;;  %v25499_v22 = vld [vmem:[#allocation5 + $0x8a0] sm:$0xff]  ;;  %v16095_v6 = vsel %vm16094_vm0, %v16087_v53, %v16089_v12  ;;  %v13601_v12 = vsel %vm13598_vm3, %v24895_v34, %v13597_v44  ;;  %vm26392_vm3 = vcmask 850944  }
 0x3ef   : > { %20605 = vmatprep.subr.msk.mxu1 %vm280_vm1, %v13147_v13 }
 0x3f0   : > { %19602 = vmatmul.mubr.msk.f32.gmra.mrb[4].mxu0 %vm267_vm2, %v25480_v29 }
 0x3f1   : > { %20595 = vmatmul.mubr.msk.f32.gmra.mrb[10].mxu1 %vm267_vm2, %v22266_v32  ;;  %15744 = vmatprep.mubr.f32.mxu0 %v26317_v38  ;;  %v25507_v32 = vpop.permute.xlu1 %16317 }
 0x3f2   : > { %20599 = vmatprep.mubr.msk.f32.mxu1 %vm267_vm2, %v22267_v16  ;;  %v16316_v16 = vpop.permute.xlu0 %16315 }
 0x3f4   : > { %19603 = vmatmul.mubr.msk.f32.gmra.mrb[6].mxu0 %vm267_vm2, %v25491_v11 }
 0x3f5   : > { %20600 = vmatmul.mubr.msk.f32.vlgmr.msra.gmra.mrb[8].mxu1 %vm267_vm2, %v24853_v42  ;;  %15953 = vmatprep.mubr.f32.mxu0 %v26317_v38  ;;  %v16322_v42 = vsel %vm26390_vm4, %v16316_v16, %v25507_v32  ;;  %v14051_v34 = vpop.permute.xlu1 %14050 }
 0x3f6   : > { %20606 = vmatpush3.msk.msra.mxu1 %vm280_vm1, %v13147_v13  ;;  %20602 = vmatprep.mubr.msk.f32.mxu1 %vm267_vm2, %v24863_v52  ;;  %v16314_v52 = vpop.permute.xlu0 %16313  ;;  %v14055_v13 = vsel %vm14052_vm8, %v25001_v19, %v14051_v34  ;;  %vm17001_vm8 = vcmask 506880  }
 0x3f7   : > { %20613 = vmatprep.subr.msk.mxu1 %vm280_vm1, %v13374_v49 }
 0x3f8   : > { %19611 = vmatmul.mubr.msk.f32.vlgmr.msra.gmra.mrb[0].mxu0 %vm267_vm2, %v25499_v22 }
 0x3f9   : > { %20603 = vmatmul.mubr.msk.f32.gmra.mrb[10].mxu1 %vm267_vm2, %v24879_v31  ;;  %15959 = vmatprep.mubr.f32.mxu0 %v26317_v38  ;;  %v25528_v31 = vld [vmem:[#allocation5 + $0x8b0] sm:$0xff]  ;;  %v16542_v53 = vpop.permute.xlu1 %16541 }
 0x3fa   : > { %20607 = vmatprep.mubr.msk.f32.mxu1 %vm267_vm2, %v24887_v33  ;;  %19621 = vmatpush1.msk.msra.mxu0 %vm280_vm1, %v16095_v6  ;;  %v25541_v33 = vld [vmem:[#allocation5 + $0x8b8] sm:$0xff] }
 0x3fb   : > { %19631 = vmatprep.subr.msk.mxu0 %vm280_vm1, %v16322_v42 }
 0x3fc   : > { %19612 = vmatmul.mubr.msk.f32.gmra.mrb[2].mxu0 %vm267_vm2, %v25517_v3 }
 0x3fd   : > { %20608 = vmatmul.mubr.msk.f32.vlgmr.msra.gmra.mrb[8].mxu1 %vm267_vm2, %v24904_v23  ;;  %15965 = vmatprep.mubr.f32.mxu0 %v26317_v38  ;;  %v14278_v23 = vpop.permute.xlu0 %14277 }
 0x3fe   : > { %20614 = vmatpush3.msk.msra.mxu1 %vm280_vm1, %v13374_v49  ;;  %20610 = vmatprep.mubr.msk.f32.mxu1 %vm267_vm2, %v24920_v10  ;;  %v25550_v10 = vld [vmem:[#allocation5 + $0x8c0] sm:$0xff] }
 0x3ff   : > { %20621 = vmatprep.subr.msk.mxu1 %vm280_vm1, %v13601_v12 }
 0x400   : > { %19613 = vmatmul.mubr.msk.f32.gmra.mrb[4].mxu0 %vm267_vm2, %v25528_v31 }
 0x401   : > { %20611 = vmatmul.mubr.msk.f32.gmra.mrb[10].mxu1 %vm267_vm2, %v24934_v40  ;;  %15971 = vmatprep.mubr.f32.mxu0 %v26317_v38  ;;  %v13828_v40 = vsel %vm13825_vm11, %v24949_v1, %v13824_v36  ;;  %v25558_v15 = vpop.permute.xlu0 %16543  ;;  %v25568_v1 = vld [vmem:[#allocation5 + $0x8c8] sm:$0xff]  ;;  %vm26393_vm11 = vcmask 719872  }
 0x402   : > { %20615 = vmatprep.mubr.msk.f32.mxu1 %vm267_vm2, %v24941_v18  ;;  %v16321_v18 = vsel %vm26391_vm6, %v16314_v52, %v16316_v16  ;;  %v26394_v52 = vld [vmem:[#allocation20_spill] sm:$0xff] }
 0x404   : > { %19614 = vmatmul.mubr.msk.f32.gmra.mrb[6].mxu0 %vm267_vm2, %v25541_v33 }
 0x405   : > { %20616 = vmatmul.mubr.msk.f32.vlgmr.msra.gmra.mrb[8].mxu1 %vm267_vm2, %v24959_v55  ;;  %16180 = vmatprep.mubr.f32.mxu0 %v26317_v38  ;;  %v16549_v55 = vsel %vm16547_vm5, %v16542_v53, %v25558_v15  ;;  %v14504_v19 = vpop.permute.xlu0 %14503 }
 0x406   : > { %20622 = vmatpush3.msk.msra.mxu1 %vm280_vm1, %v13601_v12  ;;  %20618 = vmatprep.mubr.msk.f32.mxu1 %vm267_vm2, %v24969_v20  ;;  %v16540_v20 = vpop.permute.xlu1 %16539  ;;  %v14508_v49 = vsel %vm26393_vm11, %v25107_v39, %v14504_v19  ;;  %v26399_v19 = vld [vmem:[#allocation26_spill] sm:$0xff] }
 0x407   : > { %20629 = vmatprep.subr.msk.mxu1 %vm280_vm1, %v13828_v40 }
 0x408   : > { %19622 = vmatmul.mubr.msk.f32.vlgmr.msra.gmra.mrb[0].mxu0 %vm267_vm2, %v25550_v10 }
 0x409   : > { %20619 = vmatmul.mubr.msk.f32.gmra.mrb[10].mxu1 %vm267_vm2, %v24985_v61  ;;  %16186 = vmatprep.mubr.f32.mxu0 %v26317_v38  ;;  %v25579_v61 = vld [vmem:[#allocation5 + $0x8d0] sm:$0xff]  ;;  %v16769_v36 = vpop.permute.xlu0 %16768 }
 0x40a   : > { %20623 = vmatprep.mubr.msk.f32.mxu1 %vm267_vm2, %v24993_v30  ;;  %19632 = vmatpush1.msk.msra.mxu0 %vm280_vm1, %v16321_v18  ;;  %v25592_v30 = vld [vmem:[#allocation5 + $0x8d8] sm:$0xff]  ;;  %v25732_v18 = vld [vmem:[#allocation5 + $0x930] sm:$0xff] }
 0x40b   : > { %19642 = vmatprep.subr.msk.mxu0 %vm280_vm1, %v16549_v55  ;;  %v26397_v55 = vld [vmem:[#allocation23_spill] sm:$0xff] }
 0x40c   : > { %19623 = vmatmul.mubr.msk.f32.gmra.mrb[2].mxu0 %vm267_vm2, %v25568_v1 }
 0x40d   : > { %20624 = vmatmul.mubr.msk.f32.vlgmr.msra.gmra.mrb[8].mxu1 %vm267_vm2, %v25010_v4  ;;  %16192 = vmatprep.mubr.f32.mxu0 %v26317_v38  ;;  %v14731_v4 = vpop.permute.xlu1 %14730 }
 0x40e   : > { %20630 = vmatpush3.msk.msra.mxu1 %vm280_vm1, %v13828_v40  ;;  %20626 = vmatprep.mubr.msk.f32.mxu1 %vm267_vm2, %v25026_v21  ;;  %v25601_v21 = vld [vmem:[#allocation5 + $0x8e0] sm:$0xff] }
 0x40f   : > { %20637 = vmatprep.subr.msk.mxu1 %vm280_vm1, %v14055_v13 }
 0x410   : > { %19624 = vmatmul.mubr.msk.f32.gmra.mrb[4].mxu0 %vm267_vm2, %v25579_v61 }
 0x411   : > { %20627 = vmatmul.mubr.msk.f32.gmra.mrb[10].mxu1 %vm267_vm2, %v25040_v60  ;;  %16198 = vmatprep.mubr.f32.mxu0 %v26317_v38  ;;  %v14281_v60 = vsel %vm26392_vm3, %v25055_v59, %v14278_v23  ;;  %v25609_v44 = vpop.permute.xlu1 %16770  ;;  %v25619_v59 = vld [vmem:[#allocation5 + $0x8e8] sm:$0xff] }
 0x412   : > { %20631 = vmatprep.mubr.msk.f32.mxu1 %vm267_vm2, %v25047_v41  ;;  %v16548_v41 = vsel %vm16547_vm5, %v16540_v20, %v16542_v53  ;;  %v26395_v23 = vld [vmem:[#allocation21_spill] sm:$0xff]  ;;  %v26398_v20 = vld [vmem:[#allocation24_spill] sm:$0xff] }
 0x414   : > { %19625 = vmatmul.mubr.msk.f32.gmra.mrb[6].mxu0 %vm267_vm2, %v25592_v30 }
 0x415   : > { %20632 = vmatmul.mubr.msk.f32.vlgmr.msra.gmra.mrb[8].mxu1 %vm267_vm2, %v25065_v35  ;;  %16406 = vmatprep.mubr.f32.mxu0 %v26317_v38  ;;  %v16776_v35 = vsel %vm16774_vm9, %v16769_v36, %v25609_v44  ;;  %v14958_v39 = vpop.permute.xlu1 %14957 }
 0x416   : > { %20638 = vmatpush3.msk.msra.mxu1 %vm280_vm1, %v14055_v13  ;;  %20634 = vmatprep.mubr.msk.f32.mxu1 %vm267_vm2, %v25075_v14  ;;  %v16767_v14 = vpop.permute.xlu0 %16766  ;;  %v14962_v42 = vsel %vm14959_vm13, %v25229_v17, %v14958_v39  ;;  %vm17455_vm13 = vcmask 490496  }
 0x417   : > { %20645 = vmatprep.subr.msk.mxu1 %vm280_vm1, %v14281_v60 }
 0x418   : > { %19633 = vmatmul.mubr.msk.f32.vlgmr.msra.gmra.mrb[0].mxu0 %vm267_vm2, %v25601_v21 }
 0x419   : > { %20635 = vmatmul.mubr.msk.f32.gmra.mrb[10].mxu1 %vm267_vm2, %v25091_v48  ;;  %16412 = vmatprep.mubr.f32.mxu0 %v26317_v38  ;;  %v25630_v48 = vld [vmem:[#allocation5 + $0x8f0] sm:$0xff]  ;;  %v16996_v16 = vpop.permute.xlu1 %16995 }
 0x41a   : > { %20639 = vmatprep.mubr.msk.f32.mxu1 %vm267_vm2, %v25099_v9  ;;  %19643 = vmatpush1.msk.msra.mxu0 %vm280_vm1, %v16548_v41  ;;  %v25643_v9 = vld [vmem:[#allocation5 + $0x8f8] sm:$0xff] }
 0x41b   : > { %19653 = vmatprep.subr.msk.mxu0 %vm280_vm1, %v16776_v35 }
 0x41c   : > { %19634 = vmatmul.mubr.msk.f32.gmra.mrb[2].mxu0 %vm267_vm2, %v25619_v59 }
 0x41d   : > { %20640 = vmatmul.mubr.msk.f32.vlgmr.msra.gmra.mrb[8].mxu1 %vm267_vm2, %v25116_v7  ;;  %16418 = vmatprep.mubr.f32.mxu0 %v26317_v38  ;;  %v15185_v7 = vpop.permute.xlu0 %15184 }
 0x41e   : > { %20646 = vmatpush3.msk.msra.mxu1 %vm280_vm1, %v14281_v60  ;;  %20642 = vmatprep.mubr.msk.f32.mxu1 %vm267_vm2, %v25132_v47  ;;  %v25652_v47 = vld [vmem:[#allocation5 + $0x900] sm:$0xff]  ;;  %v26400_v60 = vld [vmem:[#allocation25_spill] sm:$0xff] }
 0x41f   : > { %20653 = vmatprep.subr.msk.mxu1 %vm280_vm1, %v14508_v49 }
 0x420   : > { %19635 = vmatmul.mubr.msk.f32.gmra.mrb[4].mxu0 %vm267_vm2, %v25630_v48 }
 0x421   : > { %20643 = vmatmul.mubr.msk.f32.gmra.mrb[10].mxu1 %vm267_vm2, %v25146_v58  ;;  %16424 = vmatprep.mubr.f32.mxu0 %v26317_v38  ;;  %v14735_v58 = vsel %vm14732_vm14, %v25163_v28, %v14731_v4  ;;  %v25660_v6 = vpop.permute.xlu0 %16997  ;;  %v25670_v28 = vld [vmem:[#allocation5 + $0x908] sm:$0xff]  ;;  %vm17228_vm14 = vcmask 498688   ;;  %v25754_v4 = vld [vmem:[#allocation5 + $0x940] sm:$0xff] }
 0x422   : > { %20647 = vmatprep.mubr.msk.f32.mxu1 %vm267_vm2, %v25155_v50  ;;  %v16775_v50 = vsel %vm16774_vm9, %v16767_v14, %v16769_v36  ;;  %v26401_v36 = vld [vmem:[#allocation27_spill] sm:$0xff] }
 0x424   : > { %19636 = vmatmul.mubr.msk.f32.gmra.mrb[6].mxu0 %vm267_vm2, %v25643_v9 }
 0x425   : > { %20648 = vmatmul.mubr.msk.f32.vlgmr.msra.gmra.mrb[8].mxu1 %vm267_vm2, %v25174_v62  ;;  %16633 = vmatprep.mubr.f32.mxu0 %v26317_v38  ;;  %v17003_v62 = vsel %vm17001_vm8, %v16996_v16, %v25660_v6  ;;  %v15412_v17 = vpop.permute.xlu0 %15411 }
 0x426   : > { %20654 = vmatpush3.msk.msra.mxu1 %vm280_vm1, %v14508_v49  ;;  %20650 = vmatprep.mubr.msk.f32.mxu1 %vm267_vm2, %v25188_v2  ;;  %v16994_v2 = vpop.permute.xlu1 %16993  ;;  %v15416_v53 = vsel %vm15413_vm7, %v25334_v26, %v15412_v17  ;;  %vm26406_vm7 = vmmov %vm26390_vm4 }
 0x427   : > { %20661 = vmatprep.subr.msk.mxu1 %vm280_vm1, %v14735_v58 }
 0x428   : > { %19644 = vmatmul.mubr.msk.f32.vlgmr.msra.gmra.mrb[0].mxu0 %vm267_vm2, %v25652_v47 }
 0x429   : > { %20651 = vmatmul.mubr.msk.f32.gmra.mrb[10].mxu1 %vm267_vm2, %v25208_v43  ;;  %16639 = vmatprep.mubr.f32.mxu0 %v26317_v38  ;;  %v25681_v43 = vld [vmem:[#allocation5 + $0x910] sm:$0xff]  ;;  %v17223_v34 = vpop.permute.xlu0 %17222 }
 0x42a   : > { %20655 = vmatprep.mubr.msk.f32.mxu1 %vm267_vm2, %v25220_v57  ;;  %19654 = vmatpush1.msk.msra.mxu0 %vm280_vm1, %v16775_v50  ;;  %v25694_v57 = vld [vmem:[#allocation5 + $0x918] sm:$0xff] }
 0x42b   : > { %19664 = vmatprep.subr.msk.mxu0 %vm280_vm1, %v17003_v62  ;;  %v26403_v62 = vld [vmem:[#allocation29_spill] sm:$0xff] }
 0x42c   : > { %19645 = vmatmul.mubr.msk.f32.gmra.mrb[2].mxu0 %vm267_vm2, %v25670_v28 }
 0x42d   : > { %20656 = vmatmul.mubr.msk.f32.vlgmr.msra.gmra.mrb[8].mxu1 %vm267_vm2, %v25238_v24  ;;  %16645 = vmatprep.mubr.f32.mxu0 %v26317_v38  ;;  %v15639_v24 = vpop.permute.xlu1 %15638  ;;  %v17221_v40 = vpop.permute.xlu0 %17220 }
 0x42e   : > { %20662 = vmatpush3.msk.msra.mxu1 %vm280_vm1, %v14735_v58  ;;  %20658 = vmatprep.mubr.msk.f32.mxu1 %vm267_vm2, %v25254_v46  ;;  %v25703_v46 = vld [vmem:[#allocation5 + $0x920] sm:$0xff]  ;;  %v15643_v41 = vsel %vm15640_vm15, %v26400_v60, %v15639_v24  ;;  %v17229_v35 = vsel %vm17228_vm14, %v17221_v40, %v17223_v34  ;;  %v25772_v58 = vld [vmem:[#allocation5 + $0x948] sm:$0xff]  ;;  %vm17909_vm15 = vcmask 474112  }
 0x42f   : > { %20669 = vmatprep.subr.msk.mxu1 %vm280_vm1, %v14962_v42  ;;  %v17892_v60 = vld [vmem:[#allocation5 + $0x9c8] sm:$0xff] }
 0x430   : > { %19646 = vmatmul.mubr.msk.f32.gmra.mrb[4].mxu0 %vm267_vm2, %v25681_v43 }
 0x431   : > { %20659 = vmatmul.mubr.msk.f32.gmra.mrb[10].mxu1 %vm267_vm2, %v25266_v0  ;;  %16651 = vmatprep.mubr.f32.mxu0 %v26317_v38  ;;  %v15189_v0 = vsel %vm15186_vm10, %v25285_v8, %v15185_v7  ;;  %v25711_v12 = vpop.permute.xlu1 %17224  ;;  %v25721_v8 = vld [vmem:[#allocation5 + $0x928] sm:$0xff]  ;;  %v16093_v13 = vpop.permute.xlu0 %16092  ;;  %vm17682_vm10 = vcmask 482304  }
 0x432   : > { %20663 = vmatprep.mubr.msk.f32.mxu1 %vm267_vm2, %v25277_v27  ;;  %v17002_v27 = vsel %vm17001_vm8, %v16994_v2, %v16996_v16  ;;  %v26402_v7 = vld [vmem:[#allocation28_spill] sm:$0xff]  ;;  %v25783_v16 = vld [vmem:[#allocation5 + $0x950] sm:$0xff] }
 0x434   : > { %19647 = vmatmul.mubr.msk.f32.gmra.mrb[6].mxu0 %vm267_vm2, %v25694_v57 }
 0x435   : > { %20664 = vmatmul.mubr.msk.f32.vlgmr.msra.gmra.mrb[8].mxu1 %vm267_vm2, %v25295_v37  ;;  %16860 = vmatprep.mubr.f32.mxu0 %v26317_v38  ;;  %v17230_v37 = vsel %vm17228_vm14, %v17223_v34, %v25711_v12  ;;  %v15866_v26 = vpop.permute.xlu1 %15865  ;;  %v25762_v14 = vpop.permute.xlu0 %17451 }
 0x436   : > { %20670 = vmatpush3.msk.msra.mxu1 %vm280_vm1, %v14962_v42  ;;  %20666 = vmatprep.mubr.msk.f32.mxu1 %vm267_vm2, %v26394_v52  ;;  %v15870_v2 = vsel %vm15867_vm12, %v26403_v62, %v15866_v26  ;;  %v26405_v42 = vld [vmem:[#allocation31_spill] sm:$0xff]  ;;  %v16097_v52 = vsel %vm16094_vm0, %v25462_v56, %v16093_v13  ;;  %v25823_v56 = vld [vmem:[#allocation5 + $0x968] sm:$0xff]  ;;  %vm18136_vm12 = vcmask 465920   ;;  %vm26407_vm0 = vcmask 457728  }
 0x437   : > { %20677 = vmatprep.subr.msk.mxu1 %vm280_vm1, %v15189_v0  ;;  %vm26408_vm4 = vmmov %vm26407_vm0 }
 0x438   : > { %19655 = vmatmul.mubr.msk.f32.vlgmr.msra.gmra.mrb[0].mxu0 %vm267_vm2, %v25703_v46 }
 0x439   : > { %20667 = vmatmul.mubr.msk.f32.gmra.mrb[10].mxu1 %vm267_vm2, %v26395_v23  ;;  %16866 = vmatprep.mubr.f32.mxu0 %v26317_v38  ;;  %v17450_v49 = vpop.permute.xlu1 %17449  ;;  %v16320_v17 = vpop.permute.xlu0 %16319 }
 0x43a   : > { %20671 = vmatprep.mubr.msk.f32.mxu1 %vm267_vm2, %v25327_v45  ;;  %19665 = vmatpush1.msk.msra.mxu0 %vm280_vm1, %v17002_v27  ;;  %v26396_v45 = vld [vmem:[#allocation22_spill] sm:$0xff]  ;;  %v17457_v39 = vsel %vm17455_vm13, %v17450_v49, %v25762_v14 }
 0x43b   : > { %19675 = vmatprep.subr.msk.mxu0 %vm280_vm1, %v17230_v37  ;;  %v16323_v37 = vsel %vm26406_vm7, %v25507_v32, %v16320_v17  ;;  %v18346_v17 = vld [vmem:[#allocation5 + $0xa08] sm:$0xff] }
 0x43c   : > { %19656 = vmatmul.mubr.msk.f32.gmra.mrb[2].mxu0 %vm267_vm2, %v25721_v8 }
 0x43d   : > { %20672 = vmatmul.mubr.msk.f32.vlgmr.msra.gmra.mrb[8].mxu1 %vm267_vm2, %v25343_v54  ;;  %16872 = vmatprep.mubr.f32.mxu0 %v26317_v38  ;;  %v25745_v54 = vld [vmem:[#allocation5 + $0x938] sm:$0xff]  ;;  %v17448_v50 = vpop.permute.xlu1 %17447  ;;  %v17677_v34 = vpop.permute.xlu0 %17676 }
 0x43e   : > { %20678 = vmatpush3.msk.msra.mxu1 %vm280_vm1, %v15189_v0  ;;  %20674 = vmatprep.mubr.msk.f32.mxu1 %vm267_vm2, %v26396_v45  ;;  %v25805_v0 = vld [vmem:[#allocation5 + $0x960] sm:$0xff] }
 0x43f   : > { %20685 = vmatprep.subr.msk.mxu1 %vm280_vm1, %v15416_v53 }
 0x440   : > { %19657 = vmatmul.mubr.msk.f32.gmra.mrb[4].mxu0 %vm267_vm2, %v25732_v18 }
 0x441   : > { %20675 = vmatmul.mubr.msk.f32.gmra.mrb[10].mxu1 %vm267_vm2, %v26397_v55  ;;  %16878 = vmatprep.mubr.f32.mxu0 %v26317_v38  ;;  %v16546_v24 = vpop.permute.xlu1 %16545 }
 0x442   : > { %20679 = vmatprep.mubr.msk.f32.mxu1 %vm267_vm2, %v26398_v20 }
 0x444   : > { %19658 = vmatmul.mubr.msk.f32.gmra.mrb[6].mxu0 %vm267_vm2, %v25745_v54 }
 0x445   : > { %20680 = vmatmul.mubr.msk.f32.vlgmr.msra.gmra.mrb[8].mxu1 %vm267_vm2, %v26399_v19  ;;  %17087 = vmatprep.mubr.f32.mxu0 %v26317_v38  ;;  %v25813_v27 = vpop.permute.xlu1 %17678 }
 0x446   : > { %20686 = vmatpush3.msk.msra.mxu1 %vm280_vm1, %v15416_v53  ;;  %20682 = vmatprep.mubr.msk.f32.mxu1 %vm267_vm2, %v26401_v36 }
 0x447   : > { %20693 = vmatprep.subr.msk.mxu1 %vm280_vm1, %v15643_v41 }
 0x448   : > { %19666 = vmatmul.mubr.msk.f32.vlgmr.msra.gmra.mrb[0].mxu0 %vm267_vm2, %v25754_v4 }
 0x449   : > { %20683 = vmatmul.mubr.msk.f32.gmra.mrb[10].mxu1 %vm267_vm2, %v26402_v7  ;;  %17093 = vmatprep.mubr.f32.mxu0 %v26317_v38  ;;  %v16773_v32 = vpop.permute.xlu1 %16772 }
 0x44a   : > { %20687 = vmatprep.mubr.msk.f32.mxu1 %vm267_vm2, %v25412_v5  ;;  %19676 = vmatpush1.msk.msra.mxu0 %vm280_vm1, %v17229_v35  ;;  %v26404_v5 = vld [vmem:[#allocation30_spill] sm:$0xff]  ;;  %v16777_v53 = vsel %vm16774_vm9, %v25609_v44, %v16773_v32 }
 0x44b   : > { %19686 = vmatprep.subr.msk.mxu0 %vm280_vm1, %v17457_v39  ;;  %v17894_v35 = vld [vmem:[#allocation5 + $0x9d8] sm:$0xff] }
 0x44c   : > { %19667 = vmatmul.mubr.msk.f32.gmra.mrb[2].mxu0 %vm267_vm2, %v25772_v58 }
 0x44d   : > { %20688 = vmatmul.mubr.msk.f32.vlgmr.msra.gmra.mrb[8].mxu1 %vm267_vm2, %v25428_v25  ;;  %17099 = vmatprep.mubr.f32.mxu0 %v26317_v38  ;;  %v25796_v25 = vld [vmem:[#allocation5 + $0x958] sm:$0xff]  ;;  %v17904_v40 = vpop.permute.xlu1 %17903 }
 0x44e   : > { %20694 = vmatpush3.msk.msra.mxu1 %vm280_vm1, %v15643_v41  ;;  %20690 = vmatprep.mubr.msk.f32.mxu1 %vm267_vm2, %v26404_v5  ;;  %v17893_v41 = vld [vmem:[#allocation5 + $0x9d0] sm:$0xff]  ;;  %v18121_v5 = vld [vmem:[#allocation5 + $0x9f8] sm:$0xff] }
 0x44f   : > { %20701 = vmatprep.subr.msk.mxu1 %vm280_vm1, %v15870_v2 }
 0x450   : > { %19668 = vmatmul.mubr.msk.f32.gmra.mrb[4].mxu0 %vm267_vm2, %v25783_v16 }
 0x451   : > { %20691 = vmatmul.mubr.msk.f32.gmra.mrb[10].mxu1 %vm267_vm2, %v26405_v42  ;;  %17105 = vmatprep.mubr.f32.mxu0 %v26317_v38 }
 0x452   : > { %20695 = vmatprep.mubr.msk.f32.mxu1 %vm267_vm2, %v25455_v51  ;;  %v17456_v51 = vsel %vm17455_vm13, %v17448_v50, %v17450_v49 }
 0x454   : > { %19669 = vmatmul.mubr.msk.f32.gmra.mrb[6].mxu0 %vm267_vm2, %v25796_v25 }
 0x455   : > { %20696 = vmatmul.mubr.msk.f32.vlgmr.msra.gmra.mrb[8].mxu1 %vm267_vm2, %v25471_v63  ;;  %17314 = vmatprep.mubr.f32.mxu0 %v26317_v38  ;;  %v17684_v63 = vsel %vm17682_vm10, %v17677_v34, %v25813_v27 }
 0x456   : > { %20702 = vmatpush3.msk.msra.mxu1 %vm280_vm1, %v15870_v2  ;;  %20698 = vmatprep.mubr.msk.f32.mxu1 %vm267_vm2, %v25480_v29  ;;  %v17675_v29 = vpop.permute.xlu0 %17674 }
 0x457   : > { %20709 = vmatprep.subr.msk.mxu1 %vm280_vm1, %v16097_v52 }
 0x458   : > { %19677 = vmatmul.mubr.msk.f32.vlgmr.msra.gmra.mrb[0].mxu0 %vm267_vm2, %v25805_v0 }
 0x459   : > { %20699 = vmatmul.mubr.msk.f32.gmra.mrb[10].mxu1 %vm267_vm2, %v25491_v11  ;;  %17320 = vmatprep.mubr.f32.mxu0 %v26317_v38  ;;  %v25834_v11 = vld [vmem:[#allocation5 + $0x970] sm:$0xff] }
 0x45a   : > { %20703 = vmatprep.mubr.msk.f32.mxu1 %vm267_vm2, %v25499_v22  ;;  %19687 = vmatpush1.msk.msra.mxu0 %vm280_vm1, %v17456_v51  ;;  %v25847_v22 = vld [vmem:[#allocation5 + $0x978] sm:$0xff] }
 0x45b   : > { %19697 = vmatprep.subr.msk.mxu0 %vm280_vm1, %v17684_v63 }
 0x45c   : > { %19678 = vmatmul.mubr.msk.f32.gmra.mrb[2].mxu0 %vm267_vm2, %v25823_v56 }
 0x45d   : > { %20704 = vmatmul.mubr.msk.f32.vlgmr.msra.gmra.mrb[8].mxu1 %vm267_vm2, %v25517_v3  ;;  %17326 = vmatprep.mubr.f32.mxu0 %v26317_v38  ;;  %v17000_v3 = vpop.permute.xlu0 %16999 }
 0x45e   : > { %20710 = vmatpush3.msk.msra.mxu1 %vm280_vm1, %v16097_v52  ;;  %20706 = vmatprep.mubr.msk.f32.mxu1 %vm267_vm2, %v25528_v31  ;;  %v25856_v31 = vld [vmem:[#allocation5 + $0x980] sm:$0xff]  ;;  %v18571_v52 = vlaneseq }
 0x45f   : > { %20717 = vmatprep.subr.msk.mxu1 %vm280_vm1, %v16323_v37 }
 0x460   : > { %19679 = vmatmul.mubr.msk.f32.gmra.mrb[4].mxu0 %vm267_vm2, %v25834_v11  ;;  %v18572_v51 = vshrl.u32 %v18571_v52, 7 }
 0x461   : > { %20707 = vmatmul.mubr.msk.f32.gmra.mrb[10].mxu1 %vm267_vm2, %v25541_v33  ;;  %17332 = vmatprep.mubr.f32.mxu0 %v26317_v38  ;;  %v16550_v33 = vsel %vm16547_vm5, %v25558_v15, %v16546_v24  ;;  %v25864_v23 = vpop.permute.xlu0 %17905  ;;  %v25874_v15 = vld [vmem:[#allocation5 + $0x988] sm:$0xff]  ;;  %vm26409_vm5 = vmmov %vm26407_vm0  ;;  %v18347_v24 = vld [vmem:[#allocation5 + $0xa10] sm:$0xff] }
 0x462   : > { %20711 = vmatprep.mubr.msk.f32.mxu1 %vm267_vm2, %v25550_v10  ;;  %v17683_v10 = vsel %vm17682_vm10, %v17675_v29, %v17677_v34  ;;  %v26410_v34 = vld [vmem:[#allocation12_spill] sm:$0xff]  ;;  %v26411_v29 = vld [vmem:[#allocation13_spill] sm:$0xff] }
 0x464   : > { %19680 = vmatmul.mubr.msk.f32.gmra.mrb[6].mxu0 %vm267_vm2, %v25847_v22 }
 0x465   : > { %20712 = vmatmul.mubr.msk.f32.vlgmr.msra.gmra.mrb[8].mxu1 %vm267_vm2, %v25568_v1  ;;  %17541 = vmatprep.mubr.f32.mxu0 %v26317_v38  ;;  %v17911_v1 = vsel %vm17909_vm15, %v17904_v40, %v25864_v23  ;;  %v17227_v44 = vpop.permute.xlu0 %17226 }
 0x466   : > { %20718 = vmatpush3.msk.msra.mxu1 %vm280_vm1, %v16323_v37  ;;  %20714 = vmatprep.mubr.msk.f32.mxu1 %vm267_vm2, %v25579_v61  ;;  %v17902_v61 = vpop.permute.xlu1 %17901  ;;  %v17231_v20 = vsel %vm17228_vm14, %v25711_v12, %v17227_v44  ;;  %v18577_v37 = vsub.s32 1, %v18572_v51 }
 0x467   : > { %20725 = vmatprep.subr.msk.mxu1 %vm280_vm1, %v16550_v33 }
 0x468   : > { %19688 = vmatmul.mubr.msk.f32.vlgmr.msra.gmra.mrb[0].mxu0 %vm267_vm2, %v25856_v31 }
 0x469   : > { %20715 = vmatmul.mubr.msk.f32.gmra.mrb[10].mxu1 %vm267_vm2, %v25592_v30  ;;  %17547 = vmatprep.mubr.f32.mxu0 %v26317_v38  ;;  %v25885_v30 = vld [vmem:[#allocation5 + $0x990] sm:$0xff] }
 0x46a   : > { %20719 = vmatprep.mubr.msk.f32.mxu1 %vm267_vm2, %v25601_v21  ;;  %19698 = vmatpush1.msk.msra.mxu0 %vm280_vm1, %v17683_v10  ;;  %v25898_v21 = vld [vmem:[#allocation5 + $0x998] sm:$0xff] }
 0x46b   : > { %19708 = vmatprep.subr.msk.mxu0 %vm280_vm1, %v17911_v1  ;;  %v26413_v10 = vld [vmem:[#allocation15_spill] sm:$0xff] }
 0x46c   : > { %19689 = vmatmul.mubr.msk.f32.gmra.mrb[2].mxu0 %vm267_vm2, %v25874_v15 }
 0x46d   : > { %20720 = vmatmul.mubr.msk.f32.vlgmr.msra.gmra.mrb[8].mxu1 %vm267_vm2, %v25619_v59  ;;  %17553 = vmatprep.mubr.f32.mxu0 %v26317_v38  ;;  %v17454_v59 = vpop.permute.xlu1 %17453 }
 0x46e   : > { %20726 = vmatpush3.msk.msra.mxu1 %vm280_vm1, %v16550_v33  ;;  %20722 = vmatprep.mubr.msk.f32.mxu1 %vm267_vm2, %v25630_v48  ;;  %v25907_v48 = vld [vmem:[#allocation5 + $0x9a0] sm:$0xff] }
 0x46f   : > { %20733 = vmatprep.subr.msk.mxu1 %vm280_vm1, %v16777_v53 }
 0x470   : > { %19690 = vmatmul.mubr.msk.f32.gmra.mrb[4].mxu0 %vm267_vm2, %v25885_v30 }
 0x471   : > { %20723 = vmatmul.mubr.msk.f32.gmra.mrb[10].mxu1 %vm267_vm2, %v25643_v9  ;;  %17559 = vmatprep.mubr.f32.mxu0 %v26317_v38  ;;  %v17004_v9 = vsel %vm17001_vm8, %v25660_v6, %v17000_v3  ;;  %v25915_v45 = vpop.permute.xlu1 %18132  ;;  %v25925_v6 = vld [vmem:[#allocation5 + $0x9a8] sm:$0xff]  ;;  %v26412_v3 = vld [vmem:[#allocation14_spill] sm:$0xff] }
 0x472   : > { %20727 = vmatprep.mubr.msk.f32.mxu1 %vm267_vm2, %v25652_v47  ;;  %v17910_v47 = vsel %vm17909_vm15, %v17902_v61, %v17904_v40  ;;  %v18581_v40 = vsub.s32 2, %v18572_v51 }
 0x474   : > { %19691 = vmatmul.mubr.msk.f32.gmra.mrb[6].mxu0 %vm267_vm2, %v25898_v21 }
 0x475   : > { %20728 = vmatmul.mubr.msk.f32.vlgmr.msra.gmra.mrb[8].mxu1 %vm267_vm2, %v25670_v28  ;;  %17768 = vmatprep.mubr.f32.mxu0 %v26317_v38  ;;  %v18131_v28 = vpop.permute.xlu0 %18130  ;;  %v17681_v12 = vpop.permute.xlu1 %17680 }
 0x476   : > { %20734 = vmatpush3.msk.msra.mxu1 %vm280_vm1, %v16777_v53  ;;  %20730 = vmatprep.mubr.msk.f32.mxu1 %vm267_vm2, %v25681_v43  ;;  %v18138_v55 = vsel %vm18136_vm12, %v18131_v28, %v25915_v45  ;;  %v17685_v36 = vsel %vm17682_vm10, %v25813_v27, %v17681_v12 }
 0x477   : > { %20741 = vmatprep.subr.msk.mxu1 %vm280_vm1, %v17004_v9 }
 0x478   : > { %19699 = vmatmul.mubr.msk.f32.vlgmr.msra.gmra.mrb[0].mxu0 %vm267_vm2, %v25907_v48 }
 0x479   : > { %20731 = vmatmul.mubr.msk.f32.gmra.mrb[10].mxu1 %vm267_vm2, %v25694_v57  ;;  %17774 = vmatprep.mubr.f32.mxu0 %v26317_v38  ;;  %v18129_v43 = vpop.permute.xlu0 %18128  ;;  %v25936_v57 = vld [vmem:[#allocation5 + $0x9b0] sm:$0xff]  ;;  %v18358_v19 = vpop.permute.xlu1 %18357 }
 0x47a   : > { %20735 = vmatprep.mubr.msk.f32.mxu1 %vm267_vm2, %v25703_v46  ;;  %19709 = vmatpush1.msk.msra.mxu0 %vm280_vm1, %v17910_v47  ;;  %v25949_v46 = vld [vmem:[#allocation5 + $0x9b8] sm:$0xff]  ;;  %v18137_v26 = vsel %vm18136_vm12, %v18129_v43, %v18131_v28 }
 0x47b   : > { %19719 = vmatprep.subr.msk.mxu0 %vm280_vm1, %v18138_v55 }
 0x47c   : > { %19700 = vmatmul.mubr.msk.f32.gmra.mrb[2].mxu0 %vm267_vm2, %v25925_v6 }
 0x47d   : > { %20736 = vmatmul.mubr.msk.f32.vlgmr.msra.gmra.mrb[8].mxu1 %vm267_vm2, %v25721_v8  ;;  %17780 = vmatprep.mubr.f32.mxu0 %v26317_v38  ;;  %v17908_v8 = vpop.permute.xlu0 %17907  ;;  %v18356_v39 = vpop.permute.xlu1 %18355 }
 0x47e   : > { %20742 = vmatpush3.msk.msra.mxu1 %vm280_vm1, %v17004_v9  ;;  %20738 = vmatprep.mubr.msk.f32.mxu1 %vm267_vm2, %v25732_v18  ;;  %v17891_v18 = vld [vmem:[#allocation5 + $0x9c0] sm:$0xff]  ;;  %v17912_v49 = vsel %vm17909_vm15, %v25864_v23, %v17908_v8  ;;  %v18363_v7 = vsel %vm26408_vm4, %v18356_v39, %v18358_v19 }
 0x47f   : > { %20749 = vmatprep.subr.msk.mxu1 %vm280_vm1, %v17231_v20  ;;  %v26417_v8 = vld [vmem:[#allocation19_spill] sm:$0xff] }
 0x480   : > { %19701 = vmatmul.mubr.msk.f32.gmra.mrb[4].mxu0 %vm267_vm2, %v25936_v57 }
 0x481   : > { %20739 = vmatmul.mubr.msk.f32.gmra.mrb[10].mxu1 %vm267_vm2, %v25745_v54  ;;  %17786 = vmatprep.mubr.f32.mxu0 %v26317_v38  ;;  %v17458_v54 = vsel %vm17455_vm13, %v25762_v14, %v17454_v59  ;;  %v18360_v13 = vpop.permute.xlu0 %18359  ;;  %v18118_v14 = vld [vmem:[#allocation5 + $0x9e0] sm:$0xff]  ;;  %v18362_v2 = vpop.permute.xlu1 %18361 }
 0x482   : > { %20743 = vmatprep.mubr.msk.f32.mxu1 %vm267_vm2, %v25754_v4  ;;  %v18364_v4 = vsel %vm26407_vm0, %v18358_v19, %v18360_v13  ;;  %v18365_v42 = vsel %vm26409_vm5, %v18360_v13, %v18362_v2 }
 0x484   : > { %19702 = vmatmul.mubr.msk.f32.gmra.mrb[6].mxu0 %vm267_vm2, %v25949_v46 }
 0x485   : > { %20744 = vmatmul.mubr.msk.f32.vlgmr.msra.gmra.mrb[8].mxu1 %vm267_vm2, %v25772_v58  ;;  %17995 = vmatprep.mubr.f32.mxu0 %v26317_v38  ;;  %v18119_v58 = vld [vmem:[#allocation5 + $0x9e8] sm:$0xff]  ;;  %v18135_v50 = vpop.permute.xlu0 %18134 }
 0x486   : > { %20750 = vmatpush3.msk.msra.mxu1 %vm280_vm1, %v17231_v20  ;;  %20746 = vmatprep.mubr.msk.f32.mxu1 %vm267_vm2, %v25783_v16  ;;  %v18120_v16 = vld [vmem:[#allocation5 + $0x9f0] sm:$0xff]  ;;  %v18139_v62 = vsel %vm18136_vm12, %v25915_v45, %v18135_v50 }
 0x487   : > { %20757 = vmatprep.subr.msk.mxu1 %vm280_vm1, %v17458_v54 }
 0x488   : > { %19710 = vmatmul.mubr.msk.f32.vlgmr.msra.gmra.mrb[0].mxu0 %vm267_vm2, %v17891_v18 }
 0x489   : > { %20747 = vmatmul.mubr.msk.f32.gmra.mrb[10].mxu1 %vm267_vm2, %v25796_v25  ;;  %18001 = vmatprep.mubr.f32.mxu0 %v26317_v38  ;;  %v18345_v25 = vld [vmem:[#allocation5 + $0xa00] sm:$0xff] }
 0x48a   : > { %20751 = vmatprep.mubr.msk.f32.mxu1 %vm267_vm2, %v25805_v0  ;;  %19720 = vmatpush1.msk.msra.mxu0 %vm280_vm1, %v18137_v26  ;;  %v18348_v0 = vld [vmem:[#allocation5 + $0xa18] sm:$0xff] }
 0x48b   : > { %19730 = vmatprep.subr.msk.mxu0 %vm280_vm1, %v18364_v4 }
 0x48c   : > { %19711 = vmatmul.mubr.msk.f32.gmra.mrb[2].mxu0 %vm267_vm2, %v17892_v60 }
 0x48d   : > { %20752 = vmatmul.mubr.msk.f32.vlgmr.msra.gmra.mrb[8].mxu1 %vm267_vm2, %v25823_v56  ;;  %18007 = vmatprep.mubr.f32.mxu0 %v26317_v38 }
 0x48e   : > { %20758 = vmatpush3.msk.msra.mxu1 %vm280_vm1, %v17458_v54  ;;  %20754 = vmatprep.mubr.msk.f32.mxu1 %vm267_vm2, %v25834_v11 }
 0x48f   : > { %20765 = vmatprep.subr.msk.mxu1 %vm280_vm1, %v17685_v36 }
 0x490   : > { %19712 = vmatmul.mubr.msk.f32.gmra.mrb[4].mxu0 %vm267_vm2, %v17893_v41 }
 0x491   : > { %20755 = vmatmul.mubr.msk.f32.gmra.mrb[10].mxu1 %vm267_vm2, %v25847_v22  ;;  %18013 = vmatprep.mubr.f32.mxu0 %v26317_v38  ;;  %v238_v22 = vld [vmem:[#allocation7] sm:$0x7] }
 0x492   : > { %20759 = vmatprep.mubr.msk.f32.mxu1 %vm267_vm2, %v25856_v31  ;;  %v26059_v47 = vrot.slane %v238_v22, %v18581_v40 }
 0x494   : > { %19713 = vmatmul.mubr.msk.f32.gmra.mrb[6].mxu0 %vm267_vm2, %v17894_v35 }
 0x495   : > { %20760 = vmatmul.mubr.msk.f32.vlgmr.msra.gmra.mrb[8].mxu1 %vm267_vm2, %v25874_v15  ;;  %18222 = vmatprep.mubr.f32.mxu0 %v26317_v38  ;;  %v26053_v15 = vrot.slane %v238_v22, %v18577_v37 }
 0x496   : > { %20766 = vmatpush3.msk.msra.mxu1 %vm280_vm1, %v17685_v36  ;;  %20762 = vmatprep.mubr.msk.f32.mxu1 %vm267_vm2, %v25885_v30  ;;  %v26414_v30 = vld [vmem:[#allocation16_spill] sm:$0xff] }
 0x497   : > { %20773 = vmatprep.subr.msk.mxu1 %vm280_vm1, %v17912_v49 }
 0x498   : > { %19721 = vmatmul.mubr.msk.f32.vlgmr.msra.gmra.mrb[0].mxu0 %vm267_vm2, %v18118_v14 }
 0x499   : > { %20763 = vmatmul.mubr.msk.f32.gmra.mrb[10].mxu1 %vm267_vm2, %v25898_v21  ;;  %18228 = vmatprep.mubr.f32.mxu0 %v26317_v38 }
 0x49a   : > { %20767 = vmatprep.mubr.msk.f32.mxu1 %vm267_vm2, %v25907_v48  ;;  %19731 = vmatpush1.msk.msra.mxu0 %vm280_vm1, %v18363_v7  ;;  %v26415_v48 = vld [vmem:[#allocation17_spill] sm:$0xff] }
 0x49c   : > { %19722 = vmatmul.mubr.msk.f32.gmra.mrb[2].mxu0 %vm267_vm2, %v18119_v58 }
 0x49d   : > { %20768 = vmatmul.mubr.msk.f32.vlgmr.msra.gmra.mrb[8].mxu1 %vm267_vm2, %v25925_v6  ;;  %18234 = vmatprep.mubr.f32.mxu0 %v26317_v38  ;;  %v26416_v6 = vld [vmem:[#allocation18_spill] sm:$0xff] }
 0x49e   : > { %20774 = vmatpush3.msk.msra.mxu1 %vm280_vm1, %v17912_v49  ;;  %20770 = vmatprep.mubr.msk.f32.mxu1 %vm267_vm2, %v25936_v57 }
 0x49f   : > { %20781 = vmatprep.subr.msk.mxu1 %vm280_vm1, %v18139_v62 }
 0x4a0   : > { %19723 = vmatmul.mubr.msk.f32.gmra.mrb[4].mxu0 %vm267_vm2, %v18120_v16 }
 0x4a1   : > { %20771 = vmatmul.mubr.msk.f32.gmra.mrb[10].mxu1 %vm267_vm2, %v25949_v46  ;;  %18240 = vmatprep.mubr.f32.mxu0 %v26317_v38 }
 0x4a2   : > { %20775 = vmatprep.mubr.msk.f32.mxu1 %vm267_vm2, %v17891_v18 }
 0x4a4   : > { %19724 = vmatmul.mubr.msk.f32.gmra.mrb[6].mxu0 %vm267_vm2, %v18121_v5 }
 0x4a5   : > { %20776 = vmatmul.mubr.msk.f32.vlgmr.msra.gmra.mrb[8].mxu1 %vm267_vm2, %v17892_v60  ;;  %18448 = vmatprep.mubr.f32.mxu0 %v26317_v38 }
 0x4a6   : > { %20782 = vmatpush3.msk.msra.mxu1 %vm280_vm1, %v18139_v62  ;;  %20778 = vmatprep.mubr.msk.f32.mxu1 %vm267_vm2, %v17893_v41 }
 0x4a7   : > { %20789 = vmatprep.subr.msk.mxu1 %vm280_vm1, %v18365_v42 }
 0x4a8   : > { %19732 = vmatmul.mubr.msk.f32.vlgmr.msra.gmra.mrb[0].mxu0 %vm267_vm2, %v18345_v25 }
 0x4a9   : > { %20779 = vmatmul.mubr.msk.f32.gmra.mrb[10].mxu1 %vm267_vm2, %v17894_v35  ;;  %18454 = vmatprep.mubr.f32.mxu0 %v26317_v38 }
 0x4aa   : > { %20783 = vmatprep.mubr.msk.f32.mxu1 %vm267_vm2, %v18118_v14 }
 0x4ac   : > { %19733 = vmatmul.mubr.msk.f32.gmra.mrb[2].mxu0 %vm267_vm2, %v18346_v17 }
 0x4ad   : > { %20784 = vmatmul.mubr.msk.f32.vlgmr.msra.gmra.mrb[8].mxu1 %vm267_vm2, %v18119_v58  ;;  %18460 = vmatprep.mubr.f32.mxu0 %v26317_v38 }
 0x4ae   : > { %20790 = vmatpush3.msk.msra.mxu1 %vm280_vm1, %v18365_v42  ;;  %20786 = vmatprep.mubr.msk.f32.mxu1 %vm267_vm2, %v18120_v16 }
 0x4b0   : > { %19734 = vmatmul.mubr.msk.f32.gmra.mrb[4].mxu0 %vm267_vm2, %v18347_v24 }
 0x4b1   : > { %20787 = vmatmul.mubr.msk.f32.gmra.mrb[10].mxu1 %vm267_vm2, %v18121_v5  ;;  %18466 = vmatprep.mubr.f32.mxu0 %v26317_v38  ;;  %v18573_v38 = vsub.s32 0, %v18572_v51 }
 0x4b2   : > { %20791 = vmatprep.mubr.msk.f32.mxu1 %vm267_vm2, %v18345_v25 }
 0x4b3   : > { %v26051_v1 = vrot.slane %v238_v22, %v18573_v38 }
 0x4b4   : > { %19735 = vmatmul.mubr.msk.f32.gmra.mrb[6].mxu0 %vm267_vm2, %v18348_v0 }
 0x4b5   : > { %20792 = vmatmul.mubr.msk.f32.vlgmr.msra.gmra.mrb[8].mxu1 %vm267_vm2, %v18346_v17 }
 0x4b6   : > { %20794 = vmatprep.mubr.msk.f32.mxu1 %vm267_vm2, %v18347_v24 }
 0x4b9   : > { %20795 = vmatmul.mubr.msk.f32.gmra.mrb[10].mxu1 %vm267_vm2, %v18348_v0 }
 0x57b   : > { %v18450_v27 = vpop.f32.mrb[0].mxu0 }
 0x57c   : > { %v20799_v63 = vadd.f32 %v18450_v27, %v26410_v34  ;;  %v18452_v56 = vpop.f32.mrb[1].mxu0 }
 0x57d   : > { %v20800_v11 = vadd.f32 %v18452_v56, %v26411_v29 }
 0x57e   : > { %v18586_v45 = vmul.f32 %v20799_v63, %v26051_v1 }
 0x57f   : > { %v18456_v32 = vpop.f32.mrb[2].mxu0  ;;  %v18587_v28 = vmul.f32 %v20800_v11, %v26053_v15 }
 0x580   : > { %v20801_v31 = vadd.f32 %v18456_v32, %v26412_v3  ;;  %v18458_v33 = vpop.f32.mrb[3].mxu0 }
 0x581   : > { %v20802_v23 = vadd.f32 %v18458_v33, %v26413_v10  ;;  %v18598_v26 = vadd.f32 %v18587_v28, %v18586_v45 }
 0x582   : > { %v18589_v44 = vmul.f32 %v20801_v31, %v26051_v1 }
 0x583   : > { %v18462_v61 = vpop.f32.mrb[4].mxu0  ;;  %v18590_v59 = vmul.f32 %v20802_v23, %v26053_v15 }
 0x584   : > { %v20803_v53 = vadd.f32 %v18462_v61, %v26414_v30  ;;  %v18464_v21 = vpop.f32.mrb[5].mxu0 }
 0x585   : > { %v20804_v9 = vadd.f32 %v18464_v21, %v26415_v48  ;;  %v18602_v46 = vadd.f32 %v18590_v59, %v18589_v44 }
 0x586   : > { %v18592_v13 = vmul.f32 %v20803_v53, %v26051_v1 }
 0x587   : > { %v18468_v55 = vpop.f32.mrb[6].mxu0  ;;  %v18593_v19 = vmul.f32 %v20804_v9, %v26053_v15 }
 0x588   : > { %v20805_v43 = vadd.f32 %v18468_v55, %v26416_v6  ;;  %v20793_v57 = vpop.f32.mrb[8].mxu1  ;;  %v18470_v20 = vpop.f32.mrb[7].mxu0 }
 0x589   : > { %v18591_v12 = vmul.f32 %v20793_v57, %v26059_v47  ;;  %v20806_v18 = vadd.f32 %v18470_v20, %v26417_v8  ;;  %v18539_v54 = vpop.f32.mrb[9].mxu1  ;;  %v18606_v7 = vadd.f32 %v18593_v19, %v18592_v13 }
 0x58a   : > { %v18588_v4 = vmul.f32 %v26059_v47, %v18539_v54  ;;  %v18595_v41 = vmul.f32 %v20805_v43, %v26051_v1 }
 0x58b   : > { %v18603_v60 = vadd.f32 %v18602_v46, %v18591_v12  ;;  %v18596_v36 = vmul.f32 %v20806_v18, %v26053_v15 }
 0x58c   : > { %v18599_v35 = vadd.f32 %v18598_v26, %v18588_v4  ;;  %v20796_v14 = vpop.f32.mrb[10].mxu1 }
 0x58d   : > { %v18549_v49 = vpop.f32.mrb[11].mxu1  ;;  %18604 = vadd.xlane.f32.xlu1 %v18603_v60  ;;  %v18610_v58 = vadd.f32 %v18596_v36, %v18595_v41  ;;  %v18597_v50 = vmul.f32 %v20796_v14, %v26059_v47 }
 0x58e   : > { %v18594_v39 = vmul.f32 %v26059_v47, %v18549_v49  ;;  %18600 = vadd.xlane.f32.xlu0 %v18599_v35 }
 0x58f   : > { %v18611_v62 = vadd.f32 %v18610_v58, %v18597_v50 }
 0x590   : > { %v18607_v16 = vadd.f32 %v18606_v7, %v18594_v39 }
 0x592   : > { %18608 = vadd.xlane.f32.xlu0 %v18607_v16 }
 0x596   : > { %18612 = vadd.xlane.f32.xlu0 %v18611_v62 }
 0x61a   : > { %v18605_v2 = vpop.xlane.xlu1 %18604 }
 0x61b   : > { %v18615_v5 = vmul.f32 0.00390625, %v18605_v2  ;;  %v18601_v42 = vpop.xlane.xlu0 %18600 }
 0x61c   : > { %v18614_v25 = vmul.f32 0.00390625, %v18601_v42 }
 0x61d   : > { %v26073_v17 = vsub.f32 %v20801_v31, %v18615_v5  ;;  %v26075_v24 = vsub.f32 %v20802_v23, %v18615_v5  ;;  %v26077_v0 = vsub.f32 %v20793_v57, %v18615_v5 }
 0x61e   : > { %v26079_v52 = vsub.f32 %v20799_v63, %v18614_v25  ;;  %v26081_v51 = vsub.f32 %v20800_v11, %v18614_v25  ;;  %v26083_v27 = vsub.f32 %v18539_v54, %v18614_v25 }
 0x61f   : > { %v18633_v34 = vmul.f32 %v26073_v17, %v26073_v17  ;;  %v18634_v56 = vmul.f32 %v26075_v24, %v26075_v24  ;;  %v18635_v29 = vmul.f32 %v26077_v0, %v26077_v0  ;;  %v18609_v38 = vpop.xlane.xlu0 %18608 }
 0x620   : > { %v18630_v37 = vmul.f32 %v26079_v52, %v26079_v52  ;;  %v18631_v63 = vmul.f32 %v26081_v51, %v26081_v51  ;;  %v18616_v11 = vmul.f32 0.00390625, %v18609_v38  ;;  %v18632_v22 = vmul.f32 %v26083_v27, %v26083_v27 }
 0x621   : > { %v18645_v32 = vmul.f32 %v18633_v34, %v26051_v1  ;;  %v18646_v3 = vmul.f32 %v18634_v56, %v26053_v15  ;;  %v18647_v61 = vmul.f32 %v18635_v29, %v26059_v47 }
 0x622   : > { %v26099_v31 = vsub.f32 %v20803_v53, %v18616_v11  ;;  %v26101_v33 = vsub.f32 %v20804_v9, %v18616_v11  ;;  %v26103_v10 = vsub.f32 %v18549_v49, %v18616_v11  ;;  %v18642_v23 = vmul.f32 %v18630_v37, %v26051_v1 }
 0x623   : > { %v18613_v40 = vpop.xlane.xlu0 %18612  ;;  %v18658_v30 = vadd.f32 %v18646_v3, %v18645_v32  ;;  %v18643_v21 = vmul.f32 %v18631_v63, %v26053_v15  ;;  %v18644_v45 = vmul.f32 %v18632_v22, %v26059_v47 }
 0x624   : > { %v18636_v44 = vmul.f32 %v26099_v31, %v26099_v31  ;;  %v18637_v59 = vmul.f32 %v26101_v33, %v26101_v33  ;;  %v18617_v53 = vmul.f32 0.00390625, %v18613_v40  ;;  %v18638_v48 = vmul.f32 %v26103_v10, %v26103_v10 }
 0x625   : > { %v18659_v9 = vadd.f32 %v18658_v30, %v18647_v61  ;;  %v18654_v28 = vadd.f32 %v18643_v21, %v18642_v23 }
 0x626   : > { %v26115_v55 = vsub.f32 %v20805_v43, %v18617_v53  ;;  %v26117_v6 = vsub.f32 %v20806_v18, %v18617_v53  ;;  %v26119_v57 = vsub.f32 %v20796_v14, %v18617_v53  ;;  %v18648_v20 = vmul.f32 %v18636_v44, %v26051_v1 }
 0x627   : > { %18660 = vadd.xlane.f32.xlu0 %v18659_v9  ;;  %v18655_v46 = vadd.f32 %v18654_v28, %v18644_v45  ;;  %v18649_v12 = vmul.f32 %v18637_v59, %v26053_v15  ;;  %v18650_v18 = vmul.f32 %v18638_v48, %v26059_v47 }
 0x628   : > { %v18639_v8 = vmul.f32 %v26115_v55, %v26115_v55  ;;  %v18640_v54 = vmul.f32 %v26117_v6, %v26117_v6  ;;  %v18641_v43 = vmul.f32 %v26119_v57, %v26119_v57 }
 0x629   : > { %18656 = vadd.xlane.f32.xlu1 %v18655_v46  ;;  %v18662_v26 = vadd.f32 %v18649_v12, %v18648_v20 }
 0x62a   : > { %v18651_v13 = vmul.f32 %v18639_v8, %v26051_v1  ;;  %v18652_v19 = vmul.f32 %v18640_v54, %v26053_v15  ;;  %v18653_v60 = vmul.f32 %v18641_v43, %v26059_v47 }
 0x62b   : > { %v18663_v4 = vadd.f32 %v18662_v26, %v18650_v18 }
 0x62c   : > { %v18666_v41 = vadd.f32 %v18652_v19, %v18651_v13 }
 0x62d   : > { %18664 = vadd.xlane.f32.xlu1 %v18663_v4 }
 0x62e   : > { %v18667_v36 = vadd.f32 %v18666_v41, %v18653_v60 }
 0x630   : > { %18668 = vadd.xlane.f32.xlu0 %v18667_v36 }
 0x6b4   : > { %v18661_v35 = vpop.xlane.xlu0 %18660 }
 0x6b5   : > { %v18671_v14 = vmul.f32 0.00390625, %v18661_v35 }
 0x6b6   : > { %v18657_v49 = vpop.xlane.xlu1 %18656 }
 0x6b7   : > { %v18675_v39 = vadd.f32 1e-05, %v18671_v14  ;;  %v18670_v7 = vmul.f32 0.00390625, %v18657_v49 }
 0x6b9   : > { %22086 = vrsqrt.f32 %v18675_v39  ;;  %v18674_v58 = vadd.f32 1e-05, %v18670_v7 }
 0x6ba   : > { %v18665_v50 = vpop.xlane.xlu1 %18664 }
 0x6bb   : > { %22088 = vrsqrt.f32 %v18674_v58  ;;  %v18672_v1 = vmul.f32 0.00390625, %v18665_v50 }
 0x6bd   : > { %v18676_v16 = vadd.f32 1e-05, %v18672_v1  ;;  %v18669_v15 = vpop.xlane.xlu0 %18668 }
 0x6be   : > { %v18673_v62 = vmul.f32 0.00390625, %v18669_v15 }
 0x6bf   : > { %22090 = vrsqrt.f32 %v18676_v16 }
 0x6c0   : > { %v18677_v47 = vadd.f32 1e-05, %v18673_v62 }
 0x6c2   : > { %22092 = vrsqrt.f32 %v18677_v47 }
 0x6c3   : > { %v22087_v2 = vpop.eup %22086 }
 0x6c4   : > { %v18685_v5 = vmul.f32 %v22087_v2, %v26073_v17  ;;  %v18686_v42 = vmul.f32 %v22087_v2, %v26075_v24  ;;  %v18687_v25 = vmul.f32 %v22087_v2, %v26077_v0 }
 0x6c5   : > { %v22089_v34 = vpop.eup %22088 }
 0x6c6   : > { %v18697_v56 = vmax.f32 %v18685_v5, 0.0  ;;  %v18698_v29 = vmax.f32 %v18686_v42, 0.0  ;;  %v18699_v38 = vmax.f32 %v18687_v25, 0.0  ;;  %v18682_v37 = vmul.f32 %v22089_v34, %v26079_v52 }
 0x6c7   : > { %v18683_v63 = vmul.f32 %v22089_v34, %v26081_v51  ;;  %v18684_v11 = vmul.f32 %v22089_v34, %v26083_v27 }
 0x6c8   : > { %18709 = vst [vmem:[%s26140_s22 + $0x18] sm:$0xff] %v18697_v56  ;;  %18710 = vst [vmem:[%s26140_s22 + $0x20] sm:$0xff] %v18698_v29  ;;  %v18694_v17 = vmax.f32 %v18682_v37, 0.0 }
 0x6c9   : > { %18711 = vst [vmem:[%s26140_s22 + $0x28] sm:$0xff] %v18699_v38  ;;  %v22091_v24 = vpop.eup %22090  ;;  %v18695_v0 = vmax.f32 %v18683_v63, 0.0  ;;  %v18696_v52 = vmax.f32 %v18684_v11, 0.0 }
 0x6ca   : > { %18706 = vst [vmem:[%s26140_s22] sm:$0xff] %v18694_v17  ;;  %v18688_v51 = vmul.f32 %v22091_v24, %v26099_v31  ;;  %v18689_v27 = vmul.f32 %v22091_v24, %v26101_v33  ;;  %v18690_v22 = vmul.f32 %v22091_v24, %v26103_v10 }
 0x6cb   : > { %18707 = vst [vmem:[%s26140_s22 + $0x8] sm:$0xff] %v18695_v0  ;;  %18708 = vst [vmem:[%s26140_s22 + $0x10] sm:$0xff] %v18696_v52 }
 0x6cc   : > { %v22093_v32 = vpop.eup %22092  ;;  %v18700_v3 = vmax.f32 %v18688_v51, 0.0  ;;  %v18701_v23 = vmax.f32 %v18689_v27, 0.0  ;;  %v18702_v40 = vmax.f32 %v18690_v22, 0.0 }
 0x6cd   : > { %v18691_v61 = vmul.f32 %v22093_v32, %v26115_v55  ;;  %v18692_v31 = vmul.f32 %v22093_v32, %v26117_v6  ;;  %v18693_v33 = vmul.f32 %v22093_v32, %v26119_v57 }
 0x6ce   : > { %18712 = vst [vmem:[%s26140_s22 + $0x30] sm:$0xff] %v18700_v3  ;;  %18713 = vst [vmem:[%s26140_s22 + $0x38] sm:$0xff] %v18701_v23 }
 0x6cf   : > { %18714 = vst [vmem:[%s26140_s22 + $0x40] sm:$0xff] %v18702_v40  ;;  %v18703_v10 = vmax.f32 %v18691_v61, 0.0  ;;  %v18704_v30 = vmax.f32 %v18692_v31, 0.0  ;;  %v18705_v21 = vmax.f32 %v18693_v33, 0.0 }
 0x6d1   : > { %18715 = vst [vmem:[%s26140_s22 + $0x48] sm:$0xff] %v18703_v10  ;;  %18716 = vst [vmem:[%s26140_s22 + $0x50] sm:$0xff] %v18704_v30 }
 0x6d2   : > { %18717 = vst [vmem:[%s26140_s22 + $0x58] sm:$0xff] %v18705_v21 }
 0x6d3   : > { %22367 = shalt.err (!%p22364_p2)
}
 0x6d4   : > { %s22368_s5 = scalar_lea.hbm %s26162_s9, 1536  ;;  %s22372_s20 = scalar_lea.hbm %s26220_s3, 3072 }
 0x6d5   : > { %p22369_p0 = scmp.ne.s32.totalorder %s26162_s9, %s22368_s5  ;;  %p22373_p6 = scmp.lt.u32.totalorder %s26162_s9, %s26220_s3 }
 0x6d6   : > { %p22374_p7 = scmp.lt.u32.totalorder %s22372_s20, %s22368_s5  ;;  %p22376_p8 = scmp.lt.u32.totalorder %s22368_s5, %s26162_s9 }
 0x6d7   : > { %p22370_p4 = pnand %p22369_p0, %p26418_p12 }
 0x6d8   : > { %p22375_p11 = por %p22374_p7, %p22373_p6 }
 0x6d9   : > { %p22371_p13 = pneg %p22370_p4 }
 0x6da   : > { %p22377_p1 = por %p22376_p8, %p22375_p11 }
 0x6dc   : > { %p22378_p10 = pnand %p22377_p1, %p22371_p13 }
 0x6de   : > { %22381 = shalt.err (!%p22378_p10)
}
 0x6df   : > { %s22525_s24 = smov 384  }
 0x6e0   : > { %21774 = dma.vmem_to_hbm [thread:$0]  (%p26418_p12), %s26164_s30, 1536, %s26162_s9, %s18719_s11, %s22525_s24, %s22525_s24, %s26330_s19  }
 0x6e1 PF: > { %s18750_s15 = sand.u32 1, %s22420_s12   ;;  %p26419_p3 = scmp.ne.s32.totalorder %s26300_s23, 0 }
 0x6e2   : > { %p26420_p5 = scmp.ge.s32.totalorder %s22440_s17, 2  ;;  %s18751_s7 = scalar_lea.sflag [#allocation4], %s18750_s15 }
 0x6e4   : > { %p21788_p9 = pnand %p26420_p5, %p26419_p3 }
 0x6e6   : > { %22415 = dma.done.wait (!%p21788_p9), %s18751_s7, 1536  }
 0x6e7   : > { %22417 = vsyncadd (!%p21788_p9), %s18751_s7, 4294965760  ;;  %s20_s17 = sadd.s32 1, %s22440_s17   ;;  %s26421_s12 = smov %s22424_s13 }
 0x6e8   : > { %p17_p2 = scmp.ge.s32.totalorder %s20_s17, 4   ;;  %s26422_s13 = smov %s22428_s14 }
 0x6e9   : > { %s26423_s14 = smov %s22692_s4  ;;  %s26424_s15 = smov %s22436_s16 }
 0x6ea   : > { %s26425_s16 = smov %s26427_s18  ;;  %19 = sbr.rel (!%p17_p2) target bundleno = 7 (0x7), region = 166 }
 0x6f1   :  { %18756 = vsyncpa [#allocation3], 1 }
 0x6f2   :  { %18758 = vsyncpa [#allocation3 + $0x1], 1 }
 0x6f3   :  { %18759 = vsyncpa [#allocation6], 1 }
 0x6f4   :  { %18760 = vsyncpa [#allocation4], 1 }
 0x6f5   :  { %18762 = vsyncpa [#allocation4 + $0x1], 1 }

</bundles_post_ra>
